<compile_context>
chip_gen: v7x
topology: tpu7x:2x2x1
jax: 0.10.0
libtpu: 0.0.40
codegen_flags: <defaults>
</compile_context>

<pallas_src>
import functools

import jax
import jax.numpy as jnp
from jax.experimental import pallas as pl
from jax.experimental.pallas import tpu as pltpu

_BN_EPS = 1e-5

# (kind, cin, cout, k, stride, padding, activation) for all 10 layers.
_LAYER_CFG = [
    ("conv",     1,  16, 3, 2, 1, "relu"),      # L1
    ("conv",    16,  32, 3, 2, 1, "relu"),      # L2
    ("conv",    32,  64, 3, 2, 1, "relu"),      # L3
    ("conv",    64,  64, 3, 2, 1, "relu"),      # L4
    ("conv",    64, 128, 3, 2, 1, "relu"),      # L5
    ("conv",   128, 128, 3, 1, 1, "relu"),      # L6  (fused tail)
    ("conv",   128, 128, 3, 1, 1, "relu"),      # L7  (fused tail)
    ("deconv", 128, 256, 4, 2, 1, "relu"),      # L8  (fused tail)
    ("conv",   256, 512, 1, 1, 0, "relu"),      # L9  (fused tail)
    ("conv",   512,  15, 1, 1, 0, "sigmoid"),   # L10 (fused tail)
]

# lane-padded (stored) channel count of each head-layer output
_HEAD_STORED_COUT = [16, 128, 128, 128, 128]


# ----------------------------------------------------------------------------
# Generic fused kernel:  (patches @ folded_weights) + shift + activation
# ----------------------------------------------------------------------------
def _matmul_shift_act_kernel(a_ref, w_ref, s_ref, o_ref, *, activation):
    y = jnp.dot(a_ref[...], w_ref[...], preferred_element_type=jnp.float32)
    y = y + s_ref[...]                      # folded conv-bias + BatchNorm affine
    if activation == "relu":
        y = jnp.maximum(y, 0.0)
    elif activation == "sigmoid":
        y = jax.nn.sigmoid(y)
    o_ref[...] = y.astype(o_ref.dtype)


def _pick_tm(M):
    """Per-layer M-tile: big tiles for big M, exact tiles for the small tail."""
    if M >= 8192:
        return 1024
    if M >= 2048:
        return 512
    if M >= 512:
        return 256
    if M >= 128:
        return 64          # 2 grid steps -> both TensorCores on v7x
    return max(8, M)


def fused_matmul(a, w_mat, shift, activation, tm):
    """a: (M, K) bf16 patches, w_mat: (K, Cout) bf16, shift: (1, Cout) f32."""
    M, K = a.shape
    Cout = w_mat.shape[1]
    Mp = ((M + tm - 1) // tm) * tm
    if Mp != M:
        a = jnp.pad(a, ((0, Mp - M), (0, 0)))

    out = pl.pallas_call(
        functools.partial(_matmul_shift_act_kernel, activation=activation),
        out_shape=jax.ShapeDtypeStruct((Mp, Cout), jnp.bfloat16),
        grid=(Mp // tm,),
        in_specs=[
            pl.BlockSpec((tm, K), lambda i: (i, 0)),      # patch tile
            pl.BlockSpec((K, Cout), lambda i: (0, 0)),    # full folded weights
            pl.BlockSpec((1, Cout), lambda i: (0, 0)),    # folded bias+BN shift
        ],
        out_specs=pl.BlockSpec((tm, Cout), lambda i: (i, 0)),
        compiler_params=pltpu.CompilerParams(
            dimension_semantics=("parallel",)),
    )(a, w_mat, shift)
    return out[:M] if Mp != M else out


def conv2d_layer(x, layer):
    """x: (N, H, W, Cin_stored) bf16 -> (N, Ho, Wo, Cout_stored) bf16."""
    k, stride, padding = layer["k"], layer["stride"], layer["padding"]
    N, H, W, Cin = x.shape
    Cout = layer["w_mat"].shape[1]
    Ho = (H + 2 * padding - k) // stride + 1
    Wo = (W + 2 * padding - k) // stride + 1
    xp = jnp.pad(x, ((0, 0), (padding, padding), (padding, padding), (0, 0)))
    cols = []
    for dy in range(k):
        for dx in range(k):
            cols.append(xp[:, dy:dy + stride * (Ho - 1) + 1:stride,
                           dx:dx + stride * (Wo - 1) + 1:stride, :])
    patches = jnp.concatenate(cols, axis=-1)              # (N, Ho, Wo, k*k*Cin)
    a = patches.reshape(N * Ho * Wo, k * k * Cin)
    M = N * Ho * Wo
    y = fused_matmul(a, layer["w_mat"], layer["shift"], layer["activation"],
                     _pick_tm(M))
    return y.reshape(N, Ho, Wo, Cout)


# ----------------------------------------------------------------------------
# Fused tail kernel: L6..L10 entirely in VMEM (one image per grid step)
# ----------------------------------------------------------------------------
def _tail_kernel(x_ref, w6_ref, s6_ref, w7_ref, s7_ref, w8_ref, s8_ref,
                 w9_ref, s9_ref, w10_ref, s10_ref, out_ref, pad_ref):
    # x_ref: (1,4,4,128) bf16   pad_ref: (1,6,6,128) f32 scratch   out_ref: (64,128) f32
    H, W, C = 4, 4, 128
    M = H * W                                             # 16 rows per parity block

    # Zero the padded scratch once; only the interior is rewritten below, so the
    # 1-pixel zero border provides both conv padding and deconv boundary handling.
    pad_ref[...] = jnp.zeros(pad_ref.shape, pad_ref.dtype)

    def write_interior(val_f32):
        pad_ref[:, 1:1 + H, 1:1 + W, :] = val_f32.reshape(1, H, W, C)

    def conv3x3(w_ref, s_ref):
        cout = w_ref.shape[1]
        acc = jnp.zeros((M, cout), jnp.float32)
        for dy in range(3):
            for dx in range(3):
                a = pad_ref[:, dy:dy + H, dx:dx + W, :].reshape(M, C)
                a = a.astype(jnp.bfloat16)
                t = dy * 3 + dx
                acc = acc + jnp.dot(a, w_ref[t * C:(t + 1) * C, :],
                                    preferred_element_type=jnp.float32)
        return jnp.maximum(acc + s_ref[...], 0.0)

    # ---- L6: Conv2d(128,128,3,p=1) + BN + ReLU ------------------------------
    pad_ref[:, 1:1 + H, 1:1 + W, :] = x_ref[...].astype(jnp.float32)
    h = conv3x3(w6_ref, s6_ref)
    # ---- L7: Conv2d(128,128,3,p=1) + BN + ReLU ------------------------------
    write_interior(h)
    h = conv3x3(w7_ref, s7_ref)
    # ---- L8: ConvTranspose2d(128,256,4,s=2,p=1) + BN + ReLU ------------------
    # Parity decomposition: out[2r+py, 2c+px] = sum_{(ky,oy),(kx,ox)} x[r+oy, c+ox] @ W[ky,kx]
    write_interior(h)
    taps = {0: ((1, 0), (3, -1)), 1: ((0, 1), (2, 0))}    # parity -> ((kernel idx, input offset), ...)
    blocks = []
    for py in (0, 1):
        for px in (0, 1):
            acc = jnp.zeros((M, 256), jnp.float32)
            for ky, oy in taps[py]:
                for kx, ox in taps[px]:
                    a = pad_ref[:, 1 + oy:1 + oy + H, 1 + ox:1 + ox + W, :]
                    a = a.reshape(M, C).astype(jnp.bfloat16)
                    t = ky * 4 + kx
                    acc = acc + jnp.dot(a, w8_ref[t * C:(t + 1) * C, :],
                                        preferred_element_type=jnp.float32)
            blocks.append(jnp.maximum(acc + s8_ref[...], 0.0))
    h8 = jnp.concatenate(blocks, axis=0).astype(jnp.bfloat16)        # (64, 256)
    # ---- L9: 1x1 Conv 256->512 + BN + ReLU -----------------------------------
    h9 = jnp.maximum(
        jnp.dot(h8, w9_ref[...], preferred_element_type=jnp.float32) + s9_ref[...],
        0.0).astype(jnp.bfloat16)                                    # (64, 512)
    # ---- L10: 1x1 Conv 512->15 (lane-padded to 128) + BN + Sigmoid -----------
    y = jnp.dot(h9, w10_ref[...], preferred_element_type=jnp.float32) + s10_ref[...]
    out_ref[...] = jax.nn.sigmoid(y)


def tail_fused(x, tail):
    """x: (N, 4, 4, 128) bf16 -> (N, 15, 8, 8) f32 (NCHW)."""
    N = x.shape[0]
    out = pl.pallas_call(
        _tail_kernel,
        out_shape=jax.ShapeDtypeStruct((N * 64, 128), jnp.float32),
        grid=(N,),
        in_specs=[
            pl.BlockSpec((1, 4, 4, 128), lambda n: (n, 0, 0, 0)),
            pl.BlockSpec((1152, 128), lambda n: (0, 0)),
            pl.BlockSpec((1, 128), lambda n: (0, 0)),
            pl.BlockSpec((1152, 128), lambda n: (0, 0)),
            pl.BlockSpec((1, 128), lambda n: (0, 0)),
            pl.BlockSpec((2048, 256), lambda n: (0, 0)),
            pl.BlockSpec((1, 256), lambda n: (0, 0)),
            pl.BlockSpec((256, 512), lambda n: (0, 0)),
            pl.BlockSpec((1, 512), lambda n: (0, 0)),
            pl.BlockSpec((512, 128), lambda n: (0, 0)),
            pl.BlockSpec((1, 128), lambda n: (0, 0)),
        ],
        out_specs=pl.BlockSpec((64, 128), lambda n: (n, 0)),
        scratch_shapes=[pltpu.VMEM((1, 6, 6, 128), jnp.float32)],
        compiler_params=pltpu.CompilerParams(
            dimension_semantics=("parallel",)),
    )(x, tail["w6"], tail["s6"], tail["w7"], tail["s7"],
      tail["w8"], tail["s8"], tail["w9"], tail["s9"],
      tail["w10"], tail["s10"])

    # un-interleave parity blocks back into the 8x8 spatial grid (cheap XLA ops)
    y = out.reshape(N, 2, 2, 4, 4, 128)             # (n, py, px, r, c, co)
    y = jnp.transpose(y, (0, 3, 1, 4, 2, 5))        # (n, r, py, c, px, co)
    y = y.reshape(N, 8, 8, 128)[..., :15]           # drop lane padding (15 channels)
    return jnp.transpose(y, (0, 3, 1, 2)).astype(jnp.float32)        # NCHW


# ----------------------------------------------------------------------------
# Deterministic synthetic parameters (no checkpoint) + folding / prep
# ----------------------------------------------------------------------------
def _init_layer(key, kind, cin, cout, k):
    kw_, kb, kg, kbt, km, kv = jax.random.split(key, 6)
    fan_in = k * k * cin
    if kind == "conv":
        w = jax.random.normal(kw_, (k, k, cin, cout), jnp.float32) * (2.0 / fan_in) ** 0.5
    else:  # deconv, PyTorch layout (Cin, Cout, kh, kw)
        w = jax.random.normal(kw_, (cin, cout, k, k), jnp.float32) * (2.0 / fan_in) ** 0.5
    return dict(
        kind=kind, k=k, cin=cin, cout=cout, w=w,
        b=0.01 * jax.random.normal(kb, (cout,), jnp.float32),
        gamma=1.0 + 0.1 * jax.random.normal(kg, (cout,), jnp.float32),
        beta=0.1 * jax.random.normal(kbt, (cout,), jnp.float32),
        mean=0.1 * jax.random.normal(km, (cout,), jnp.float32),
        var=1.0 + 0.1 * jax.random.uniform(kv, (cout,), jnp.float32),
    )


def init_raw_params(key):
    raw = []
    for (kind, cin, cout, k, _s, _p, _act) in _LAYER_CFG:
        key, sub = jax.random.split(key)
        raw.append(_init_layer(sub, kind, cin, cout, k))
    return raw


def _fold_scale_shift(raw):
    scale = raw["gamma"] / jnp.sqrt(raw["var"] + _BN_EPS)
    shift = raw["b"] * scale + raw["beta"] - raw["mean"] * scale
    return scale, shift


def prepare_params(raw_layers):
    """Fold bias+BN into weights, lane-pad channels, cast matmul operands to bf16."""
    head = []
    cin_stored = 1
    for idx in range(5):
        kind, cin, cout, k, s, p, act = _LAYER_CFG[idx]
        raw = raw_layers[idx]
        scale, shift = _fold_scale_shift(raw)
        w = raw["w"] * scale[None, None, None, :]                    # (k,k,cin,cout)
        cs = _HEAD_STORED_COUT[idx]
        w = jnp.pad(w, ((0, 0), (0, 0), (0, cin_stored - cin), (0, cs - cout)))
        shift = jnp.pad(shift, (0, cs - cout))
        head.append(dict(
            w_mat=w.reshape(k * k * cin_stored, cs).astype(jnp.bfloat16),
            shift=shift.reshape(1, cs).astype(jnp.float32),
            k=k, stride=s, padding=p, activation=act,
        ))
        cin_stored = cs

    def fold_conv_mat(raw, kk, cin, cout, pad_cout=None):
        scale, shift = _fold_scale_shift(raw)
        w = raw["w"] * scale[None, None, None, :]
        if pad_cout is not None:
            w = jnp.pad(w, ((0, 0), (0, 0), (0, 0), (0, pad_cout - cout)))
            shift = jnp.pad(shift, (0, pad_cout - cout))
            cout = pad_cout
        return (w.reshape(kk * kk * cin, cout).astype(jnp.bfloat16),
                shift.reshape(1, cout).astype(jnp.float32))

    w6, s6 = fold_conv_mat(raw_layers[5], 3, 128, 128)
    w7, s7 = fold_conv_mat(raw_layers[6], 3, 128, 128)
    # deconv: PyTorch (Cin,Cout,kh,kw) -> (kh,kw,Cin,Cout), fold BN over Cout
    raw8 = raw_layers[7]
    scale8, s8 = _fold_scale_shift(raw8)
    w8 = jnp.transpose(raw8["w"], (2, 3, 0, 1)) * scale8[None, None, None, :]
    w9, s9 = fold_conv_mat(raw_layers[8], 1, 256, 512)
    w10, s10 = fold_conv_mat(raw_layers[9], 1, 512, 15, pad_cout=128)

    tail = dict(
        w6=w6, s6=s6, w7=w7, s7=s7,
        w8=w8.reshape(16 * 128, 256).astype(jnp.bfloat16),
        s8=s8.reshape(1, 256).astype(jnp.float32),
        w9=w9, s9=s9, w10=w10, s10=s10,
    )
    return dict(head=head, tail=tail)


# ----------------------------------------------------------------------------
# Forward pass (accepts NCHW like the PyTorch module, returns NCHW)
# ----------------------------------------------------------------------------
def forward(prepared, x_nchw):
    x = jnp.transpose(x_nchw, (0, 2, 3, 1)).astype(jnp.bfloat16)     # NCHW -> NHWC
    for layer in prepared["head"]:                                   # L1..L5
        x = conv2d_layer(x, layer)
    return tail_fused(x, prepared["tail"])                           # L6..L10, NCHW out


if __name__ == "__main__":
    key = jax.random.PRNGKey(0)
    kparam, kdata = jax.random.split(key)
    prepared = prepare_params(init_raw_params(kparam))

    # grayscale input, NCHW: (batch=2, channels=1, 128, 128)
    x = jax.random.normal(kdata, (2, 1, 128, 128), jnp.float32)

    fwd = jax.jit(functools.partial(forward, prepared))
    y = jax.block_until_ready(fwd(x))

    assert y.shape == (2, 15, 8, 8), y.shape
    assert bool(jnp.all(jnp.isfinite(y)))
    assert bool(jnp.all((y >= 0.0) & (y <= 1.0)))   # sigmoid output range
    print("KERNEL_OK")
</pallas_src>

<mosaic_0001>
module attributes {stable_mosaic.version = 11 : i64} {
  func.func @_matmul_shift_act_kernel(%arg0: i32, %arg1: memref<1024x9xbf16, #tpu.memory_space<vmem>>, %arg2: memref<9x16xbf16, #tpu.memory_space<vmem>>, %arg3: memref<1x16xf32, #tpu.memory_space<vmem>>, %arg4: memref<1024x16xbf16, #tpu.memory_space<vmem>>) attributes {dimension_semantics = [#tpu.dimension_semantics<parallel>], iteration_bounds = array<i64: 8>, scalar_prefetch = 0 : i64, scratch_operands = 0 : i64, tpu.core_type = #tpu.core_type<tc>, window_params = [{transform_indices = @transform_0, window_bounds = array<i64: 1024, 9>}, {pipeline_mode = #tpu.pipeline_mode<synchronous>, transform_indices = @transform_1, window_bounds = array<i64: 9, 16>}, {pipeline_mode = #tpu.pipeline_mode<synchronous>, transform_indices = @transform_2, window_bounds = array<i64: 1, 16>}, {transform_indices = @transform_3, window_bounds = array<i64: 1024, 16>}]} {
    %c0 = arith.constant 0 : index
    %c0_0 = arith.constant 0 : index
    %0 = vector.load %arg1[%c0, %c0_0] : memref<1024x9xbf16, #tpu.memory_space<vmem>>, vector<1024x9xbf16>
    %c0_1 = arith.constant 0 : index
    %c0_2 = arith.constant 0 : index
    %1 = vector.load %arg2[%c0_1, %c0_2] : memref<9x16xbf16, #tpu.memory_space<vmem>>, vector<9x16xbf16>
    %cst = arith.constant dense<0.000000e+00> : vector<1024x16xf32>
    %2 = tpu.matmul %0, %1, %cst {dimension_numbers = #tpu.dot_dimension_numbers<[1], [0], [0], [1], [0, 0, 1, 1], [], []>} : vector<1024x9xbf16>, vector<9x16xbf16>, vector<1024x16xf32> -> vector<1024x16xf32>
    %c0_3 = arith.constant 0 : index
    %c0_4 = arith.constant 0 : index
    %3 = vector.load %arg3[%c0_3, %c0_4] : memref<1x16xf32, #tpu.memory_space<vmem>>, vector<1x16xf32>
    %4 = vector.broadcast %3 : vector<1x16xf32> to vector<1024x16xf32>
    %5 = arith.addf %2, %4 : vector<1024x16xf32>
    %cst_5 = arith.constant 0.000000e+00 : f32
    %6 = vector.broadcast %cst_5 : f32 to vector<1024x16xf32>
    %7 = arith.maximumf %5, %6 : vector<1024x16xf32>
    %8 = arith.truncf %7 : vector<1024x16xf32> to vector<1024x16xbf16>
    %c0_6 = arith.constant 0 : index
    %c0_7 = arith.constant 0 : index
    %9 = vector.load %arg4[%c0_6, %c0_7] : memref<1024x16xbf16, #tpu.memory_space<vmem>>, vector<1024x16xbf16>
    tpu.vector_store %arg4[%c0_6, %c0_7], %8 {strides = array<i32>} : memref<1024x16xbf16, #tpu.memory_space<vmem>>, vector<1024x16xbf16>,
    return
  }
  func.func @transform_0(%arg0: i32) -> (i32, i32) {
    %c0_i32 = arith.constant 0 : i32
    %c0_i32_0 = arith.constant 0 : i32
    return %arg0, %c0_i32 : i32, i32
  }
  func.func @transform_1(%arg0: i32) -> (i32, i32) {
    %c0_i32 = arith.constant 0 : i32
    %c0_i32_0 = arith.constant 0 : i32
    %c0_i32_1 = arith.constant 0 : i32
    return %c0_i32, %c0_i32_0 : i32, i32
  }
  func.func @transform_2(%arg0: i32) -> (i32, i32) {
    %c0_i32 = arith.constant 0 : i32
    %c0_i32_0 = arith.constant 0 : i32
    %c0_i32_1 = arith.constant 0 : i32
    return %c0_i32, %c0_i32_0 : i32, i32
  }
  func.func @transform_3(%arg0: i32) -> (i32, i32) {
    %c0_i32 = arith.constant 0 : i32
    %c0_i32_0 = arith.constant 0 : i32
    return %arg0, %c0_i32 : i32, i32
  }
}

module attributes {stable_mosaic.version = 11 : i64} {
  func.func @_matmul_shift_act_kernel(%arg0: i32, %arg1: memref<512x144xbf16, #tpu.memory_space<vmem>>, %arg2: memref<144x128xbf16, #tpu.memory_space<vmem>>, %arg3: memref<1x128xf32, #tpu.memory_space<vmem>>, %arg4: memref<512x128xbf16, #tpu.memory_space<vmem>>) attributes {dimension_semantics = [#tpu.dimension_semantics<parallel>], iteration_bounds = array<i64: 4>, scalar_prefetch = 0 : i64, scratch_operands = 0 : i64, tpu.core_type = #tpu.core_type<tc>, window_params = [{transform_indices = @transform_0, window_bounds = array<i64: 512, 144>}, {pipeline_mode = #tpu.pipeline_mode<synchronous>, transform_indices = @transform_1, window_bounds = array<i64: 144, 128>}, {pipeline_mode = #tpu.pipeline_mode<synchronous>, transform_indices = @transform_2, window_bounds = array<i64: 1, 128>}, {transform_indices = @transform_3, window_bounds = array<i64: 512, 128>}]} {
    %c0 = arith.constant 0 : index
    %c0_0 = arith.constant 0 : index
    %0 = vector.load %arg1[%c0, %c0_0] : memref<512x144xbf16, #tpu.memory_space<vmem>>, vector<512x144xbf16>
    %c0_1 = arith.constant 0 : index
    %c0_2 = arith.constant 0 : index
    %1 = vector.load %arg2[%c0_1, %c0_2] : memref<144x128xbf16, #tpu.memory_space<vmem>>, vector<144x128xbf16>
    %cst = arith.constant dense<0.000000e+00> : vector<512x128xf32>
    %2 = tpu.matmul %0, %1, %cst {dimension_numbers = #tpu.dot_dimension_numbers<[1], [0], [0], [1], [0, 0, 1, 1], [], []>} : vector<512x144xbf16>, vector<144x128xbf16>, vector<512x128xf32> -> vector<512x128xf32>
    %c0_3 = arith.constant 0 : index
    %c0_4 = arith.constant 0 : index
    %3 = vector.load %arg3[%c0_3, %c0_4] : memref<1x128xf32, #tpu.memory_space<vmem>>, vector<1x128xf32>
    %4 = vector.broadcast %3 : vector<1x128xf32> to vector<512x128xf32>
    %5 = arith.addf %2, %4 : vector<512x128xf32>
    %cst_5 = arith.constant 0.000000e+00 : f32
    %6 = vector.broadcast %cst_5 : f32 to vector<512x128xf32>
    %7 = arith.maximumf %5, %6 : vector<512x128xf32>
    %8 = arith.truncf %7 : vector<512x128xf32> to vector<512x128xbf16>
    %c0_6 = arith.constant 0 : index
    %c0_7 = arith.constant 0 : index
    %9 = vector.load %arg4[%c0_6, %c0_7] : memref<512x128xbf16, #tpu.memory_space<vmem>>, vector<512x128xbf16>
    tpu.vector_store %arg4[%c0_6, %c0_7], %8 {strides = array<i32>} : memref<512x128xbf16, #tpu.memory_space<vmem>>, vector<512x128xbf16>,
    return
  }
  func.func @transform_0(%arg0: i32) -> (i32, i32) {
    %c0_i32 = arith.constant 0 : i32
    %c0_i32_0 = arith.constant 0 : i32
    return %arg0, %c0_i32 : i32, i32
  }
  func.func @transform_1(%arg0: i32) -> (i32, i32) {
    %c0_i32 = arith.constant 0 : i32
    %c0_i32_0 = arith.constant 0 : i32
    %c0_i32_1 = arith.constant 0 : i32
    return %c0_i32, %c0_i32_0 : i32, i32
  }
  func.func @transform_2(%arg0: i32) -> (i32, i32) {
    %c0_i32 = arith.constant 0 : i32
    %c0_i32_0 = arith.constant 0 : i32
    %c0_i32_1 = arith.constant 0 : i32
    return %c0_i32, %c0_i32_0 : i32, i32
  }
  func.func @transform_3(%arg0: i32) -> (i32, i32) {
    %c0_i32 = arith.constant 0 : i32
    %c0_i32_0 = arith.constant 0 : i32
    return %arg0, %c0_i32 : i32, i32
  }
}

module attributes {stable_mosaic.version = 11 : i64} {
  func.func @_matmul_shift_act_kernel(%arg0: i32, %arg1: memref<256x1152xbf16, #tpu.memory_space<vmem>>, %arg2: memref<1152x128xbf16, #tpu.memory_space<vmem>>, %arg3: memref<1x128xf32, #tpu.memory_space<vmem>>, %arg4: memref<256x128xbf16, #tpu.memory_space<vmem>>) attributes {dimension_semantics = [#tpu.dimension_semantics<parallel>], iteration_bounds = array<i64: 2>, scalar_prefetch = 0 : i64, scratch_operands = 0 : i64, tpu.core_type = #tpu.core_type<tc>, window_params = [{transform_indices = @transform_0, window_bounds = array<i64: 256, 1152>}, {pipeline_mode = #tpu.pipeline_mode<synchronous>, transform_indices = @transform_1, window_bounds = array<i64: 1152, 128>}, {pipeline_mode = #tpu.pipeline_mode<synchronous>, transform_indices = @transform_2, window_bounds = array<i64: 1, 128>}, {transform_indices = @transform_3, window_bounds = array<i64: 256, 128>}]} {
    %c0 = arith.constant 0 : index
    %c0_0 = arith.constant 0 : index
    %0 = vector.load %arg1[%c0, %c0_0] : memref<256x1152xbf16, #tpu.memory_space<vmem>>, vector<256x1152xbf16>
    %c0_1 = arith.constant 0 : index
    %c0_2 = arith.constant 0 : index
    %1 = vector.load %arg2[%c0_1, %c0_2] : memref<1152x128xbf16, #tpu.memory_space<vmem>>, vector<1152x128xbf16>
    %cst = arith.constant dense<0.000000e+00> : vector<256x128xf32>
    %2 = tpu.matmul %0, %1, %cst {dimension_numbers = #tpu.dot_dimension_numbers<[1], [0], [0], [1], [0, 0, 1, 1], [], []>} : vector<256x1152xbf16>, vector<1152x128xbf16>, vector<256x128xf32> -> vector<256x128xf32>
    %c0_3 = arith.constant 0 : index
    %c0_4 = arith.constant 0 : index
    %3 = vector.load %arg3[%c0_3, %c0_4] : memref<1x128xf32, #tpu.memory_space<vmem>>, vector<1x128xf32>
    %4 = vector.broadcast %3 : vector<1x128xf32> to vector<256x128xf32>
    %5 = arith.addf %2, %4 : vector<256x128xf32>
    %cst_5 = arith.constant 0.000000e+00 : f32
    %6 = vector.broadcast %cst_5 : f32 to vector<256x128xf32>
    %7 = arith.maximumf %5, %6 : vector<256x128xf32>
    %8 = arith.truncf %7 : vector<256x128xf32> to vector<256x128xbf16>
    %c0_6 = arith.constant 0 : index
    %c0_7 = arith.constant 0 : index
    %9 = vector.load %arg4[%c0_6, %c0_7] : memref<256x128xbf16, #tpu.memory_space<vmem>>, vector<256x128xbf16>
    tpu.vector_store %arg4[%c0_6, %c0_7], %8 {strides = array<i32>} : memref<256x128xbf16, #tpu.memory_space<vmem>>, vector<256x128xbf16>,
    return
  }
  func.func @transform_0(%arg0: i32) -> (i32, i32) {
    %c0_i32 = arith.constant 0 : i32
    %c0_i32_0 = arith.constant 0 : i32
    return %arg0, %c0_i32 : i32, i32
  }
  func.func @transform_1(%arg0: i32) -> (i32, i32) {
    %c0_i32 = arith.constant 0 : i32
    %c0_i32_0 = arith.constant 0 : i32
    %c0_i32_1 = arith.constant 0 : i32
    return %c0_i32, %c0_i32_0 : i32, i32
  }
  func.func @transform_2(%arg0: i32) -> (i32, i32) {
    %c0_i32 = arith.constant 0 : i32
    %c0_i32_0 = arith.constant 0 : i32
    %c0_i32_1 = arith.constant 0 : i32
    return %c0_i32, %c0_i32_0 : i32, i32
  }
  func.func @transform_3(%arg0: i32) -> (i32, i32) {
    %c0_i32 = arith.constant 0 : i32
    %c0_i32_0 = arith.constant 0 : i32
    return %arg0, %c0_i32 : i32, i32
  }
}

module attributes {stable_mosaic.version = 11 : i64} {
  func.func @_matmul_shift_act_kernel(%arg0: i32, %arg1: memref<64x1152xbf16, #tpu.memory_space<vmem>>, %arg2: memref<1152x128xbf16, #tpu.memory_space<vmem>>, %arg3: memref<1x128xf32, #tpu.memory_space<vmem>>, %arg4: memref<64x128xbf16, #tpu.memory_space<vmem>>) attributes {dimension_semantics = [#tpu.dimension_semantics<parallel>], iteration_bounds = array<i64: 2>, scalar_prefetch = 0 : i64, scratch_operands = 0 : i64, tpu.core_type = #tpu.core_type<tc>, window_params = [{transform_indices = @transform_0, window_bounds = array<i64: 64, 1152>}, {pipeline_mode = #tpu.pipeline_mode<synchronous>, transform_indices = @transform_1, window_bounds = array<i64: 1152, 128>}, {pipeline_mode = #tpu.pipeline_mode<synchronous>, transform_indices = @transform_2, window_bounds = array<i64: 1, 128>}, {transform_indices = @transform_3, window_bounds = array<i64: 64, 128>}]} {
    %c0 = arith.constant 0 : index
    %c0_0 = arith.constant 0 : index
    %0 = vector.load %arg1[%c0, %c0_0] : memref<64x1152xbf16, #tpu.memory_space<vmem>>, vector<64x1152xbf16>
    %c0_1 = arith.constant 0 : index
    %c0_2 = arith.constant 0 : index
    %1 = vector.load %arg2[%c0_1, %c0_2] : memref<1152x128xbf16, #tpu.memory_space<vmem>>, vector<1152x128xbf16>
    %cst = arith.constant dense<0.000000e+00> : vector<64x128xf32>
    %2 = tpu.matmul %0, %1, %cst {dimension_numbers = #tpu.dot_dimension_numbers<[1], [0], [0], [1], [0, 0, 1, 1], [], []>} : vector<64x1152xbf16>, vector<1152x128xbf16>, vector<64x128xf32> -> vector<64x128xf32>
    %c0_3 = arith.constant 0 : index
    %c0_4 = arith.constant 0 : index
    %3 = vector.load %arg3[%c0_3, %c0_4] : memref<1x128xf32, #tpu.memory_space<vmem>>, vector<1x128xf32>
    %4 = vector.broadcast %3 : vector<1x128xf32> to vector<64x128xf32>
    %5 = arith.addf %2, %4 : vector<64x128xf32>
    %cst_5 = arith.constant 0.000000e+00 : f32
    %6 = vector.broadcast %cst_5 : f32 to vector<64x128xf32>
    %7 = arith.maximumf %5, %6 : vector<64x128xf32>
    %8 = arith.truncf %7 : vector<64x128xf32> to vector<64x128xbf16>
    %c0_6 = arith.constant 0 : index
    %c0_7 = arith.constant 0 : index
    %9 = vector.load %arg4[%c0_6, %c0_7] : memref<64x128xbf16, #tpu.memory_space<vmem>>, vector<64x128xbf16>
    tpu.vector_store %arg4[%c0_6, %c0_7], %8 {strides = array<i32>} : memref<64x128xbf16, #tpu.memory_space<vmem>>, vector<64x128xbf16>,
    return
  }
  func.func @transform_0(%arg0: i32) -> (i32, i32) {
    %c0_i32 = arith.constant 0 : i32
    %c0_i32_0 = arith.constant 0 : i32
    return %arg0, %c0_i32 : i32, i32
  }
  func.func @transform_1(%arg0: i32) -> (i32, i32) {
    %c0_i32 = arith.constant 0 : i32
    %c0_i32_0 = arith.constant 0 : i32
    %c0_i32_1 = arith.constant 0 : i32
    return %c0_i32, %c0_i32_0 : i32, i32
  }
  func.func @transform_2(%arg0: i32) -> (i32, i32) {
    %c0_i32 = arith.constant 0 : i32
    %c0_i32_0 = arith.constant 0 : i32
    %c0_i32_1 = arith.constant 0 : i32
    return %c0_i32, %c0_i32_0 : i32, i32
  }
  func.func @transform_3(%arg0: i32) -> (i32, i32) {
    %c0_i32 = arith.constant 0 : i32
    %c0_i32_0 = arith.constant 0 : i32
    return %arg0, %c0_i32 : i32, i32
  }
}

module attributes {stable_mosaic.version = 11 : i64} {
  func.func @_matmul_shift_act_kernel(%arg0: i32, %arg1: memref<32x1152xbf16, #tpu.memory_space<vmem>>, %arg2: memref<1152x128xbf16, #tpu.memory_space<vmem>>, %arg3: memref<1x128xf32, #tpu.memory_space<vmem>>, %arg4: memref<32x128xbf16, #tpu.memory_space<vmem>>) attributes {dimension_semantics = [#tpu.dimension_semantics<parallel>], iteration_bounds = array<i64: 1>, scalar_prefetch = 0 : i64, scratch_operands = 0 : i64, tpu.core_type = #tpu.core_type<tc>, window_params = [{transform_indices = @transform_0, window_bounds = array<i64: 32, 1152>}, {pipeline_mode = #tpu.pipeline_mode<synchronous>, transform_indices = @transform_1, window_bounds = array<i64: 1152, 128>}, {pipeline_mode = #tpu.pipeline_mode<synchronous>, transform_indices = @transform_2, window_bounds = array<i64: 1, 128>}, {transform_indices = @transform_3, window_bounds = array<i64: 32, 128>}]} {
    %c0 = arith.constant 0 : index
    %c0_0 = arith.constant 0 : index
    %0 = vector.load %arg1[%c0, %c0_0] : memref<32x1152xbf16, #tpu.memory_space<vmem>>, vector<32x1152xbf16>
    %c0_1 = arith.constant 0 : index
    %c0_2 = arith.constant 0 : index
    %1 = vector.load %arg2[%c0_1, %c0_2] : memref<1152x128xbf16, #tpu.memory_space<vmem>>, vector<1152x128xbf16>
    %cst = arith.constant dense<0.000000e+00> : vector<32x128xf32>
    %2 = tpu.matmul %0, %1, %cst {dimension_numbers = #tpu.dot_dimension_numbers<[1], [0], [0], [1], [0, 0, 1, 1], [], []>} : vector<32x1152xbf16>, vector<1152x128xbf16>, vector<32x128xf32> -> vector<32x128xf32>
    %c0_3 = arith.constant 0 : index
    %c0_4 = arith.constant 0 : index
    %3 = vector.load %arg3[%c0_3, %c0_4] : memref<1x128xf32, #tpu.memory_space<vmem>>, vector<1x128xf32>
    %4 = vector.broadcast %3 : vector<1x128xf32> to vector<32x128xf32>
    %5 = arith.addf %2, %4 : vector<32x128xf32>
    %cst_5 = arith.constant 0.000000e+00 : f32
    %6 = vector.broadcast %cst_5 : f32 to vector<32x128xf32>
    %7 = arith.maximumf %5, %6 : vector<32x128xf32>
    %8 = arith.truncf %7 : vector<32x128xf32> to vector<32x128xbf16>
    %c0_6 = arith.constant 0 : index
    %c0_7 = arith.constant 0 : index
    %9 = vector.load %arg4[%c0_6, %c0_7] : memref<32x128xbf16, #tpu.memory_space<vmem>>, vector<32x128xbf16>
    tpu.vector_store %arg4[%c0_6, %c0_7], %8 {strides = array<i32>} : memref<32x128xbf16, #tpu.memory_space<vmem>>, vector<32x128xbf16>,
    return
  }
  func.func @transform_0(%arg0: i32) -> (i32, i32) {
    %c0_i32 = arith.constant 0 : i32
    %c0_i32_0 = arith.constant 0 : i32
    return %arg0, %c0_i32 : i32, i32
  }
  func.func @transform_1(%arg0: i32) -> (i32, i32) {
    %c0_i32 = arith.constant 0 : i32
    %c0_i32_0 = arith.constant 0 : i32
    %c0_i32_1 = arith.constant 0 : i32
    return %c0_i32, %c0_i32_0 : i32, i32
  }
  func.func @transform_2(%arg0: i32) -> (i32, i32) {
    %c0_i32 = arith.constant 0 : i32
    %c0_i32_0 = arith.constant 0 : i32
    %c0_i32_1 = arith.constant 0 : i32
    return %c0_i32, %c0_i32_0 : i32, i32
  }
  func.func @transform_3(%arg0: i32) -> (i32, i32) {
    %c0_i32 = arith.constant 0 : i32
    %c0_i32_0 = arith.constant 0 : i32
    return %arg0, %c0_i32 : i32, i32
  }
}

module attributes {stable_mosaic.version = 11 : i64} {
  func.func @_tail_kernel(%arg0: i32, %arg1: memref<1x4x4x128xbf16, #tpu.memory_space<vmem>>, %arg2: memref<1152x128xbf16, #tpu.memory_space<vmem>>, %arg3: memref<1x128xf32, #tpu.memory_space<vmem>>, %arg4: memref<1152x128xbf16, #tpu.memory_space<vmem>>, %arg5: memref<1x128xf32, #tpu.memory_space<vmem>>, %arg6: memref<2048x256xbf16, #tpu.memory_space<vmem>>, %arg7: memref<1x256xf32, #tpu.memory_space<vmem>>, %arg8: memref<256x512xbf16, #tpu.memory_space<vmem>>, %arg9: memref<1x512xf32, #tpu.memory_space<vmem>>, %arg10: memref<512x128xbf16, #tpu.memory_space<vmem>>, %arg11: memref<1x128xf32, #tpu.memory_space<vmem>>, %arg12: memref<64x128xf32, #tpu.memory_space<vmem>>, %arg13: memref<1x6x6x128xf32, #tpu.memory_space<vmem>>) attributes {dimension_semantics = [#tpu.dimension_semantics<parallel>], iteration_bounds = array<i64: 2>, scalar_prefetch = 0 : i64, scratch_operands = 1 : i64, tpu.core_type = #tpu.core_type<tc>, window_params = [{transform_indices = @transform_0, window_bounds = array<i64: 1, 4, 4, 128>}, {pipeline_mode = #tpu.pipeline_mode<synchronous>, transform_indices = @transform_1, window_bounds = array<i64: 1152, 128>}, {pipeline_mode = #tpu.pipeline_mode<synchronous>, transform_indices = @transform_2, window_bounds = array<i64: 1, 128>}, {pipeline_mode = #tpu.pipeline_mode<synchronous>, transform_indices = @transform_3, window_bounds = array<i64: 1152, 128>}, {pipeline_mode = #tpu.pipeline_mode<synchronous>, transform_indices = @transform_4, window_bounds = array<i64: 1, 128>}, {pipeline_mode = #tpu.pipeline_mode<synchronous>, transform_indices = @transform_5, window_bounds = array<i64: 2048, 256>}, {pipeline_mode = #tpu.pipeline_mode<synchronous>, transform_indices = @transform_6, window_bounds = array<i64: 1, 256>}, {pipeline_mode = #tpu.pipeline_mode<synchronous>, transform_indices = @transform_7, window_bounds = array<i64: 256, 512>}, {pipeline_mode = #tpu.pipeline_mode<synchronous>, transform_indices = @transform_8, window_bounds = array<i64: 1, 512>}, {pipeline_mode = #tpu.pipeline_mode<synchronous>, transform_indices = @transform_9, window_bounds = array<i64: 512, 128>}, {pipeline_mode = #tpu.pipeline_mode<synchronous>, transform_indices = @transform_10, window_bounds = array<i64: 1, 128>}, {transform_indices = @transform_11, window_bounds = array<i64: 64, 128>}]} {
    %cst = arith.constant 0.000000e+00 : f32
    %0 = vector.broadcast %cst : f32 to vector<1x6x6x128xf32>
    %c0 = arith.constant 0 : index
    %c0_0 = arith.constant 0 : index
    %c0_1 = arith.constant 0 : index
    %c0_2 = arith.constant 0 : index
    %1 = vector.load %arg13[%c0, %c0_0, %c0_1, %c0_2] : memref<1x6x6x128xf32, #tpu.memory_space<vmem>>, vector<1x6x6x128xf32>
    tpu.vector_store %arg13[%c0, %c0_0, %c0_1, %c0_2], %0 {strides = array<i32>} : memref<1x6x6x128xf32, #tpu.memory_space<vmem>>, vector<1x6x6x128xf32>,
    %c0_3 = arith.constant 0 : index
    %c0_4 = arith.constant 0 : index
    %c0_5 = arith.constant 0 : index
    %c0_6 = arith.constant 0 : index
    %2 = vector.load %arg1[%c0_3, %c0_4, %c0_5, %c0_6] : memref<1x4x4x128xbf16, #tpu.memory_space<vmem>>, vector<1x4x4x128xbf16>
    %3 = arith.extf %2 : vector<1x4x4x128xbf16> to vector<1x4x4x128xf32>
    %c0_7 = arith.constant 0 : index
    %c1 = arith.constant 1 : index
    %c1_8 = arith.constant 1 : index
    %c0_9 = arith.constant 0 : index
    %4 = vector.load %arg13[%c0_7, %c1, %c1_8, %c0_9] : memref<1x6x6x128xf32, #tpu.memory_space<vmem>>, vector<1x4x4x128xf32>
    tpu.vector_store %arg13[%c0_7, %c1, %c1_8, %c0_9], %3 {strides = array<i32>} : memref<1x6x6x128xf32, #tpu.memory_space<vmem>>, vector<1x4x4x128xf32>,
    %cst_10 = arith.constant 0.000000e+00 : f32
    %5 = vector.broadcast %cst_10 : f32 to vector<16x128xf32>
    %c0_11 = arith.constant 0 : index
    %c0_12 = arith.constant 0 : index
    %c0_13 = arith.constant 0 : index
    %c0_14 = arith.constant 0 : index
    %6 = vector.load %arg13[%c0_11, %c0_12, %c0_13, %c0_14] : memref<1x6x6x128xf32, #tpu.memory_space<vmem>>, vector<1x4x4x128xf32>
    %7 = vector.shape_cast %6 : vector<1x4x4x128xf32> to vector<16x128xf32>
    %8 = arith.truncf %7 : vector<16x128xf32> to vector<16x128xbf16>
    %c0_15 = arith.constant 0 : index
    %c0_16 = arith.constant 0 : index
    %9 = vector.load %arg2[%c0_15, %c0_16] : memref<1152x128xbf16, #tpu.memory_space<vmem>>, vector<128x128xbf16>
    %cst_17 = arith.constant dense<0.000000e+00> : vector<16x128xf32>
    %10 = tpu.matmul %8, %9, %cst_17 {dimension_numbers = #tpu.dot_dimension_numbers<[1], [0], [0], [1], [0, 0, 1, 1], [], []>} : vector<16x128xbf16>, vector<128x128xbf16>, vector<16x128xf32> -> vector<16x128xf32>
    %11 = arith.addf %5, %10 : vector<16x128xf32>
    %c0_18 = arith.constant 0 : index
    %c0_19 = arith.constant 0 : index
    %c1_20 = arith.constant 1 : index
    %c0_21 = arith.constant 0 : index
    %12 = vector.load %arg13[%c0_18, %c0_19, %c1_20, %c0_21] : memref<1x6x6x128xf32, #tpu.memory_space<vmem>>, vector<1x4x4x128xf32>
    %13 = vector.shape_cast %12 : vector<1x4x4x128xf32> to vector<16x128xf32>
    %14 = arith.truncf %13 : vector<16x128xf32> to vector<16x128xbf16>
    %c128 = arith.constant 128 : index
    %c0_22 = arith.constant 0 : index
    %15 = vector.load %arg2[%c128, %c0_22] : memref<1152x128xbf16, #tpu.memory_space<vmem>>, vector<128x128xbf16>
    %cst_23 = arith.constant dense<0.000000e+00> : vector<16x128xf32>
    %16 = tpu.matmul %14, %15, %cst_23 {dimension_numbers = #tpu.dot_dimension_numbers<[1], [0], [0], [1], [0, 0, 1, 1], [], []>} : vector<16x128xbf16>, vector<128x128xbf16>, vector<16x128xf32> -> vector<16x128xf32>
    %17 = arith.addf %11, %16 : vector<16x128xf32>
    %c0_24 = arith.constant 0 : index
    %c0_25 = arith.constant 0 : index
    %c2 = arith.constant 2 : index
    %c0_26 = arith.constant 0 : index
    %18 = vector.load %arg13[%c0_24, %c0_25, %c2, %c0_26] : memref<1x6x6x128xf32, #tpu.memory_space<vmem>>, vector<1x4x4x128xf32>
    %19 = vector.shape_cast %18 : vector<1x4x4x128xf32> to vector<16x128xf32>
    %20 = arith.truncf %19 : vector<16x128xf32> to vector<16x128xbf16>
    %c256 = arith.constant 256 : index
    %c0_27 = arith.constant 0 : index
    %21 = vector.load %arg2[%c256, %c0_27] : memref<1152x128xbf16, #tpu.memory_space<vmem>>, vector<128x128xbf16>
    %cst_28 = arith.constant dense<0.000000e+00> : vector<16x128xf32>
    %22 = tpu.matmul %20, %21, %cst_28 {dimension_numbers = #tpu.dot_dimension_numbers<[1], [0], [0], [1], [0, 0, 1, 1], [], []>} : vector<16x128xbf16>, vector<128x128xbf16>, vector<16x128xf32> -> vector<16x128xf32>
    %23 = arith.addf %17, %22 : vector<16x128xf32>
    %c0_29 = arith.constant 0 : index
    %c1_30 = arith.constant 1 : index
    %c0_31 = arith.constant 0 : index
    %c0_32 = arith.constant 0 : index
    %24 = vector.load %arg13[%c0_29, %c1_30, %c0_31, %c0_32] : memref<1x6x6x128xf32, #tpu.memory_space<vmem>>, vector<1x4x4x128xf32>
    %25 = vector.shape_cast %24 : vector<1x4x4x128xf32> to vector<16x128xf32>
    %26 = arith.truncf %25 : vector<16x128xf32> to vector<16x128xbf16>
    %c384 = arith.constant 384 : index
    %c0_33 = arith.constant 0 : index
    %27 = vector.load %arg2[%c384, %c0_33] : memref<1152x128xbf16, #tpu.memory_space<vmem>>, vector<128x128xbf16>
    %cst_34 = arith.constant dense<0.000000e+00> : vector<16x128xf32>
    %28 = tpu.matmul %26, %27, %cst_34 {dimension_numbers = #tpu.dot_dimension_numbers<[1], [0], [0], [1], [0, 0, 1, 1], [], []>} : vector<16x128xbf16>, vector<128x128xbf16>, vector<16x128xf32> -> vector<16x128xf32>
    %29 = arith.addf %23, %28 : vector<16x128xf32>
    %c0_35 = arith.constant 0 : index
    %c1_36 = arith.constant 1 : index
    %c1_37 = arith.constant 1 : index
    %c0_38 = arith.constant 0 : index
    %30 = vector.load %arg13[%c0_35, %c1_36, %c1_37, %c0_38] : memref<1x6x6x128xf32, #tpu.memory_space<vmem>>, vector<1x4x4x128xf32>
    %31 = vector.shape_cast %30 : vector<1x4x4x128xf32> to vector<16x128xf32>
    %32 = arith.truncf %31 : vector<16x128xf32> to vector<16x128xbf16>
    %c512 = arith.constant 512 : index
    %c0_39 = arith.constant 0 : index
    %33 = vector.load %arg2[%c512, %c0_39] : memref<1152x128xbf16, #tpu.memory_space<vmem>>, vector<128x128xbf16>
    %cst_40 = arith.constant dense<0.000000e+00> : vector<16x128xf32>
    %34 = tpu.matmul %32, %33, %cst_40 {dimension_numbers = #tpu.dot_dimension_numbers<[1], [0], [0], [1], [0, 0, 1, 1], [], []>} : vector<16x128xbf16>, vector<128x128xbf16>, vector<16x128xf32> -> vector<16x128xf32>
    %35 = arith.addf %29, %34 : vector<16x128xf32>
    %c0_41 = arith.constant 0 : index
    %c1_42 = arith.constant 1 : index
    %c2_43 = arith.constant 2 : index
    %c0_44 = arith.constant 0 : index
    %36 = vector.load %arg13[%c0_41, %c1_42, %c2_43, %c0_44] : memref<1x6x6x128xf32, #tpu.memory_space<vmem>>, vector<1x4x4x128xf32>
    %37 = vector.shape_cast %36 : vector<1x4x4x128xf32> to vector<16x128xf32>
    %38 = arith.truncf %37 : vector<16x128xf32> to vector<16x128xbf16>
    %c640 = arith.constant 640 : index
    %c0_45 = arith.constant 0 : index
    %39 = vector.load %arg2[%c640, %c0_45] : memref<1152x128xbf16, #tpu.memory_space<vmem>>, vector<128x128xbf16>
    %cst_46 = arith.constant dense<0.000000e+00> : vector<16x128xf32>
    %40 = tpu.matmul %38, %39, %cst_46 {dimension_numbers = #tpu.dot_dimension_numbers<[1], [0], [0], [1], [0, 0, 1, 1], [], []>} : vector<16x128xbf16>, vector<128x128xbf16>, vector<16x128xf32> -> vector<16x128xf32>
    %41 = arith.addf %35, %40 : vector<16x128xf32>
    %c0_47 = arith.constant 0 : index
    %c2_48 = arith.constant 2 : index
    %c0_49 = arith.constant 0 : index
    %c0_50 = arith.constant 0 : index
    %42 = vector.load %arg13[%c0_47, %c2_48, %c0_49, %c0_50] : memref<1x6x6x128xf32, #tpu.memory_space<vmem>>, vector<1x4x4x128xf32>
    %43 = vector.shape_cast %42 : vector<1x4x4x128xf32> to vector<16x128xf32>
    %44 = arith.truncf %43 : vector<16x128xf32> to vector<16x128xbf16>
    %c768 = arith.constant 768 : index
    %c0_51 = arith.constant 0 : index
    %45 = vector.load %arg2[%c768, %c0_51] : memref<1152x128xbf16, #tpu.memory_space<vmem>>, vector<128x128xbf16>
    %cst_52 = arith.constant dense<0.000000e+00> : vector<16x128xf32>
    %46 = tpu.matmul %44, %45, %cst_52 {dimension_numbers = #tpu.dot_dimension_numbers<[1], [0], [0], [1], [0, 0, 1, 1], [], []>} : vector<16x128xbf16>, vector<128x128xbf16>, vector<16x128xf32> -> vector<16x128xf32>
    %47 = arith.addf %41, %46 : vector<16x128xf32>
    %c0_53 = arith.constant 0 : index
    %c2_54 = arith.constant 2 : index
    %c1_55 = arith.constant 1 : index
    %c0_56 = arith.constant 0 : index
    %48 = vector.load %arg13[%c0_53, %c2_54, %c1_55, %c0_56] : memref<1x6x6x128xf32, #tpu.memory_space<vmem>>, vector<1x4x4x128xf32>
    %49 = vector.shape_cast %48 : vector<1x4x4x128xf32> to vector<16x128xf32>
    %50 = arith.truncf %49 : vector<16x128xf32> to vector<16x128xbf16>
    %c896 = arith.constant 896 : index
    %c0_57 = arith.constant 0 : index
    %51 = vector.load %arg2[%c896, %c0_57] : memref<1152x128xbf16, #tpu.memory_space<vmem>>, vector<128x128xbf16>
    %cst_58 = arith.constant dense<0.000000e+00> : vector<16x128xf32>
    %52 = tpu.matmul %50, %51, %cst_58 {dimension_numbers = #tpu.dot_dimension_numbers<[1], [0], [0], [1], [0, 0, 1, 1], [], []>} : vector<16x128xbf16>, vector<128x128xbf16>, vector<16x128xf32> -> vector<16x128xf32>
    %53 = arith.addf %47, %52 : vector<16x128xf32>
    %c0_59 = arith.constant 0 : index
    %c2_60 = arith.constant 2 : index
    %c2_61 = arith.constant 2 : index
    %c0_62 = arith.constant 0 : index
    %54 = vector.load %arg13[%c0_59, %c2_60, %c2_61, %c0_62] : memref<1x6x6x128xf32, #tpu.memory_space<vmem>>, vector<1x4x4x128xf32>
    %55 = vector.shape_cast %54 : vector<1x4x4x128xf32> to vector<16x128xf32>
    %56 = arith.truncf %55 : vector<16x128xf32> to vector<16x128xbf16>
    %c1024 = arith.constant 1024 : index
    %c0_63 = arith.constant 0 : index
    %57 = vector.load %arg2[%c1024, %c0_63] : memref<1152x128xbf16, #tpu.memory_space<vmem>>, vector<128x128xbf16>
    %cst_64 = arith.constant dense<0.000000e+00> : vector<16x128xf32>
    %58 = tpu.matmul %56, %57, %cst_64 {dimension_numbers = #tpu.dot_dimension_numbers<[1], [0], [0], [1], [0, 0, 1, 1], [], []>} : vector<16x128xbf16>, vector<128x128xbf16>, vector<16x128xf32> -> vector<16x128xf32>
    %59 = arith.addf %53, %58 : vector<16x128xf32>
    %c0_65 = arith.constant 0 : index
    %c0_66 = arith.constant 0 : index
    %60 = vector.load %arg3[%c0_65, %c0_66] : memref<1x128xf32, #tpu.memory_space<vmem>>, vector<1x128xf32>
    %61 = vector.broadcast %60 : vector<1x128xf32> to vector<16x128xf32>
    %62 = arith.addf %59, %61 : vector<16x128xf32>
    %cst_67 = arith.constant 0.000000e+00 : f32
    %63 = vector.broadcast %cst_67 : f32 to vector<16x128xf32>
    %64 = arith.maximumf %62, %63 : vector<16x128xf32>
    %65 = vector.shape_cast %64 : vector<16x128xf32> to vector<1x4x4x128xf32>
    %c0_68 = arith.constant 0 : index
    %c1_69 = arith.constant 1 : index
    %c1_70 = arith.constant 1 : index
    %c0_71 = arith.constant 0 : index
    %66 = vector.load %arg13[%c0_68, %c1_69, %c1_70, %c0_71] : memref<1x6x6x128xf32, #tpu.memory_space<vmem>>, vector<1x4x4x128xf32>
    tpu.vector_store %arg13[%c0_68, %c1_69, %c1_70, %c0_71], %65 {strides = array<i32>} : memref<1x6x6x128xf32, #tpu.memory_space<vmem>>, vector<1x4x4x128xf32>,
    %cst_72 = arith.constant 0.000000e+00 : f32
    %67 = vector.broadcast %cst_72 : f32 to vector<16x128xf32>
    %c0_73 = arith.constant 0 : index
    %c0_74 = arith.constant 0 : index
    %c0_75 = arith.constant 0 : index
    %c0_76 = arith.constant 0 : index
    %68 = vector.load %arg13[%c0_73, %c0_74, %c0_75, %c0_76] : memref<1x6x6x128xf32, #tpu.memory_space<vmem>>, vector<1x4x4x128xf32>
    %69 = vector.shape_cast %68 : vector<1x4x4x128xf32> to vector<16x128xf32>
    %70 = arith.truncf %69 : vector<16x128xf32> to vector<16x128xbf16>
    %c0_77 = arith.constant 0 : index
    %c0_78 = arith.constant 0 : index
    %71 = vector.load %arg4[%c0_77, %c0_78] : memref<1152x128xbf16, #tpu.memory_space<vmem>>, vector<128x128xbf16>
    %cst_79 = arith.constant dense<0.000000e+00> : vector<16x128xf32>
    %72 = tpu.matmul %70, %71, %cst_79 {dimension_numbers = #tpu.dot_dimension_numbers<[1], [0], [0], [1], [0, 0, 1, 1], [], []>} : vector<16x128xbf16>, vector<128x128xbf16>, vector<16x128xf32> -> vector<16x128xf32>
    %73 = arith.addf %67, %72 : vector<16x128xf32>
    %c0_80 = arith.constant 0 : index
    %c0_81 = arith.constant 0 : index
    %c1_82 = arith.constant 1 : index
    %c0_83 = arith.constant 0 : index
    %74 = vector.load %arg13[%c0_80, %c0_81, %c1_82, %c0_83] : memref<1x6x6x128xf32, #tpu.memory_space<vmem>>, vector<1x4x4x128xf32>
    %75 = vector.shape_cast %74 : vector<1x4x4x128xf32> to vector<16x128xf32>
    %76 = arith.truncf %75 : vector<16x128xf32> to vector<16x128xbf16>
    %c128_84 = arith.constant 128 : index
    %c0_85 = arith.constant 0 : index
    %77 = vector.load %arg4[%c128_84, %c0_85] : memref<1152x128xbf16, #tpu.memory_space<vmem>>, vector<128x128xbf16>
    %cst_86 = arith.constant dense<0.000000e+00> : vector<16x128xf32>
    %78 = tpu.matmul %76, %77, %cst_86 {dimension_numbers = #tpu.dot_dimension_numbers<[1], [0], [0], [1], [0, 0, 1, 1], [], []>} : vector<16x128xbf16>, vector<128x128xbf16>, vector<16x128xf32> -> vector<16x128xf32>
    %79 = arith.addf %73, %78 : vector<16x128xf32>
    %c0_87 = arith.constant 0 : index
    %c0_88 = arith.constant 0 : index
    %c2_89 = arith.constant 2 : index
    %c0_90 = arith.constant 0 : index
    %80 = vector.load %arg13[%c0_87, %c0_88, %c2_89, %c0_90] : memref<1x6x6x128xf32, #tpu.memory_space<vmem>>, vector<1x4x4x128xf32>
    %81 = vector.shape_cast %80 : vector<1x4x4x128xf32> to vector<16x128xf32>
    %82 = arith.truncf %81 : vector<16x128xf32> to vector<16x128xbf16>
    %c256_91 = arith.constant 256 : index
    %c0_92 = arith.constant 0 : index
    %83 = vector.load %arg4[%c256_91, %c0_92] : memref<1152x128xbf16, #tpu.memory_space<vmem>>, vector<128x128xbf16>
    %cst_93 = arith.constant dense<0.000000e+00> : vector<16x128xf32>
    %84 = tpu.matmul %82, %83, %cst_93 {dimension_numbers = #tpu.dot_dimension_numbers<[1], [0], [0], [1], [0, 0, 1, 1], [], []>} : vector<16x128xbf16>, vector<128x128xbf16>, vector<16x128xf32> -> vector<16x128xf32>
    %85 = arith.addf %79, %84 : vector<16x128xf32>
    %c0_94 = arith.constant 0 : index
    %c1_95 = arith.constant 1 : index
    %c0_96 = arith.constant 0 : index
    %c0_97 = arith.constant 0 : index
    %86 = vector.load %arg13[%c0_94, %c1_95, %c0_96, %c0_97] : memref<1x6x6x128xf32, #tpu.memory_space<vmem>>, vector<1x4x4x128xf32>
    %87 = vector.shape_cast %86 : vector<1x4x4x128xf32> to vector<16x128xf32>
    %88 = arith.truncf %87 : vector<16x128xf32> to vector<16x128xbf16>
    %c384_98 = arith.constant 384 : index
    %c0_99 = arith.constant 0 : index
    %89 = vector.load %arg4[%c384_98, %c0_99] : memref<1152x128xbf16, #tpu.memory_space<vmem>>, vector<128x128xbf16>
    %cst_100 = arith.constant dense<0.000000e+00> : vector<16x128xf32>
    %90 = tpu.matmul %88, %89, %cst_100 {dimension_numbers = #tpu.dot_dimension_numbers<[1], [0], [0], [1], [0, 0, 1, 1], [], []>} : vector<16x128xbf16>, vector<128x128xbf16>, vector<16x128xf32> -> vector<16x128xf32>
    %91 = arith.addf %85, %90 : vector<16x128xf32>
    %c0_101 = arith.constant 0 : index
    %c1_102 = arith.constant 1 : index
    %c1_103 = arith.constant 1 : index
    %c0_104 = arith.constant 0 : index
    %92 = vector.load %arg13[%c0_101, %c1_102, %c1_103, %c0_104] : memref<1x6x6x128xf32, #tpu.memory_space<vmem>>, vector<1x4x4x128xf32>
    %93 = vector.shape_cast %92 : vector<1x4x4x128xf32> to vector<16x128xf32>
    %94 = arith.truncf %93 : vector<16x128xf32> to vector<16x128xbf16>
    %c512_105 = arith.constant 512 : index
    %c0_106 = arith.constant 0 : index
    %95 = vector.load %arg4[%c512_105, %c0_106] : memref<1152x128xbf16, #tpu.memory_space<vmem>>, vector<128x128xbf16>
    %cst_107 = arith.constant dense<0.000000e+00> : vector<16x128xf32>
    %96 = tpu.matmul %94, %95, %cst_107 {dimension_numbers = #tpu.dot_dimension_numbers<[1], [0], [0], [1], [0, 0, 1, 1], [], []>} : vector<16x128xbf16>, vector<128x128xbf16>, vector<16x128xf32> -> vector<16x128xf32>
    %97 = arith.addf %91, %96 : vector<16x128xf32>
    %c0_108 = arith.constant 0 : index
    %c1_109 = arith.constant 1 : index
    %c2_110 = arith.constant 2 : index
    %c0_111 = arith.constant 0 : index
    %98 = vector.load %arg13[%c0_108, %c1_109, %c2_110, %c0_111] : memref<1x6x6x128xf32, #tpu.memory_space<vmem>>, vector<1x4x4x128xf32>
    %99 = vector.shape_cast %98 : vector<1x4x4x128xf32> to vector<16x128xf32>
    %100 = arith.truncf %99 : vector<16x128xf32> to vector<16x128xbf16>
    %c640_112 = arith.constant 640 : index
    %c0_113 = arith.constant 0 : index
    %101 = vector.load %arg4[%c640_112, %c0_113] : memref<1152x128xbf16, #tpu.memory_space<vmem>>, vector<128x128xbf16>
    %cst_114 = arith.constant dense<0.000000e+00> : vector<16x128xf32>
    %102 = tpu.matmul %100, %101, %cst_114 {dimension_numbers = #tpu.dot_dimension_numbers<[1], [0], [0], [1], [0, 0, 1, 1], [], []>} : vector<16x128xbf16>, vector<128x128xbf16>, vector<16x128xf32> -> vector<16x128xf32>
    %103 = arith.addf %97, %102 : vector<16x128xf32>
    %c0_115 = arith.constant 0 : index
    %c2_116 = arith.constant 2 : index
    %c0_117 = arith.constant 0 : index
    %c0_118 = arith.constant 0 : index
    %104 = vector.load %arg13[%c0_115, %c2_116, %c0_117, %c0_118] : memref<1x6x6x128xf32, #tpu.memory_space<vmem>>, vector<1x4x4x128xf32>
    %105 = vector.shape_cast %104 : vector<1x4x4x128xf32> to vector<16x128xf32>
    %106 = arith.truncf %105 : vector<16x128xf32> to vector<16x128xbf16>
    %c768_119 = arith.constant 768 : index
    %c0_120 = arith.constant 0 : index
    %107 = vector.load %arg4[%c768_119, %c0_120] : memref<1152x128xbf16, #tpu.memory_space<vmem>>, vector<128x128xbf16>
    %cst_121 = arith.constant dense<0.000000e+00> : vector<16x128xf32>
    %108 = tpu.matmul %106, %107, %cst_121 {dimension_numbers = #tpu.dot_dimension_numbers<[1], [0], [0], [1], [0, 0, 1, 1], [], []>} : vector<16x128xbf16>, vector<128x128xbf16>, vector<16x128xf32> -> vector<16x128xf32>
    %109 = arith.addf %103, %108 : vector<16x128xf32>
    %c0_122 = arith.constant 0 : index
    %c2_123 = arith.constant 2 : index
    %c1_124 = arith.constant 1 : index
    %c0_125 = arith.constant 0 : index
    %110 = vector.load %arg13[%c0_122, %c2_123, %c1_124, %c0_125] : memref<1x6x6x128xf32, #tpu.memory_space<vmem>>, vector<1x4x4x128xf32>
    %111 = vector.shape_cast %110 : vector<1x4x4x128xf32> to vector<16x128xf32>
    %112 = arith.truncf %111 : vector<16x128xf32> to vector<16x128xbf16>
    %c896_126 = arith.constant 896 : index
    %c0_127 = arith.constant 0 : index
    %113 = vector.load %arg4[%c896_126, %c0_127] : memref<1152x128xbf16, #tpu.memory_space<vmem>>, vector<128x128xbf16>
    %cst_128 = arith.constant dense<0.000000e+00> : vector<16x128xf32>
    %114 = tpu.matmul %112, %113, %cst_128 {dimension_numbers = #tpu.dot_dimension_numbers<[1], [0], [0], [1], [0, 0, 1, 1], [], []>} : vector<16x128xbf16>, vector<128x128xbf16>, vector<16x128xf32> -> vector<16x128xf32>
    %115 = arith.addf %109, %114 : vector<16x128xf32>
    %c0_129 = arith.constant 0 : index
    %c2_130 = arith.constant 2 : index
    %c2_131 = arith.constant 2 : index
    %c0_132 = arith.constant 0 : index
    %116 = vector.load %arg13[%c0_129, %c2_130, %c2_131, %c0_132] : memref<1x6x6x128xf32, #tpu.memory_space<vmem>>, vector<1x4x4x128xf32>
    %117 = vector.shape_cast %116 : vector<1x4x4x128xf32> to vector<16x128xf32>
    %118 = arith.truncf %117 : vector<16x128xf32> to vector<16x128xbf16>
    %c1024_133 = arith.constant 1024 : index
    %c0_134 = arith.constant 0 : index
    %119 = vector.load %arg4[%c1024_133, %c0_134] : memref<1152x128xbf16, #tpu.memory_space<vmem>>, vector<128x128xbf16>
    %cst_135 = arith.constant dense<0.000000e+00> : vector<16x128xf32>
    %120 = tpu.matmul %118, %119, %cst_135 {dimension_numbers = #tpu.dot_dimension_numbers<[1], [0], [0], [1], [0, 0, 1, 1], [], []>} : vector<16x128xbf16>, vector<128x128xbf16>, vector<16x128xf32> -> vector<16x128xf32>
    %121 = arith.addf %115, %120 : vector<16x128xf32>
    %c0_136 = arith.constant 0 : index
    %c0_137 = arith.constant 0 : index
    %122 = vector.load %arg5[%c0_136, %c0_137] : memref<1x128xf32, #tpu.memory_space<vmem>>, vector<1x128xf32>
    %123 = vector.broadcast %122 : vector<1x128xf32> to vector<16x128xf32>
    %124 = arith.addf %121, %123 : vector<16x128xf32>
    %cst_138 = arith.constant 0.000000e+00 : f32
    %125 = vector.broadcast %cst_138 : f32 to vector<16x128xf32>
    %126 = arith.maximumf %124, %125 : vector<16x128xf32>
    %127 = vector.shape_cast %126 : vector<16x128xf32> to vector<1x4x4x128xf32>
    %c0_139 = arith.constant 0 : index
    %c1_140 = arith.constant 1 : index
    %c1_141 = arith.constant 1 : index
    %c0_142 = arith.constant 0 : index
    %128 = vector.load %arg13[%c0_139, %c1_140, %c1_141, %c0_142] : memref<1x6x6x128xf32, #tpu.memory_space<vmem>>, vector<1x4x4x128xf32>
    tpu.vector_store %arg13[%c0_139, %c1_140, %c1_141, %c0_142], %127 {strides = array<i32>} : memref<1x6x6x128xf32, #tpu.memory_space<vmem>>, vector<1x4x4x128xf32>,
    %cst_143 = arith.constant 0.000000e+00 : f32
    %129 = vector.broadcast %cst_143 : f32 to vector<16x256xf32>
    %c0_144 = arith.constant 0 : index
    %c1_145 = arith.constant 1 : index
    %c1_146 = arith.constant 1 : index
    %c0_147 = arith.constant 0 : index
    %130 = vector.load %arg13[%c0_144, %c1_145, %c1_146, %c0_147] : memref<1x6x6x128xf32, #tpu.memory_space<vmem>>, vector<1x4x4x128xf32>
    %131 = vector.shape_cast %130 : vector<1x4x4x128xf32> to vector<16x128xf32>
    %132 = arith.truncf %131 : vector<16x128xf32> to vector<16x128xbf16>
    %c640_148 = arith.constant 640 : index
    %c0_149 = arith.constant 0 : index
    %133 = vector.load %arg6[%c640_148, %c0_149] : memref<2048x256xbf16, #tpu.memory_space<vmem>>, vector<128x256xbf16>
    %cst_150 = arith.constant dense<0.000000e+00> : vector<16x256xf32>
    %134 = tpu.matmul %132, %133, %cst_150 {dimension_numbers = #tpu.dot_dimension_numbers<[1], [0], [0], [1], [0, 0, 1, 1], [], []>} : vector<16x128xbf16>, vector<128x256xbf16>, vector<16x256xf32> -> vector<16x256xf32>
    %135 = arith.addf %129, %134 : vector<16x256xf32>
    %c0_151 = arith.constant 0 : index
    %c1_152 = arith.constant 1 : index
    %c0_153 = arith.constant 0 : index
    %c0_154 = arith.constant 0 : index
    %136 = vector.load %arg13[%c0_151, %c1_152, %c0_153, %c0_154] : memref<1x6x6x128xf32, #tpu.memory_space<vmem>>, vector<1x4x4x128xf32>
    %137 = vector.shape_cast %136 : vector<1x4x4x128xf32> to vector<16x128xf32>
    %138 = arith.truncf %137 : vector<16x128xf32> to vector<16x128xbf16>
    %c896_155 = arith.constant 896 : index
    %c0_156 = arith.constant 0 : index
    %139 = vector.load %arg6[%c896_155, %c0_156] : memref<2048x256xbf16, #tpu.memory_space<vmem>>, vector<128x256xbf16>
    %cst_157 = arith.constant dense<0.000000e+00> : vector<16x256xf32>
    %140 = tpu.matmul %138, %139, %cst_157 {dimension_numbers = #tpu.dot_dimension_numbers<[1], [0], [0], [1], [0, 0, 1, 1], [], []>} : vector<16x128xbf16>, vector<128x256xbf16>, vector<16x256xf32> -> vector<16x256xf32>
    %141 = arith.addf %135, %140 : vector<16x256xf32>
    %c0_158 = arith.constant 0 : index
    %c0_159 = arith.constant 0 : index
    %c1_160 = arith.constant 1 : index
    %c0_161 = arith.constant 0 : index
    %142 = vector.load %arg13[%c0_158, %c0_159, %c1_160, %c0_161] : memref<1x6x6x128xf32, #tpu.memory_space<vmem>>, vector<1x4x4x128xf32>
    %143 = vector.shape_cast %142 : vector<1x4x4x128xf32> to vector<16x128xf32>
    %144 = arith.truncf %143 : vector<16x128xf32> to vector<16x128xbf16>
    %c1664 = arith.constant 1664 : index
    %c0_162 = arith.constant 0 : index
    %145 = vector.load %arg6[%c1664, %c0_162] : memref<2048x256xbf16, #tpu.memory_space<vmem>>, vector<128x256xbf16>
    %cst_163 = arith.constant dense<0.000000e+00> : vector<16x256xf32>
    %146 = tpu.matmul %144, %145, %cst_163 {dimension_numbers = #tpu.dot_dimension_numbers<[1], [0], [0], [1], [0, 0, 1, 1], [], []>} : vector<16x128xbf16>, vector<128x256xbf16>, vector<16x256xf32> -> vector<16x256xf32>
    %147 = arith.addf %141, %146 : vector<16x256xf32>
    %c0_164 = arith.constant 0 : index
    %c0_165 = arith.constant 0 : index
    %c0_166 = arith.constant 0 : index
    %c0_167 = arith.constant 0 : index
    %148 = vector.load %arg13[%c0_164, %c0_165, %c0_166, %c0_167] : memref<1x6x6x128xf32, #tpu.memory_space<vmem>>, vector<1x4x4x128xf32>
    %149 = vector.shape_cast %148 : vector<1x4x4x128xf32> to vector<16x128xf32>
    %150 = arith.truncf %149 : vector<16x128xf32> to vector<16x128xbf16>
    %c1920 = arith.constant 1920 : index
    %c0_168 = arith.constant 0 : index
    %151 = vector.load %arg6[%c1920, %c0_168] : memref<2048x256xbf16, #tpu.memory_space<vmem>>, vector<128x256xbf16>
    %cst_169 = arith.constant dense<0.000000e+00> : vector<16x256xf32>
    %152 = tpu.matmul %150, %151, %cst_169 {dimension_numbers = #tpu.dot_dimension_numbers<[1], [0], [0], [1], [0, 0, 1, 1], [], []>} : vector<16x128xbf16>, vector<128x256xbf16>, vector<16x256xf32> -> vector<16x256xf32>
    %153 = arith.addf %147, %152 : vector<16x256xf32>
    %c0_170 = arith.constant 0 : index
    %c0_171 = arith.constant 0 : index
    %154 = vector.load %arg7[%c0_170, %c0_171] : memref<1x256xf32, #tpu.memory_space<vmem>>, vector<1x256xf32>
    %155 = vector.broadcast %154 : vector<1x256xf32> to vector<16x256xf32>
    %156 = arith.addf %153, %155 : vector<16x256xf32>
    %cst_172 = arith.constant 0.000000e+00 : f32
    %157 = vector.broadcast %cst_172 : f32 to vector<16x256xf32>
    %158 = arith.maximumf %156, %157 : vector<16x256xf32>
    %cst_173 = arith.constant 0.000000e+00 : f32
    %159 = vector.broadcast %cst_173 : f32 to vector<16x256xf32>
    %c0_174 = arith.constant 0 : index
    %c1_175 = arith.constant 1 : index
    %c2_176 = arith.constant 2 : index
    %c0_177 = arith.constant 0 : index
    %160 = vector.load %arg13[%c0_174, %c1_175, %c2_176, %c0_177] : memref<1x6x6x128xf32, #tpu.memory_space<vmem>>, vector<1x4x4x128xf32>
    %161 = vector.shape_cast %160 : vector<1x4x4x128xf32> to vector<16x128xf32>
    %162 = arith.truncf %161 : vector<16x128xf32> to vector<16x128xbf16>
    %c512_178 = arith.constant 512 : index
    %c0_179 = arith.constant 0 : index
    %163 = vector.load %arg6[%c512_178, %c0_179] : memref<2048x256xbf16, #tpu.memory_space<vmem>>, vector<128x256xbf16>
    %cst_180 = arith.constant dense<0.000000e+00> : vector<16x256xf32>
    %164 = tpu.matmul %162, %163, %cst_180 {dimension_numbers = #tpu.dot_dimension_numbers<[1], [0], [0], [1], [0, 0, 1, 1], [], []>} : vector<16x128xbf16>, vector<128x256xbf16>, vector<16x256xf32> -> vector<16x256xf32>
    %165 = arith.addf %159, %164 : vector<16x256xf32>
    %c0_181 = arith.constant 0 : index
    %c1_182 = arith.constant 1 : index
    %c1_183 = arith.constant 1 : index
    %c0_184 = arith.constant 0 : index
    %166 = vector.load %arg13[%c0_181, %c1_182, %c1_183, %c0_184] : memref<1x6x6x128xf32, #tpu.memory_space<vmem>>, vector<1x4x4x128xf32>
    %167 = vector.shape_cast %166 : vector<1x4x4x128xf32> to vector<16x128xf32>
    %168 = arith.truncf %167 : vector<16x128xf32> to vector<16x128xbf16>
    %c768_185 = arith.constant 768 : index
    %c0_186 = arith.constant 0 : index
    %169 = vector.load %arg6[%c768_185, %c0_186] : memref<2048x256xbf16, #tpu.memory_space<vmem>>, vector<128x256xbf16>
    %cst_187 = arith.constant dense<0.000000e+00> : vector<16x256xf32>
    %170 = tpu.matmul %168, %169, %cst_187 {dimension_numbers = #tpu.dot_dimension_numbers<[1], [0], [0], [1], [0, 0, 1, 1], [], []>} : vector<16x128xbf16>, vector<128x256xbf16>, vector<16x256xf32> -> vector<16x256xf32>
    %171 = arith.addf %165, %170 : vector<16x256xf32>
    %c0_188 = arith.constant 0 : index
    %c0_189 = arith.constant 0 : index
    %c2_190 = arith.constant 2 : index
    %c0_191 = arith.constant 0 : index
    %172 = vector.load %arg13[%c0_188, %c0_189, %c2_190, %c0_191] : memref<1x6x6x128xf32, #tpu.memory_space<vmem>>, vector<1x4x4x128xf32>
    %173 = vector.shape_cast %172 : vector<1x4x4x128xf32> to vector<16x128xf32>
    %174 = arith.truncf %173 : vector<16x128xf32> to vector<16x128xbf16>
    %c1536 = arith.constant 1536 : index
    %c0_192 = arith.constant 0 : index
    %175 = vector.load %arg6[%c1536, %c0_192] : memref<2048x256xbf16, #tpu.memory_space<vmem>>, vector<128x256xbf16>
    %cst_193 = arith.constant dense<0.000000e+00> : vector<16x256xf32>
    %176 = tpu.matmul %174, %175, %cst_193 {dimension_numbers = #tpu.dot_dimension_numbers<[1], [0], [0], [1], [0, 0, 1, 1], [], []>} : vector<16x128xbf16>, vector<128x256xbf16>, vector<16x256xf32> -> vector<16x256xf32>
    %177 = arith.addf %171, %176 : vector<16x256xf32>
    %c0_194 = arith.constant 0 : index
    %c0_195 = arith.constant 0 : index
    %c1_196 = arith.constant 1 : index
    %c0_197 = arith.constant 0 : index
    %178 = vector.load %arg13[%c0_194, %c0_195, %c1_196, %c0_197] : memref<1x6x6x128xf32, #tpu.memory_space<vmem>>, vector<1x4x4x128xf32>
    %179 = vector.shape_cast %178 : vector<1x4x4x128xf32> to vector<16x128xf32>
    %180 = arith.truncf %179 : vector<16x128xf32> to vector<16x128xbf16>
    %c1792 = arith.constant 1792 : index
    %c0_198 = arith.constant 0 : index
    %181 = vector.load %arg6[%c1792, %c0_198] : memref<2048x256xbf16, #tpu.memory_space<vmem>>, vector<128x256xbf16>
    %cst_199 = arith.constant dense<0.000000e+00> : vector<16x256xf32>
    %182 = tpu.matmul %180, %181, %cst_199 {dimension_numbers = #tpu.dot_dimension_numbers<[1], [0], [0], [1], [0, 0, 1, 1], [], []>} : vector<16x128xbf16>, vector<128x256xbf16>, vector<16x256xf32> -> vector<16x256xf32>
    %183 = arith.addf %177, %182 : vector<16x256xf32>
    %c0_200 = arith.constant 0 : index
    %c0_201 = arith.constant 0 : index
    %184 = vector.load %arg7[%c0_200, %c0_201] : memref<1x256xf32, #tpu.memory_space<vmem>>, vector<1x256xf32>
    %185 = vector.broadcast %184 : vector<1x256xf32> to vector<16x256xf32>
    %186 = arith.addf %183, %185 : vector<16x256xf32>
    %cst_202 = arith.constant 0.000000e+00 : f32
    %187 = vector.broadcast %cst_202 : f32 to vector<16x256xf32>
    %188 = arith.maximumf %186, %187 : vector<16x256xf32>
    %cst_203 = arith.constant 0.000000e+00 : f32
    %189 = vector.broadcast %cst_203 : f32 to vector<16x256xf32>
    %c0_204 = arith.constant 0 : index
    %c2_205 = arith.constant 2 : index
    %c1_206 = arith.constant 1 : index
    %c0_207 = arith.constant 0 : index
    %190 = vector.load %arg13[%c0_204, %c2_205, %c1_206, %c0_207] : memref<1x6x6x128xf32, #tpu.memory_space<vmem>>, vector<1x4x4x128xf32>
    %191 = vector.shape_cast %190 : vector<1x4x4x128xf32> to vector<16x128xf32>
    %192 = arith.truncf %191 : vector<16x128xf32> to vector<16x128xbf16>
    %c128_208 = arith.constant 128 : index
    %c0_209 = arith.constant 0 : index
    %193 = vector.load %arg6[%c128_208, %c0_209] : memref<2048x256xbf16, #tpu.memory_space<vmem>>, vector<128x256xbf16>
    %cst_210 = arith.constant dense<0.000000e+00> : vector<16x256xf32>
    %194 = tpu.matmul %192, %193, %cst_210 {dimension_numbers = #tpu.dot_dimension_numbers<[1], [0], [0], [1], [0, 0, 1, 1], [], []>} : vector<16x128xbf16>, vector<128x256xbf16>, vector<16x256xf32> -> vector<16x256xf32>
    %195 = arith.addf %189, %194 : vector<16x256xf32>
    %c0_211 = arith.constant 0 : index
    %c2_212 = arith.constant 2 : index
    %c0_213 = arith.constant 0 : index
    %c0_214 = arith.constant 0 : index
    %196 = vector.load %arg13[%c0_211, %c2_212, %c0_213, %c0_214] : memref<1x6x6x128xf32, #tpu.memory_space<vmem>>, vector<1x4x4x128xf32>
    %197 = vector.shape_cast %196 : vector<1x4x4x128xf32> to vector<16x128xf32>
    %198 = arith.truncf %197 : vector<16x128xf32> to vector<16x128xbf16>
    %c384_215 = arith.constant 384 : index
    %c0_216 = arith.constant 0 : index
    %199 = vector.load %arg6[%c384_215, %c0_216] : memref<2048x256xbf16, #tpu.memory_space<vmem>>, vector<128x256xbf16>
    %cst_217 = arith.constant dense<0.000000e+00> : vector<16x256xf32>
    %200 = tpu.matmul %198, %199, %cst_217 {dimension_numbers = #tpu.dot_dimension_numbers<[1], [0], [0], [1], [0, 0, 1, 1], [], []>} : vector<16x128xbf16>, vector<128x256xbf16>, vector<16x256xf32> -> vector<16x256xf32>
    %201 = arith.addf %195, %200 : vector<16x256xf32>
    %c0_218 = arith.constant 0 : index
    %c1_219 = arith.constant 1 : index
    %c1_220 = arith.constant 1 : index
    %c0_221 = arith.constant 0 : index
    %202 = vector.load %arg13[%c0_218, %c1_219, %c1_220, %c0_221] : memref<1x6x6x128xf32, #tpu.memory_space<vmem>>, vector<1x4x4x128xf32>
    %203 = vector.shape_cast %202 : vector<1x4x4x128xf32> to vector<16x128xf32>
    %204 = arith.truncf %203 : vector<16x128xf32> to vector<16x128xbf16>
    %c1152 = arith.constant 1152 : index
    %c0_222 = arith.constant 0 : index
    %205 = vector.load %arg6[%c1152, %c0_222] : memref<2048x256xbf16, #tpu.memory_space<vmem>>, vector<128x256xbf16>
    %cst_223 = arith.constant dense<0.000000e+00> : vector<16x256xf32>
    %206 = tpu.matmul %204, %205, %cst_223 {dimension_numbers = #tpu.dot_dimension_numbers<[1], [0], [0], [1], [0, 0, 1, 1], [], []>} : vector<16x128xbf16>, vector<128x256xbf16>, vector<16x256xf32> -> vector<16x256xf32>
    %207 = arith.addf %201, %206 : vector<16x256xf32>
    %c0_224 = arith.constant 0 : index
    %c1_225 = arith.constant 1 : index
    %c0_226 = arith.constant 0 : index
    %c0_227 = arith.constant 0 : index
    %208 = vector.load %arg13[%c0_224, %c1_225, %c0_226, %c0_227] : memref<1x6x6x128xf32, #tpu.memory_space<vmem>>, vector<1x4x4x128xf32>
    %209 = vector.shape_cast %208 : vector<1x4x4x128xf32> to vector<16x128xf32>
    %210 = arith.truncf %209 : vector<16x128xf32> to vector<16x128xbf16>
    %c1408 = arith.constant 1408 : index
    %c0_228 = arith.constant 0 : index
    %211 = vector.load %arg6[%c1408, %c0_228] : memref<2048x256xbf16, #tpu.memory_space<vmem>>, vector<128x256xbf16>
    %cst_229 = arith.constant dense<0.000000e+00> : vector<16x256xf32>
    %212 = tpu.matmul %210, %211, %cst_229 {dimension_numbers = #tpu.dot_dimension_numbers<[1], [0], [0], [1], [0, 0, 1, 1], [], []>} : vector<16x128xbf16>, vector<128x256xbf16>, vector<16x256xf32> -> vector<16x256xf32>
    %213 = arith.addf %207, %212 : vector<16x256xf32>
    %c0_230 = arith.constant 0 : index
    %c0_231 = arith.constant 0 : index
    %214 = vector.load %arg7[%c0_230, %c0_231] : memref<1x256xf32, #tpu.memory_space<vmem>>, vector<1x256xf32>
    %215 = vector.broadcast %214 : vector<1x256xf32> to vector<16x256xf32>
    %216 = arith.addf %213, %215 : vector<16x256xf32>
    %cst_232 = arith.constant 0.000000e+00 : f32
    %217 = vector.broadcast %cst_232 : f32 to vector<16x256xf32>
    %218 = arith.maximumf %216, %217 : vector<16x256xf32>
    %cst_233 = arith.constant 0.000000e+00 : f32
    %219 = vector.broadcast %cst_233 : f32 to vector<16x256xf32>
    %c0_234 = arith.constant 0 : index
    %c2_235 = arith.constant 2 : index
    %c2_236 = arith.constant 2 : index
    %c0_237 = arith.constant 0 : index
    %220 = vector.load %arg13[%c0_234, %c2_235, %c2_236, %c0_237] : memref<1x6x6x128xf32, #tpu.memory_space<vmem>>, vector<1x4x4x128xf32>
    %221 = vector.shape_cast %220 : vector<1x4x4x128xf32> to vector<16x128xf32>
    %222 = arith.truncf %221 : vector<16x128xf32> to vector<16x128xbf16>
    %c0_238 = arith.constant 0 : index
    %c0_239 = arith.constant 0 : index
    %223 = vector.load %arg6[%c0_238, %c0_239] : memref<2048x256xbf16, #tpu.memory_space<vmem>>, vector<128x256xbf16>
    %cst_240 = arith.constant dense<0.000000e+00> : vector<16x256xf32>
    %224 = tpu.matmul %222, %223, %cst_240 {dimension_numbers = #tpu.dot_dimension_numbers<[1], [0], [0], [1], [0, 0, 1, 1], [], []>} : vector<16x128xbf16>, vector<128x256xbf16>, vector<16x256xf32> -> vector<16x256xf32>
    %225 = arith.addf %219, %224 : vector<16x256xf32>
    %c0_241 = arith.constant 0 : index
    %c2_242 = arith.constant 2 : index
    %c1_243 = arith.constant 1 : index
    %c0_244 = arith.constant 0 : index
    %226 = vector.load %arg13[%c0_241, %c2_242, %c1_243, %c0_244] : memref<1x6x6x128xf32, #tpu.memory_space<vmem>>, vector<1x4x4x128xf32>
    %227 = vector.shape_cast %226 : vector<1x4x4x128xf32> to vector<16x128xf32>
    %228 = arith.truncf %227 : vector<16x128xf32> to vector<16x128xbf16>
    %c256_245 = arith.constant 256 : index
    %c0_246 = arith.constant 0 : index
    %229 = vector.load %arg6[%c256_245, %c0_246] : memref<2048x256xbf16, #tpu.memory_space<vmem>>, vector<128x256xbf16>
    %cst_247 = arith.constant dense<0.000000e+00> : vector<16x256xf32>
    %230 = tpu.matmul %228, %229, %cst_247 {dimension_numbers = #tpu.dot_dimension_numbers<[1], [0], [0], [1], [0, 0, 1, 1], [], []>} : vector<16x128xbf16>, vector<128x256xbf16>, vector<16x256xf32> -> vector<16x256xf32>
    %231 = arith.addf %225, %230 : vector<16x256xf32>
    %c0_248 = arith.constant 0 : index
    %c1_249 = arith.constant 1 : index
    %c2_250 = arith.constant 2 : index
    %c0_251 = arith.constant 0 : index
    %232 = vector.load %arg13[%c0_248, %c1_249, %c2_250, %c0_251] : memref<1x6x6x128xf32, #tpu.memory_space<vmem>>, vector<1x4x4x128xf32>
    %233 = vector.shape_cast %232 : vector<1x4x4x128xf32> to vector<16x128xf32>
    %234 = arith.truncf %233 : vector<16x128xf32> to vector<16x128xbf16>
    %c1024_252 = arith.constant 1024 : index
    %c0_253 = arith.constant 0 : index
    %235 = vector.load %arg6[%c1024_252, %c0_253] : memref<2048x256xbf16, #tpu.memory_space<vmem>>, vector<128x256xbf16>
    %cst_254 = arith.constant dense<0.000000e+00> : vector<16x256xf32>
    %236 = tpu.matmul %234, %235, %cst_254 {dimension_numbers = #tpu.dot_dimension_numbers<[1], [0], [0], [1], [0, 0, 1, 1], [], []>} : vector<16x128xbf16>, vector<128x256xbf16>, vector<16x256xf32> -> vector<16x256xf32>
    %237 = arith.addf %231, %236 : vector<16x256xf32>
    %c0_255 = arith.constant 0 : index
    %c1_256 = arith.constant 1 : index
    %c1_257 = arith.constant 1 : index
    %c0_258 = arith.constant 0 : index
    %238 = vector.load %arg13[%c0_255, %c1_256, %c1_257, %c0_258] : memref<1x6x6x128xf32, #tpu.memory_space<vmem>>, vector<1x4x4x128xf32>
    %239 = vector.shape_cast %238 : vector<1x4x4x128xf32> to vector<16x128xf32>
    %240 = arith.truncf %239 : vector<16x128xf32> to vector<16x128xbf16>
    %c1280 = arith.constant 1280 : index
    %c0_259 = arith.constant 0 : index
    %241 = vector.load %arg6[%c1280, %c0_259] : memref<2048x256xbf16, #tpu.memory_space<vmem>>, vector<128x256xbf16>
    %cst_260 = arith.constant dense<0.000000e+00> : vector<16x256xf32>
    %242 = tpu.matmul %240, %241, %cst_260 {dimension_numbers = #tpu.dot_dimension_numbers<[1], [0], [0], [1], [0, 0, 1, 1], [], []>} : vector<16x128xbf16>, vector<128x256xbf16>, vector<16x256xf32> -> vector<16x256xf32>
    %243 = arith.addf %237, %242 : vector<16x256xf32>
    %c0_261 = arith.constant 0 : index
    %c0_262 = arith.constant 0 : index
    %244 = vector.load %arg7[%c0_261, %c0_262] : memref<1x256xf32, #tpu.memory_space<vmem>>, vector<1x256xf32>
    %245 = vector.broadcast %244 : vector<1x256xf32> to vector<16x256xf32>
    %246 = arith.addf %243, %245 : vector<16x256xf32>
    %cst_263 = arith.constant 0.000000e+00 : f32
    %247 = vector.broadcast %cst_263 : f32 to vector<16x256xf32>
    %248 = arith.maximumf %246, %247 : vector<16x256xf32>
    %249 = tpu.concatenate %158, %188, %218, %248 in 0 : vector<16x256xf32>, vector<16x256xf32>, vector<16x256xf32>, vector<16x256xf32> -> vector<64x256xf32>
    %250 = arith.truncf %249 : vector<64x256xf32> to vector<64x256xbf16>
    %c0_264 = arith.constant 0 : index
    %c0_265 = arith.constant 0 : index
    %251 = vector.load %arg8[%c0_264, %c0_265] : memref<256x512xbf16, #tpu.memory_space<vmem>>, vector<256x512xbf16>
    %cst_266 = arith.constant dense<0.000000e+00> : vector<64x512xf32>
    %252 = tpu.matmul %250, %251, %cst_266 {dimension_numbers = #tpu.dot_dimension_numbers<[1], [0], [0], [1], [0, 0, 1, 1], [], []>} : vector<64x256xbf16>, vector<256x512xbf16>, vector<64x512xf32> -> vector<64x512xf32>
    %c0_267 = arith.constant 0 : index
    %c0_268 = arith.constant 0 : index
    %253 = vector.load %arg9[%c0_267, %c0_268] : memref<1x512xf32, #tpu.memory_space<vmem>>, vector<1x512xf32>
    %254 = vector.broadcast %253 : vector<1x512xf32> to vector<64x512xf32>
    %255 = arith.addf %252, %254 : vector<64x512xf32>
    %cst_269 = arith.constant 0.000000e+00 : f32
    %256 = vector.broadcast %cst_269 : f32 to vector<64x512xf32>
    %257 = arith.maximumf %255, %256 : vector<64x512xf32>
    %258 = arith.truncf %257 : vector<64x512xf32> to vector<64x512xbf16>
    %c0_270 = arith.constant 0 : index
    %c0_271 = arith.constant 0 : index
    %259 = vector.load %arg10[%c0_270, %c0_271] : memref<512x128xbf16, #tpu.memory_space<vmem>>, vector<512x128xbf16>
    %cst_272 = arith.constant dense<0.000000e+00> : vector<64x128xf32>
    %260 = tpu.matmul %258, %259, %cst_272 {dimension_numbers = #tpu.dot_dimension_numbers<[1], [0], [0], [1], [0, 0, 1, 1], [], []>} : vector<64x512xbf16>, vector<512x128xbf16>, vector<64x128xf32> -> vector<64x128xf32>
    %c0_273 = arith.constant 0 : index
    %c0_274 = arith.constant 0 : index
    %261 = vector.load %arg11[%c0_273, %c0_274] : memref<1x128xf32, #tpu.memory_space<vmem>>, vector<1x128xf32>
    %262 = vector.broadcast %261 : vector<1x128xf32> to vector<64x128xf32>
    %263 = arith.addf %260, %262 : vector<64x128xf32>
    %264 = arith.negf %263 : vector<64x128xf32>
    %265 = math.exp %264 : vector<64x128xf32>
    %cst_275 = arith.constant 1.000000e+00 : f32
    %266 = vector.broadcast %cst_275 : f32 to vector<64x128xf32>
    %267 = arith.addf %266, %265 : vector<64x128xf32>
    %268 = arith.divf %266, %267 : vector<64x128xf32>
    %c0_276 = arith.constant 0 : index
    %c0_277 = arith.constant 0 : index
    %269 = vector.load %arg12[%c0_276, %c0_277] : memref<64x128xf32, #tpu.memory_space<vmem>>, vector<64x128xf32>
    tpu.vector_store %arg12[%c0_276, %c0_277], %268 {strides = array<i32>} : memref<64x128xf32, #tpu.memory_space<vmem>>, vector<64x128xf32>,
    return
  }
  func.func @transform_0(%arg0: i32) -> (i32, i32, i32, i32) {
    %c0_i32 = arith.constant 0 : i32
    %c0_i32_0 = arith.constant 0 : i32
    %c0_i32_1 = arith.constant 0 : i32
    %c0_i32_2 = arith.constant 0 : i32
    return %arg0, %c0_i32, %c0_i32_0, %c0_i32_1 : i32, i32, i32, i32
  }
  func.func @transform_1(%arg0: i32) -> (i32, i32) {
    %c0_i32 = arith.constant 0 : i32
    %c0_i32_0 = arith.constant 0 : i32
    %c0_i32_1 = arith.constant 0 : i32
    return %c0_i32, %c0_i32_0 : i32, i32
  }
  func.func @transform_2(%arg0: i32) -> (i32, i32) {
    %c0_i32 = arith.constant 0 : i32
    %c0_i32_0 = arith.constant 0 : i32
    %c0_i32_1 = arith.constant 0 : i32
    return %c0_i32, %c0_i32_0 : i32, i32
  }
  func.func @transform_3(%arg0: i32) -> (i32, i32) {
    %c0_i32 = arith.constant 0 : i32
    %c0_i32_0 = arith.constant 0 : i32
    %c0_i32_1 = arith.constant 0 : i32
    return %c0_i32, %c0_i32_0 : i32, i32
  }
  func.func @transform_4(%arg0: i32) -> (i32, i32) {
    %c0_i32 = arith.constant 0 : i32
    %c0_i32_0 = arith.constant 0 : i32
    %c0_i32_1 = arith.constant 0 : i32
    return %c0_i32, %c0_i32_0 : i32, i32
  }
  func.func @transform_5(%arg0: i32) -> (i32, i32) {
    %c0_i32 = arith.constant 0 : i32
    %c0_i32_0 = arith.constant 0 : i32
    %c0_i32_1 = arith.constant 0 : i32
    return %c0_i32, %c0_i32_0 : i32, i32
  }
  func.func @transform_6(%arg0: i32) -> (i32, i32) {
    %c0_i32 = arith.constant 0 : i32
    %c0_i32_0 = arith.constant 0 : i32
    %c0_i32_1 = arith.constant 0 : i32
    return %c0_i32, %c0_i32_0 : i32, i32
  }
  func.func @transform_7(%arg0: i32) -> (i32, i32) {
    %c0_i32 = arith.constant 0 : i32
    %c0_i32_0 = arith.constant 0 : i32
    %c0_i32_1 = arith.constant 0 : i32
    return %c0_i32, %c0_i32_0 : i32, i32
  }
  func.func @transform_8(%arg0: i32) -> (i32, i32) {
    %c0_i32 = arith.constant 0 : i32
    %c0_i32_0 = arith.constant 0 : i32
    %c0_i32_1 = arith.constant 0 : i32
    return %c0_i32, %c0_i32_0 : i32, i32
  }
  func.func @transform_9(%arg0: i32) -> (i32, i32) {
    %c0_i32 = arith.constant 0 : i32
    %c0_i32_0 = arith.constant 0 : i32
    %c0_i32_1 = arith.constant 0 : i32
    return %c0_i32, %c0_i32_0 : i32, i32
  }
  func.func @transform_10(%arg0: i32) -> (i32, i32) {
    %c0_i32 = arith.constant 0 : i32
    %c0_i32_0 = arith.constant 0 : i32
    %c0_i32_1 = arith.constant 0 : i32
    return %c0_i32, %c0_i32_0 : i32, i32
  }
  func.func @transform_11(%arg0: i32) -> (i32, i32) {
    %c0_i32 = arith.constant 0 : i32
    %c0_i32_0 = arith.constant 0 : i32
    return %arg0, %c0_i32 : i32, i32
  }
}

</mosaic_0001>

<bundles_post_ra>
// kernel: forward.6
= control target key start
LH: loop header
LB: loop body
LE: loop exit
PB: predicated region body
PF: predicated region fallthrough
CT: control target
= control target key end

     0   :  { %s2905_s12 = smov 0   ;;  %s3458_s0 = inlined_call_operand.vmem [shape: bf16[8192,9], index: 0, kind: input, shape index: {}]   ;;  %s3459_s1 = inlined_call_operand.vmem [shape: bf16[9,16], index: 1, kind: input, shape index: {}]   ;;  %s3460_s2 = inlined_call_operand.vmem [shape: f32[1,16], index: 2, kind: input, shape index: {}]   ;;  %s3461_s3 = inlined_call_operand.vmem [shape: bf16[8192,16], index: 3, kind: output, shape index: {}]  }
   0x1 LB: > { %s2207_s13 = sadd.s32 4294967295, %s2882_s12   ;;  %p2211_p0 = scmp.ge.s32.totalorder %s2882_s12, 1  ;;  %s2882_s12 = sphi %s2905_s12, %s13_s12  }
   0x2   : > { %p138_p1 = scmp.lt.s32.totalorder %s2882_s12, 9 }
   0x4   : > { %p139_p2 = pnand %p2211_p0, %p138_p1 }
   0x5   : > { %v2810_v0 = vld [vmem:[%s3459_s1] sm:$0x1f] (!%p139_p2)   ;;  %vm830_vm0 = vcmask (!%p139_p2), 1043456   ;;  %vm831_vm1 = vcmask (!%p139_p2), 1044480   ;;  %s2212_s16 = sshll.u32 (!%p139_p2), %s2207_s13, 7  ;;  %v2884_v1 = vmov (!%p139_p2), 65535  }
   0x6   : > { %142 = sbr.rel (%p139_p2) target bundleno = 361 (0x169), region = 32  ;;  %v832_v2 = vsel (!%p139_p2), %vm830_vm0, 4294967295, %v2884_v1  ;;  %p163_p3 = scmp.lt.s32.totalorder (!%p139_p2), %s2212_s16, 1023  ;;  %vm637_vm2 = vcmask (!%p139_p2), 72704   ;;  %vm2022_vm3 = vcmask (!%p139_p2), 125952  }
   0x7   : > { %v833_v3 = vsel (!%p139_p2), %vm831_vm1, %v832_v2, 0 }
   0x8   : > { %v835_v4 = vand.u32 (!%p139_p2), %v2810_v0, %v833_v3 }
   0xa   : > { %2669 = vmatprep.subr.bf16.mxu0 (!%p139_p2), %v835_v4  ;;  %2799 = vmatprep.subr.bf16.mxu1 (!%p139_p2), %v835_v4 }
   0xb   : > { %2670 = vmatpush3.bf16.msra.mxu0 (!%p139_p2), %v835_v4  ;;  %2800 = vmatpush3.bf16.msra.mxu1 (!%p139_p2), %v835_v4 }
   0xd   : > { %s3463_s16 = smov (!%p163_p3, %s2212_s16), 1023 }
   0xe   : > { %s2213_s17 = sshll.u32 %s3463_s16, 2 }
   0xf   : > { %s2924_s20 = scalar_lea.vmem %s3458_s0, %s2213_s17  ;;  %s3069_s25 = scalar_lea.vmem %s3461_s3, %s2213_s17 }
  0x10   : > { %v2811_v5 = vld [vmem:[%s2924_s20] sm:$0xff]   ;;  %v2813_v7 = vld [vmem:[%s2924_s20 + $0x8] sm:$0xff]   ;;  %v2815_v9 = vld [vmem:[%s2924_s20 + $0x10] sm:$0xff]  }
  0x11   : > { %v2812_v6 = vld [vmem:[%s2924_s20 + $0x100] sm:$0xff]   ;;  %2671 = vmatprep.mubr.msk.bf16.mxu0 %vm637_vm2, %v2811_v5  ;;  %v2814_v8 = vld [vmem:[%s2924_s20 + $0x108] sm:$0xff]   ;;  %v2816_v10 = vld [vmem:[%s2924_s20 + $0x110] sm:$0xff]  }
  0x12   : > { %2735 = vmatprep.mubr.msk.bf16.mxu1 %vm637_vm2, %v2812_v6  ;;  %2672 = vmatmul.mubr.msk.bf16.vlgmr.msra.gmra.mrb[0].mxu0 %vm637_vm2, %v2813_v7  ;;  %v2817_v11 = vld [vmem:[%s2924_s20 + $0x18] sm:$0xff]   ;;  %v2819_v13 = vld [vmem:[%s2924_s20 + $0x20] sm:$0xff]   ;;  %v2821_v15 = vld [vmem:[%s2924_s20 + $0x28] sm:$0xff]  }
  0x13   : > { %2736 = vmatmul.mubr.msk.bf16.vlgmr.msra.gmra.mrb[0].mxu1 %vm637_vm2, %v2814_v8  ;;  %2675 = vmatprep.mubr.msk.bf16.mxu0 %vm637_vm2, %v2815_v9  ;;  %v2818_v12 = vld [vmem:[%s2924_s20 + $0x118] sm:$0xff]   ;;  %v2820_v14 = vld [vmem:[%s2924_s20 + $0x120] sm:$0xff]   ;;  %v2822_v16 = vld [vmem:[%s2924_s20 + $0x128] sm:$0xff]  }
  0x14   : > { %2739 = vmatprep.mubr.msk.bf16.mxu1 %vm637_vm2, %v2816_v10  ;;  %v2823_v17 = vld [vmem:[%s2924_s20 + $0x30] sm:$0xff]   ;;  %v2825_v19 = vld [vmem:[%s2924_s20 + $0x38] sm:$0xff]   ;;  %v2827_v21 = vld [vmem:[%s2924_s20 + $0x40] sm:$0xff]  }
  0x15   : > { %v2824_v18 = vld [vmem:[%s2924_s20 + $0x130] sm:$0xff]   ;;  %v2826_v20 = vld [vmem:[%s2924_s20 + $0x138] sm:$0xff]   ;;  %v2828_v22 = vld [vmem:[%s2924_s20 + $0x140] sm:$0xff]  }
  0x16   : > { %v2829_v23 = vld [vmem:[%s2924_s20 + $0x48] sm:$0xff]   ;;  %v2831_v25 = vld [vmem:[%s2924_s20 + $0x50] sm:$0xff]   ;;  %v2833_v27 = vld [vmem:[%s2924_s20 + $0x58] sm:$0xff]  }
  0x17   : > { %v2830_v24 = vld [vmem:[%s2924_s20 + $0x148] sm:$0xff]   ;;  %v2832_v26 = vld [vmem:[%s2924_s20 + $0x150] sm:$0xff]   ;;  %v2834_v28 = vld [vmem:[%s2924_s20 + $0x158] sm:$0xff]  }
  0x18   : > { %v2835_v29 = vld [vmem:[%s2924_s20 + $0x60] sm:$0xff]   ;;  %v2837_v31 = vld [vmem:[%s2924_s20 + $0x68] sm:$0xff]   ;;  %v2839_v33 = vld [vmem:[%s2924_s20 + $0x70] sm:$0xff]  }
  0x19   : > { %v2836_v30 = vld [vmem:[%s2924_s20 + $0x160] sm:$0xff]   ;;  %v2838_v32 = vld [vmem:[%s2924_s20 + $0x168] sm:$0xff]   ;;  %v2840_v34 = vld [vmem:[%s2924_s20 + $0x170] sm:$0xff]  }
  0x1a   : > { %2676 = vmatmul.mubr.msk.bf16.gmra.mrb[4].mxu0 %vm637_vm2, %v2817_v11  ;;  %v2841_v35 = vld [vmem:[%s2924_s20 + $0x78] sm:$0xff]   ;;  %v2843_v37 = vld [vmem:[%s2924_s20 + $0x80] sm:$0xff]   ;;  %v2845_v39 = vld [vmem:[%s2924_s20 + $0x88] sm:$0xff]  }
  0x1b   : > { %2740 = vmatmul.mubr.msk.bf16.gmra.mrb[4].mxu1 %vm637_vm2, %v2818_v12  ;;  %2679 = vmatprep.mubr.msk.bf16.mxu0 %vm637_vm2, %v2819_v13  ;;  %v2842_v36 = vld [vmem:[%s2924_s20 + $0x178] sm:$0xff]   ;;  %v2844_v38 = vld [vmem:[%s2924_s20 + $0x180] sm:$0xff]   ;;  %v2846_v40 = vld [vmem:[%s2924_s20 + $0x188] sm:$0xff]  }
  0x1c   : > { %2743 = vmatprep.mubr.msk.bf16.mxu1 %vm637_vm2, %v2820_v14  ;;  %v2847_v41 = vld [vmem:[%s2924_s20 + $0x90] sm:$0xff]   ;;  %v2849_v43 = vld [vmem:[%s2924_s20 + $0x98] sm:$0xff]   ;;  %v2851_v45 = vld [vmem:[%s2924_s20 + $0xa0] sm:$0xff]  }
  0x1d   : > { %v2848_v42 = vld [vmem:[%s2924_s20 + $0x190] sm:$0xff]   ;;  %v2850_v44 = vld [vmem:[%s2924_s20 + $0x198] sm:$0xff]   ;;  %v2852_v46 = vld [vmem:[%s2924_s20 + $0x1a0] sm:$0xff]  }
  0x1e   : > { %v2853_v47 = vld [vmem:[%s2924_s20 + $0xa8] sm:$0xff]   ;;  %v2855_v49 = vld [vmem:[%s2924_s20 + $0xb0] sm:$0xff]   ;;  %v2857_v51 = vld [vmem:[%s2924_s20 + $0xb8] sm:$0xff]  }
  0x1f   : > { %v2854_v48 = vld [vmem:[%s2924_s20 + $0x1a8] sm:$0xff]   ;;  %v2856_v50 = vld [vmem:[%s2924_s20 + $0x1b0] sm:$0xff]   ;;  %v2858_v52 = vld [vmem:[%s2924_s20 + $0x1b8] sm:$0xff]  }
  0x20   : > { %v2859_v53 = vld [vmem:[%s2924_s20 + $0xc0] sm:$0xff]   ;;  %v2861_v55 = vld [vmem:[%s2924_s20 + $0xc8] sm:$0xff]   ;;  %v2863_v57 = vld [vmem:[%s2924_s20 + $0xd0] sm:$0xff]  }
  0x21   : > { %v2860_v54 = vld [vmem:[%s2924_s20 + $0x1c0] sm:$0xff]   ;;  %v2862_v56 = vld [vmem:[%s2924_s20 + $0x1c8] sm:$0xff]   ;;  %v2864_v58 = vld [vmem:[%s2924_s20 + $0x1d0] sm:$0xff]  }
  0x22   : > { %2680 = vmatmul.mubr.msk.bf16.gmra.mrb[8].mxu0 %vm637_vm2, %v2821_v15  ;;  %v2865_v59 = vld [vmem:[%s2924_s20 + $0xd8] sm:$0xff]   ;;  %v2867_v61 = vld [vmem:[%s2924_s20 + $0xe0] sm:$0xff]   ;;  %v2869_v63 = vld [vmem:[%s2924_s20 + $0xe8] sm:$0xff]  }
  0x23   : > { %2744 = vmatmul.mubr.msk.bf16.gmra.mrb[8].mxu1 %vm637_vm2, %v2822_v16  ;;  %2683 = vmatprep.mubr.msk.bf16.mxu0 %vm637_vm2, %v2823_v17  ;;  %v2866_v60 = vld [vmem:[%s2924_s20 + $0x1d8] sm:$0xff]   ;;  %v2868_v62 = vld [vmem:[%s2924_s20 + $0x1e0] sm:$0xff]   ;;  %v2870_v0 = vld [vmem:[%s2924_s20 + $0x1e8] sm:$0xff]  }
  0x24   : > { %2747 = vmatprep.mubr.msk.bf16.mxu1 %vm637_vm2, %v2824_v18  ;;  %v2871_v1 = vld [vmem:[%s2924_s20 + $0xf0] sm:$0xff]   ;;  %v2873_v3 = vld [vmem:[%s2924_s20 + $0xf8] sm:$0xff]   ;;  %v3057_v5 = vld [vmem:[%s3460_s2] ss:$0 sm:$0xff] }
  0x25   : > { %v2872_v2 = vld [vmem:[%s2924_s20 + $0x1f0] sm:$0xff]   ;;  %v2874_v4 = vld [vmem:[%s2924_s20 + $0x1f8] sm:$0xff]  }
  0x2a   : > { %2684 = vmatmul.mubr.msk.bf16.gmra.mrb[12].mxu0 %vm637_vm2, %v2825_v19 }
  0x2b   : > { %2748 = vmatmul.mubr.msk.bf16.gmra.mrb[12].mxu1 %vm637_vm2, %v2826_v20  ;;  %2687 = vmatprep.mubr.msk.bf16.mxu0 %vm637_vm2, %v2827_v21 }
  0x2c   : > { %2751 = vmatprep.mubr.msk.bf16.mxu1 %vm637_vm2, %v2828_v22 }
  0x32   : > { %2688 = vmatmul.mubr.msk.bf16.gmra.mrb[16].mxu0 %vm637_vm2, %v2829_v23 }
  0x33   : > { %2752 = vmatmul.mubr.msk.bf16.gmra.mrb[16].mxu1 %vm637_vm2, %v2830_v24  ;;  %2691 = vmatprep.mubr.msk.bf16.mxu0 %vm637_vm2, %v2831_v25 }
  0x34   : > { %2755 = vmatprep.mubr.msk.bf16.mxu1 %vm637_vm2, %v2832_v26 }
  0x3a   : > { %2692 = vmatmul.mubr.msk.bf16.gmra.mrb[20].mxu0 %vm637_vm2, %v2833_v27 }
  0x3b   : > { %2756 = vmatmul.mubr.msk.bf16.gmra.mrb[20].mxu1 %vm637_vm2, %v2834_v28  ;;  %2695 = vmatprep.mubr.msk.bf16.mxu0 %vm637_vm2, %v2835_v29 }
  0x3c   : > { %2759 = vmatprep.mubr.msk.bf16.mxu1 %vm637_vm2, %v2836_v30 }
  0x42   : > { %2696 = vmatmul.mubr.msk.bf16.gmra.mrb[24].mxu0 %vm637_vm2, %v2837_v31 }
  0x43   : > { %2760 = vmatmul.mubr.msk.bf16.gmra.mrb[24].mxu1 %vm637_vm2, %v2838_v32  ;;  %2699 = vmatprep.mubr.msk.bf16.mxu0 %vm637_vm2, %v2839_v33 }
  0x44   : > { %2763 = vmatprep.mubr.msk.bf16.mxu1 %vm637_vm2, %v2840_v34 }
  0x4a   : > { %2700 = vmatmul.mubr.msk.bf16.gmra.mrb[28].mxu0 %vm637_vm2, %v2841_v35 }
  0x4b   : > { %2764 = vmatmul.mubr.msk.bf16.gmra.mrb[28].mxu1 %vm637_vm2, %v2842_v36  ;;  %2703 = vmatprep.mubr.msk.bf16.mxu0 %vm637_vm2, %v2843_v37 }
  0x4c   : > { %2767 = vmatprep.mubr.msk.bf16.mxu1 %vm637_vm2, %v2844_v38 }
  0x52   : > { %2704 = vmatmul.mubr.msk.bf16.gmra.mrb[32].mxu0 %vm637_vm2, %v2845_v39 }
  0x53   : > { %2768 = vmatmul.mubr.msk.bf16.gmra.mrb[32].mxu1 %vm637_vm2, %v2846_v40  ;;  %2707 = vmatprep.mubr.msk.bf16.mxu0 %vm637_vm2, %v2847_v41 }
  0x54   : > { %2771 = vmatprep.mubr.msk.bf16.mxu1 %vm637_vm2, %v2848_v42 }
  0x5a   : > { %2708 = vmatmul.mubr.msk.bf16.gmra.mrb[36].mxu0 %vm637_vm2, %v2849_v43 }
  0x5b   : > { %2772 = vmatmul.mubr.msk.bf16.gmra.mrb[36].mxu1 %vm637_vm2, %v2850_v44  ;;  %2711 = vmatprep.mubr.msk.bf16.mxu0 %vm637_vm2, %v2851_v45 }
  0x5c   : > { %2775 = vmatprep.mubr.msk.bf16.mxu1 %vm637_vm2, %v2852_v46 }
  0x62   : > { %2712 = vmatmul.mubr.msk.bf16.gmra.mrb[40].mxu0 %vm637_vm2, %v2853_v47 }
  0x63   : > { %2776 = vmatmul.mubr.msk.bf16.gmra.mrb[40].mxu1 %vm637_vm2, %v2854_v48  ;;  %2715 = vmatprep.mubr.msk.bf16.mxu0 %vm637_vm2, %v2855_v49 }
  0x64   : > { %2779 = vmatprep.mubr.msk.bf16.mxu1 %vm637_vm2, %v2856_v50 }
  0x6a   : > { %2716 = vmatmul.mubr.msk.bf16.gmra.mrb[44].mxu0 %vm637_vm2, %v2857_v51 }
  0x6b   : > { %2780 = vmatmul.mubr.msk.bf16.gmra.mrb[44].mxu1 %vm637_vm2, %v2858_v52  ;;  %2719 = vmatprep.mubr.msk.bf16.mxu0 %vm637_vm2, %v2859_v53 }
  0x6c   : > { %2783 = vmatprep.mubr.msk.bf16.mxu1 %vm637_vm2, %v2860_v54 }
  0x72   : > { %2720 = vmatmul.mubr.msk.bf16.gmra.mrb[48].mxu0 %vm637_vm2, %v2861_v55 }
  0x73   : > { %2784 = vmatmul.mubr.msk.bf16.gmra.mrb[48].mxu1 %vm637_vm2, %v2862_v56  ;;  %2723 = vmatprep.mubr.msk.bf16.mxu0 %vm637_vm2, %v2863_v57 }
  0x74   : > { %2787 = vmatprep.mubr.msk.bf16.mxu1 %vm637_vm2, %v2864_v58 }
  0x7a   : > { %2724 = vmatmul.mubr.msk.bf16.gmra.mrb[52].mxu0 %vm637_vm2, %v2865_v59 }
  0x7b   : > { %2788 = vmatmul.mubr.msk.bf16.gmra.mrb[52].mxu1 %vm637_vm2, %v2866_v60  ;;  %2727 = vmatprep.mubr.msk.bf16.mxu0 %vm637_vm2, %v2867_v61 }
  0x7c   : > { %2791 = vmatprep.mubr.msk.bf16.mxu1 %vm637_vm2, %v2868_v62 }
  0x82   : > { %2728 = vmatmul.mubr.msk.bf16.gmra.mrb[56].mxu0 %vm637_vm2, %v2869_v63 }
  0x83   : > { %2792 = vmatmul.mubr.msk.bf16.gmra.mrb[56].mxu1 %vm637_vm2, %v2870_v0  ;;  %2731 = vmatprep.mubr.msk.bf16.mxu0 %vm637_vm2, %v2871_v1 }
  0x84   : > { %2795 = vmatprep.mubr.msk.bf16.mxu1 %vm637_vm2, %v2872_v2 }
  0x8a   : > { %2732 = vmatmul.mubr.msk.bf16.gmra.mrb[60].mxu0 %vm637_vm2, %v2873_v3 }
  0x8b   : > { %2796 = vmatmul.mubr.msk.bf16.gmra.mrb[60].mxu1 %vm637_vm2, %v2874_v4 }
  0xe5   : > { %v2673_v6 = vpop.f32.mrb[0].mxu0 }
  0xe6   : > { %v880_v7 = vadd.f32 %v2673_v6, %v3057_v5  ;;  %v2737_v8 = vpop.f32.mrb[0].mxu1  ;;  %v871_v9 = vpop.f32.mrb[1].mxu0 }
  0xe7   : > { %v1136_v10 = vadd.f32 %v2737_v8, %v3057_v5  ;;  %v872_v11 = vadd.f32 %v3057_v5, %v871_v9  ;;  %v1127_v12 = vpop.f32.mrb[1].mxu1  ;;  %v2674_v13 = vpop.f32.mrb[2].mxu0 }
  0xe8   : > { %v1384_v14 = vmax.f32 %v880_v7, 0.0  ;;  %v1128_v15 = vadd.f32 %v3057_v5, %v1127_v12  ;;  %v883_v16 = vadd.f32 %v2674_v13, %v3057_v5  ;;  %v2738_v17 = vpop.f32.mrb[2].mxu1  ;;  %v874_v18 = vpop.f32.mrb[3].mxu0 }
  0xe9   : > { %v1448_v19 = vmax.f32 %v1136_v10, 0.0  ;;  %v1382_v20 = vmax.f32 %v872_v11, 0.0  ;;  %v1139_v21 = vadd.f32 %v2738_v17, %v3057_v5  ;;  %v875_v22 = vadd.f32 %v3057_v5, %v874_v18  ;;  %v1130_v23 = vpop.f32.mrb[3].mxu1 }
  0xea   : > { %v2478_v24 = vpack.c.bf16 %v1384_v14, %v1384_v14  ;;  %v1446_v25 = vmax.f32 %v1128_v15, 0.0  ;;  %v1385_v26 = vmax.f32 %v883_v16, 0.0  ;;  %v1131_v27 = vadd.f32 %v3057_v5, %v1130_v23 }
  0xeb   : > { %v2542_v28 = vpack.c.bf16 %v1448_v19, %v1448_v19  ;;  %v2476_v29 = vpack.c.bf16 %v1382_v20, %v1382_v20  ;;  %v1449_v30 = vmax.f32 %v1139_v21, 0.0  ;;  %v1383_v31 = vmax.f32 %v875_v22, 0.0 }
  0xec   : > { %2025 = vst.msk [vmem:[%s3069_s25 + $0x8] sm:$0xf] %vm2022_vm3, %v2478_v24  ;;  %v2540_v32 = vpack.c.bf16 %v1446_v25, %v1446_v25  ;;  %v2479_v33 = vpack.c.bf16 %v1385_v26, %v1385_v26  ;;  %v1447_v34 = vmax.f32 %v1131_v27, 0.0 }
  0xed   : > { %2089 = vst.msk [vmem:[%s3069_s25 + $0x108] sm:$0xf] %vm2022_vm3, %v2542_v28  ;;  %2023 = vst.msk [vmem:[%s3069_s25] sm:$0xf] %vm2022_vm3, %v2476_v29  ;;  %v2543_v35 = vpack.c.bf16 %v1449_v30, %v1449_v30  ;;  %v2477_v36 = vpack.c.bf16 %v1383_v31, %v1383_v31  ;;  %v2677_v37 = vpop.f32.mrb[4].mxu0 }
  0xee   : > { %2087 = vst.msk [vmem:[%s3069_s25 + $0x100] sm:$0xf] %vm2022_vm3, %v2540_v32  ;;  %2026 = vst.msk [vmem:[%s3069_s25 + $0xc] sm:$0xf] %vm2022_vm3, %v2479_v33  ;;  %v2541_v38 = vpack.c.bf16 %v1447_v34, %v1447_v34  ;;  %v896_v39 = vadd.f32 %v2677_v37, %v3057_v5  ;;  %v2741_v40 = vpop.f32.mrb[4].mxu1  ;;  %v887_v41 = vpop.f32.mrb[5].mxu0 }
  0xef   : > { %2090 = vst.msk [vmem:[%s3069_s25 + $0x10c] sm:$0xf] %vm2022_vm3, %v2543_v35  ;;  %2024 = vst.msk [vmem:[%s3069_s25 + $0x4] sm:$0xf] %vm2022_vm3, %v2477_v36  ;;  %v1152_v42 = vadd.f32 %v2741_v40, %v3057_v5  ;;  %v888_v43 = vadd.f32 %v3057_v5, %v887_v41  ;;  %v1143_v44 = vpop.f32.mrb[5].mxu1  ;;  %v2678_v45 = vpop.f32.mrb[6].mxu0 }
  0xf0   : > { %2088 = vst.msk [vmem:[%s3069_s25 + $0x104] sm:$0xf] %vm2022_vm3, %v2541_v38  ;;  %v1388_v46 = vmax.f32 %v896_v39, 0.0  ;;  %v1144_v47 = vadd.f32 %v3057_v5, %v1143_v44  ;;  %v899_v48 = vadd.f32 %v2678_v45, %v3057_v5  ;;  %v2742_v49 = vpop.f32.mrb[6].mxu1  ;;  %v890_v50 = vpop.f32.mrb[7].mxu0 }
  0xf1   : > { %v1452_v51 = vmax.f32 %v1152_v42, 0.0  ;;  %v1386_v52 = vmax.f32 %v888_v43, 0.0  ;;  %v1155_v53 = vadd.f32 %v2742_v49, %v3057_v5  ;;  %v891_v54 = vadd.f32 %v3057_v5, %v890_v50  ;;  %v1146_v55 = vpop.f32.mrb[7].mxu1 }
  0xf2   : > { %v2482_v56 = vpack.c.bf16 %v1388_v46, %v1388_v46  ;;  %v1450_v57 = vmax.f32 %v1144_v47, 0.0  ;;  %v1389_v58 = vmax.f32 %v899_v48, 0.0  ;;  %v1147_v59 = vadd.f32 %v3057_v5, %v1146_v55 }
  0xf3   : > { %v2546_v60 = vpack.c.bf16 %v1452_v51, %v1452_v51  ;;  %v2480_v61 = vpack.c.bf16 %v1386_v52, %v1386_v52  ;;  %v1453_v62 = vmax.f32 %v1155_v53, 0.0  ;;  %v1387_v63 = vmax.f32 %v891_v54, 0.0 }
  0xf4   : > { %2029 = vst.msk [vmem:[%s3069_s25 + $0x18] sm:$0xf] %vm2022_vm3, %v2482_v56  ;;  %v2544_v0 = vpack.c.bf16 %v1450_v57, %v1450_v57  ;;  %v2483_v1 = vpack.c.bf16 %v1389_v58, %v1389_v58  ;;  %v1451_v2 = vmax.f32 %v1147_v59, 0.0 }
  0xf5   : > { %2093 = vst.msk [vmem:[%s3069_s25 + $0x118] sm:$0xf] %vm2022_vm3, %v2546_v60  ;;  %2027 = vst.msk [vmem:[%s3069_s25 + $0x10] sm:$0xf] %vm2022_vm3, %v2480_v61  ;;  %v2547_v3 = vpack.c.bf16 %v1453_v62, %v1453_v62  ;;  %v2481_v4 = vpack.c.bf16 %v1387_v63, %v1387_v63  ;;  %v2681_v6 = vpop.f32.mrb[8].mxu0 }
  0xf6   : > { %2091 = vst.msk [vmem:[%s3069_s25 + $0x110] sm:$0xf] %vm2022_vm3, %v2544_v0  ;;  %2030 = vst.msk [vmem:[%s3069_s25 + $0x1c] sm:$0xf] %vm2022_vm3, %v2483_v1  ;;  %v2545_v7 = vpack.c.bf16 %v1451_v2, %v1451_v2  ;;  %v912_v8 = vadd.f32 %v2681_v6, %v3057_v5  ;;  %v2745_v9 = vpop.f32.mrb[8].mxu1  ;;  %v903_v10 = vpop.f32.mrb[9].mxu0 }
  0xf7   : > { %2094 = vst.msk [vmem:[%s3069_s25 + $0x11c] sm:$0xf] %vm2022_vm3, %v2547_v3  ;;  %2028 = vst.msk [vmem:[%s3069_s25 + $0x14] sm:$0xf] %vm2022_vm3, %v2481_v4  ;;  %v1168_v11 = vadd.f32 %v2745_v9, %v3057_v5  ;;  %v904_v12 = vadd.f32 %v3057_v5, %v903_v10  ;;  %v1159_v13 = vpop.f32.mrb[9].mxu1  ;;  %v2682_v14 = vpop.f32.mrb[10].mxu0 }
  0xf8   : > { %2092 = vst.msk [vmem:[%s3069_s25 + $0x114] sm:$0xf] %vm2022_vm3, %v2545_v7  ;;  %v1392_v15 = vmax.f32 %v912_v8, 0.0  ;;  %v1160_v16 = vadd.f32 %v3057_v5, %v1159_v13  ;;  %v915_v17 = vadd.f32 %v2682_v14, %v3057_v5  ;;  %v2746_v18 = vpop.f32.mrb[10].mxu1  ;;  %v906_v19 = vpop.f32.mrb[11].mxu0 }
  0xf9   : > { %v1456_v20 = vmax.f32 %v1168_v11, 0.0  ;;  %v1390_v21 = vmax.f32 %v904_v12, 0.0  ;;  %v1171_v22 = vadd.f32 %v2746_v18, %v3057_v5  ;;  %v907_v23 = vadd.f32 %v3057_v5, %v906_v19  ;;  %v1162_v24 = vpop.f32.mrb[11].mxu1 }
  0xfa   : > { %v2486_v25 = vpack.c.bf16 %v1392_v15, %v1392_v15  ;;  %v1454_v26 = vmax.f32 %v1160_v16, 0.0  ;;  %v1393_v27 = vmax.f32 %v915_v17, 0.0  ;;  %v1163_v28 = vadd.f32 %v3057_v5, %v1162_v24 }
  0xfb   : > { %v2550_v29 = vpack.c.bf16 %v1456_v20, %v1456_v20  ;;  %v2484_v30 = vpack.c.bf16 %v1390_v21, %v1390_v21  ;;  %v1457_v31 = vmax.f32 %v1171_v22, 0.0  ;;  %v1391_v32 = vmax.f32 %v907_v23, 0.0 }
  0xfc   : > { %2033 = vst.msk [vmem:[%s3069_s25 + $0x28] sm:$0xf] %vm2022_vm3, %v2486_v25  ;;  %v2548_v33 = vpack.c.bf16 %v1454_v26, %v1454_v26  ;;  %v2487_v34 = vpack.c.bf16 %v1393_v27, %v1393_v27  ;;  %v1455_v35 = vmax.f32 %v1163_v28, 0.0 }
  0xfd   : > { %2097 = vst.msk [vmem:[%s3069_s25 + $0x128] sm:$0xf] %vm2022_vm3, %v2550_v29  ;;  %2031 = vst.msk [vmem:[%s3069_s25 + $0x20] sm:$0xf] %vm2022_vm3, %v2484_v30  ;;  %v2551_v36 = vpack.c.bf16 %v1457_v31, %v1457_v31  ;;  %v2485_v37 = vpack.c.bf16 %v1391_v32, %v1391_v32  ;;  %v2685_v38 = vpop.f32.mrb[12].mxu0 }
  0xfe   : > { %2095 = vst.msk [vmem:[%s3069_s25 + $0x120] sm:$0xf] %vm2022_vm3, %v2548_v33  ;;  %2034 = vst.msk [vmem:[%s3069_s25 + $0x2c] sm:$0xf] %vm2022_vm3, %v2487_v34  ;;  %v2549_v39 = vpack.c.bf16 %v1455_v35, %v1455_v35  ;;  %v928_v40 = vadd.f32 %v2685_v38, %v3057_v5  ;;  %v2749_v41 = vpop.f32.mrb[12].mxu1  ;;  %v919_v42 = vpop.f32.mrb[13].mxu0 }
  0xff   : > { %2098 = vst.msk [vmem:[%s3069_s25 + $0x12c] sm:$0xf] %vm2022_vm3, %v2551_v36  ;;  %2032 = vst.msk [vmem:[%s3069_s25 + $0x24] sm:$0xf] %vm2022_vm3, %v2485_v37  ;;  %v1184_v43 = vadd.f32 %v2749_v41, %v3057_v5  ;;  %v920_v44 = vadd.f32 %v3057_v5, %v919_v42  ;;  %v1175_v45 = vpop.f32.mrb[13].mxu1  ;;  %v2686_v46 = vpop.f32.mrb[14].mxu0 }
 0x100   : > { %2096 = vst.msk [vmem:[%s3069_s25 + $0x124] sm:$0xf] %vm2022_vm3, %v2549_v39  ;;  %v1396_v47 = vmax.f32 %v928_v40, 0.0  ;;  %v1176_v48 = vadd.f32 %v3057_v5, %v1175_v45  ;;  %v931_v49 = vadd.f32 %v2686_v46, %v3057_v5  ;;  %v2750_v50 = vpop.f32.mrb[14].mxu1  ;;  %v922_v51 = vpop.f32.mrb[15].mxu0 }
 0x101   : > { %v1460_v52 = vmax.f32 %v1184_v43, 0.0  ;;  %v1394_v53 = vmax.f32 %v920_v44, 0.0  ;;  %v1187_v54 = vadd.f32 %v2750_v50, %v3057_v5  ;;  %v923_v55 = vadd.f32 %v3057_v5, %v922_v51  ;;  %v1178_v56 = vpop.f32.mrb[15].mxu1 }
 0x102   : > { %v2490_v57 = vpack.c.bf16 %v1396_v47, %v1396_v47  ;;  %v1458_v58 = vmax.f32 %v1176_v48, 0.0  ;;  %v1397_v59 = vmax.f32 %v931_v49, 0.0  ;;  %v1179_v60 = vadd.f32 %v3057_v5, %v1178_v56 }
 0x103   : > { %v2554_v61 = vpack.c.bf16 %v1460_v52, %v1460_v52  ;;  %v2488_v62 = vpack.c.bf16 %v1394_v53, %v1394_v53  ;;  %v1461_v63 = vmax.f32 %v1187_v54, 0.0  ;;  %v1395_v0 = vmax.f32 %v923_v55, 0.0 }
 0x104   : > { %2037 = vst.msk [vmem:[%s3069_s25 + $0x38] sm:$0xf] %vm2022_vm3, %v2490_v57  ;;  %v2552_v1 = vpack.c.bf16 %v1458_v58, %v1458_v58  ;;  %v2491_v2 = vpack.c.bf16 %v1397_v59, %v1397_v59  ;;  %v1459_v3 = vmax.f32 %v1179_v60, 0.0 }
 0x105   : > { %2101 = vst.msk [vmem:[%s3069_s25 + $0x138] sm:$0xf] %vm2022_vm3, %v2554_v61  ;;  %2035 = vst.msk [vmem:[%s3069_s25 + $0x30] sm:$0xf] %vm2022_vm3, %v2488_v62  ;;  %v2555_v4 = vpack.c.bf16 %v1461_v63, %v1461_v63  ;;  %v2489_v6 = vpack.c.bf16 %v1395_v0, %v1395_v0  ;;  %v2689_v7 = vpop.f32.mrb[16].mxu0 }
 0x106   : > { %2099 = vst.msk [vmem:[%s3069_s25 + $0x130] sm:$0xf] %vm2022_vm3, %v2552_v1  ;;  %2038 = vst.msk [vmem:[%s3069_s25 + $0x3c] sm:$0xf] %vm2022_vm3, %v2491_v2  ;;  %v2553_v8 = vpack.c.bf16 %v1459_v3, %v1459_v3  ;;  %v944_v9 = vadd.f32 %v2689_v7, %v3057_v5  ;;  %v2753_v10 = vpop.f32.mrb[16].mxu1  ;;  %v935_v11 = vpop.f32.mrb[17].mxu0 }
 0x107   : > { %2102 = vst.msk [vmem:[%s3069_s25 + $0x13c] sm:$0xf] %vm2022_vm3, %v2555_v4  ;;  %2036 = vst.msk [vmem:[%s3069_s25 + $0x34] sm:$0xf] %vm2022_vm3, %v2489_v6  ;;  %v1200_v12 = vadd.f32 %v2753_v10, %v3057_v5  ;;  %v936_v13 = vadd.f32 %v3057_v5, %v935_v11  ;;  %v1191_v14 = vpop.f32.mrb[17].mxu1  ;;  %v2690_v15 = vpop.f32.mrb[18].mxu0 }
 0x108   : > { %2100 = vst.msk [vmem:[%s3069_s25 + $0x134] sm:$0xf] %vm2022_vm3, %v2553_v8  ;;  %v1400_v16 = vmax.f32 %v944_v9, 0.0  ;;  %v1192_v17 = vadd.f32 %v3057_v5, %v1191_v14  ;;  %v947_v18 = vadd.f32 %v2690_v15, %v3057_v5  ;;  %v2754_v19 = vpop.f32.mrb[18].mxu1  ;;  %v938_v20 = vpop.f32.mrb[19].mxu0 }
 0x109   : > { %v1464_v21 = vmax.f32 %v1200_v12, 0.0  ;;  %v1398_v22 = vmax.f32 %v936_v13, 0.0  ;;  %v1203_v23 = vadd.f32 %v2754_v19, %v3057_v5  ;;  %v939_v24 = vadd.f32 %v3057_v5, %v938_v20  ;;  %v1194_v25 = vpop.f32.mrb[19].mxu1 }
 0x10a   : > { %v2494_v26 = vpack.c.bf16 %v1400_v16, %v1400_v16  ;;  %v1462_v27 = vmax.f32 %v1192_v17, 0.0  ;;  %v1401_v28 = vmax.f32 %v947_v18, 0.0  ;;  %v1195_v29 = vadd.f32 %v3057_v5, %v1194_v25 }
 0x10b   : > { %v2558_v30 = vpack.c.bf16 %v1464_v21, %v1464_v21  ;;  %v2492_v31 = vpack.c.bf16 %v1398_v22, %v1398_v22  ;;  %v1465_v32 = vmax.f32 %v1203_v23, 0.0  ;;  %v1399_v33 = vmax.f32 %v939_v24, 0.0 }
 0x10c   : > { %2041 = vst.msk [vmem:[%s3069_s25 + $0x48] sm:$0xf] %vm2022_vm3, %v2494_v26  ;;  %v2556_v34 = vpack.c.bf16 %v1462_v27, %v1462_v27  ;;  %v2495_v35 = vpack.c.bf16 %v1401_v28, %v1401_v28  ;;  %v1463_v36 = vmax.f32 %v1195_v29, 0.0 }
 0x10d   : > { %2105 = vst.msk [vmem:[%s3069_s25 + $0x148] sm:$0xf] %vm2022_vm3, %v2558_v30  ;;  %2039 = vst.msk [vmem:[%s3069_s25 + $0x40] sm:$0xf] %vm2022_vm3, %v2492_v31  ;;  %v2559_v37 = vpack.c.bf16 %v1465_v32, %v1465_v32  ;;  %v2493_v38 = vpack.c.bf16 %v1399_v33, %v1399_v33  ;;  %v2693_v39 = vpop.f32.mrb[20].mxu0 }
 0x10e   : > { %2103 = vst.msk [vmem:[%s3069_s25 + $0x140] sm:$0xf] %vm2022_vm3, %v2556_v34  ;;  %2042 = vst.msk [vmem:[%s3069_s25 + $0x4c] sm:$0xf] %vm2022_vm3, %v2495_v35  ;;  %v2557_v40 = vpack.c.bf16 %v1463_v36, %v1463_v36  ;;  %v960_v41 = vadd.f32 %v2693_v39, %v3057_v5  ;;  %v2757_v42 = vpop.f32.mrb[20].mxu1  ;;  %v951_v43 = vpop.f32.mrb[21].mxu0 }
 0x10f   : > { %2106 = vst.msk [vmem:[%s3069_s25 + $0x14c] sm:$0xf] %vm2022_vm3, %v2559_v37  ;;  %2040 = vst.msk [vmem:[%s3069_s25 + $0x44] sm:$0xf] %vm2022_vm3, %v2493_v38  ;;  %v1216_v44 = vadd.f32 %v2757_v42, %v3057_v5  ;;  %v952_v45 = vadd.f32 %v3057_v5, %v951_v43  ;;  %v1207_v46 = vpop.f32.mrb[21].mxu1  ;;  %v2694_v47 = vpop.f32.mrb[22].mxu0 }
 0x110   : > { %2104 = vst.msk [vmem:[%s3069_s25 + $0x144] sm:$0xf] %vm2022_vm3, %v2557_v40  ;;  %v1404_v48 = vmax.f32 %v960_v41, 0.0  ;;  %v1208_v49 = vadd.f32 %v3057_v5, %v1207_v46  ;;  %v963_v50 = vadd.f32 %v2694_v47, %v3057_v5  ;;  %v2758_v51 = vpop.f32.mrb[22].mxu1  ;;  %v954_v52 = vpop.f32.mrb[23].mxu0 }
 0x111   : > { %v1468_v53 = vmax.f32 %v1216_v44, 0.0  ;;  %v1402_v54 = vmax.f32 %v952_v45, 0.0  ;;  %v1219_v55 = vadd.f32 %v2758_v51, %v3057_v5  ;;  %v955_v56 = vadd.f32 %v3057_v5, %v954_v52  ;;  %v1210_v57 = vpop.f32.mrb[23].mxu1 }
 0x112   : > { %v2498_v58 = vpack.c.bf16 %v1404_v48, %v1404_v48  ;;  %v1466_v59 = vmax.f32 %v1208_v49, 0.0  ;;  %v1405_v60 = vmax.f32 %v963_v50, 0.0  ;;  %v1211_v61 = vadd.f32 %v3057_v5, %v1210_v57 }
 0x113   : > { %v2562_v62 = vpack.c.bf16 %v1468_v53, %v1468_v53  ;;  %v2496_v63 = vpack.c.bf16 %v1402_v54, %v1402_v54  ;;  %v1469_v0 = vmax.f32 %v1219_v55, 0.0  ;;  %v1403_v1 = vmax.f32 %v955_v56, 0.0 }
 0x114   : > { %2045 = vst.msk [vmem:[%s3069_s25 + $0x58] sm:$0xf] %vm2022_vm3, %v2498_v58  ;;  %v2560_v2 = vpack.c.bf16 %v1466_v59, %v1466_v59  ;;  %v2499_v3 = vpack.c.bf16 %v1405_v60, %v1405_v60  ;;  %v1467_v4 = vmax.f32 %v1211_v61, 0.0 }
 0x115   : > { %2109 = vst.msk [vmem:[%s3069_s25 + $0x158] sm:$0xf] %vm2022_vm3, %v2562_v62  ;;  %2043 = vst.msk [vmem:[%s3069_s25 + $0x50] sm:$0xf] %vm2022_vm3, %v2496_v63  ;;  %v2563_v6 = vpack.c.bf16 %v1469_v0, %v1469_v0  ;;  %v2497_v7 = vpack.c.bf16 %v1403_v1, %v1403_v1  ;;  %v2697_v8 = vpop.f32.mrb[24].mxu0 }
 0x116   : > { %2107 = vst.msk [vmem:[%s3069_s25 + $0x150] sm:$0xf] %vm2022_vm3, %v2560_v2  ;;  %2046 = vst.msk [vmem:[%s3069_s25 + $0x5c] sm:$0xf] %vm2022_vm3, %v2499_v3  ;;  %v2561_v9 = vpack.c.bf16 %v1467_v4, %v1467_v4  ;;  %v976_v10 = vadd.f32 %v2697_v8, %v3057_v5  ;;  %v2761_v11 = vpop.f32.mrb[24].mxu1  ;;  %v967_v12 = vpop.f32.mrb[25].mxu0 }
 0x117   : > { %2110 = vst.msk [vmem:[%s3069_s25 + $0x15c] sm:$0xf] %vm2022_vm3, %v2563_v6  ;;  %2044 = vst.msk [vmem:[%s3069_s25 + $0x54] sm:$0xf] %vm2022_vm3, %v2497_v7  ;;  %v1232_v13 = vadd.f32 %v2761_v11, %v3057_v5  ;;  %v968_v14 = vadd.f32 %v3057_v5, %v967_v12  ;;  %v1223_v15 = vpop.f32.mrb[25].mxu1  ;;  %v2698_v16 = vpop.f32.mrb[26].mxu0 }
 0x118   : > { %2108 = vst.msk [vmem:[%s3069_s25 + $0x154] sm:$0xf] %vm2022_vm3, %v2561_v9  ;;  %v1408_v17 = vmax.f32 %v976_v10, 0.0  ;;  %v1224_v18 = vadd.f32 %v3057_v5, %v1223_v15  ;;  %v979_v19 = vadd.f32 %v2698_v16, %v3057_v5  ;;  %v2762_v20 = vpop.f32.mrb[26].mxu1  ;;  %v970_v21 = vpop.f32.mrb[27].mxu0 }
 0x119   : > { %v1472_v22 = vmax.f32 %v1232_v13, 0.0  ;;  %v1406_v23 = vmax.f32 %v968_v14, 0.0  ;;  %v1235_v24 = vadd.f32 %v2762_v20, %v3057_v5  ;;  %v971_v25 = vadd.f32 %v3057_v5, %v970_v21  ;;  %v1226_v26 = vpop.f32.mrb[27].mxu1 }
 0x11a   : > { %v2502_v27 = vpack.c.bf16 %v1408_v17, %v1408_v17  ;;  %v1470_v28 = vmax.f32 %v1224_v18, 0.0  ;;  %v1409_v29 = vmax.f32 %v979_v19, 0.0  ;;  %v1227_v30 = vadd.f32 %v3057_v5, %v1226_v26 }
 0x11b   : > { %v2566_v31 = vpack.c.bf16 %v1472_v22, %v1472_v22  ;;  %v2500_v32 = vpack.c.bf16 %v1406_v23, %v1406_v23  ;;  %v1473_v33 = vmax.f32 %v1235_v24, 0.0  ;;  %v1407_v34 = vmax.f32 %v971_v25, 0.0 }
 0x11c   : > { %2049 = vst.msk [vmem:[%s3069_s25 + $0x68] sm:$0xf] %vm2022_vm3, %v2502_v27  ;;  %v2564_v35 = vpack.c.bf16 %v1470_v28, %v1470_v28  ;;  %v2503_v36 = vpack.c.bf16 %v1409_v29, %v1409_v29  ;;  %v1471_v37 = vmax.f32 %v1227_v30, 0.0 }
 0x11d   : > { %2113 = vst.msk [vmem:[%s3069_s25 + $0x168] sm:$0xf] %vm2022_vm3, %v2566_v31  ;;  %2047 = vst.msk [vmem:[%s3069_s25 + $0x60] sm:$0xf] %vm2022_vm3, %v2500_v32  ;;  %v2567_v38 = vpack.c.bf16 %v1473_v33, %v1473_v33  ;;  %v2501_v39 = vpack.c.bf16 %v1407_v34, %v1407_v34  ;;  %v2701_v40 = vpop.f32.mrb[28].mxu0 }
 0x11e   : > { %2111 = vst.msk [vmem:[%s3069_s25 + $0x160] sm:$0xf] %vm2022_vm3, %v2564_v35  ;;  %2050 = vst.msk [vmem:[%s3069_s25 + $0x6c] sm:$0xf] %vm2022_vm3, %v2503_v36  ;;  %v2565_v41 = vpack.c.bf16 %v1471_v37, %v1471_v37  ;;  %v992_v42 = vadd.f32 %v2701_v40, %v3057_v5  ;;  %v2765_v43 = vpop.f32.mrb[28].mxu1  ;;  %v983_v44 = vpop.f32.mrb[29].mxu0 }
 0x11f   : > { %2114 = vst.msk [vmem:[%s3069_s25 + $0x16c] sm:$0xf] %vm2022_vm3, %v2567_v38  ;;  %2048 = vst.msk [vmem:[%s3069_s25 + $0x64] sm:$0xf] %vm2022_vm3, %v2501_v39  ;;  %v1248_v45 = vadd.f32 %v2765_v43, %v3057_v5  ;;  %v984_v46 = vadd.f32 %v3057_v5, %v983_v44  ;;  %v1239_v47 = vpop.f32.mrb[29].mxu1  ;;  %v2702_v48 = vpop.f32.mrb[30].mxu0 }
 0x120   : > { %2112 = vst.msk [vmem:[%s3069_s25 + $0x164] sm:$0xf] %vm2022_vm3, %v2565_v41  ;;  %v1412_v49 = vmax.f32 %v992_v42, 0.0  ;;  %v1240_v50 = vadd.f32 %v3057_v5, %v1239_v47  ;;  %v995_v51 = vadd.f32 %v2702_v48, %v3057_v5  ;;  %v2766_v52 = vpop.f32.mrb[30].mxu1  ;;  %v986_v53 = vpop.f32.mrb[31].mxu0 }
 0x121   : > { %v1476_v54 = vmax.f32 %v1248_v45, 0.0  ;;  %v1410_v55 = vmax.f32 %v984_v46, 0.0  ;;  %v1251_v56 = vadd.f32 %v2766_v52, %v3057_v5  ;;  %v987_v57 = vadd.f32 %v3057_v5, %v986_v53  ;;  %v1242_v58 = vpop.f32.mrb[31].mxu1 }
 0x122   : > { %v2506_v59 = vpack.c.bf16 %v1412_v49, %v1412_v49  ;;  %v1474_v60 = vmax.f32 %v1240_v50, 0.0  ;;  %v1413_v61 = vmax.f32 %v995_v51, 0.0  ;;  %v1243_v62 = vadd.f32 %v3057_v5, %v1242_v58 }
 0x123   : > { %v2570_v63 = vpack.c.bf16 %v1476_v54, %v1476_v54  ;;  %v2504_v0 = vpack.c.bf16 %v1410_v55, %v1410_v55  ;;  %v1477_v1 = vmax.f32 %v1251_v56, 0.0  ;;  %v1411_v2 = vmax.f32 %v987_v57, 0.0 }
 0x124   : > { %2053 = vst.msk [vmem:[%s3069_s25 + $0x78] sm:$0xf] %vm2022_vm3, %v2506_v59  ;;  %v2568_v3 = vpack.c.bf16 %v1474_v60, %v1474_v60  ;;  %v2507_v4 = vpack.c.bf16 %v1413_v61, %v1413_v61  ;;  %v1475_v6 = vmax.f32 %v1243_v62, 0.0 }
 0x125   : > { %2117 = vst.msk [vmem:[%s3069_s25 + $0x178] sm:$0xf] %vm2022_vm3, %v2570_v63  ;;  %2051 = vst.msk [vmem:[%s3069_s25 + $0x70] sm:$0xf] %vm2022_vm3, %v2504_v0  ;;  %v2571_v7 = vpack.c.bf16 %v1477_v1, %v1477_v1  ;;  %v2505_v8 = vpack.c.bf16 %v1411_v2, %v1411_v2  ;;  %v2705_v9 = vpop.f32.mrb[32].mxu0 }
 0x126   : > { %2115 = vst.msk [vmem:[%s3069_s25 + $0x170] sm:$0xf] %vm2022_vm3, %v2568_v3  ;;  %2054 = vst.msk [vmem:[%s3069_s25 + $0x7c] sm:$0xf] %vm2022_vm3, %v2507_v4  ;;  %v2569_v10 = vpack.c.bf16 %v1475_v6, %v1475_v6  ;;  %v1008_v11 = vadd.f32 %v2705_v9, %v3057_v5  ;;  %v2769_v12 = vpop.f32.mrb[32].mxu1  ;;  %v999_v13 = vpop.f32.mrb[33].mxu0 }
 0x127   : > { %2118 = vst.msk [vmem:[%s3069_s25 + $0x17c] sm:$0xf] %vm2022_vm3, %v2571_v7  ;;  %2052 = vst.msk [vmem:[%s3069_s25 + $0x74] sm:$0xf] %vm2022_vm3, %v2505_v8  ;;  %v1264_v14 = vadd.f32 %v2769_v12, %v3057_v5  ;;  %v1000_v15 = vadd.f32 %v3057_v5, %v999_v13  ;;  %v1255_v16 = vpop.f32.mrb[33].mxu1  ;;  %v2706_v17 = vpop.f32.mrb[34].mxu0 }
 0x128   : > { %2116 = vst.msk [vmem:[%s3069_s25 + $0x174] sm:$0xf] %vm2022_vm3, %v2569_v10  ;;  %v1416_v18 = vmax.f32 %v1008_v11, 0.0  ;;  %v1256_v19 = vadd.f32 %v3057_v5, %v1255_v16  ;;  %v1011_v20 = vadd.f32 %v2706_v17, %v3057_v5  ;;  %v2770_v21 = vpop.f32.mrb[34].mxu1  ;;  %v1002_v22 = vpop.f32.mrb[35].mxu0 }
 0x129   : > { %v1480_v23 = vmax.f32 %v1264_v14, 0.0  ;;  %v1414_v24 = vmax.f32 %v1000_v15, 0.0  ;;  %v1267_v25 = vadd.f32 %v2770_v21, %v3057_v5  ;;  %v1003_v26 = vadd.f32 %v3057_v5, %v1002_v22  ;;  %v1258_v27 = vpop.f32.mrb[35].mxu1 }
 0x12a   : > { %v2510_v28 = vpack.c.bf16 %v1416_v18, %v1416_v18  ;;  %v1478_v29 = vmax.f32 %v1256_v19, 0.0  ;;  %v1417_v30 = vmax.f32 %v1011_v20, 0.0  ;;  %v1259_v31 = vadd.f32 %v3057_v5, %v1258_v27 }
 0x12b   : > { %v2574_v32 = vpack.c.bf16 %v1480_v23, %v1480_v23  ;;  %v2508_v33 = vpack.c.bf16 %v1414_v24, %v1414_v24  ;;  %v1481_v34 = vmax.f32 %v1267_v25, 0.0  ;;  %v1415_v35 = vmax.f32 %v1003_v26, 0.0 }
 0x12c   : > { %2057 = vst.msk [vmem:[%s3069_s25 + $0x88] sm:$0xf] %vm2022_vm3, %v2510_v28  ;;  %v2572_v36 = vpack.c.bf16 %v1478_v29, %v1478_v29  ;;  %v2511_v37 = vpack.c.bf16 %v1417_v30, %v1417_v30  ;;  %v1479_v38 = vmax.f32 %v1259_v31, 0.0 }
 0x12d   : > { %2121 = vst.msk [vmem:[%s3069_s25 + $0x188] sm:$0xf] %vm2022_vm3, %v2574_v32  ;;  %2055 = vst.msk [vmem:[%s3069_s25 + $0x80] sm:$0xf] %vm2022_vm3, %v2508_v33  ;;  %v2575_v39 = vpack.c.bf16 %v1481_v34, %v1481_v34  ;;  %v2509_v40 = vpack.c.bf16 %v1415_v35, %v1415_v35  ;;  %v2709_v41 = vpop.f32.mrb[36].mxu0 }
 0x12e   : > { %2119 = vst.msk [vmem:[%s3069_s25 + $0x180] sm:$0xf] %vm2022_vm3, %v2572_v36  ;;  %2058 = vst.msk [vmem:[%s3069_s25 + $0x8c] sm:$0xf] %vm2022_vm3, %v2511_v37  ;;  %v2573_v42 = vpack.c.bf16 %v1479_v38, %v1479_v38  ;;  %v1024_v43 = vadd.f32 %v2709_v41, %v3057_v5  ;;  %v2773_v44 = vpop.f32.mrb[36].mxu1  ;;  %v1015_v45 = vpop.f32.mrb[37].mxu0 }
 0x12f   : > { %2122 = vst.msk [vmem:[%s3069_s25 + $0x18c] sm:$0xf] %vm2022_vm3, %v2575_v39  ;;  %2056 = vst.msk [vmem:[%s3069_s25 + $0x84] sm:$0xf] %vm2022_vm3, %v2509_v40  ;;  %v1280_v46 = vadd.f32 %v2773_v44, %v3057_v5  ;;  %v1016_v47 = vadd.f32 %v3057_v5, %v1015_v45  ;;  %v1271_v48 = vpop.f32.mrb[37].mxu1  ;;  %v2710_v49 = vpop.f32.mrb[38].mxu0 }
 0x130   : > { %2120 = vst.msk [vmem:[%s3069_s25 + $0x184] sm:$0xf] %vm2022_vm3, %v2573_v42  ;;  %v1420_v50 = vmax.f32 %v1024_v43, 0.0  ;;  %v1272_v51 = vadd.f32 %v3057_v5, %v1271_v48  ;;  %v1027_v52 = vadd.f32 %v2710_v49, %v3057_v5  ;;  %v2774_v53 = vpop.f32.mrb[38].mxu1  ;;  %v1018_v54 = vpop.f32.mrb[39].mxu0 }
 0x131   : > { %v1484_v55 = vmax.f32 %v1280_v46, 0.0  ;;  %v1418_v56 = vmax.f32 %v1016_v47, 0.0  ;;  %v1283_v57 = vadd.f32 %v2774_v53, %v3057_v5  ;;  %v1019_v58 = vadd.f32 %v3057_v5, %v1018_v54  ;;  %v1274_v59 = vpop.f32.mrb[39].mxu1 }
 0x132   : > { %v2514_v60 = vpack.c.bf16 %v1420_v50, %v1420_v50  ;;  %v1482_v61 = vmax.f32 %v1272_v51, 0.0  ;;  %v1421_v62 = vmax.f32 %v1027_v52, 0.0  ;;  %v1275_v63 = vadd.f32 %v3057_v5, %v1274_v59 }
 0x133   : > { %v2578_v0 = vpack.c.bf16 %v1484_v55, %v1484_v55  ;;  %v2512_v1 = vpack.c.bf16 %v1418_v56, %v1418_v56  ;;  %v1485_v2 = vmax.f32 %v1283_v57, 0.0  ;;  %v1419_v3 = vmax.f32 %v1019_v58, 0.0 }
 0x134   : > { %2061 = vst.msk [vmem:[%s3069_s25 + $0x98] sm:$0xf] %vm2022_vm3, %v2514_v60  ;;  %v2576_v4 = vpack.c.bf16 %v1482_v61, %v1482_v61  ;;  %v2515_v6 = vpack.c.bf16 %v1421_v62, %v1421_v62  ;;  %v1483_v7 = vmax.f32 %v1275_v63, 0.0 }
 0x135   : > { %2125 = vst.msk [vmem:[%s3069_s25 + $0x198] sm:$0xf] %vm2022_vm3, %v2578_v0  ;;  %2059 = vst.msk [vmem:[%s3069_s25 + $0x90] sm:$0xf] %vm2022_vm3, %v2512_v1  ;;  %v2579_v8 = vpack.c.bf16 %v1485_v2, %v1485_v2  ;;  %v2513_v9 = vpack.c.bf16 %v1419_v3, %v1419_v3  ;;  %v2713_v10 = vpop.f32.mrb[40].mxu0 }
 0x136   : > { %2123 = vst.msk [vmem:[%s3069_s25 + $0x190] sm:$0xf] %vm2022_vm3, %v2576_v4  ;;  %2062 = vst.msk [vmem:[%s3069_s25 + $0x9c] sm:$0xf] %vm2022_vm3, %v2515_v6  ;;  %v2577_v11 = vpack.c.bf16 %v1483_v7, %v1483_v7  ;;  %v1040_v12 = vadd.f32 %v2713_v10, %v3057_v5  ;;  %v2777_v13 = vpop.f32.mrb[40].mxu1  ;;  %v1031_v14 = vpop.f32.mrb[41].mxu0 }
 0x137   : > { %2126 = vst.msk [vmem:[%s3069_s25 + $0x19c] sm:$0xf] %vm2022_vm3, %v2579_v8  ;;  %2060 = vst.msk [vmem:[%s3069_s25 + $0x94] sm:$0xf] %vm2022_vm3, %v2513_v9  ;;  %v1296_v15 = vadd.f32 %v2777_v13, %v3057_v5  ;;  %v1032_v16 = vadd.f32 %v3057_v5, %v1031_v14  ;;  %v1287_v17 = vpop.f32.mrb[41].mxu1  ;;  %v2714_v18 = vpop.f32.mrb[42].mxu0 }
 0x138   : > { %2124 = vst.msk [vmem:[%s3069_s25 + $0x194] sm:$0xf] %vm2022_vm3, %v2577_v11  ;;  %v1424_v19 = vmax.f32 %v1040_v12, 0.0  ;;  %v1288_v20 = vadd.f32 %v3057_v5, %v1287_v17  ;;  %v1043_v21 = vadd.f32 %v2714_v18, %v3057_v5  ;;  %v2778_v22 = vpop.f32.mrb[42].mxu1  ;;  %v1034_v23 = vpop.f32.mrb[43].mxu0 }
 0x139   : > { %v1488_v24 = vmax.f32 %v1296_v15, 0.0  ;;  %v1422_v25 = vmax.f32 %v1032_v16, 0.0  ;;  %v1299_v26 = vadd.f32 %v2778_v22, %v3057_v5  ;;  %v1035_v27 = vadd.f32 %v3057_v5, %v1034_v23  ;;  %v1290_v28 = vpop.f32.mrb[43].mxu1 }
 0x13a   : > { %v2518_v29 = vpack.c.bf16 %v1424_v19, %v1424_v19  ;;  %v1486_v30 = vmax.f32 %v1288_v20, 0.0  ;;  %v1425_v31 = vmax.f32 %v1043_v21, 0.0  ;;  %v1291_v32 = vadd.f32 %v3057_v5, %v1290_v28 }
 0x13b   : > { %v2582_v33 = vpack.c.bf16 %v1488_v24, %v1488_v24  ;;  %v2516_v34 = vpack.c.bf16 %v1422_v25, %v1422_v25  ;;  %v1489_v35 = vmax.f32 %v1299_v26, 0.0  ;;  %v1423_v36 = vmax.f32 %v1035_v27, 0.0 }
 0x13c   : > { %2065 = vst.msk [vmem:[%s3069_s25 + $0xa8] sm:$0xf] %vm2022_vm3, %v2518_v29  ;;  %v2580_v37 = vpack.c.bf16 %v1486_v30, %v1486_v30  ;;  %v2519_v38 = vpack.c.bf16 %v1425_v31, %v1425_v31  ;;  %v1487_v39 = vmax.f32 %v1291_v32, 0.0 }
 0x13d   : > { %2129 = vst.msk [vmem:[%s3069_s25 + $0x1a8] sm:$0xf] %vm2022_vm3, %v2582_v33  ;;  %2063 = vst.msk [vmem:[%s3069_s25 + $0xa0] sm:$0xf] %vm2022_vm3, %v2516_v34  ;;  %v2583_v40 = vpack.c.bf16 %v1489_v35, %v1489_v35  ;;  %v2517_v41 = vpack.c.bf16 %v1423_v36, %v1423_v36  ;;  %v2717_v42 = vpop.f32.mrb[44].mxu0 }
 0x13e   : > { %2127 = vst.msk [vmem:[%s3069_s25 + $0x1a0] sm:$0xf] %vm2022_vm3, %v2580_v37  ;;  %2066 = vst.msk [vmem:[%s3069_s25 + $0xac] sm:$0xf] %vm2022_vm3, %v2519_v38  ;;  %v2581_v43 = vpack.c.bf16 %v1487_v39, %v1487_v39  ;;  %v1056_v44 = vadd.f32 %v2717_v42, %v3057_v5  ;;  %v2781_v45 = vpop.f32.mrb[44].mxu1  ;;  %v1047_v46 = vpop.f32.mrb[45].mxu0 }
 0x13f   : > { %2130 = vst.msk [vmem:[%s3069_s25 + $0x1ac] sm:$0xf] %vm2022_vm3, %v2583_v40  ;;  %2064 = vst.msk [vmem:[%s3069_s25 + $0xa4] sm:$0xf] %vm2022_vm3, %v2517_v41  ;;  %v1312_v47 = vadd.f32 %v2781_v45, %v3057_v5  ;;  %v1048_v48 = vadd.f32 %v3057_v5, %v1047_v46  ;;  %v1303_v49 = vpop.f32.mrb[45].mxu1  ;;  %v2718_v50 = vpop.f32.mrb[46].mxu0 }
 0x140   : > { %2128 = vst.msk [vmem:[%s3069_s25 + $0x1a4] sm:$0xf] %vm2022_vm3, %v2581_v43  ;;  %v1428_v51 = vmax.f32 %v1056_v44, 0.0  ;;  %v1304_v52 = vadd.f32 %v3057_v5, %v1303_v49  ;;  %v1059_v53 = vadd.f32 %v2718_v50, %v3057_v5  ;;  %v2782_v54 = vpop.f32.mrb[46].mxu1  ;;  %v1050_v55 = vpop.f32.mrb[47].mxu0 }
 0x141   : > { %v1492_v56 = vmax.f32 %v1312_v47, 0.0  ;;  %v1426_v57 = vmax.f32 %v1048_v48, 0.0  ;;  %v1315_v58 = vadd.f32 %v2782_v54, %v3057_v5  ;;  %v1051_v59 = vadd.f32 %v3057_v5, %v1050_v55  ;;  %v1306_v60 = vpop.f32.mrb[47].mxu1  ;;  %v3375_v44 = vld [vmem:[%s3460_s2] ss:$0 sm:$0xff] }
 0x142   : > { %v2522_v61 = vpack.c.bf16 %v1428_v51, %v1428_v51  ;;  %v1490_v62 = vmax.f32 %v1304_v52, 0.0  ;;  %v1429_v63 = vmax.f32 %v1059_v53, 0.0  ;;  %v1307_v0 = vadd.f32 %v3057_v5, %v1306_v60 }
 0x143   : > { %v2586_v1 = vpack.c.bf16 %v1492_v56, %v1492_v56  ;;  %v2520_v2 = vpack.c.bf16 %v1426_v57, %v1426_v57  ;;  %v1493_v3 = vmax.f32 %v1315_v58, 0.0  ;;  %v1427_v4 = vmax.f32 %v1051_v59, 0.0 }
 0x144   : > { %2069 = vst.msk [vmem:[%s3069_s25 + $0xb8] sm:$0xf] %vm2022_vm3, %v2522_v61  ;;  %v2584_v6 = vpack.c.bf16 %v1490_v62, %v1490_v62  ;;  %v2523_v7 = vpack.c.bf16 %v1429_v63, %v1429_v63  ;;  %v1491_v8 = vmax.f32 %v1307_v0, 0.0 }
 0x145   : > { %2133 = vst.msk [vmem:[%s3069_s25 + $0x1b8] sm:$0xf] %vm2022_vm3, %v2586_v1  ;;  %2067 = vst.msk [vmem:[%s3069_s25 + $0xb0] sm:$0xf] %vm2022_vm3, %v2520_v2  ;;  %v2587_v9 = vpack.c.bf16 %v1493_v3, %v1493_v3  ;;  %v2521_v10 = vpack.c.bf16 %v1427_v4, %v1427_v4  ;;  %v2721_v11 = vpop.f32.mrb[48].mxu0 }
 0x146   : > { %2131 = vst.msk [vmem:[%s3069_s25 + $0x1b0] sm:$0xf] %vm2022_vm3, %v2584_v6  ;;  %2070 = vst.msk [vmem:[%s3069_s25 + $0xbc] sm:$0xf] %vm2022_vm3, %v2523_v7  ;;  %v2585_v12 = vpack.c.bf16 %v1491_v8, %v1491_v8  ;;  %v1072_v13 = vadd.f32 %v2721_v11, %v3057_v5  ;;  %v2785_v14 = vpop.f32.mrb[48].mxu1  ;;  %v1063_v15 = vpop.f32.mrb[49].mxu0 }
 0x147   : > { %2134 = vst.msk [vmem:[%s3069_s25 + $0x1bc] sm:$0xf] %vm2022_vm3, %v2587_v9  ;;  %2068 = vst.msk [vmem:[%s3069_s25 + $0xb4] sm:$0xf] %vm2022_vm3, %v2521_v10  ;;  %v1328_v16 = vadd.f32 %v2785_v14, %v3057_v5  ;;  %v1064_v17 = vadd.f32 %v3057_v5, %v1063_v15  ;;  %v1319_v18 = vpop.f32.mrb[49].mxu1  ;;  %v2722_v19 = vpop.f32.mrb[50].mxu0 }
 0x148   : > { %2132 = vst.msk [vmem:[%s3069_s25 + $0x1b4] sm:$0xf] %vm2022_vm3, %v2585_v12  ;;  %v1432_v20 = vmax.f32 %v1072_v13, 0.0  ;;  %v1320_v21 = vadd.f32 %v3057_v5, %v1319_v18  ;;  %v1075_v22 = vadd.f32 %v2722_v19, %v3057_v5  ;;  %v2786_v23 = vpop.f32.mrb[50].mxu1  ;;  %v1066_v24 = vpop.f32.mrb[51].mxu0 }
 0x149   : > { %v1496_v25 = vmax.f32 %v1328_v16, 0.0  ;;  %v1430_v26 = vmax.f32 %v1064_v17, 0.0  ;;  %v1331_v27 = vadd.f32 %v2786_v23, %v3057_v5  ;;  %v1067_v28 = vadd.f32 %v3057_v5, %v1066_v24  ;;  %v1322_v29 = vpop.f32.mrb[51].mxu1 }
 0x14a   : > { %v2526_v30 = vpack.c.bf16 %v1432_v20, %v1432_v20  ;;  %v1494_v31 = vmax.f32 %v1320_v21, 0.0  ;;  %v1433_v32 = vmax.f32 %v1075_v22, 0.0  ;;  %v1323_v33 = vadd.f32 %v3057_v5, %v1322_v29 }
 0x14b   : > { %v2590_v34 = vpack.c.bf16 %v1496_v25, %v1496_v25  ;;  %v2524_v35 = vpack.c.bf16 %v1430_v26, %v1430_v26  ;;  %v1497_v36 = vmax.f32 %v1331_v27, 0.0  ;;  %v1431_v37 = vmax.f32 %v1067_v28, 0.0 }
 0x14c   : > { %2073 = vst.msk [vmem:[%s3069_s25 + $0xc8] sm:$0xf] %vm2022_vm3, %v2526_v30  ;;  %v2588_v38 = vpack.c.bf16 %v1494_v31, %v1494_v31  ;;  %v2527_v39 = vpack.c.bf16 %v1433_v32, %v1433_v32  ;;  %v1495_v40 = vmax.f32 %v1323_v33, 0.0 }
 0x14d   : > { %2137 = vst.msk [vmem:[%s3069_s25 + $0x1c8] sm:$0xf] %vm2022_vm3, %v2590_v34  ;;  %2071 = vst.msk [vmem:[%s3069_s25 + $0xc0] sm:$0xf] %vm2022_vm3, %v2524_v35  ;;  %v2591_v41 = vpack.c.bf16 %v1497_v36, %v1497_v36  ;;  %v2525_v42 = vpack.c.bf16 %v1431_v37, %v1431_v37  ;;  %v2725_v43 = vpop.f32.mrb[52].mxu0 }
 0x14e   : > { %2135 = vst.msk [vmem:[%s3069_s25 + $0x1c0] sm:$0xf] %vm2022_vm3, %v2588_v38  ;;  %2074 = vst.msk [vmem:[%s3069_s25 + $0xcc] sm:$0xf] %vm2022_vm3, %v2527_v39  ;;  %v2589_v5 = vpack.c.bf16 %v1495_v40, %v1495_v40  ;;  %v1088_v45 = vadd.f32 %v3375_v44, %v2725_v43  ;;  %v2789_v46 = vpop.f32.mrb[52].mxu1  ;;  %v1079_v47 = vpop.f32.mrb[53].mxu0 }
 0x14f   : > { %2138 = vst.msk [vmem:[%s3069_s25 + $0x1cc] sm:$0xf] %vm2022_vm3, %v2591_v41  ;;  %2072 = vst.msk [vmem:[%s3069_s25 + $0xc4] sm:$0xf] %vm2022_vm3, %v2525_v42  ;;  %v1344_v48 = vadd.f32 %v3375_v44, %v2789_v46  ;;  %v1080_v49 = vadd.f32 %v3375_v44, %v1079_v47  ;;  %v1335_v50 = vpop.f32.mrb[53].mxu1  ;;  %v2726_v51 = vpop.f32.mrb[54].mxu0 }
 0x150   : > { %2136 = vst.msk [vmem:[%s3069_s25 + $0x1c4] sm:$0xf] %vm2022_vm3, %v2589_v5  ;;  %v1436_v52 = vmax.f32 %v1088_v45, 0.0  ;;  %v1336_v53 = vadd.f32 %v3375_v44, %v1335_v50  ;;  %v1091_v54 = vadd.f32 %v3375_v44, %v2726_v51  ;;  %v2790_v55 = vpop.f32.mrb[54].mxu1  ;;  %v1082_v56 = vpop.f32.mrb[55].mxu0 }
 0x151   : > { %v1500_v57 = vmax.f32 %v1344_v48, 0.0  ;;  %v1434_v58 = vmax.f32 %v1080_v49, 0.0  ;;  %v1347_v59 = vadd.f32 %v3375_v44, %v2790_v55  ;;  %v1083_v60 = vadd.f32 %v3375_v44, %v1082_v56  ;;  %v1338_v61 = vpop.f32.mrb[55].mxu1 }
 0x152   : > { %v2530_v62 = vpack.c.bf16 %v1436_v52, %v1436_v52  ;;  %v1498_v63 = vmax.f32 %v1336_v53, 0.0  ;;  %v1437_v0 = vmax.f32 %v1091_v54, 0.0  ;;  %v1339_v1 = vadd.f32 %v3375_v44, %v1338_v61 }
 0x153   : > { %v2594_v2 = vpack.c.bf16 %v1500_v57, %v1500_v57  ;;  %v2528_v3 = vpack.c.bf16 %v1434_v58, %v1434_v58  ;;  %v1501_v4 = vmax.f32 %v1347_v59, 0.0  ;;  %v1435_v6 = vmax.f32 %v1083_v60, 0.0 }
 0x154   : > { %2077 = vst.msk [vmem:[%s3069_s25 + $0xd8] sm:$0xf] %vm2022_vm3, %v2530_v62  ;;  %v2592_v7 = vpack.c.bf16 %v1498_v63, %v1498_v63  ;;  %v2531_v8 = vpack.c.bf16 %v1437_v0, %v1437_v0  ;;  %v1499_v9 = vmax.f32 %v1339_v1, 0.0 }
 0x155   : > { %2141 = vst.msk [vmem:[%s3069_s25 + $0x1d8] sm:$0xf] %vm2022_vm3, %v2594_v2  ;;  %2075 = vst.msk [vmem:[%s3069_s25 + $0xd0] sm:$0xf] %vm2022_vm3, %v2528_v3  ;;  %v2595_v10 = vpack.c.bf16 %v1501_v4, %v1501_v4  ;;  %v2529_v11 = vpack.c.bf16 %v1435_v6, %v1435_v6  ;;  %v2729_v12 = vpop.f32.mrb[56].mxu0 }
 0x156   : > { %2139 = vst.msk [vmem:[%s3069_s25 + $0x1d0] sm:$0xf] %vm2022_vm3, %v2592_v7  ;;  %2078 = vst.msk [vmem:[%s3069_s25 + $0xdc] sm:$0xf] %vm2022_vm3, %v2531_v8  ;;  %v2593_v13 = vpack.c.bf16 %v1499_v9, %v1499_v9  ;;  %v1104_v14 = vadd.f32 %v3375_v44, %v2729_v12  ;;  %v2793_v15 = vpop.f32.mrb[56].mxu1  ;;  %v1095_v16 = vpop.f32.mrb[57].mxu0 }
 0x157   : > { %2142 = vst.msk [vmem:[%s3069_s25 + $0x1dc] sm:$0xf] %vm2022_vm3, %v2595_v10  ;;  %2076 = vst.msk [vmem:[%s3069_s25 + $0xd4] sm:$0xf] %vm2022_vm3, %v2529_v11  ;;  %v1360_v17 = vadd.f32 %v3375_v44, %v2793_v15  ;;  %v1096_v18 = vadd.f32 %v3375_v44, %v1095_v16  ;;  %v1351_v19 = vpop.f32.mrb[57].mxu1  ;;  %v2730_v20 = vpop.f32.mrb[58].mxu0 }
 0x158   : > { %2140 = vst.msk [vmem:[%s3069_s25 + $0x1d4] sm:$0xf] %vm2022_vm3, %v2593_v13  ;;  %v1440_v21 = vmax.f32 %v1104_v14, 0.0  ;;  %v1352_v22 = vadd.f32 %v3375_v44, %v1351_v19  ;;  %v1107_v23 = vadd.f32 %v3375_v44, %v2730_v20  ;;  %v2794_v24 = vpop.f32.mrb[58].mxu1  ;;  %v1098_v25 = vpop.f32.mrb[59].mxu0 }
 0x159   : > { %v1504_v26 = vmax.f32 %v1360_v17, 0.0  ;;  %v1438_v27 = vmax.f32 %v1096_v18, 0.0  ;;  %v1363_v28 = vadd.f32 %v3375_v44, %v2794_v24  ;;  %v1099_v29 = vadd.f32 %v3375_v44, %v1098_v25  ;;  %v1354_v30 = vpop.f32.mrb[59].mxu1 }
 0x15a   : > { %v2534_v31 = vpack.c.bf16 %v1440_v21, %v1440_v21  ;;  %v1502_v32 = vmax.f32 %v1352_v22, 0.0  ;;  %v1441_v33 = vmax.f32 %v1107_v23, 0.0  ;;  %v1355_v34 = vadd.f32 %v3375_v44, %v1354_v30 }
 0x15b   : > { %v2598_v35 = vpack.c.bf16 %v1504_v26, %v1504_v26  ;;  %v2532_v36 = vpack.c.bf16 %v1438_v27, %v1438_v27  ;;  %v1505_v37 = vmax.f32 %v1363_v28, 0.0  ;;  %v1439_v38 = vmax.f32 %v1099_v29, 0.0 }
 0x15c   : > { %2081 = vst.msk [vmem:[%s3069_s25 + $0xe8] sm:$0xf] %vm2022_vm3, %v2534_v31  ;;  %v2596_v39 = vpack.c.bf16 %v1502_v32, %v1502_v32  ;;  %v2535_v40 = vpack.c.bf16 %v1441_v33, %v1441_v33  ;;  %v1503_v41 = vmax.f32 %v1355_v34, 0.0 }
 0x15d   : > { %2145 = vst.msk [vmem:[%s3069_s25 + $0x1e8] sm:$0xf] %vm2022_vm3, %v2598_v35  ;;  %2079 = vst.msk [vmem:[%s3069_s25 + $0xe0] sm:$0xf] %vm2022_vm3, %v2532_v36  ;;  %v2599_v42 = vpack.c.bf16 %v1505_v37, %v1505_v37  ;;  %v2533_v43 = vpack.c.bf16 %v1439_v38, %v1439_v38  ;;  %v2733_v5 = vpop.f32.mrb[60].mxu0 }
 0x15e   : > { %2143 = vst.msk [vmem:[%s3069_s25 + $0x1e0] sm:$0xf] %vm2022_vm3, %v2596_v39  ;;  %2082 = vst.msk [vmem:[%s3069_s25 + $0xec] sm:$0xf] %vm2022_vm3, %v2535_v40  ;;  %v2597_v45 = vpack.c.bf16 %v1503_v41, %v1503_v41  ;;  %v1120_v46 = vadd.f32 %v3375_v44, %v2733_v5  ;;  %v2797_v47 = vpop.f32.mrb[60].mxu1  ;;  %v1111_v48 = vpop.f32.mrb[61].mxu0 }
 0x15f   : > { %2146 = vst.msk [vmem:[%s3069_s25 + $0x1ec] sm:$0xf] %vm2022_vm3, %v2599_v42  ;;  %2080 = vst.msk [vmem:[%s3069_s25 + $0xe4] sm:$0xf] %vm2022_vm3, %v2533_v43  ;;  %v1376_v49 = vadd.f32 %v3375_v44, %v2797_v47  ;;  %v1112_v50 = vadd.f32 %v3375_v44, %v1111_v48  ;;  %v1367_v51 = vpop.f32.mrb[61].mxu1  ;;  %v2734_v52 = vpop.f32.mrb[62].mxu0 }
 0x160   : > { %2144 = vst.msk [vmem:[%s3069_s25 + $0x1e4] sm:$0xf] %vm2022_vm3, %v2597_v45  ;;  %v1444_v53 = vmax.f32 %v1120_v46, 0.0  ;;  %v1368_v54 = vadd.f32 %v3375_v44, %v1367_v51  ;;  %v1123_v55 = vadd.f32 %v3375_v44, %v2734_v52  ;;  %v2798_v56 = vpop.f32.mrb[62].mxu1  ;;  %v1114_v57 = vpop.f32.mrb[63].mxu0 }
 0x161   : > { %v1508_v58 = vmax.f32 %v1376_v49, 0.0  ;;  %v1442_v59 = vmax.f32 %v1112_v50, 0.0  ;;  %v1379_v60 = vadd.f32 %v3375_v44, %v2798_v56  ;;  %v1115_v61 = vadd.f32 %v3375_v44, %v1114_v57  ;;  %v1370_v62 = vpop.f32.mrb[63].mxu1 }
 0x162   : > { %v2538_v63 = vpack.c.bf16 %v1444_v53, %v1444_v53  ;;  %v1506_v0 = vmax.f32 %v1368_v54, 0.0  ;;  %v1445_v1 = vmax.f32 %v1123_v55, 0.0  ;;  %v1371_v2 = vadd.f32 %v3375_v44, %v1370_v62 }
 0x163   : > { %v2602_v3 = vpack.c.bf16 %v1508_v58, %v1508_v58  ;;  %v2536_v4 = vpack.c.bf16 %v1442_v59, %v1442_v59  ;;  %v1509_v6 = vmax.f32 %v1379_v60, 0.0  ;;  %v1443_v7 = vmax.f32 %v1115_v61, 0.0 }
 0x164   : > { %2085 = vst.msk [vmem:[%s3069_s25 + $0xf8] sm:$0xf] %vm2022_vm3, %v2538_v63  ;;  %v2600_v8 = vpack.c.bf16 %v1506_v0, %v1506_v0  ;;  %v2539_v9 = vpack.c.bf16 %v1445_v1, %v1445_v1  ;;  %v1507_v10 = vmax.f32 %v1371_v2, 0.0 }
 0x165   : > { %2149 = vst.msk [vmem:[%s3069_s25 + $0x1f8] sm:$0xf] %vm2022_vm3, %v2602_v3  ;;  %2083 = vst.msk [vmem:[%s3069_s25 + $0xf0] sm:$0xf] %vm2022_vm3, %v2536_v4  ;;  %v2603_v11 = vpack.c.bf16 %v1509_v6, %v1509_v6  ;;  %v2537_v12 = vpack.c.bf16 %v1443_v7, %v1443_v7 }
 0x166   : > { %2147 = vst.msk [vmem:[%s3069_s25 + $0x1f0] sm:$0xf] %vm2022_vm3, %v2600_v8  ;;  %2086 = vst.msk [vmem:[%s3069_s25 + $0xfc] sm:$0xf] %vm2022_vm3, %v2539_v9  ;;  %v2601_v44 = vpack.c.bf16 %v1507_v10, %v1507_v10 }
 0x167   : > { %2150 = vst.msk [vmem:[%s3069_s25 + $0x1fc] sm:$0xf] %vm2022_vm3, %v2603_v11  ;;  %2084 = vst.msk [vmem:[%s3069_s25 + $0xf4] sm:$0xf] %vm2022_vm3, %v2537_v12 }
 0x168   : > { %2148 = vst.msk [vmem:[%s3069_s25 + $0x1f4] sm:$0xf] %vm2022_vm3, %v2601_v44 }
 0x169 PF: > { %s13_s12 = sadd.s32 1, %s2882_s12  }
 0x16a   : > { %p10_p4 = scmp.ge.s32.totalorder %s13_s12, 10  }
 0x16c   :  { %12 = sbr.rel (!%p10_p4) target bundleno = 1 (0x1), region = 62 }

// kernel: forward.7
= control target key start
LH: loop header
LB: loop body
LE: loop exit
PB: predicated region body
PF: predicated region fallthrough
CT: control target
= control target key end

     0   :  { %s2034_s12 = smov 0   ;;  %s2283_s0 = inlined_call_operand.vmem [shape: bf16[2048,144], index: 0, kind: input, shape index: {}]   ;;  %s2284_s1 = inlined_call_operand.vmem [shape: bf16[144,128], index: 1, kind: input, shape index: {}]   ;;  %s2285_s2 = inlined_call_operand.vmem [shape: f32[1,128], index: 2, kind: input, shape index: {}]   ;;  %s2286_s3 = inlined_call_operand.vmem [shape: bf16[2048,128], index: 3, kind: output, shape index: {}]  }
   0x1 LB: > { %s1435_s13 = sadd.s32 4294967295, %s2011_s12   ;;  %p1439_p0 = scmp.ge.s32.totalorder %s2011_s12, 1  ;;  %s2011_s12 = sphi %s2034_s12, %s13_s12  }
   0x2   : > { %p139_p1 = scmp.lt.s32.totalorder %s2011_s12, 5 }
   0x4   : > { %p140_p2 = pnand %p1439_p0, %p139_p1 }
   0x5   : > { %v1900_v0 = vld [vmem:[%s2284_s1] sm:$0xff] (!%p140_p2)   ;;  %v2013_v1 = vmov (!%p140_p2), 0   ;;  %s1440_s16 = sshll.u32 (!%p140_p2), %s1435_s13, 6  ;;  %v1901_v2 = vld [vmem:[%s2284_s1 + $0x8] sm:$0xff] (!%p140_p2)   ;;  %v1902_v3 = vld [vmem:[%s2284_s1 + $0x10] sm:$0xff] (!%p140_p2)   ;;  %vm609_vm0 = vcmask (!%p140_p2), 130048  }
   0x6   : > { %143 = sbr.rel (%p140_p2) target bundleno = 383 (0x17f), region = 32  ;;  %706 = vmatprep.subr.bf16.mxu0 (!%p140_p2), %v2013_v1  ;;  %1873 = vmatprep.subr.bf16.mxu1 (!%p140_p2), %v2013_v1  ;;  %p165_p3 = scmp.lt.s32.totalorder (!%p140_p2), %s1440_s16, 255  ;;  %v1903_v4 = vld [vmem:[%s2284_s1 + $0x18] sm:$0xff] (!%p140_p2)   ;;  %v1904_v7 = vld [vmem:[%s2284_s1 + $0x20] sm:$0xff] (!%p140_p2)   ;;  %v1905_v8 = vld [vmem:[%s2284_s1 + $0x28] sm:$0xff] (!%p140_p2)  }
   0x7   : > { %707 = vmatpush1.bf16.msra.mxu0 (!%p140_p2), %v1900_v0  ;;  %1882 = vmatpush1.bf16.msra.mxu1 (!%p140_p2), %v1900_v0  ;;  %v1906_v9 = vld [vmem:[%s2284_s1 + $0x30] sm:$0xff] (!%p140_p2)   ;;  %v1907_v10 = vld [vmem:[%s2284_s1 + $0x38] sm:$0xff] (!%p140_p2)   ;;  %v1908_v11 = vld [vmem:[%s2284_s1 + $0x40] sm:$0xff] (!%p140_p2)  }
   0x8   : > { %708 = vmatprep.subr.bf16.mxu0 (!%p140_p2), %v2013_v1  ;;  %1874 = vmatprep.subr.bf16.mxu1 (!%p140_p2), %v2013_v1 }
   0xb   : > { %709 = vmatpush1.bf16.msra.mxu0 (!%p140_p2), %v1901_v2  ;;  %1883 = vmatpush1.bf16.msra.mxu1 (!%p140_p2), %v1901_v2 }
   0xc   : > { %710 = vmatprep.subr.bf16.mxu0 (!%p140_p2), %v2013_v1  ;;  %1875 = vmatprep.subr.bf16.mxu1 (!%p140_p2), %v2013_v1 }
   0xd   : > { %s2288_s16 = smov (!%p165_p3, %s1440_s16), 255 }
   0xe   : > { %s1617_s21 = sshll.u32 %s2288_s16, 3  ;;  %s1444_s13 = sshll.u32 %s2288_s16, 2 }
   0xf   : > { %s2057_s24 = scalar_lea.vmem %s2283_s0, %s1617_s21  ;;  %711 = vmatpush1.bf16.msra.mxu0 %v1902_v3  ;;  %1884 = vmatpush1.bf16.msra.mxu1 %v1902_v3  ;;  %s2186_s17 = scalar_lea.vmem %s2286_s3, %s1444_s13 }
  0x10   : > { %v1911_v5 = vld [vmem:[%s2057_s24 + $0x4] ss:$8 sps:$4 sm:$0xff]   ;;  %712 = vmatprep.subr.bf16.mxu0 %v2013_v1  ;;  %1876 = vmatprep.subr.bf16.mxu1 %v2013_v1  ;;  %v1909_v12 = vld [vmem:[%s2057_s24] ss:$8 sps:$4 sm:$0xff]   ;;  %v1915_v14 = vld [vmem:[%s2057_s24 + $0x14] ss:$8 sps:$4 sm:$0xff]  }
  0x11   : > { %v1914_v6 = vld [vmem:[%s2057_s24 + $0x104] ss:$8 sps:$4 sm:$0xff]   ;;  %1519 = vmatprep.mubr.msk.bf16.mxu0 %vm609_vm0, %v1911_v5  ;;  %v1912_v13 = vld [vmem:[%s2057_s24 + $0x100] ss:$8 sps:$4 sm:$0xff]   ;;  %v1917_v15 = vld [vmem:[%s2057_s24 + $0x114] ss:$8 sps:$4 sm:$0xff]  }
  0x12   : > { %1535 = vmatprep.mubr.msk.bf16.mxu1 %vm609_vm0, %v1914_v6  ;;  %v1919_v16 = vld [vmem:[%s2057_s24 + $0x10] ss:$8 sps:$4 sm:$0xff]   ;;  %v1921_v18 = vld [vmem:[%s2057_s24 + $0x24] ss:$8 sps:$4 sm:$0xff]   ;;  %v1925_v20 = vld [vmem:[%s2057_s24 + $0x20] ss:$8 sps:$4 sm:$0xff]  }
  0x13   : > { %713 = vmatpush1.bf16.msra.mxu0 %v1903_v4  ;;  %1885 = vmatpush1.bf16.msra.mxu1 %v1903_v4  ;;  %v1920_v17 = vld [vmem:[%s2057_s24 + $0x110] ss:$8 sps:$4 sm:$0xff]   ;;  %v1923_v19 = vld [vmem:[%s2057_s24 + $0x124] ss:$8 sps:$4 sm:$0xff]   ;;  %v1926_v21 = vld [vmem:[%s2057_s24 + $0x120] ss:$8 sps:$4 sm:$0xff]  }
  0x14   : > { %714 = vmatprep.subr.bf16.mxu0 %v2013_v1  ;;  %1877 = vmatprep.subr.bf16.mxu1 %v2013_v1  ;;  %v1927_v22 = vld [vmem:[%s2057_s24 + $0x34] ss:$8 sps:$4 sm:$0xff]   ;;  %v1931_v24 = vld [vmem:[%s2057_s24 + $0x30] ss:$8 sps:$4 sm:$0xff]   ;;  %v1933_v26 = vld [vmem:[%s2057_s24 + $0x44] ss:$8 sps:$4 sm:$0xff]  }
  0x15   : > { %v1929_v23 = vld [vmem:[%s2057_s24 + $0x134] ss:$8 sps:$4 sm:$0xff]   ;;  %v1932_v25 = vld [vmem:[%s2057_s24 + $0x130] ss:$8 sps:$4 sm:$0xff]   ;;  %v1935_v27 = vld [vmem:[%s2057_s24 + $0x144] ss:$8 sps:$4 sm:$0xff]  }
  0x16   : > { %v1937_v28 = vld [vmem:[%s2057_s24 + $0x40] ss:$8 sps:$4 sm:$0xff]   ;;  %v1939_v30 = vld [vmem:[%s2057_s24 + $0x54] ss:$8 sps:$4 sm:$0xff]   ;;  %v1943_v32 = vld [vmem:[%s2057_s24 + $0x50] ss:$8 sps:$4 sm:$0xff]  }
  0x17   : > { %715 = vmatpush1.bf16.msra.mxu0 %v1904_v7  ;;  %1886 = vmatpush1.bf16.msra.mxu1 %v1904_v7  ;;  %v1938_v29 = vld [vmem:[%s2057_s24 + $0x140] ss:$8 sps:$4 sm:$0xff]   ;;  %v1941_v31 = vld [vmem:[%s2057_s24 + $0x154] ss:$8 sps:$4 sm:$0xff]   ;;  %v1944_v33 = vld [vmem:[%s2057_s24 + $0x150] ss:$8 sps:$4 sm:$0xff]  }
  0x18   : > { %716 = vmatprep.subr.bf16.mxu0 %v2013_v1  ;;  %1878 = vmatprep.subr.bf16.mxu1 %v2013_v1  ;;  %v1945_v34 = vld [vmem:[%s2057_s24 + $0x64] ss:$8 sps:$4 sm:$0xff]   ;;  %v1949_v36 = vld [vmem:[%s2057_s24 + $0x60] ss:$8 sps:$4 sm:$0xff]   ;;  %v1951_v38 = vld [vmem:[%s2057_s24 + $0x74] ss:$8 sps:$4 sm:$0xff]  }
  0x19   : > { %v1947_v35 = vld [vmem:[%s2057_s24 + $0x164] ss:$8 sps:$4 sm:$0xff]   ;;  %v1950_v37 = vld [vmem:[%s2057_s24 + $0x160] ss:$8 sps:$4 sm:$0xff]   ;;  %v1953_v39 = vld [vmem:[%s2057_s24 + $0x174] ss:$8 sps:$4 sm:$0xff]  }
  0x1a   : > { %v1955_v40 = vld [vmem:[%s2057_s24 + $0x70] ss:$8 sps:$4 sm:$0xff]   ;;  %v1957_v42 = vld [vmem:[%s2057_s24 + $0x84] ss:$8 sps:$4 sm:$0xff]   ;;  %v1961_v44 = vld [vmem:[%s2057_s24 + $0x80] ss:$8 sps:$4 sm:$0xff]  }
  0x1b   : > { %717 = vmatpush1.bf16.msra.mxu0 %v1905_v8  ;;  %1887 = vmatpush1.bf16.msra.mxu1 %v1905_v8  ;;  %v1956_v41 = vld [vmem:[%s2057_s24 + $0x170] ss:$8 sps:$4 sm:$0xff]   ;;  %v1959_v43 = vld [vmem:[%s2057_s24 + $0x184] ss:$8 sps:$4 sm:$0xff]   ;;  %v1962_v45 = vld [vmem:[%s2057_s24 + $0x180] ss:$8 sps:$4 sm:$0xff]  }
  0x1c   : > { %718 = vmatprep.subr.bf16.mxu0 %v2013_v1  ;;  %1879 = vmatprep.subr.bf16.mxu1 %v2013_v1  ;;  %v1963_v46 = vld [vmem:[%s2057_s24 + $0x94] ss:$8 sps:$4 sm:$0xff]   ;;  %v1967_v48 = vld [vmem:[%s2057_s24 + $0x90] ss:$8 sps:$4 sm:$0xff]   ;;  %v1969_v50 = vld [vmem:[%s2057_s24 + $0xa4] ss:$8 sps:$4 sm:$0xff]  }
  0x1d   : > { %v1965_v47 = vld [vmem:[%s2057_s24 + $0x194] ss:$8 sps:$4 sm:$0xff]   ;;  %v1968_v49 = vld [vmem:[%s2057_s24 + $0x190] ss:$8 sps:$4 sm:$0xff]   ;;  %v1971_v51 = vld [vmem:[%s2057_s24 + $0x1a4] ss:$8 sps:$4 sm:$0xff]  }
  0x1e   : > { %v1973_v52 = vld [vmem:[%s2057_s24 + $0xa0] ss:$8 sps:$4 sm:$0xff]   ;;  %v1975_v54 = vld [vmem:[%s2057_s24 + $0xb4] ss:$8 sps:$4 sm:$0xff]   ;;  %v1979_v56 = vld [vmem:[%s2057_s24 + $0xb0] ss:$8 sps:$4 sm:$0xff]  }
  0x1f   : > { %719 = vmatpush1.bf16.msra.mxu0 %v1906_v9  ;;  %1888 = vmatpush1.bf16.msra.mxu1 %v1906_v9  ;;  %v1974_v53 = vld [vmem:[%s2057_s24 + $0x1a0] ss:$8 sps:$4 sm:$0xff]   ;;  %v1977_v55 = vld [vmem:[%s2057_s24 + $0x1b4] ss:$8 sps:$4 sm:$0xff]   ;;  %v1980_v57 = vld [vmem:[%s2057_s24 + $0x1b0] ss:$8 sps:$4 sm:$0xff]  }
  0x20   : > { %720 = vmatprep.subr.bf16.mxu0 %v2013_v1  ;;  %1880 = vmatprep.subr.bf16.mxu1 %v2013_v1  ;;  %v1981_v58 = vld [vmem:[%s2057_s24 + $0xc4] ss:$8 sps:$4 sm:$0xff]   ;;  %v1985_v60 = vld [vmem:[%s2057_s24 + $0xc0] ss:$8 sps:$4 sm:$0xff]   ;;  %v1987_v62 = vld [vmem:[%s2057_s24 + $0xd4] ss:$8 sps:$4 sm:$0xff]  }
  0x21   : > { %v1983_v59 = vld [vmem:[%s2057_s24 + $0x1c4] ss:$8 sps:$4 sm:$0xff]   ;;  %v1986_v61 = vld [vmem:[%s2057_s24 + $0x1c0] ss:$8 sps:$4 sm:$0xff]   ;;  %v1989_v63 = vld [vmem:[%s2057_s24 + $0x1d4] ss:$8 sps:$4 sm:$0xff]  }
  0x22   : > { %v1991_v0 = vld [vmem:[%s2057_s24 + $0xd0] ss:$8 sps:$4 sm:$0xff]   ;;  %v1993_v2 = vld [vmem:[%s2057_s24 + $0xe4] ss:$8 sps:$4 sm:$0xff]   ;;  %v1997_v4 = vld [vmem:[%s2057_s24 + $0xe0] ss:$8 sps:$4 sm:$0xff]  }
  0x23   : > { %721 = vmatpush1.bf16.msra.mxu0 %v1907_v10  ;;  %1889 = vmatpush1.bf16.msra.mxu1 %v1907_v10  ;;  %v1995_v3 = vld [vmem:[%s2057_s24 + $0x1e4] ss:$8 sps:$4 sm:$0xff]   ;;  %v1998_v5 = vld [vmem:[%s2057_s24 + $0x1e0] ss:$8 sps:$4 sm:$0xff]   ;;  %v1999_v6 = vld [vmem:[%s2057_s24 + $0xf4] ss:$8 sps:$4 sm:$0xff]  }
  0x24   : > { %722 = vmatprep.subr.bf16.mxu0 %v2013_v1  ;;  %1881 = vmatprep.subr.bf16.mxu1 %v2013_v1  ;;  %v1992_v1 = vld [vmem:[%s2057_s24 + $0x1d0] ss:$8 sps:$4 sm:$0xff]   ;;  %v2001_v7 = vld [vmem:[%s2057_s24 + $0x1f4] ss:$8 sps:$4 sm:$0xff]   ;;  %v2176_v10 = vld [vmem:[%s2285_s2] ss:$0 sm:$0xff] }
  0x25   : > { %v2003_v8 = vld [vmem:[%s2057_s24 + $0xf0] ss:$8 sps:$4 sm:$0xff]  }
  0x26   : > { %v2004_v9 = vld [vmem:[%s2057_s24 + $0x1f0] ss:$8 sps:$4 sm:$0xff]  }
  0x27   : > { %723 = vmatpush1.bf16.msra.mxu0 %v1908_v11  ;;  %1890 = vmatpush1.bf16.msra.mxu1 %v1908_v11 }
  0x2a   : > { %739 = vmatmul.mubr.bf16.vlgmr.msra.gmra.mrb[0].mxu0 %v1909_v12  ;;  %867 = vmatmul.mubr.bf16.vlgmr.msra.gmra.mrb[0].mxu1 %v1912_v13 }
  0x2b   : > { %1520 = vmatprep.mubr.msk.bf16.mxu0 %vm609_vm0, %v1915_v14  ;;  %1536 = vmatprep.mubr.msk.bf16.mxu1 %vm609_vm0, %v1917_v15 }
  0x32   : > { %747 = vmatmul.mubr.bf16.gmra.mrb[4].mxu0 %v1919_v16  ;;  %875 = vmatmul.mubr.bf16.gmra.mrb[4].mxu1 %v1920_v17 }
  0x33   : > { %1521 = vmatprep.mubr.msk.bf16.mxu0 %vm609_vm0, %v1921_v18  ;;  %1537 = vmatprep.mubr.msk.bf16.mxu1 %vm609_vm0, %v1923_v19 }
  0x3a   : > { %755 = vmatmul.mubr.bf16.gmra.mrb[8].mxu0 %v1925_v20  ;;  %883 = vmatmul.mubr.bf16.gmra.mrb[8].mxu1 %v1926_v21 }
  0x3b   : > { %1522 = vmatprep.mubr.msk.bf16.mxu0 %vm609_vm0, %v1927_v22  ;;  %1538 = vmatprep.mubr.msk.bf16.mxu1 %vm609_vm0, %v1929_v23 }
  0x42   : > { %763 = vmatmul.mubr.bf16.gmra.mrb[12].mxu0 %v1931_v24  ;;  %891 = vmatmul.mubr.bf16.gmra.mrb[12].mxu1 %v1932_v25 }
  0x43   : > { %1523 = vmatprep.mubr.msk.bf16.mxu0 %vm609_vm0, %v1933_v26  ;;  %1539 = vmatprep.mubr.msk.bf16.mxu1 %vm609_vm0, %v1935_v27 }
  0x4a   : > { %771 = vmatmul.mubr.bf16.gmra.mrb[16].mxu0 %v1937_v28  ;;  %899 = vmatmul.mubr.bf16.gmra.mrb[16].mxu1 %v1938_v29 }
  0x4b   : > { %1524 = vmatprep.mubr.msk.bf16.mxu0 %vm609_vm0, %v1939_v30  ;;  %1540 = vmatprep.mubr.msk.bf16.mxu1 %vm609_vm0, %v1941_v31 }
  0x52   : > { %779 = vmatmul.mubr.bf16.gmra.mrb[20].mxu0 %v1943_v32  ;;  %907 = vmatmul.mubr.bf16.gmra.mrb[20].mxu1 %v1944_v33 }
  0x53   : > { %1525 = vmatprep.mubr.msk.bf16.mxu0 %vm609_vm0, %v1945_v34  ;;  %1541 = vmatprep.mubr.msk.bf16.mxu1 %vm609_vm0, %v1947_v35 }
  0x5a   : > { %787 = vmatmul.mubr.bf16.gmra.mrb[24].mxu0 %v1949_v36  ;;  %915 = vmatmul.mubr.bf16.gmra.mrb[24].mxu1 %v1950_v37 }
  0x5b   : > { %1526 = vmatprep.mubr.msk.bf16.mxu0 %vm609_vm0, %v1951_v38  ;;  %1542 = vmatprep.mubr.msk.bf16.mxu1 %vm609_vm0, %v1953_v39 }
  0x62   : > { %795 = vmatmul.mubr.bf16.gmra.mrb[28].mxu0 %v1955_v40  ;;  %923 = vmatmul.mubr.bf16.gmra.mrb[28].mxu1 %v1956_v41 }
  0x63   : > { %1527 = vmatprep.mubr.msk.bf16.mxu0 %vm609_vm0, %v1957_v42  ;;  %1543 = vmatprep.mubr.msk.bf16.mxu1 %vm609_vm0, %v1959_v43 }
  0x6a   : > { %803 = vmatmul.mubr.bf16.gmra.mrb[32].mxu0 %v1961_v44  ;;  %931 = vmatmul.mubr.bf16.gmra.mrb[32].mxu1 %v1962_v45 }
  0x6b   : > { %1528 = vmatprep.mubr.msk.bf16.mxu0 %vm609_vm0, %v1963_v46  ;;  %1544 = vmatprep.mubr.msk.bf16.mxu1 %vm609_vm0, %v1965_v47 }
  0x72   : > { %811 = vmatmul.mubr.bf16.gmra.mrb[36].mxu0 %v1967_v48  ;;  %939 = vmatmul.mubr.bf16.gmra.mrb[36].mxu1 %v1968_v49 }
  0x73   : > { %1529 = vmatprep.mubr.msk.bf16.mxu0 %vm609_vm0, %v1969_v50  ;;  %1545 = vmatprep.mubr.msk.bf16.mxu1 %vm609_vm0, %v1971_v51 }
  0x7a   : > { %819 = vmatmul.mubr.bf16.gmra.mrb[40].mxu0 %v1973_v52  ;;  %947 = vmatmul.mubr.bf16.gmra.mrb[40].mxu1 %v1974_v53 }
  0x7b   : > { %1530 = vmatprep.mubr.msk.bf16.mxu0 %vm609_vm0, %v1975_v54  ;;  %1546 = vmatprep.mubr.msk.bf16.mxu1 %vm609_vm0, %v1977_v55 }
  0x82   : > { %827 = vmatmul.mubr.bf16.gmra.mrb[44].mxu0 %v1979_v56  ;;  %955 = vmatmul.mubr.bf16.gmra.mrb[44].mxu1 %v1980_v57 }
  0x83   : > { %1531 = vmatprep.mubr.msk.bf16.mxu0 %vm609_vm0, %v1981_v58  ;;  %1547 = vmatprep.mubr.msk.bf16.mxu1 %vm609_vm0, %v1983_v59 }
  0x8a   : > { %835 = vmatmul.mubr.bf16.gmra.mrb[48].mxu0 %v1985_v60  ;;  %963 = vmatmul.mubr.bf16.gmra.mrb[48].mxu1 %v1986_v61 }
  0x8b   : > { %1532 = vmatprep.mubr.msk.bf16.mxu0 %vm609_vm0, %v1987_v62  ;;  %1548 = vmatprep.mubr.msk.bf16.mxu1 %vm609_vm0, %v1989_v63 }
  0x92   : > { %843 = vmatmul.mubr.bf16.gmra.mrb[52].mxu0 %v1991_v0  ;;  %971 = vmatmul.mubr.bf16.gmra.mrb[52].mxu1 %v1992_v1 }
  0x93   : > { %1533 = vmatprep.mubr.msk.bf16.mxu0 %vm609_vm0, %v1993_v2  ;;  %1549 = vmatprep.mubr.msk.bf16.mxu1 %vm609_vm0, %v1995_v3 }
  0x9a   : > { %851 = vmatmul.mubr.bf16.gmra.mrb[56].mxu0 %v1997_v4  ;;  %979 = vmatmul.mubr.bf16.gmra.mrb[56].mxu1 %v1998_v5 }
  0x9b   : > { %1534 = vmatprep.mubr.msk.bf16.mxu0 %vm609_vm0, %v1999_v6  ;;  %1550 = vmatprep.mubr.msk.bf16.mxu1 %vm609_vm0, %v2001_v7 }
  0xa2   : > { %859 = vmatmul.mubr.bf16.gmra.mrb[60].mxu0 %v2003_v8  ;;  %987 = vmatmul.mubr.bf16.gmra.mrb[60].mxu1 %v2004_v9 }
  0xfd   : > { %v740_v11 = vpop.f32.mrb[0].mxu0  ;;  %v868_v12 = vpop.f32.mrb[0].mxu1 }
  0xfe   : > { %v741_v13 = vadd.f32 %v2176_v10, %v740_v11  ;;  %v869_v14 = vadd.f32 %v2176_v10, %v868_v12  ;;  %v742_v15 = vpop.f32.mrb[1].mxu0  ;;  %v870_v16 = vpop.f32.mrb[1].mxu1 }
  0xff   : > { %v743_v17 = vpop.f32.mrb[2].mxu0  ;;  %v871_v18 = vpop.f32.mrb[2].mxu1 }
 0x100   : > { %v744_v19 = vadd.f32 %v2176_v10, %v743_v17  ;;  %v872_v20 = vadd.f32 %v2176_v10, %v871_v18  ;;  %v745_v21 = vpop.f32.mrb[3].mxu0  ;;  %v873_v22 = vpop.f32.mrb[3].mxu1  ;;  %v995_v23 = vmax.f32 %v741_v13, 0.0  ;;  %v1027_v24 = vmax.f32 %v869_v14, 0.0 }
 0x102   : > { %v996_v25 = vmax.f32 %v744_v19, 0.0  ;;  %v1028_v26 = vmax.f32 %v872_v20, 0.0 }
 0x104   : > { %v1685_v27 = vpack.c.bf16 %v996_v25, %v995_v23  ;;  %v1765_v28 = vpack.c.bf16 %v1028_v26, %v1027_v24 }
 0x105   : > { %v748_v29 = vpop.f32.mrb[4].mxu0  ;;  %v876_v30 = vpop.f32.mrb[4].mxu1 }
 0x106   : > { %1686 = vst [vmem:[%s2186_s17] sm:$0xff] %v1685_v27   ;;  %1857 = vst [vmem:[%s2186_s17 + $0x80] sm:$0xff] %v1765_v28   ;;  %v749_v31 = vadd.f32 %v2176_v10, %v748_v29  ;;  %v877_v32 = vadd.f32 %v2176_v10, %v876_v30  ;;  %v750_v33 = vpop.f32.mrb[5].mxu0  ;;  %v878_v34 = vpop.f32.mrb[5].mxu1 }
 0x107   : > { %v751_v35 = vpop.f32.mrb[6].mxu0  ;;  %v879_v36 = vpop.f32.mrb[6].mxu1 }
 0x108   : > { %v752_v37 = vadd.f32 %v2176_v10, %v751_v35  ;;  %v880_v38 = vadd.f32 %v2176_v10, %v879_v36  ;;  %v753_v39 = vpop.f32.mrb[7].mxu0  ;;  %v881_v40 = vpop.f32.mrb[7].mxu1  ;;  %v997_v41 = vmax.f32 %v749_v31, 0.0  ;;  %v1029_v42 = vmax.f32 %v877_v32, 0.0 }
 0x10a   : > { %v998_v43 = vmax.f32 %v752_v37, 0.0  ;;  %v1030_v44 = vmax.f32 %v880_v38, 0.0 }
 0x10c   : > { %v1690_v45 = vpack.c.bf16 %v998_v43, %v997_v41  ;;  %v1770_v46 = vpack.c.bf16 %v1030_v44, %v1029_v42 }
 0x10d   : > { %v756_v47 = vpop.f32.mrb[8].mxu0  ;;  %v884_v48 = vpop.f32.mrb[8].mxu1 }
 0x10e   : > { %1842 = vst [vmem:[%s2186_s17 + $0x8] sm:$0xff] %v1690_v45   ;;  %1858 = vst [vmem:[%s2186_s17 + $0x88] sm:$0xff] %v1770_v46   ;;  %v757_v49 = vadd.f32 %v2176_v10, %v756_v47  ;;  %v885_v50 = vadd.f32 %v2176_v10, %v884_v48  ;;  %v758_v51 = vpop.f32.mrb[9].mxu0  ;;  %v886_v52 = vpop.f32.mrb[9].mxu1 }
 0x10f   : > { %v759_v53 = vpop.f32.mrb[10].mxu0  ;;  %v887_v54 = vpop.f32.mrb[10].mxu1 }
 0x110   : > { %v760_v55 = vadd.f32 %v2176_v10, %v759_v53  ;;  %v888_v56 = vadd.f32 %v2176_v10, %v887_v54  ;;  %v761_v57 = vpop.f32.mrb[11].mxu0  ;;  %v889_v58 = vpop.f32.mrb[11].mxu1  ;;  %v999_v59 = vmax.f32 %v757_v49, 0.0  ;;  %v1031_v60 = vmax.f32 %v885_v50, 0.0 }
 0x112   : > { %v1000_v61 = vmax.f32 %v760_v55, 0.0  ;;  %v1032_v62 = vmax.f32 %v888_v56, 0.0 }
 0x114   : > { %v1695_v63 = vpack.c.bf16 %v1000_v61, %v999_v59  ;;  %v1775_v0 = vpack.c.bf16 %v1032_v62, %v1031_v60 }
 0x115   : > { %v764_v1 = vpop.f32.mrb[12].mxu0  ;;  %v892_v2 = vpop.f32.mrb[12].mxu1 }
 0x116   : > { %1843 = vst [vmem:[%s2186_s17 + $0x10] sm:$0xff] %v1695_v63   ;;  %1859 = vst [vmem:[%s2186_s17 + $0x90] sm:$0xff] %v1775_v0   ;;  %v765_v3 = vadd.f32 %v2176_v10, %v764_v1  ;;  %v893_v4 = vadd.f32 %v2176_v10, %v892_v2  ;;  %v766_v5 = vpop.f32.mrb[13].mxu0  ;;  %v894_v6 = vpop.f32.mrb[13].mxu1 }
 0x117   : > { %v767_v7 = vpop.f32.mrb[14].mxu0  ;;  %v895_v8 = vpop.f32.mrb[14].mxu1 }
 0x118   : > { %v768_v9 = vadd.f32 %v2176_v10, %v767_v7  ;;  %v896_v11 = vadd.f32 %v2176_v10, %v895_v8  ;;  %v769_v12 = vpop.f32.mrb[15].mxu0  ;;  %v897_v13 = vpop.f32.mrb[15].mxu1  ;;  %v1001_v14 = vmax.f32 %v765_v3, 0.0  ;;  %v1033_v15 = vmax.f32 %v893_v4, 0.0 }
 0x11a   : > { %v1002_v16 = vmax.f32 %v768_v9, 0.0  ;;  %v1034_v17 = vmax.f32 %v896_v11, 0.0 }
 0x11c   : > { %v1700_v18 = vpack.c.bf16 %v1002_v16, %v1001_v14  ;;  %v1780_v19 = vpack.c.bf16 %v1034_v17, %v1033_v15 }
 0x11d   : > { %v772_v20 = vpop.f32.mrb[16].mxu0  ;;  %v900_v21 = vpop.f32.mrb[16].mxu1 }
 0x11e   : > { %1844 = vst [vmem:[%s2186_s17 + $0x18] sm:$0xff] %v1700_v18   ;;  %1860 = vst [vmem:[%s2186_s17 + $0x98] sm:$0xff] %v1780_v19   ;;  %v773_v22 = vadd.f32 %v2176_v10, %v772_v20  ;;  %v901_v23 = vadd.f32 %v2176_v10, %v900_v21  ;;  %v774_v24 = vpop.f32.mrb[17].mxu0  ;;  %v902_v25 = vpop.f32.mrb[17].mxu1 }
 0x11f   : > { %v775_v26 = vpop.f32.mrb[18].mxu0  ;;  %v903_v27 = vpop.f32.mrb[18].mxu1 }
 0x120   : > { %v776_v28 = vadd.f32 %v2176_v10, %v775_v26  ;;  %v904_v29 = vadd.f32 %v2176_v10, %v903_v27  ;;  %v777_v30 = vpop.f32.mrb[19].mxu0  ;;  %v905_v31 = vpop.f32.mrb[19].mxu1  ;;  %v1003_v32 = vmax.f32 %v773_v22, 0.0  ;;  %v1035_v33 = vmax.f32 %v901_v23, 0.0 }
 0x122   : > { %v1004_v34 = vmax.f32 %v776_v28, 0.0  ;;  %v1036_v35 = vmax.f32 %v904_v29, 0.0 }
 0x124   : > { %v1705_v36 = vpack.c.bf16 %v1004_v34, %v1003_v32  ;;  %v1785_v37 = vpack.c.bf16 %v1036_v35, %v1035_v33 }
 0x125   : > { %v780_v38 = vpop.f32.mrb[20].mxu0  ;;  %v908_v39 = vpop.f32.mrb[20].mxu1 }
 0x126   : > { %1845 = vst [vmem:[%s2186_s17 + $0x20] sm:$0xff] %v1705_v36   ;;  %1861 = vst [vmem:[%s2186_s17 + $0xa0] sm:$0xff] %v1785_v37   ;;  %v781_v40 = vadd.f32 %v2176_v10, %v780_v38  ;;  %v909_v41 = vadd.f32 %v2176_v10, %v908_v39  ;;  %v782_v42 = vpop.f32.mrb[21].mxu0  ;;  %v910_v43 = vpop.f32.mrb[21].mxu1 }
 0x127   : > { %v783_v44 = vpop.f32.mrb[22].mxu0  ;;  %v911_v45 = vpop.f32.mrb[22].mxu1 }
 0x128   : > { %v784_v46 = vadd.f32 %v2176_v10, %v783_v44  ;;  %v912_v47 = vadd.f32 %v2176_v10, %v911_v45  ;;  %v785_v48 = vpop.f32.mrb[23].mxu0  ;;  %v913_v49 = vpop.f32.mrb[23].mxu1  ;;  %v1005_v50 = vmax.f32 %v781_v40, 0.0  ;;  %v1037_v51 = vmax.f32 %v909_v41, 0.0 }
 0x12a   : > { %v1006_v52 = vmax.f32 %v784_v46, 0.0  ;;  %v1038_v53 = vmax.f32 %v912_v47, 0.0 }
 0x12c   : > { %v1710_v54 = vpack.c.bf16 %v1006_v52, %v1005_v50  ;;  %v1790_v55 = vpack.c.bf16 %v1038_v53, %v1037_v51 }
 0x12d   : > { %v788_v56 = vpop.f32.mrb[24].mxu0  ;;  %v916_v57 = vpop.f32.mrb[24].mxu1 }
 0x12e   : > { %1846 = vst [vmem:[%s2186_s17 + $0x28] sm:$0xff] %v1710_v54   ;;  %1862 = vst [vmem:[%s2186_s17 + $0xa8] sm:$0xff] %v1790_v55   ;;  %v789_v58 = vadd.f32 %v2176_v10, %v788_v56  ;;  %v917_v59 = vadd.f32 %v2176_v10, %v916_v57  ;;  %v790_v60 = vpop.f32.mrb[25].mxu0  ;;  %v918_v61 = vpop.f32.mrb[25].mxu1 }
 0x12f   : > { %v791_v62 = vpop.f32.mrb[26].mxu0  ;;  %v919_v63 = vpop.f32.mrb[26].mxu1 }
 0x130   : > { %v792_v0 = vadd.f32 %v2176_v10, %v791_v62  ;;  %v920_v1 = vadd.f32 %v2176_v10, %v919_v63  ;;  %v793_v2 = vpop.f32.mrb[27].mxu0  ;;  %v921_v3 = vpop.f32.mrb[27].mxu1  ;;  %v1007_v4 = vmax.f32 %v789_v58, 0.0  ;;  %v1039_v5 = vmax.f32 %v917_v59, 0.0 }
 0x132   : > { %v1008_v6 = vmax.f32 %v792_v0, 0.0  ;;  %v1040_v7 = vmax.f32 %v920_v1, 0.0 }
 0x134   : > { %v1715_v8 = vpack.c.bf16 %v1008_v6, %v1007_v4  ;;  %v1795_v9 = vpack.c.bf16 %v1040_v7, %v1039_v5 }
 0x135   : > { %v796_v11 = vpop.f32.mrb[28].mxu0  ;;  %v924_v12 = vpop.f32.mrb[28].mxu1 }
 0x136   : > { %1847 = vst [vmem:[%s2186_s17 + $0x30] sm:$0xff] %v1715_v8   ;;  %1863 = vst [vmem:[%s2186_s17 + $0xb0] sm:$0xff] %v1795_v9   ;;  %v797_v13 = vadd.f32 %v2176_v10, %v796_v11  ;;  %v925_v14 = vadd.f32 %v2176_v10, %v924_v12  ;;  %v798_v15 = vpop.f32.mrb[29].mxu0  ;;  %v926_v16 = vpop.f32.mrb[29].mxu1 }
 0x137   : > { %v799_v17 = vpop.f32.mrb[30].mxu0  ;;  %v927_v18 = vpop.f32.mrb[30].mxu1 }
 0x138   : > { %v800_v19 = vadd.f32 %v2176_v10, %v799_v17  ;;  %v928_v20 = vadd.f32 %v2176_v10, %v927_v18  ;;  %v801_v21 = vpop.f32.mrb[31].mxu0  ;;  %v929_v22 = vpop.f32.mrb[31].mxu1  ;;  %v1009_v23 = vmax.f32 %v797_v13, 0.0  ;;  %v1041_v24 = vmax.f32 %v925_v14, 0.0 }
 0x13a   : > { %v1010_v25 = vmax.f32 %v800_v19, 0.0  ;;  %v1042_v26 = vmax.f32 %v928_v20, 0.0 }
 0x13c   : > { %v1720_v27 = vpack.c.bf16 %v1010_v25, %v1009_v23  ;;  %v1800_v28 = vpack.c.bf16 %v1042_v26, %v1041_v24 }
 0x13d   : > { %v804_v29 = vpop.f32.mrb[32].mxu0  ;;  %v932_v30 = vpop.f32.mrb[32].mxu1 }
 0x13e   : > { %1848 = vst [vmem:[%s2186_s17 + $0x38] sm:$0xff] %v1720_v27   ;;  %1864 = vst [vmem:[%s2186_s17 + $0xb8] sm:$0xff] %v1800_v28   ;;  %v805_v31 = vadd.f32 %v2176_v10, %v804_v29  ;;  %v933_v32 = vadd.f32 %v2176_v10, %v932_v30  ;;  %v806_v33 = vpop.f32.mrb[33].mxu0  ;;  %v934_v34 = vpop.f32.mrb[33].mxu1 }
 0x13f   : > { %v807_v35 = vpop.f32.mrb[34].mxu0  ;;  %v935_v36 = vpop.f32.mrb[34].mxu1 }
 0x140   : > { %v808_v37 = vadd.f32 %v2176_v10, %v807_v35  ;;  %v936_v38 = vadd.f32 %v2176_v10, %v935_v36  ;;  %v809_v39 = vpop.f32.mrb[35].mxu0  ;;  %v937_v40 = vpop.f32.mrb[35].mxu1  ;;  %v1011_v41 = vmax.f32 %v805_v31, 0.0  ;;  %v1043_v42 = vmax.f32 %v933_v32, 0.0 }
 0x142   : > { %v1012_v43 = vmax.f32 %v808_v37, 0.0  ;;  %v1044_v44 = vmax.f32 %v936_v38, 0.0 }
 0x144   : > { %v1725_v45 = vpack.c.bf16 %v1012_v43, %v1011_v41  ;;  %v1805_v46 = vpack.c.bf16 %v1044_v44, %v1043_v42 }
 0x145   : > { %v812_v47 = vpop.f32.mrb[36].mxu0  ;;  %v940_v48 = vpop.f32.mrb[36].mxu1 }
 0x146   : > { %1849 = vst [vmem:[%s2186_s17 + $0x40] sm:$0xff] %v1725_v45   ;;  %1865 = vst [vmem:[%s2186_s17 + $0xc0] sm:$0xff] %v1805_v46   ;;  %v813_v49 = vadd.f32 %v2176_v10, %v812_v47  ;;  %v941_v50 = vadd.f32 %v2176_v10, %v940_v48  ;;  %v814_v51 = vpop.f32.mrb[37].mxu0  ;;  %v942_v52 = vpop.f32.mrb[37].mxu1 }
 0x147   : > { %v815_v53 = vpop.f32.mrb[38].mxu0  ;;  %v943_v54 = vpop.f32.mrb[38].mxu1 }
 0x148   : > { %v816_v55 = vadd.f32 %v2176_v10, %v815_v53  ;;  %v944_v56 = vadd.f32 %v2176_v10, %v943_v54  ;;  %v817_v57 = vpop.f32.mrb[39].mxu0  ;;  %v945_v58 = vpop.f32.mrb[39].mxu1  ;;  %v1013_v59 = vmax.f32 %v813_v49, 0.0  ;;  %v1045_v60 = vmax.f32 %v941_v50, 0.0 }
 0x14a   : > { %v1014_v61 = vmax.f32 %v816_v55, 0.0  ;;  %v1046_v62 = vmax.f32 %v944_v56, 0.0 }
 0x14c   : > { %v1730_v63 = vpack.c.bf16 %v1014_v61, %v1013_v59  ;;  %v1810_v0 = vpack.c.bf16 %v1046_v62, %v1045_v60 }
 0x14d   : > { %v820_v1 = vpop.f32.mrb[40].mxu0  ;;  %v948_v2 = vpop.f32.mrb[40].mxu1 }
 0x14e   : > { %1850 = vst [vmem:[%s2186_s17 + $0x48] sm:$0xff] %v1730_v63   ;;  %1866 = vst [vmem:[%s2186_s17 + $0xc8] sm:$0xff] %v1810_v0   ;;  %v821_v3 = vadd.f32 %v2176_v10, %v820_v1  ;;  %v949_v4 = vadd.f32 %v2176_v10, %v948_v2  ;;  %v822_v5 = vpop.f32.mrb[41].mxu0  ;;  %v950_v6 = vpop.f32.mrb[41].mxu1 }
 0x14f   : > { %v823_v7 = vpop.f32.mrb[42].mxu0  ;;  %v951_v8 = vpop.f32.mrb[42].mxu1 }
 0x150   : > { %v824_v9 = vadd.f32 %v2176_v10, %v823_v7  ;;  %v952_v11 = vadd.f32 %v2176_v10, %v951_v8  ;;  %v825_v12 = vpop.f32.mrb[43].mxu0  ;;  %v953_v13 = vpop.f32.mrb[43].mxu1  ;;  %v1015_v14 = vmax.f32 %v821_v3, 0.0  ;;  %v1047_v15 = vmax.f32 %v949_v4, 0.0 }
 0x152   : > { %v1016_v16 = vmax.f32 %v824_v9, 0.0  ;;  %v1048_v17 = vmax.f32 %v952_v11, 0.0 }
 0x154   : > { %v1735_v18 = vpack.c.bf16 %v1016_v16, %v1015_v14  ;;  %v1815_v19 = vpack.c.bf16 %v1048_v17, %v1047_v15 }
 0x155   : > { %v828_v20 = vpop.f32.mrb[44].mxu0  ;;  %v956_v21 = vpop.f32.mrb[44].mxu1 }
 0x156   : > { %1851 = vst [vmem:[%s2186_s17 + $0x50] sm:$0xff] %v1735_v18   ;;  %1867 = vst [vmem:[%s2186_s17 + $0xd0] sm:$0xff] %v1815_v19   ;;  %v829_v22 = vadd.f32 %v2176_v10, %v828_v20  ;;  %v957_v23 = vadd.f32 %v2176_v10, %v956_v21  ;;  %v830_v24 = vpop.f32.mrb[45].mxu0  ;;  %v958_v25 = vpop.f32.mrb[45].mxu1 }
 0x157   : > { %v831_v26 = vpop.f32.mrb[46].mxu0  ;;  %v959_v27 = vpop.f32.mrb[46].mxu1 }
 0x158   : > { %v832_v28 = vadd.f32 %v2176_v10, %v831_v26  ;;  %v960_v29 = vadd.f32 %v2176_v10, %v959_v27  ;;  %v833_v30 = vpop.f32.mrb[47].mxu0  ;;  %v961_v31 = vpop.f32.mrb[47].mxu1  ;;  %v1017_v32 = vmax.f32 %v829_v22, 0.0  ;;  %v1049_v33 = vmax.f32 %v957_v23, 0.0 }
 0x15a   : > { %v1018_v34 = vmax.f32 %v832_v28, 0.0  ;;  %v1050_v35 = vmax.f32 %v960_v29, 0.0 }
 0x15c   : > { %v1740_v36 = vpack.c.bf16 %v1018_v34, %v1017_v32  ;;  %v1820_v37 = vpack.c.bf16 %v1050_v35, %v1049_v33 }
 0x15d   : > { %v836_v38 = vpop.f32.mrb[48].mxu0  ;;  %v964_v39 = vpop.f32.mrb[48].mxu1 }
 0x15e   : > { %1852 = vst [vmem:[%s2186_s17 + $0x58] sm:$0xff] %v1740_v36   ;;  %1868 = vst [vmem:[%s2186_s17 + $0xd8] sm:$0xff] %v1820_v37   ;;  %v837_v40 = vadd.f32 %v2176_v10, %v836_v38  ;;  %v965_v41 = vadd.f32 %v2176_v10, %v964_v39  ;;  %v838_v42 = vpop.f32.mrb[49].mxu0  ;;  %v966_v43 = vpop.f32.mrb[49].mxu1 }
 0x15f   : > { %v839_v44 = vpop.f32.mrb[50].mxu0  ;;  %v967_v45 = vpop.f32.mrb[50].mxu1 }
 0x160   : > { %v840_v46 = vadd.f32 %v2176_v10, %v839_v44  ;;  %v968_v47 = vadd.f32 %v2176_v10, %v967_v45  ;;  %v841_v48 = vpop.f32.mrb[51].mxu0  ;;  %v969_v49 = vpop.f32.mrb[51].mxu1  ;;  %v1019_v50 = vmax.f32 %v837_v40, 0.0  ;;  %v1051_v51 = vmax.f32 %v965_v41, 0.0 }
 0x162   : > { %v1020_v52 = vmax.f32 %v840_v46, 0.0  ;;  %v1052_v53 = vmax.f32 %v968_v47, 0.0 }
 0x164   : > { %v1745_v54 = vpack.c.bf16 %v1020_v52, %v1019_v50  ;;  %v1825_v55 = vpack.c.bf16 %v1052_v53, %v1051_v51 }
 0x165   : > { %v844_v56 = vpop.f32.mrb[52].mxu0  ;;  %v972_v57 = vpop.f32.mrb[52].mxu1 }
 0x166   : > { %1853 = vst [vmem:[%s2186_s17 + $0x60] sm:$0xff] %v1745_v54   ;;  %1869 = vst [vmem:[%s2186_s17 + $0xe0] sm:$0xff] %v1825_v55   ;;  %v845_v58 = vadd.f32 %v2176_v10, %v844_v56  ;;  %v973_v59 = vadd.f32 %v2176_v10, %v972_v57  ;;  %v846_v60 = vpop.f32.mrb[53].mxu0  ;;  %v974_v61 = vpop.f32.mrb[53].mxu1 }
 0x167   : > { %v847_v62 = vpop.f32.mrb[54].mxu0  ;;  %v975_v63 = vpop.f32.mrb[54].mxu1 }
 0x168   : > { %v848_v0 = vadd.f32 %v2176_v10, %v847_v62  ;;  %v976_v1 = vadd.f32 %v2176_v10, %v975_v63  ;;  %v849_v2 = vpop.f32.mrb[55].mxu0  ;;  %v977_v3 = vpop.f32.mrb[55].mxu1  ;;  %v1021_v4 = vmax.f32 %v845_v58, 0.0  ;;  %v1053_v5 = vmax.f32 %v973_v59, 0.0 }
 0x16a   : > { %v1022_v6 = vmax.f32 %v848_v0, 0.0  ;;  %v1054_v7 = vmax.f32 %v976_v1, 0.0 }
 0x16c   : > { %v1750_v8 = vpack.c.bf16 %v1022_v6, %v1021_v4  ;;  %v1830_v9 = vpack.c.bf16 %v1054_v7, %v1053_v5 }
 0x16d   : > { %v852_v11 = vpop.f32.mrb[56].mxu0  ;;  %v980_v12 = vpop.f32.mrb[56].mxu1 }
 0x16e   : > { %1854 = vst [vmem:[%s2186_s17 + $0x68] sm:$0xff] %v1750_v8   ;;  %1870 = vst [vmem:[%s2186_s17 + $0xe8] sm:$0xff] %v1830_v9   ;;  %v853_v13 = vadd.f32 %v2176_v10, %v852_v11  ;;  %v981_v14 = vadd.f32 %v2176_v10, %v980_v12  ;;  %v854_v15 = vpop.f32.mrb[57].mxu0  ;;  %v982_v16 = vpop.f32.mrb[57].mxu1 }
 0x16f   : > { %v855_v17 = vpop.f32.mrb[58].mxu0  ;;  %v983_v18 = vpop.f32.mrb[58].mxu1 }
 0x170   : > { %v856_v19 = vadd.f32 %v2176_v10, %v855_v17  ;;  %v984_v20 = vadd.f32 %v2176_v10, %v983_v18  ;;  %v857_v21 = vpop.f32.mrb[59].mxu0  ;;  %v985_v22 = vpop.f32.mrb[59].mxu1  ;;  %v1023_v23 = vmax.f32 %v853_v13, 0.0  ;;  %v1055_v24 = vmax.f32 %v981_v14, 0.0 }
 0x172   : > { %v1024_v25 = vmax.f32 %v856_v19, 0.0  ;;  %v1056_v26 = vmax.f32 %v984_v20, 0.0 }
 0x174   : > { %v1755_v27 = vpack.c.bf16 %v1024_v25, %v1023_v23  ;;  %v1835_v28 = vpack.c.bf16 %v1056_v26, %v1055_v24 }
 0x175   : > { %v860_v29 = vpop.f32.mrb[60].mxu0  ;;  %v988_v30 = vpop.f32.mrb[60].mxu1 }
 0x176   : > { %1855 = vst [vmem:[%s2186_s17 + $0x70] sm:$0xff] %v1755_v27   ;;  %1871 = vst [vmem:[%s2186_s17 + $0xf0] sm:$0xff] %v1835_v28   ;;  %v861_v31 = vadd.f32 %v2176_v10, %v860_v29  ;;  %v989_v32 = vadd.f32 %v2176_v10, %v988_v30  ;;  %v862_v33 = vpop.f32.mrb[61].mxu0  ;;  %v990_v34 = vpop.f32.mrb[61].mxu1 }
 0x177   : > { %v863_v35 = vpop.f32.mrb[62].mxu0  ;;  %v991_v36 = vpop.f32.mrb[62].mxu1 }
 0x178   : > { %v864_v37 = vadd.f32 %v2176_v10, %v863_v35  ;;  %v992_v38 = vadd.f32 %v2176_v10, %v991_v36  ;;  %v865_v39 = vpop.f32.mrb[63].mxu0  ;;  %v993_v40 = vpop.f32.mrb[63].mxu1  ;;  %v1025_v41 = vmax.f32 %v861_v31, 0.0  ;;  %v1057_v42 = vmax.f32 %v989_v32, 0.0 }
 0x17a   : > { %v1026_v43 = vmax.f32 %v864_v37, 0.0  ;;  %v1058_v44 = vmax.f32 %v992_v38, 0.0 }
 0x17c   : > { %v1760_v45 = vpack.c.bf16 %v1026_v43, %v1025_v41  ;;  %v1840_v46 = vpack.c.bf16 %v1058_v44, %v1057_v42 }
 0x17e   : > { %1856 = vst [vmem:[%s2186_s17 + $0x78] sm:$0xff] %v1760_v45   ;;  %1872 = vst [vmem:[%s2186_s17 + $0xf8] sm:$0xff] %v1840_v46  }
 0x17f PF: > { %s13_s12 = sadd.s32 1, %s2011_s12  }
 0x180   : > { %p10_p4 = scmp.ge.s32.totalorder %s13_s12, 6  }
 0x182   :  { %12 = sbr.rel (!%p10_p4) target bundleno = 1 (0x1), region = 62 }

// kernel: forward.9
= control target key start
LH: loop header
LB: loop body
LE: loop exit
PB: predicated region body
PF: predicated region fallthrough
CT: control target
= control target key end

     0   :  { %s1946_s12 = smov 0   ;;  %s2226_s0 = inlined_call_operand.vmem [shape: bf16[128,1152], index: 0, kind: input, shape index: {}]   ;;  %s2227_s1 = inlined_call_operand.vmem [shape: bf16[1152,128], index: 1, kind: input, shape index: {}]   ;;  %s2228_s2 = inlined_call_operand.vmem [shape: f32[1,128], index: 2, kind: input, shape index: {}]   ;;  %s2229_s3 = inlined_call_operand.vmem [shape: bf16[128,128], index: 3, kind: output, shape index: {}]  }
   0x1 LB: > { %s1414_s13 = sadd.s32 4294967295, %s1924_s12   ;;  %p1418_p0 = scmp.ge.s32.totalorder %s1924_s12, 1  ;;  %s1924_s12 = sphi %s1946_s12, %s13_s12  }
   0x2   : > { %p139_p1 = scmp.lt.s32.totalorder %s1924_s12, 3 }
   0x4   : > { %p140_p2 = pnand %p1418_p0, %p139_p1 }
   0x5   : > { %v1794_v0 = vld [vmem:[%s2227_s1 + $0x40] sm:$0xff] (!%p140_p2)   ;;  %v1798_v4 = vld [vmem:[%s2227_s1 + $0x48] sm:$0xff] (!%p140_p2)   ;;  %v1802_v8 = vld [vmem:[%s2227_s1 + $0x50] sm:$0xff] (!%p140_p2)   ;;  %s1419_s19 = sshll.u32 (!%p140_p2), %s1414_s13, 3 }
   0x6   : > { %143 = sbr.rel (%p140_p2) target bundleno = 327 (0x147), region = 32  ;;  %v1795_v1 = vld [vmem:[%s2227_s1 + $0xc0] sm:$0xff] (!%p140_p2)   ;;  %1573 = vmatprep.subr.bf16.mxu0 (!%p140_p2), %v1794_v0  ;;  %v1799_v5 = vld [vmem:[%s2227_s1 + $0xc8] sm:$0xff] (!%p140_p2)   ;;  %v1803_v9 = vld [vmem:[%s2227_s1 + $0xd0] sm:$0xff] (!%p140_p2)   ;;  %p165_p3 = scmp.lt.s32.totalorder (!%p140_p2), %s1419_s19, 15 }
   0x7   : > { %v1796_v2 = vld [vmem:[%s2227_s1] sm:$0xff] (!%p140_p2)   ;;  %1613 = vmatprep.subr.bf16.mxu1 (!%p140_p2), %v1795_v1  ;;  %v1800_v6 = vld [vmem:[%s2227_s1 + $0x8] sm:$0xff] (!%p140_p2)   ;;  %v1804_v10 = vld [vmem:[%s2227_s1 + $0x10] sm:$0xff] (!%p140_p2)  }
   0x8   : > { %v1797_v3 = vld [vmem:[%s2227_s1 + $0x80] sm:$0xff] (!%p140_p2)   ;;  %1574 = vmatpush3.bf16.msra.mxu0 (!%p140_p2), %v1796_v2  ;;  %v1801_v7 = vld [vmem:[%s2227_s1 + $0x88] sm:$0xff] (!%p140_p2)   ;;  %v1805_v11 = vld [vmem:[%s2227_s1 + $0x90] sm:$0xff] (!%p140_p2)  }
   0x9   : > { %1614 = vmatpush3.bf16.msra.mxu1 (!%p140_p2), %v1797_v3  ;;  %1575 = vmatprep.subr.bf16.mxu0 (!%p140_p2), %v1798_v4  ;;  %v1806_v12 = vld [vmem:[%s2227_s1 + $0x58] sm:$0xff] (!%p140_p2)   ;;  %v1810_v16 = vld [vmem:[%s2227_s1 + $0x60] sm:$0xff] (!%p140_p2)   ;;  %v1814_v20 = vld [vmem:[%s2227_s1 + $0x68] sm:$0xff] (!%p140_p2)  }
   0xa   : > { %1615 = vmatprep.subr.bf16.mxu1 (!%p140_p2), %v1799_v5  ;;  %v1807_v13 = vld [vmem:[%s2227_s1 + $0xd8] sm:$0xff] (!%p140_p2)   ;;  %v1811_v17 = vld [vmem:[%s2227_s1 + $0xe0] sm:$0xff] (!%p140_p2)   ;;  %v1815_v21 = vld [vmem:[%s2227_s1 + $0xe8] sm:$0xff] (!%p140_p2)  }
   0xb   : > { %v1808_v14 = vld [vmem:[%s2227_s1 + $0x18] sm:$0xff] (!%p140_p2)   ;;  %v1812_v18 = vld [vmem:[%s2227_s1 + $0x20] sm:$0xff] (!%p140_p2)   ;;  %v1816_v22 = vld [vmem:[%s2227_s1 + $0x28] sm:$0xff] (!%p140_p2)  }
   0xc   : > { %1576 = vmatpush3.bf16.msra.mxu0 (!%p140_p2), %v1800_v6  ;;  %v1809_v15 = vld [vmem:[%s2227_s1 + $0x98] sm:$0xff] (!%p140_p2)   ;;  %v1813_v19 = vld [vmem:[%s2227_s1 + $0xa0] sm:$0xff] (!%p140_p2)   ;;  %v1817_v23 = vld [vmem:[%s2227_s1 + $0xa8] sm:$0xff] (!%p140_p2)  }
   0xd   : > { %1616 = vmatpush3.bf16.msra.mxu1 %v1801_v7  ;;  %1577 = vmatprep.subr.bf16.mxu0 %v1802_v8  ;;  %s2231_s19 = smov (!%p165_p3, %s1419_s19), 15  ;;  %v1818_v24 = vld [vmem:[%s2227_s1 + $0x70] sm:$0xff]   ;;  %v1822_v28 = vld [vmem:[%s2227_s1 + $0x78] sm:$0xff]   ;;  %v1832_v36 = vld [vmem:[%s2227_s1 + $0x140] sm:$0xff]  }
   0xe   : > { %1617 = vmatprep.subr.bf16.mxu1 %v1803_v9  ;;  %v1819_v25 = vld [vmem:[%s2227_s1 + $0xf0] sm:$0xff]   ;;  %s1785_s16 = smul.u32 36, %s2231_s19  ;;  %v1823_v29 = vld [vmem:[%s2227_s1 + $0xf8] sm:$0xff]   ;;  %v1833_v37 = vld [vmem:[%s2227_s1 + $0x1c0] sm:$0xff]  }
   0xf   : > { %v1820_v26 = vld [vmem:[%s2227_s1 + $0x30] sm:$0xff]   ;;  %v1824_v30 = vld [vmem:[%s2227_s1 + $0x38] sm:$0xff]   ;;  %v1834_v38 = vld [vmem:[%s2227_s1 + $0x100] sm:$0xff]  }
  0x10   : > { %1578 = vmatpush3.bf16.msra.mxu0 %v1804_v10  ;;  %v1821_v27 = vld [vmem:[%s2227_s1 + $0xb0] sm:$0xff]   ;;  %s2052_s13 = scalar_lea.vmem %s2226_s0, %s1785_s16  ;;  %v1825_v31 = vld [vmem:[%s2227_s1 + $0xb8] sm:$0xff]   ;;  %v1835_v39 = vld [vmem:[%s2227_s1 + $0x180] sm:$0xff]  }
  0x11   : > { %1618 = vmatpush3.bf16.msra.mxu1 %v1805_v11  ;;  %1579 = vmatprep.subr.bf16.mxu0 %v1806_v12  ;;  %v1826_v32 = vld [vmem:[%s2052_s13] ss:$36 sps:$4 sm:$0xff]   ;;  %v1829_v34 = vld [vmem:[%s2052_s13 + $0x8] ss:$36 sps:$4 sm:$0xff]   ;;  %v1842_v45 = vld [vmem:[%s2052_s13 + $0x54] ss:$36 sps:$4 sm:$0xff]  }
  0x12   : > { %1619 = vmatprep.subr.bf16.mxu1 %v1807_v13  ;;  %v1828_v33 = vld [vmem:[%s2052_s13 + $0x4] ss:$36 sps:$4 sm:$0xff]   ;;  %v1831_v35 = vld [vmem:[%s2052_s13 + $0xc] ss:$36 sps:$4 sm:$0xff]   ;;  %v1850_v52 = vld [vmem:[%s2227_s1 + $0x158] sm:$0xff]  }
  0x13   : > { %1017 = vmatprep.mubr.bf16.mxu0 %v1828_v33  ;;  %1082 = vmatprep.mubr.bf16.mxu1 %v1831_v35  ;;  %v1836_v40 = vld [vmem:[%s2227_s1 + $0x148] sm:$0xff]   ;;  %v1845_v47 = vld [vmem:[%s2052_s13 + $0x50] ss:$36 sps:$4 sm:$0xff]   ;;  %v1851_v53 = vld [vmem:[%s2227_s1 + $0x1d8] sm:$0xff]  }
  0x14   : > { %1580 = vmatpush3.bf16.msra.mxu0 %v1808_v14  ;;  %v1837_v41 = vld [vmem:[%s2227_s1 + $0x1c8] sm:$0xff]   ;;  %v1846_v48 = vld [vmem:[%s2227_s1 + $0x150] sm:$0xff]   ;;  %v1852_v54 = vld [vmem:[%s2227_s1 + $0x118] sm:$0xff]  }
  0x15   : > { %1620 = vmatpush3.bf16.msra.mxu1 %v1809_v15  ;;  %1581 = vmatprep.subr.bf16.mxu0 %v1810_v16  ;;  %v1838_v42 = vld [vmem:[%s2227_s1 + $0x108] sm:$0xff]   ;;  %v1847_v49 = vld [vmem:[%s2227_s1 + $0x1d0] sm:$0xff]   ;;  %v1853_v55 = vld [vmem:[%s2227_s1 + $0x198] sm:$0xff]  }
  0x16   : > { %1621 = vmatprep.subr.bf16.mxu1 %v1811_v17  ;;  %v1839_v43 = vld [vmem:[%s2227_s1 + $0x188] sm:$0xff]   ;;  %v1848_v50 = vld [vmem:[%s2227_s1 + $0x110] sm:$0xff]   ;;  %v1856_v57 = vld [vmem:[%s2052_s13 + $0x9c] ss:$36 sps:$4 sm:$0xff]  }
  0x17   : > { %v1840_v44 = vld [vmem:[%s2052_s13 + $0x4c] ss:$36 sps:$4 sm:$0xff]   ;;  %v1854_v56 = vld [vmem:[%s2052_s13 + $0x94] ss:$36 sps:$4 sm:$0xff]   ;;  %v1860_v60 = vld [vmem:[%s2227_s1 + $0x160] sm:$0xff]  }
  0x18   : > { %1582 = vmatpush3.bf16.msra.mxu0 %v1812_v18  ;;  %v1844_v46 = vld [vmem:[%s2052_s13 + $0x48] ss:$36 sps:$4 sm:$0xff]   ;;  %v1849_v51 = vld [vmem:[%s2227_s1 + $0x190] sm:$0xff]   ;;  %v1859_v59 = vld [vmem:[%s2052_s13 + $0x98] ss:$36 sps:$4 sm:$0xff]  }
  0x19   : > { %1622 = vmatpush3.bf16.msra.mxu1 %v1813_v19  ;;  %1583 = vmatprep.subr.bf16.mxu0 %v1814_v20  ;;  %v1858_v58 = vld [vmem:[%s2052_s13 + $0x90] ss:$36 sps:$4 sm:$0xff]   ;;  %v1861_v61 = vld [vmem:[%s2227_s1 + $0x1e0] sm:$0xff]   ;;  %v1864_v0 = vld [vmem:[%s2227_s1 + $0x168] sm:$0xff]  }
  0x1a   : > { %1623 = vmatprep.subr.bf16.mxu1 %v1815_v21  ;;  %v1862_v62 = vld [vmem:[%s2227_s1 + $0x120] sm:$0xff]   ;;  %v1865_v1 = vld [vmem:[%s2227_s1 + $0x1e8] sm:$0xff]   ;;  %v1872_v6 = vld [vmem:[%s2052_s13 + $0xd8] ss:$36 sps:$4 sm:$0xff]  }
  0x1b   : > { %v1863_v63 = vld [vmem:[%s2227_s1 + $0x1a0] sm:$0xff]   ;;  %v1866_v2 = vld [vmem:[%s2227_s1 + $0x128] sm:$0xff]   ;;  %v1874_v8 = vld [vmem:[%s2227_s1 + $0x170] sm:$0xff]  }
  0x1c   : > { %1584 = vmatpush3.bf16.msra.mxu0 %v1816_v22  ;;  %v1867_v3 = vld [vmem:[%s2227_s1 + $0x1a8] sm:$0xff]   ;;  %v1868_v4 = vld [vmem:[%s2052_s13 + $0xdc] ss:$36 sps:$4 sm:$0xff]   ;;  %v1875_v9 = vld [vmem:[%s2227_s1 + $0x1f0] sm:$0xff]  }
  0x1d   : > { %1624 = vmatpush3.bf16.msra.mxu1 %v1817_v23  ;;  %1585 = vmatprep.subr.bf16.mxu0 %v1818_v24  ;;  %v1870_v5 = vld [vmem:[%s2052_s13 + $0xe4] ss:$36 sps:$4 sm:$0xff]   ;;  %v1876_v10 = vld [vmem:[%s2227_s1 + $0x130] sm:$0xff]   ;;  %v1878_v12 = vld [vmem:[%s2227_s1 + $0x178] sm:$0xff]  }
  0x1e   : > { %1625 = vmatprep.subr.bf16.mxu1 %v1819_v25  ;;  %v1873_v7 = vld [vmem:[%s2052_s13 + $0xe0] ss:$36 sps:$4 sm:$0xff]   ;;  %v1877_v11 = vld [vmem:[%s2227_s1 + $0x1b0] sm:$0xff]   ;;  %v1879_v13 = vld [vmem:[%s2227_s1 + $0x1f8] sm:$0xff]  }
  0x1f   : > { %v1880_v14 = vld [vmem:[%s2227_s1 + $0x138] sm:$0xff]   ;;  %v1882_v16 = vld [vmem:[%s2052_s13 + $0x10] ss:$36 sps:$4 sm:$0xff]   ;;  %v1888_v20 = vld [vmem:[%s2227_s1 + $0x200] sm:$0xff]  }
  0x20   : > { %1586 = vmatpush3.bf16.msra.mxu0 %v1820_v26  ;;  %v1881_v15 = vld [vmem:[%s2227_s1 + $0x1b8] sm:$0xff]   ;;  %v1889_v21 = vld [vmem:[%s2227_s1 + $0x208] sm:$0xff]   ;;  %v1895_v25 = vld [vmem:[%s2052_s13 + $0x60] ss:$36 sps:$4 sm:$0xff]  }
  0x21   : > { %1626 = vmatpush3.bf16.msra.mxu1 %v1821_v27  ;;  %1587 = vmatprep.subr.bf16.mxu0 %v1822_v28  ;;  %v1884_v17 = vld [vmem:[%s2052_s13 + $0x14] ss:$36 sps:$4 sm:$0xff]   ;;  %v1887_v19 = vld [vmem:[%s2052_s13 + $0x1c] ss:$36 sps:$4 sm:$0xff]   ;;  %v1892_v23 = vld [vmem:[%s2052_s13 + $0x64] ss:$36 sps:$4 sm:$0xff]  }
  0x22   : > { %1627 = vmatprep.subr.bf16.mxu1 %v1823_v29  ;;  %v1885_v18 = vld [vmem:[%s2052_s13 + $0x18] ss:$36 sps:$4 sm:$0xff]   ;;  %v1896_v26 = vld [vmem:[%s2227_s1 + $0x210] sm:$0xff]   ;;  %v1898_v27 = vld [vmem:[%s2052_s13 + $0xa4] ss:$36 sps:$4 sm:$0xff]  }
  0x23   : > { %v1890_v22 = vld [vmem:[%s2052_s13 + $0x5c] ss:$36 sps:$4 sm:$0xff]   ;;  %v1900_v28 = vld [vmem:[%s2052_s13 + $0xac] ss:$36 sps:$4 sm:$0xff]  }
  0x24   : > { %1588 = vmatpush3.bf16.msra.mxu0 %v1824_v30  ;;  %v1894_v24 = vld [vmem:[%s2052_s13 + $0x58] ss:$36 sps:$4 sm:$0xff]   ;;  %v1902_v30 = vld [vmem:[%s2052_s13 + $0xa0] ss:$36 sps:$4 sm:$0xff]   ;;  %v1906_v33 = vld [vmem:[%s2052_s13 + $0xec] ss:$36 sps:$4 sm:$0xff]  }
  0x25   : > { %1628 = vmatpush3.bf16.msra.mxu1 %v1825_v31  ;;  %1653 = vmatprep.subr.bf16.mxu0 %v1832_v36  ;;  %v1897_v29 = vld [vmem:[%s2227_s1 + $0x218] sm:$0xff]   ;;  %v1903_v31 = vld [vmem:[%s2052_s13 + $0xa8] ss:$36 sps:$4 sm:$0xff]  }
  0x26   : > { %1693 = vmatprep.subr.bf16.mxu1 %v1833_v37  ;;  %v1905_v35 = vld [vmem:[%s2227_s1 + $0x228] sm:$0xff]   ;;  %v1912_v37 = vld [vmem:[%s2227_s1 + $0x230] sm:$0xff]  }
  0x27   : > { %1018 = vmatmul.mubr.bf16.vlgmr.msra.gmra.mrb[0].mxu0 %v1826_v32  ;;  %v1904_v32 = vld [vmem:[%s2227_s1 + $0x220] sm:$0xff]   ;;  %v1910_v36 = vld [vmem:[%s2052_s13 + $0xe8] ss:$36 sps:$4 sm:$0xff]  }
  0x28   : > { %1083 = vmatmul.mubr.bf16.vlgmr.msra.gmra.mrb[0].mxu1 %v1829_v34  ;;  %1654 = vmatpush3.bf16.msra.mxu0 %v1834_v38  ;;  %v1908_v34 = vld [vmem:[%s2052_s13 + $0xf4] ss:$36 sps:$4 sm:$0xff]  }
  0x29   : > { %1694 = vmatpush3.bf16.msra.mxu1 %v1835_v39  ;;  %1655 = vmatprep.subr.bf16.mxu0 %v1836_v40  ;;  %v1911_v38 = vld [vmem:[%s2052_s13 + $0xf0] ss:$36 sps:$4 sm:$0xff]   ;;  %v1914_v39 = vld [vmem:[%s2052_s13 + $0x20] ss:$36 sps:$4 sm:$0xff]  }
  0x2a   : > { %1695 = vmatprep.subr.bf16.mxu1 %v1837_v41  ;;  %1025 = vmatprep.mubr.bf16.mxu0 %v1840_v44  ;;  %v1915_v40 = vld [vmem:[%s2052_s13 + $0xb0] ss:$36 sps:$4 sm:$0xff]   ;;  %v1913_v41 = vld [vmem:[%s2227_s1 + $0x238] sm:$0xff]  }
  0x2b   : > { %1090 = vmatprep.mubr.bf16.mxu1 %v1842_v45 }
  0x2c   : > { %1656 = vmatpush3.bf16.msra.mxu0 %v1838_v42  ;;  %v1916_v42 = vld [vmem:[%s2052_s13 + $0x68] ss:$36 sps:$4 sm:$0xff]  }
  0x2d   : > { %1696 = vmatpush3.bf16.msra.mxu1 %v1839_v43  ;;  %1657 = vmatprep.subr.bf16.mxu0 %v1846_v48  ;;  %v1917_v43 = vld [vmem:[%s2052_s13 + $0xf8] ss:$36 sps:$4 sm:$0xff]   ;;  %s1422_s13 = sshll.u32 %s2231_s19, 2 }
  0x2e   : > { %1697 = vmatprep.subr.bf16.mxu1 %v1847_v49  ;;  %s175_s20 = scalar_lea.vmem %s2229_s3, %s1422_s13 }
  0x2f   : > { %1026 = vmatmul.mubr.bf16.gmra.mrb[4].mxu0 %v1844_v46  ;;  %v1423_v46 = vld [vmem:[%s2228_s2] ss:$0 sm:$0xff] }
  0x30   : > { %1091 = vmatmul.mubr.bf16.gmra.mrb[4].mxu1 %v1845_v47  ;;  %1658 = vmatpush3.bf16.msra.mxu0 %v1848_v50 }
  0x31   : > { %1698 = vmatpush3.bf16.msra.mxu1 %v1849_v51  ;;  %1659 = vmatprep.subr.bf16.mxu0 %v1850_v52 }
  0x32   : > { %1699 = vmatprep.subr.bf16.mxu1 %v1851_v53  ;;  %1033 = vmatprep.mubr.bf16.mxu0 %v1854_v56 }
  0x33   : > { %1098 = vmatprep.mubr.bf16.mxu1 %v1856_v57 }
  0x34   : > { %1660 = vmatpush3.bf16.msra.mxu0 %v1852_v54 }
  0x35   : > { %1700 = vmatpush3.bf16.msra.mxu1 %v1853_v55  ;;  %1661 = vmatprep.subr.bf16.mxu0 %v1860_v60 }
  0x36   : > { %1701 = vmatprep.subr.bf16.mxu1 %v1861_v61 }
  0x37   : > { %1034 = vmatmul.mubr.bf16.gmra.mrb[8].mxu0 %v1858_v58 }
  0x38   : > { %1099 = vmatmul.mubr.bf16.gmra.mrb[8].mxu1 %v1859_v59  ;;  %1662 = vmatpush3.bf16.msra.mxu0 %v1862_v62 }
  0x39   : > { %1702 = vmatpush3.bf16.msra.mxu1 %v1863_v63  ;;  %1663 = vmatprep.subr.bf16.mxu0 %v1864_v0 }
  0x3a   : > { %1703 = vmatprep.subr.bf16.mxu1 %v1865_v1  ;;  %1041 = vmatprep.mubr.bf16.mxu0 %v1868_v4 }
  0x3b   : > { %1106 = vmatprep.mubr.bf16.mxu1 %v1870_v5 }
  0x3c   : > { %1664 = vmatpush3.bf16.msra.mxu0 %v1866_v2 }
  0x3d   : > { %1704 = vmatpush3.bf16.msra.mxu1 %v1867_v3  ;;  %1665 = vmatprep.subr.bf16.mxu0 %v1874_v8 }
  0x3e   : > { %1705 = vmatprep.subr.bf16.mxu1 %v1875_v9 }
  0x3f   : > { %1042 = vmatmul.mubr.bf16.gmra.mrb[12].mxu0 %v1872_v6 }
  0x40   : > { %1107 = vmatmul.mubr.bf16.gmra.mrb[12].mxu1 %v1873_v7  ;;  %1666 = vmatpush3.bf16.msra.mxu0 %v1876_v10 }
  0x41   : > { %1706 = vmatpush3.bf16.msra.mxu1 %v1877_v11  ;;  %1667 = vmatprep.subr.bf16.mxu0 %v1878_v12 }
  0x42   : > { %1707 = vmatprep.subr.bf16.mxu1 %v1879_v13  ;;  %1147 = vmatprep.mubr.bf16.mxu0 %v1884_v17 }
  0x43   : > { %1212 = vmatprep.mubr.bf16.mxu1 %v1887_v19 }
  0x44   : > { %1668 = vmatpush3.bf16.msra.mxu0 %v1880_v14 }
  0x45   : > { %1708 = vmatpush3.bf16.msra.mxu1 %v1881_v15  ;;  %1745 = vmatprep.subr.bf16.mxu0 %v1888_v20 }
  0x46   : > { %1769 = vmatprep.subr.bf16.mxu1 %v1888_v20 }
  0x47   : > { %1148 = vmatmul.mubr.bf16.vlgmr.msra.gmra.mrb[16].mxu0 %v1882_v16 }
  0x48   : > { %1213 = vmatmul.mubr.bf16.vlgmr.msra.gmra.mrb[16].mxu1 %v1885_v18  ;;  %1746 = vmatpush3.bf16.msra.mxu0 %v1888_v20 }
  0x49   : > { %1777 = vmatpush3.bf16.msra.mxu1 %v1888_v20  ;;  %1747 = vmatprep.subr.bf16.mxu0 %v1889_v21 }
  0x4a   : > { %1770 = vmatprep.subr.bf16.mxu1 %v1889_v21  ;;  %1155 = vmatprep.mubr.bf16.mxu0 %v1890_v22 }
  0x4b   : > { %1220 = vmatprep.mubr.bf16.mxu1 %v1892_v23 }
  0x4c   : > { %1748 = vmatpush3.bf16.msra.mxu0 %v1889_v21 }
  0x4d   : > { %1778 = vmatpush3.bf16.msra.mxu1 %v1889_v21  ;;  %1749 = vmatprep.subr.bf16.mxu0 %v1896_v26 }
  0x4e   : > { %1771 = vmatprep.subr.bf16.mxu1 %v1896_v26 }
  0x4f   : > { %1156 = vmatmul.mubr.bf16.gmra.mrb[20].mxu0 %v1894_v24 }
  0x50   : > { %1221 = vmatmul.mubr.bf16.gmra.mrb[20].mxu1 %v1895_v25  ;;  %1163 = vmatprep.mubr.bf16.mxu0 %v1898_v27 }
  0x51   : > { %1750 = vmatpush3.bf16.msra.mxu0 %v1896_v26  ;;  %1228 = vmatprep.mubr.bf16.mxu1 %v1900_v28 }
  0x52   : > { %1779 = vmatpush3.bf16.msra.mxu1 %v1896_v26  ;;  %1751 = vmatprep.subr.bf16.mxu0 %v1897_v29 }
  0x53   : > { %1772 = vmatprep.subr.bf16.mxu1 %v1897_v29 }
  0x55   : > { %1752 = vmatpush3.bf16.msra.mxu0 %v1897_v29 }
  0x56   : > { %1780 = vmatpush3.bf16.msra.mxu1 %v1897_v29  ;;  %1753 = vmatprep.subr.bf16.mxu0 %v1904_v32 }
  0x57   : > { %1164 = vmatmul.mubr.bf16.gmra.mrb[24].mxu0 %v1902_v30  ;;  %1773 = vmatprep.subr.bf16.mxu1 %v1904_v32 }
  0x58   : > { %1229 = vmatmul.mubr.bf16.gmra.mrb[24].mxu1 %v1903_v31  ;;  %1171 = vmatprep.mubr.bf16.mxu0 %v1906_v33 }
  0x59   : > { %1754 = vmatpush3.bf16.msra.mxu0 %v1904_v32  ;;  %1236 = vmatprep.mubr.bf16.mxu1 %v1908_v34 }
  0x5a   : > { %1781 = vmatpush3.bf16.msra.mxu1 %v1904_v32  ;;  %1755 = vmatprep.subr.bf16.mxu0 %v1905_v35 }
  0x5b   : > { %1774 = vmatprep.subr.bf16.mxu1 %v1905_v35 }
  0x5d   : > { %1756 = vmatpush3.bf16.msra.mxu0 %v1905_v35 }
  0x5e   : > { %1782 = vmatpush3.bf16.msra.mxu1 %v1905_v35  ;;  %1757 = vmatprep.subr.bf16.mxu0 %v1912_v37 }
  0x5f   : > { %1172 = vmatmul.mubr.bf16.gmra.mrb[28].mxu0 %v1910_v36  ;;  %1775 = vmatprep.subr.bf16.mxu1 %v1912_v37 }
  0x60   : > { %1237 = vmatmul.mubr.bf16.gmra.mrb[28].mxu1 %v1911_v38  ;;  %1761 = vmatprep.mubr.bf16.mxu0 %v1914_v39 }
  0x61   : > { %1758 = vmatpush3.bf16.msra.mxu0 %v1912_v37  ;;  %1765 = vmatprep.mubr.bf16.mxu1 %v1915_v40 }
  0x62   : > { %1783 = vmatpush3.bf16.msra.mxu1 %v1912_v37  ;;  %1759 = vmatprep.subr.bf16.mxu0 %v1913_v41 }
  0x63   : > { %1776 = vmatprep.subr.bf16.mxu1 %v1913_v41 }
  0x65   : > { %1760 = vmatpush3.bf16.msra.mxu0 %v1913_v41 }
  0x66   : > { %1784 = vmatpush3.bf16.msra.mxu1 %v1913_v41 }
  0x68   : > { %1762 = vmatmul.mubr.bf16.vlgmr.msra.gmra.mrb[32].mxu0 %v1916_v42 }
  0x69   : > { %1766 = vmatmul.mubr.bf16.vlgmr.msra.gmra.mrb[32].mxu1 %v1917_v43 }
  0xfa   : > { %v1589_v44 = vpop.f32.mrb[0].mxu0 }
  0xfb   : > { %v1629_v45 = vpop.f32.mrb[0].mxu1  ;;  %v1590_v47 = vpop.f32.mrb[1].mxu0 }
  0xfc   : > { %v1591_v48 = vadd.f32 %v1590_v47, %v1589_v44  ;;  %v1630_v49 = vpop.f32.mrb[1].mxu1  ;;  %v1592_v50 = vpop.f32.mrb[2].mxu0 }
  0xfd   : > { %v1631_v51 = vadd.f32 %v1630_v49, %v1629_v45  ;;  %v1632_v52 = vpop.f32.mrb[2].mxu1  ;;  %v1593_v53 = vpop.f32.mrb[3].mxu0 }
  0xfe   : > { %v1020_v54 = vadd.f32 %v1591_v48, %v1423_v46  ;;  %v1594_v55 = vadd.f32 %v1593_v53, %v1592_v50  ;;  %v1633_v56 = vpop.f32.mrb[3].mxu1 }
  0xff   : > { %v1634_v57 = vadd.f32 %v1633_v56, %v1632_v52 }
 0x100   : > { %v1085_v58 = vadd.f32 %v1631_v51, %v1020_v54  ;;  %v1023_v59 = vadd.f32 %v1594_v55, %v1423_v46 }
 0x102   : > { %v1088_v60 = vadd.f32 %v1634_v57, %v1023_v59  ;;  %v1595_v61 = vpop.f32.mrb[4].mxu0 }
 0x103   : > { %v1635_v62 = vpop.f32.mrb[4].mxu1  ;;  %v1596_v63 = vpop.f32.mrb[5].mxu0 }
 0x104   : > { %v1597_v0 = vadd.f32 %v1596_v63, %v1595_v61  ;;  %v1636_v1 = vpop.f32.mrb[5].mxu1  ;;  %v1598_v2 = vpop.f32.mrb[6].mxu0 }
 0x105   : > { %v1637_v3 = vadd.f32 %v1636_v1, %v1635_v62  ;;  %v1638_v4 = vpop.f32.mrb[6].mxu1  ;;  %v1599_v5 = vpop.f32.mrb[7].mxu0 }
 0x106   : > { %v1028_v6 = vadd.f32 %v1597_v0, %v1423_v46  ;;  %v1600_v7 = vadd.f32 %v1599_v5, %v1598_v2  ;;  %v1639_v8 = vpop.f32.mrb[7].mxu1 }
 0x107   : > { %v1640_v9 = vadd.f32 %v1639_v8, %v1638_v4 }
 0x108   : > { %v1093_v10 = vadd.f32 %v1637_v3, %v1028_v6  ;;  %v1031_v11 = vadd.f32 %v1600_v7, %v1423_v46 }
 0x10a   : > { %v1096_v12 = vadd.f32 %v1640_v9, %v1031_v11  ;;  %v1601_v13 = vpop.f32.mrb[8].mxu0 }
 0x10b   : > { %v1641_v14 = vpop.f32.mrb[8].mxu1  ;;  %v1602_v15 = vpop.f32.mrb[9].mxu0 }
 0x10c   : > { %v1603_v16 = vadd.f32 %v1602_v15, %v1601_v13  ;;  %v1642_v17 = vpop.f32.mrb[9].mxu1  ;;  %v1604_v18 = vpop.f32.mrb[10].mxu0 }
 0x10d   : > { %v1643_v19 = vadd.f32 %v1642_v17, %v1641_v14  ;;  %v1644_v20 = vpop.f32.mrb[10].mxu1  ;;  %v1605_v21 = vpop.f32.mrb[11].mxu0 }
 0x10e   : > { %v1036_v22 = vadd.f32 %v1603_v16, %v1423_v46  ;;  %v1606_v23 = vadd.f32 %v1605_v21, %v1604_v18  ;;  %v1645_v24 = vpop.f32.mrb[11].mxu1 }
 0x10f   : > { %v1646_v25 = vadd.f32 %v1645_v24, %v1644_v20 }
 0x110   : > { %v1101_v26 = vadd.f32 %v1643_v19, %v1036_v22  ;;  %v1039_v27 = vadd.f32 %v1606_v23, %v1423_v46 }
 0x112   : > { %v1104_v28 = vadd.f32 %v1646_v25, %v1039_v27  ;;  %v1607_v29 = vpop.f32.mrb[12].mxu0 }
 0x113   : > { %v1647_v30 = vpop.f32.mrb[12].mxu1  ;;  %v1608_v31 = vpop.f32.mrb[13].mxu0 }
 0x114   : > { %v1648_v32 = vpop.f32.mrb[13].mxu1  ;;  %v1609_v33 = vadd.f32 %v1608_v31, %v1607_v29  ;;  %v1610_v35 = vpop.f32.mrb[14].mxu0 }
 0x115   : > { %v1649_v34 = vadd.f32 %v1648_v32, %v1647_v30  ;;  %v1650_v36 = vpop.f32.mrb[14].mxu1  ;;  %v1611_v37 = vpop.f32.mrb[15].mxu0 }
 0x116   : > { %v1651_v38 = vpop.f32.mrb[15].mxu1  ;;  %v1044_v39 = vadd.f32 %v1609_v33, %v1423_v46  ;;  %v1612_v40 = vadd.f32 %v1611_v37, %v1610_v35 }
 0x117   : > { %v1652_v41 = vadd.f32 %v1651_v38, %v1650_v36 }
 0x118   : > { %v1109_v42 = vadd.f32 %v1649_v34, %v1044_v39  ;;  %v1047_v43 = vadd.f32 %v1612_v40, %v1423_v46 }
 0x11a   : > { %v1112_v44 = vadd.f32 %v1652_v41, %v1047_v43  ;;  %v1669_v45 = vpop.f32.mrb[16].mxu0 }
 0x11b   : > { %v1670_v47 = vpop.f32.mrb[17].mxu0  ;;  %v1709_v48 = vpop.f32.mrb[16].mxu1 }
 0x11c   : > { %v1671_v49 = vadd.f32 %v1670_v47, %v1669_v45  ;;  %v1672_v50 = vpop.f32.mrb[18].mxu0  ;;  %v1710_v51 = vpop.f32.mrb[17].mxu1 }
 0x11d   : > { %v1673_v52 = vpop.f32.mrb[19].mxu0  ;;  %v1711_v54 = vadd.f32 %v1710_v51, %v1709_v48  ;;  %v1712_v55 = vpop.f32.mrb[18].mxu1 }
 0x11e   : > { %v1150_v53 = vadd.f32 %v1671_v49, %v1085_v58  ;;  %v1674_v56 = vadd.f32 %v1673_v52, %v1672_v50  ;;  %v1713_v57 = vpop.f32.mrb[19].mxu1 }
 0x11f   : > { %v1714_v61 = vadd.f32 %v1713_v57, %v1712_v55 }
 0x120   : > { %v1153_v59 = vadd.f32 %v1674_v56, %v1088_v60  ;;  %v1215_v62 = vadd.f32 %v1711_v54, %v1150_v53 }
 0x122   : > { %v1675_v63 = vpop.f32.mrb[20].mxu0  ;;  %v1218_v0 = vadd.f32 %v1714_v61, %v1153_v59 }
 0x123   : > { %v1676_v1 = vpop.f32.mrb[21].mxu0  ;;  %v1715_v46 = vpop.f32.mrb[20].mxu1 }
 0x124   : > { %v1677_v2 = vadd.f32 %v1676_v1, %v1675_v63  ;;  %v1678_v3 = vpop.f32.mrb[22].mxu0  ;;  %v1716_v4 = vpop.f32.mrb[21].mxu1 }
 0x125   : > { %v1679_v5 = vpop.f32.mrb[23].mxu0  ;;  %v1717_v7 = vadd.f32 %v1716_v4, %v1715_v46  ;;  %v1718_v8 = vpop.f32.mrb[22].mxu1 }
 0x126   : > { %v1158_v6 = vadd.f32 %v1677_v2, %v1093_v10  ;;  %v1680_v9 = vadd.f32 %v1679_v5, %v1678_v3  ;;  %v1719_v58 = vpop.f32.mrb[23].mxu1 }
 0x127   : > { %v1720_v13 = vadd.f32 %v1719_v58, %v1718_v8 }
 0x128   : > { %v1161_v11 = vadd.f32 %v1680_v9, %v1096_v12  ;;  %v1223_v14 = vadd.f32 %v1717_v7, %v1158_v6 }
 0x12a   : > { %v1681_v15 = vpop.f32.mrb[24].mxu0  ;;  %v1226_v60 = vadd.f32 %v1720_v13, %v1161_v11 }
 0x12b   : > { %v1682_v16 = vpop.f32.mrb[25].mxu0  ;;  %v1721_v17 = vpop.f32.mrb[24].mxu1 }
 0x12c   : > { %v1683_v18 = vadd.f32 %v1682_v16, %v1681_v15  ;;  %v1684_v19 = vpop.f32.mrb[26].mxu0  ;;  %v1722_v20 = vpop.f32.mrb[25].mxu1 }
 0x12d   : > { %v1685_v21 = vpop.f32.mrb[27].mxu0  ;;  %v1723_v23 = vadd.f32 %v1722_v20, %v1721_v17  ;;  %v1724_v24 = vpop.f32.mrb[26].mxu1 }
 0x12e   : > { %v1166_v22 = vadd.f32 %v1683_v18, %v1101_v26  ;;  %v1686_v25 = vadd.f32 %v1685_v21, %v1684_v19  ;;  %v1725_v10 = vpop.f32.mrb[27].mxu1 }
 0x12f   : > { %v1726_v29 = vadd.f32 %v1725_v10, %v1724_v24 }
 0x130   : > { %v1169_v27 = vadd.f32 %v1686_v25, %v1104_v28  ;;  %v1231_v30 = vadd.f32 %v1723_v23, %v1166_v22 }
 0x132   : > { %v1687_v31 = vpop.f32.mrb[28].mxu0  ;;  %v1234_v12 = vadd.f32 %v1726_v29, %v1169_v27 }
 0x133   : > { %v1688_v32 = vpop.f32.mrb[29].mxu0  ;;  %v1727_v33 = vpop.f32.mrb[28].mxu1 }
 0x134   : > { %v1689_v34 = vadd.f32 %v1688_v32, %v1687_v31  ;;  %v1690_v35 = vpop.f32.mrb[30].mxu0  ;;  %v1728_v36 = vpop.f32.mrb[29].mxu1 }
 0x135   : > { %v1691_v37 = vpop.f32.mrb[31].mxu0  ;;  %v1729_v39 = vadd.f32 %v1728_v36, %v1727_v33  ;;  %v1730_v40 = vpop.f32.mrb[30].mxu1 }
 0x136   : > { %v1174_v38 = vadd.f32 %v1689_v34, %v1109_v42  ;;  %v1692_v26 = vadd.f32 %v1691_v37, %v1690_v35  ;;  %v1731_v41 = vpop.f32.mrb[31].mxu1 }
 0x137   : > { %v1732_v45 = vadd.f32 %v1731_v41, %v1730_v40 }
 0x138   : > { %v1177_v43 = vadd.f32 %v1692_v26, %v1112_v44  ;;  %v1239_v47 = vadd.f32 %v1729_v39, %v1174_v38 }
 0x13a   : > { %v1242_v28 = vadd.f32 %v1732_v45, %v1177_v43 }
 0x13b   : > { %v1763_v48 = vpop.f32.mrb[32].mxu0 }
 0x13c   : > { %v1288_v49 = vadd.f32 %v1763_v48, %v1223_v14  ;;  %v1767_v50 = vpop.f32.mrb[32].mxu1  ;;  %v1279_v51 = vpop.f32.mrb[33].mxu0 }
 0x13d   : > { %v1304_v52 = vadd.f32 %v1767_v50, %v1239_v47  ;;  %v1280_v53 = vadd.f32 %v1279_v51, %v1215_v62  ;;  %v1295_v54 = vpop.f32.mrb[33].mxu1  ;;  %v1764_v55 = vpop.f32.mrb[34].mxu0 }
 0x13e   : > { %v1296_v56 = vadd.f32 %v1295_v54, %v1231_v30  ;;  %v1291_v42 = vadd.f32 %v1764_v55, %v1226_v60  ;;  %v1768_v57 = vpop.f32.mrb[34].mxu1  ;;  %v1282_v59 = vpop.f32.mrb[35].mxu0  ;;  %v1312_v44 = vmax.f32 %v1288_v49, 0.0 }
 0x13f   : > { %v1307_v61 = vadd.f32 %v1768_v57, %v1242_v28  ;;  %v1283_v63 = vadd.f32 %v1282_v59, %v1218_v0  ;;  %v1298_v1 = vpop.f32.mrb[35].mxu1  ;;  %v1316_v3 = vmax.f32 %v1304_v52, 0.0  ;;  %v1310_v4 = vmax.f32 %v1280_v53, 0.0 }
 0x140   : > { %v1313_v46 = vmax.f32 %v1291_v42, 0.0  ;;  %v1299_v2 = vadd.f32 %v1298_v1, %v1234_v12  ;;  %v1314_v6 = vmax.f32 %v1296_v56, 0.0 }
 0x141   : > { %v1317_v62 = vmax.f32 %v1307_v61, 0.0  ;;  %v1311_v5 = vmax.f32 %v1283_v63, 0.0 }
 0x142   : > { %v1558_v7 = vpack.c.bf16 %v1313_v46, %v1312_v44  ;;  %v1315_v8 = vmax.f32 %v1299_v2, 0.0 }
 0x143   : > { %v1568_v9 = vpack.c.bf16 %v1317_v62, %v1316_v3  ;;  %v1553_v58 = vpack.c.bf16 %v1311_v5, %v1310_v4 }
 0x144   : > { %1570 = vst [vmem:[%s175_s20 + $0x8] sm:$0xff] %v1558_v7   ;;  %v1563_v11 = vpack.c.bf16 %v1315_v8, %v1314_v6 }
 0x145   : > { %1572 = vst [vmem:[%s175_s20 + $0x18] sm:$0xff] %v1568_v9   ;;  %1554 = vst [vmem:[%s175_s20] sm:$0xff] %v1553_v58  }
 0x146   : > { %1571 = vst [vmem:[%s175_s20 + $0x10] sm:$0xff] %v1563_v11  }
 0x147 PF: > { %s13_s12 = sadd.s32 1, %s1924_s12  }
 0x148   : > { %p10_p4 = scmp.ge.s32.totalorder %s13_s12, 4  }
 0x14a   :  { %12 = sbr.rel (!%p10_p4) target bundleno = 1 (0x1), region = 62 }

// kernel: forward.8
= control target key start
LH: loop header
LB: loop body
LE: loop exit
PB: predicated region body
PF: predicated region fallthrough
CT: control target
= control target key end

     0   :  { %s3950_s12 = smov 0   ;;  %s4730_s0 = inlined_call_operand.vmem [shape: bf16[512,1152], index: 0, kind: input, shape index: {}]   ;;  %s4731_s1 = inlined_call_operand.vmem [shape: bf16[1152,128], index: 1, kind: input, shape index: {}]   ;;  %s4732_s2 = inlined_call_operand.vmem [shape: f32[1,128], index: 2, kind: input, shape index: {}]   ;;  %s4733_s3 = inlined_call_operand.vmem [shape: bf16[512,128], index: 3, kind: output, shape index: {}]  }
   0x1 LB: > { %s2710_s13 = sadd.s32 4294967295, %s3928_s12   ;;  %p2714_p0 = scmp.ge.s32.totalorder %s3928_s12, 1  ;;  %s3928_s12 = sphi %s3950_s12, %s13_s12  }
   0x2   : > { %p139_p1 = scmp.lt.s32.totalorder %s3928_s12, 3 }
   0x4   : > { %p140_p2 = pnand %p2714_p0, %p139_p1 }
   0x5   : > { %v3642_v0 = vld [vmem:[%s4731_s1 + $0x40] sm:$0xff] (!%p140_p2)   ;;  %s2715_s16 = sshll.u32 (!%p140_p2), %s2710_s13, 5  ;;  %v3644_v2 = vld [vmem:[%s4731_s1 + $0x48] sm:$0xff] (!%p140_p2)   ;;  %v3646_v4 = vld [vmem:[%s4731_s1 + $0x50] sm:$0xff] (!%p140_p2)  }
   0x6   : > { %143 = sbr.rel (%p140_p2) target bundleno = 544 (0x220), region = 32  ;;  %v3643_v1 = vld [vmem:[%s4731_s1] sm:$0xff] (!%p140_p2)   ;;  %3097 = vmatprep.subr.bf16.mxu0 (!%p140_p2), %v3642_v0  ;;  %3617 = vmatprep.subr.bf16.mxu1 (!%p140_p2), %v3642_v0  ;;  %p165_p3 = scmp.lt.s32.totalorder (!%p140_p2), %s2715_s16, 63  ;;  %v3645_v3 = vld [vmem:[%s4731_s1 + $0x8] sm:$0xff] (!%p140_p2)   ;;  %v3647_v5 = vld [vmem:[%s4731_s1 + $0x10] sm:$0xff] (!%p140_p2)  }
   0x7   : > { %3098 = vmatpush3.bf16.msra.mxu0 (!%p140_p2), %v3643_v1  ;;  %3625 = vmatpush3.bf16.msra.mxu1 (!%p140_p2), %v3643_v1  ;;  %v3648_v6 = vld [vmem:[%s4731_s1 + $0x58] sm:$0xff] (!%p140_p2)   ;;  %v3650_v8 = vld [vmem:[%s4731_s1 + $0x60] sm:$0xff] (!%p140_p2)   ;;  %v3652_v10 = vld [vmem:[%s4731_s1 + $0x68] sm:$0xff] (!%p140_p2)  }
   0x8   : > { %3099 = vmatprep.subr.bf16.mxu0 (!%p140_p2), %v3644_v2  ;;  %3618 = vmatprep.subr.bf16.mxu1 (!%p140_p2), %v3644_v2  ;;  %v3649_v7 = vld [vmem:[%s4731_s1 + $0x18] sm:$0xff] (!%p140_p2)   ;;  %v3651_v9 = vld [vmem:[%s4731_s1 + $0x20] sm:$0xff] (!%p140_p2)   ;;  %v3653_v13 = vld [vmem:[%s4731_s1 + $0x28] sm:$0xff] (!%p140_p2)  }
   0x9   : > { %v3654_v14 = vld [vmem:[%s4731_s1 + $0x70] sm:$0xff] (!%p140_p2)   ;;  %v3656_v16 = vld [vmem:[%s4731_s1 + $0x78] sm:$0xff] (!%p140_p2)   ;;  %v3664_v18 = vld [vmem:[%s4731_s1 + $0xc0] sm:$0xff] (!%p140_p2)  }
   0xa   : > { %v3655_v15 = vld [vmem:[%s4731_s1 + $0x30] sm:$0xff] (!%p140_p2)   ;;  %v3657_v17 = vld [vmem:[%s4731_s1 + $0x38] sm:$0xff] (!%p140_p2)   ;;  %v3667_v21 = vld [vmem:[%s4731_s1 + $0x140] sm:$0xff] (!%p140_p2)  }
   0xb   : > { %3100 = vmatpush3.bf16.msra.mxu0 (!%p140_p2), %v3645_v3  ;;  %3626 = vmatpush3.bf16.msra.mxu1 (!%p140_p2), %v3645_v3  ;;  %v3665_v22 = vld [vmem:[%s4731_s1 + $0x80] sm:$0xff] (!%p140_p2)   ;;  %v3666_v23 = vld [vmem:[%s4731_s1 + $0xc8] sm:$0xff] (!%p140_p2)   ;;  %v3676_v31 = vld [vmem:[%s4731_s1 + $0xd0] sm:$0xff] (!%p140_p2)  }
   0xc   : > { %3101 = vmatprep.subr.bf16.mxu0 (!%p140_p2), %v3646_v4  ;;  %3619 = vmatprep.subr.bf16.mxu1 (!%p140_p2), %v3646_v4  ;;  %v3669_v24 = vld [vmem:[%s4731_s1 + $0x100] sm:$0xff] (!%p140_p2)   ;;  %v3668_v27 = vld [vmem:[%s4731_s1 + $0x88] sm:$0xff] (!%p140_p2)   ;;  %v3677_v32 = vld [vmem:[%s4731_s1 + $0x90] sm:$0xff] (!%p140_p2)  }
   0xd   : > { %s4735_s16 = smov (!%p165_p3, %s2715_s16), 63  ;;  %v3687_v28 = vld [vmem:[%s4731_s1 + $0x148] sm:$0xff]   ;;  %v3678_v34 = vld [vmem:[%s4731_s1 + $0xd8] sm:$0xff]   ;;  %v3686_v40 = vld [vmem:[%s4731_s1 + $0xe0] sm:$0xff]  }
   0xe   : > { %s3633_s29 = smul.u32 36, %s4735_s16  ;;  %v3689_v33 = vld [vmem:[%s4731_s1 + $0x108] sm:$0xff]   ;;  %v3679_v37 = vld [vmem:[%s4731_s1 + $0x98] sm:$0xff]   ;;  %v3688_v41 = vld [vmem:[%s4731_s1 + $0xa0] sm:$0xff]  }
   0xf   : > { %3102 = vmatpush3.bf16.msra.mxu0 %v3647_v5  ;;  %3627 = vmatpush3.bf16.msra.mxu1 %v3647_v5  ;;  %v3690_v42 = vld [vmem:[%s4731_s1 + $0xe8] sm:$0xff]   ;;  %v3701_v43 = vld [vmem:[%s4731_s1 + $0x150] sm:$0xff]   ;;  %v3700_v52 = vld [vmem:[%s4731_s1 + $0xf8] sm:$0xff]  }
  0x10   : > { %3103 = vmatprep.subr.bf16.mxu0 %v3648_v6  ;;  %3620 = vmatprep.subr.bf16.mxu1 %v3648_v6  ;;  %s3991_s9 = scalar_lea.vmem %s4730_s0, %s3633_s29  ;;  %v3703_v46 = vld [vmem:[%s4731_s1 + $0x110] sm:$0xff]   ;;  %v3691_v47 = vld [vmem:[%s4731_s1 + $0xa8] sm:$0xff]   ;;  %v3718_v55 = vld [vmem:[%s4731_s1 + $0x158] sm:$0xff]  }
  0x11   : > { %v3660_v11 = vld [vmem:[%s3991_s9 + $0x4] ss:$36 sps:$4 sm:$0xff]   ;;  %v3670_v25 = vld [vmem:[%s3991_s9 + $0x4c] ss:$36 sps:$4 sm:$0xff]   ;;  %v3680_v35 = vld [vmem:[%s3991_s9 + $0x94] ss:$36 sps:$4 sm:$0xff]  }
  0x12   : > { %v3663_v12 = vld [vmem:[%s3991_s9 + $0x364] ss:$36 sps:$4 sm:$0xff]   ;;  %1689 = vmatprep.mubr.bf16.mxu0 %v3660_v11  ;;  %v3672_v26 = vld [vmem:[%s3991_s9 + $0x3ac] ss:$36 sps:$4 sm:$0xff]   ;;  %v3682_v36 = vld [vmem:[%s3991_s9 + $0x3f4] ss:$36 sps:$4 sm:$0xff]  }
  0x13   : > { %3104 = vmatpush3.bf16.msra.mxu0 %v3649_v7  ;;  %3628 = vmatpush3.bf16.msra.mxu1 %v3649_v7  ;;  %v3658_v19 = vld [vmem:[%s3991_s9] ss:$36 sps:$4 sm:$0xff]   ;;  %v3674_v29 = vld [vmem:[%s3991_s9 + $0x48] ss:$36 sps:$4 sm:$0xff]   ;;  %v3684_v38 = vld [vmem:[%s3991_s9 + $0x90] ss:$36 sps:$4 sm:$0xff]  }
  0x14   : > { %3105 = vmatprep.subr.bf16.mxu0 %v3650_v8  ;;  %3621 = vmatprep.subr.bf16.mxu1 %v3650_v8  ;;  %v3661_v20 = vld [vmem:[%s3991_s9 + $0x360] ss:$36 sps:$4 sm:$0xff]   ;;  %v3675_v30 = vld [vmem:[%s3991_s9 + $0x3a8] ss:$36 sps:$4 sm:$0xff]   ;;  %v3685_v39 = vld [vmem:[%s3991_s9 + $0x3f0] ss:$36 sps:$4 sm:$0xff]  }
  0x15   : > { %1785 = vmatprep.mubr.bf16.mxu1 %v3663_v12  ;;  %v3692_v44 = vld [vmem:[%s3991_s9 + $0xdc] ss:$36 sps:$4 sm:$0xff]   ;;  %v3698_v48 = vld [vmem:[%s4731_s1 + $0xf0] sm:$0xff]   ;;  %v3704_v53 = vld [vmem:[%s3991_s9 + $0x124] ss:$36 sps:$4 sm:$0xff]  }
  0x16   : > { %v3694_v45 = vld [vmem:[%s3991_s9 + $0x43c] ss:$36 sps:$4 sm:$0xff]   ;;  %v3699_v51 = vld [vmem:[%s4731_s1 + $0xb0] sm:$0xff]   ;;  %v3706_v58 = vld [vmem:[%s3991_s9 + $0x8] ss:$36 sps:$4 sm:$0xff]  }
  0x17   : > { %3106 = vmatpush3.bf16.msra.mxu0 %v3651_v9  ;;  %3629 = vmatpush3.bf16.msra.mxu1 %v3651_v9  ;;  %v3696_v49 = vld [vmem:[%s3991_s9 + $0xd8] ss:$36 sps:$4 sm:$0xff]   ;;  %v3708_v54 = vld [vmem:[%s3991_s9 + $0xc] ss:$36 sps:$4 sm:$0xff]   ;;  %v3709_v59 = vld [vmem:[%s3991_s9 + $0x120] ss:$36 sps:$4 sm:$0xff]  }
  0x18   : > { %3107 = vmatprep.subr.bf16.mxu0 %v3652_v10  ;;  %3622 = vmatprep.subr.bf16.mxu1 %v3652_v10  ;;  %v3697_v50 = vld [vmem:[%s3991_s9 + $0x438] ss:$36 sps:$4 sm:$0xff]   ;;  %v3710_v60 = vld [vmem:[%s4731_s1 + $0x1c0] sm:$0xff]   ;;  %v3712_v62 = vld [vmem:[%s3991_s9 + $0x16c] ss:$36 sps:$4 sm:$0xff]  }
  0x19   : > { %v3719_v56 = vld [vmem:[%s4731_s1 + $0x118] sm:$0xff]   ;;  %v3711_v61 = vld [vmem:[%s4731_s1 + $0x180] sm:$0xff]   ;;  %v3726_v1 = vld [vmem:[%s4731_s1 + $0x1c8] sm:$0xff]  }
  0x1a   : > { %v3702_v57 = vld [vmem:[%s4731_s1 + $0xb8] sm:$0xff]   ;;  %v3728_v0 = vld [vmem:[%s4731_s1 + $0x160] sm:$0xff]   ;;  %v3727_v3 = vld [vmem:[%s4731_s1 + $0x188] sm:$0xff]  }
  0x1b   : > { %3108 = vmatpush3.bf16.msra.mxu0 %v3653_v13  ;;  %3630 = vmatpush3.bf16.msra.mxu1 %v3653_v13  ;;  %v3714_v63 = vld [vmem:[%s3991_s9 + $0x54] ss:$36 sps:$4 sm:$0xff]   ;;  %v3729_v2 = vld [vmem:[%s4731_s1 + $0x120] sm:$0xff]   ;;  %v3716_v4 = vld [vmem:[%s3991_s9 + $0x168] ss:$36 sps:$4 sm:$0xff]  }
  0x1c   : > { %3109 = vmatprep.subr.bf16.mxu0 %v3654_v14  ;;  %3623 = vmatprep.subr.bf16.mxu1 %v3654_v14  ;;  %v3717_v5 = vld [vmem:[%s3991_s9 + $0x50] ss:$36 sps:$4 sm:$0xff]   ;;  %v3722_v7 = vld [vmem:[%s3991_s9 + $0x9c] ss:$36 sps:$4 sm:$0xff]   ;;  %v3742_v8 = vld [vmem:[%s4731_s1 + $0x168] sm:$0xff]  }
  0x1d   : > { %v3720_v6 = vld [vmem:[%s3991_s9 + $0x1b4] ss:$36 sps:$4 sm:$0xff]   ;;  %v3744_v10 = vld [vmem:[%s4731_s1 + $0x128] sm:$0xff]   ;;  %v3730_v14 = vld [vmem:[%s3991_s9 + $0x1fc] ss:$36 sps:$4 sm:$0xff]  }
  0x1e   : > { %v3743_v9 = vld [vmem:[%s4731_s1 + $0x1d0] sm:$0xff]   ;;  %v3725_v13 = vld [vmem:[%s3991_s9 + $0x98] ss:$36 sps:$4 sm:$0xff]  }
  0x1f   : > { %3110 = vmatpush3.bf16.msra.mxu0 %v3655_v15  ;;  %3631 = vmatpush3.bf16.msra.mxu1 %v3655_v15  ;;  %v3745_v11 = vld [vmem:[%s4731_s1 + $0x190] sm:$0xff]  }
  0x20   : > { %3111 = vmatprep.subr.bf16.mxu0 %v3656_v16  ;;  %3624 = vmatprep.subr.bf16.mxu1 %v3656_v16  ;;  %v3724_v12 = vld [vmem:[%s3991_s9 + $0x1b0] ss:$36 sps:$4 sm:$0xff]  }
  0x21   : > { %v3752_v15 = vld [vmem:[%s4731_s1 + $0x170] sm:$0xff]  }
  0x22   : > { %v3753_v16 = vld [vmem:[%s4731_s1 + $0x130] sm:$0xff]  }
  0x23   : > { %3112 = vmatpush3.bf16.msra.mxu0 %v3657_v17  ;;  %3632 = vmatpush3.bf16.msra.mxu1 %v3657_v17  ;;  %v3732_v17 = vld [vmem:[%s3991_s9 + $0xe4] ss:$36 sps:$4 sm:$0xff]  }
  0x24   : > { %3209 = vmatprep.subr.bf16.mxu1 %v3664_v18  ;;  %3321 = vmatprep.subr.bf16.mxu0 %v3667_v21  ;;  %v3760_v18 = vld [vmem:[%s4731_s1 + $0x1d8] sm:$0xff]   ;;  %v3735_v21 = vld [vmem:[%s3991_s9 + $0xe0] ss:$36 sps:$4 sm:$0xff]  }
  0x26   : > { %1690 = vmatmul.mubr.bf16.vlgmr.msra.gmra.mrb[0].mxu0 %v3658_v19  ;;  %1786 = vmatmul.mubr.bf16.vlgmr.msra.gmra.mrb[0].mxu1 %v3661_v20  ;;  %v3761_v19 = vld [vmem:[%s4731_s1 + $0x198] sm:$0xff]  }
  0x27   : > { %3210 = vmatpush3.bf16.msra.mxu1 %v3665_v22  ;;  %3322 = vmatpush3.bf16.msra.mxu0 %v3669_v24  ;;  %v3734_v20 = vld [vmem:[%s3991_s9 + $0x1f8] ss:$36 sps:$4 sm:$0xff]   ;;  %v3736_v22 = vld [vmem:[%s3991_s9 + $0x244] ss:$36 sps:$4 sm:$0xff]  }
  0x28   : > { %3211 = vmatprep.subr.bf16.mxu1 %v3666_v23  ;;  %1697 = vmatprep.mubr.bf16.mxu0 %v3670_v25  ;;  %v3738_v23 = vld [vmem:[%s3991_s9 + $0x12c] ss:$36 sps:$4 sm:$0xff]   ;;  %v3768_v24 = vld [vmem:[%s4731_s1 + $0x178] sm:$0xff]  }
  0x29   : > { %1793 = vmatprep.mubr.bf16.mxu1 %v3672_v26  ;;  %3323 = vmatprep.subr.bf16.mxu0 %v3687_v28  ;;  %v3769_v25 = vld [vmem:[%s4731_s1 + $0x138] sm:$0xff]   ;;  %v3776_v26 = vld [vmem:[%s4731_s1 + $0x1e0] sm:$0xff]  }
  0x2a   : > { %v3777_v28 = vld [vmem:[%s4731_s1 + $0x1a0] sm:$0xff]  }
  0x2b   : > { %3212 = vmatpush3.bf16.msra.mxu1 %v3668_v27  ;;  %3324 = vmatpush3.bf16.msra.mxu0 %v3689_v33  ;;  %v3740_v27 = vld [vmem:[%s3991_s9 + $0x240] ss:$36 sps:$4 sm:$0xff]   ;;  %v3791_v33 = vld [vmem:[%s4731_s1 + $0x1e8] sm:$0xff]  }
  0x2c   : > { %3213 = vmatprep.subr.bf16.mxu1 %v3676_v31  ;;  %3325 = vmatprep.subr.bf16.mxu0 %v3701_v43  ;;  %v3746_v31 = vld [vmem:[%s3991_s9 + $0x28c] ss:$36 sps:$4 sm:$0xff]   ;;  %v3762_v43 = vld [vmem:[%s3991_s9 + $0x31c] ss:$36 sps:$4 sm:$0xff]  }
  0x2e   : > { %1698 = vmatmul.mubr.bf16.gmra.mrb[4].mxu0 %v3674_v29  ;;  %1794 = vmatmul.mubr.bf16.gmra.mrb[4].mxu1 %v3675_v30  ;;  %v3778_v29 = vld [vmem:[%s4731_s1 + $0x200] sm:$0xff]   ;;  %v3741_v30 = vld [vmem:[%s3991_s9 + $0x128] ss:$36 sps:$4 sm:$0xff]  }
  0x2f   : > { %3214 = vmatpush3.bf16.msra.mxu1 %v3677_v32  ;;  %1705 = vmatprep.mubr.bf16.mxu0 %v3680_v35  ;;  %v3748_v32 = vld [vmem:[%s3991_s9 + $0x174] ss:$36 sps:$4 sm:$0xff]   ;;  %v3792_v35 = vld [vmem:[%s4731_s1 + $0x1a8] sm:$0xff]  }
  0x30   : > { %3215 = vmatprep.subr.bf16.mxu1 %v3678_v34  ;;  %1801 = vmatprep.mubr.bf16.mxu1 %v3682_v36  ;;  %v3750_v34 = vld [vmem:[%s3991_s9 + $0x288] ss:$36 sps:$4 sm:$0xff]   ;;  %v3751_v36 = vld [vmem:[%s3991_s9 + $0x170] ss:$36 sps:$4 sm:$0xff]  }
  0x31   : > { %3326 = vmatpush3.bf16.msra.mxu0 %v3703_v46  ;;  %v3767_v46 = vld [vmem:[%s3991_s9 + $0x200] ss:$36 sps:$4 sm:$0xff]  }
  0x32   : > { %3327 = vmatprep.subr.bf16.mxu0 %v3718_v55  ;;  %v3793_v55 = vld [vmem:[%s4731_s1 + $0x208] sm:$0xff]  }
  0x33   : > { %3216 = vmatpush3.bf16.msra.mxu1 %v3679_v37  ;;  %v3754_v37 = vld [vmem:[%s3991_s9 + $0x2d4] ss:$36 sps:$4 sm:$0xff]  }
  0x34   : > { %3217 = vmatprep.subr.bf16.mxu1 %v3686_v40  ;;  %v3759_v40 = vld [vmem:[%s3991_s9 + $0x1b8] ss:$36 sps:$4 sm:$0xff]  }
  0x35   : > { %3328 = vmatpush3.bf16.msra.mxu0 %v3719_v56  ;;  %v3808_v56 = vld [vmem:[%s4731_s1 + $0x210] sm:$0xff]  }
  0x36   : > { %1706 = vmatmul.mubr.bf16.gmra.mrb[8].mxu0 %v3684_v38  ;;  %1802 = vmatmul.mubr.bf16.gmra.mrb[8].mxu1 %v3685_v39  ;;  %v3756_v38 = vld [vmem:[%s3991_s9 + $0x1bc] ss:$36 sps:$4 sm:$0xff]   ;;  %v3758_v39 = vld [vmem:[%s3991_s9 + $0x2d0] ss:$36 sps:$4 sm:$0xff]  }
  0x37   : > { %3218 = vmatpush3.bf16.msra.mxu1 %v3688_v41  ;;  %1713 = vmatprep.mubr.bf16.mxu0 %v3692_v44  ;;  %v3806_v41 = vld [vmem:[%s4731_s1 + $0x1f0] sm:$0xff]   ;;  %v3764_v44 = vld [vmem:[%s3991_s9 + $0x204] ss:$36 sps:$4 sm:$0xff]  }
  0x38   : > { %3219 = vmatprep.subr.bf16.mxu1 %v3690_v42  ;;  %1809 = vmatprep.mubr.bf16.mxu1 %v3694_v45  ;;  %v3807_v42 = vld [vmem:[%s4731_s1 + $0x1b0] sm:$0xff]   ;;  %v3766_v45 = vld [vmem:[%s3991_s9 + $0x318] ss:$36 sps:$4 sm:$0xff]  }
  0x39   : > { %3329 = vmatprep.subr.bf16.mxu0 %v3728_v0  ;;  %v3790_v0 = vld [vmem:[%s3991_s9 + $0xa0] ss:$36 sps:$4 sm:$0xff]  }
  0x3a   : > { %3330 = vmatpush3.bf16.msra.mxu0 %v3729_v2  ;;  %v3796_v2 = vld [vmem:[%s3991_s9 + $0xec] ss:$36 sps:$4 sm:$0xff]  }
  0x3b   : > { %3220 = vmatpush3.bf16.msra.mxu1 %v3691_v47  ;;  %3331 = vmatprep.subr.bf16.mxu0 %v3742_v8  ;;  %v3821_v47 = vld [vmem:[%s4731_s1 + $0x1f8] sm:$0xff]  }
  0x3c   : > { %3221 = vmatprep.subr.bf16.mxu1 %v3698_v48  ;;  %v3822_v48 = vld [vmem:[%s4731_s1 + $0x1b8] sm:$0xff]  }
  0x3d   : > { %v3802_v8 = vld [vmem:[%s3991_s9 + $0x134] ss:$36 sps:$4 sm:$0xff]  }
  0x3e   : > { %1714 = vmatmul.mubr.bf16.gmra.mrb[12].mxu0 %v3696_v49  ;;  %1810 = vmatmul.mubr.bf16.gmra.mrb[12].mxu1 %v3697_v50  ;;  %v3770_v49 = vld [vmem:[%s3991_s9 + $0x24c] ss:$36 sps:$4 sm:$0xff]   ;;  %v3774_v50 = vld [vmem:[%s3991_s9 + $0x14] ss:$36 sps:$4 sm:$0xff]  }
  0x3f   : > { %3222 = vmatpush3.bf16.msra.mxu1 %v3699_v51  ;;  %1721 = vmatprep.mubr.bf16.mxu0 %v3704_v53  ;;  %v3772_v51 = vld [vmem:[%s3991_s9 + $0x10] ss:$36 sps:$4 sm:$0xff]  }
  0x40   : > { %3223 = vmatprep.subr.bf16.mxu1 %v3700_v52  ;;  %1850 = vmatprep.mubr.bf16.mxu1 %v3708_v54  ;;  %v3775_v52 = vld [vmem:[%s3991_s9 + $0x248] ss:$36 sps:$4 sm:$0xff]   ;;  %v3779_v53 = vld [vmem:[%s3991_s9 + $0x294] ss:$36 sps:$4 sm:$0xff]   ;;  %v3781_v54 = vld [vmem:[%s3991_s9 + $0x5c] ss:$36 sps:$4 sm:$0xff]  }
  0x41   : > { %3332 = vmatpush3.bf16.msra.mxu0 %v3744_v10  ;;  %v3804_v10 = vld [vmem:[%s3991_s9 + $0x368] ss:$36 sps:$4 sm:$0xff]  }
  0x42   : > { %3333 = vmatprep.subr.bf16.mxu0 %v3752_v15  ;;  %v3814_v15 = vld [vmem:[%s3991_s9 + $0x178] ss:$36 sps:$4 sm:$0xff]  }
  0x43   : > { %3224 = vmatpush3.bf16.msra.mxu1 %v3702_v57  ;;  %v3783_v57 = vld [vmem:[%s3991_s9 + $0x290] ss:$36 sps:$4 sm:$0xff]  }
  0x44   : > { %3433 = vmatprep.subr.bf16.mxu1 %v3710_v60  ;;  %v3787_v60 = vld [vmem:[%s3991_s9 + $0xa4] ss:$36 sps:$4 sm:$0xff]  }
  0x45   : > { %3334 = vmatpush3.bf16.msra.mxu0 %v3753_v16  ;;  %v3815_v16 = vld [vmem:[%s3991_s9 + $0x3fc] ss:$36 sps:$4 sm:$0xff]  }
  0x46   : > { %1722 = vmatmul.mubr.bf16.gmra.mrb[16].mxu0 %v3709_v59  ;;  %1851 = vmatmul.mubr.bf16.vlgmr.msra.gmra.mrb[16].mxu1 %v3706_v58  ;;  %v3784_v58 = vld [vmem:[%s3991_s9 + $0x58] ss:$36 sps:$4 sm:$0xff]  }
  0x47   : > { %3434 = vmatpush3.bf16.msra.mxu1 %v3711_v61  ;;  %1729 = vmatprep.mubr.bf16.mxu0 %v3712_v62  ;;  %v3785_v59 = vld [vmem:[%s3991_s9 + $0x2dc] ss:$36 sps:$4 sm:$0xff]  }
  0x48   : > { %1858 = vmatprep.mubr.bf16.mxu1 %v3714_v63  ;;  %3435 = vmatprep.subr.bf16.mxu1 %v3726_v1  ;;  %v3823_v61 = vld [vmem:[%s4731_s1 + $0x218] sm:$0xff]   ;;  %v3836_v62 = vld [vmem:[%s4731_s1 + $0x220] sm:$0xff]  }
  0x49   : > { %3335 = vmatprep.subr.bf16.mxu0 %v3768_v24  ;;  %v3789_v63 = vld [vmem:[%s3991_s9 + $0x2d8] ss:$36 sps:$4 sm:$0xff]   ;;  %v3794_v1 = vld [vmem:[%s3991_s9 + $0x324] ss:$36 sps:$4 sm:$0xff]  }
  0x4a   : > { %3336 = vmatpush3.bf16.msra.mxu0 %v3769_v25  ;;  %v3830_v24 = vld [vmem:[%s3991_s9 + $0x254] ss:$36 sps:$4 sm:$0xff]   ;;  %v3834_v25 = vld [vmem:[%s3991_s9 + $0x1c] ss:$36 sps:$4 sm:$0xff]  }
  0x4b   : > { %3436 = vmatpush3.bf16.msra.mxu1 %v3727_v3  ;;  %3569 = vmatprep.subr.bf16.mxu0 %v3778_v29  ;;  %v3849_v3 = vld [vmem:[%s4731_s1 + $0x228] sm:$0xff]  }
  0x4c   : > { %3437 = vmatprep.subr.bf16.mxu1 %v3743_v9  ;;  %v3875_v9 = vld [vmem:[%s4731_s1 + $0x238] sm:$0xff]  }
  0x4e   : > { %1730 = vmatmul.mubr.bf16.gmra.mrb[20].mxu0 %v3716_v4  ;;  %1859 = vmatmul.mubr.bf16.gmra.mrb[20].mxu1 %v3717_v5  ;;  %v3798_v4 = vld [vmem:[%s3991_s9 + $0x320] ss:$36 sps:$4 sm:$0xff]   ;;  %v3799_v5 = vld [vmem:[%s3991_s9 + $0xe8] ss:$36 sps:$4 sm:$0xff]  }
  0x4f   : > { %1737 = vmatprep.mubr.bf16.mxu0 %v3720_v6  ;;  %1866 = vmatprep.mubr.bf16.mxu1 %v3722_v7  ;;  %v3862_v6 = vld [vmem:[%s4731_s1 + $0x230] sm:$0xff]  }
  0x50   : > { %3438 = vmatpush3.bf16.msra.mxu1 %v3745_v11  ;;  %v3800_v7 = vld [vmem:[%s3991_s9 + $0x36c] ss:$36 sps:$4 sm:$0xff]  }
  0x51   : > { %3439 = vmatprep.subr.bf16.mxu1 %v3760_v18  ;;  %v3805_v11 = vld [vmem:[%s3991_s9 + $0x130] ss:$36 sps:$4 sm:$0xff]   ;;  %v3819_v18 = vld [vmem:[%s3991_s9 + $0x3f8] ss:$36 sps:$4 sm:$0xff]  }
  0x54   : > { %3440 = vmatpush3.bf16.msra.mxu1 %v3761_v19  ;;  %v3820_v19 = vld [vmem:[%s3991_s9 + $0x1c0] ss:$36 sps:$4 sm:$0xff]  }
  0x55   : > { %3441 = vmatprep.subr.bf16.mxu1 %v3776_v26  ;;  %v3832_v26 = vld [vmem:[%s3991_s9 + $0x18] ss:$36 sps:$4 sm:$0xff]  }
  0x56   : > { %1738 = vmatmul.mubr.bf16.gmra.mrb[24].mxu0 %v3724_v12  ;;  %1867 = vmatmul.mubr.bf16.gmra.mrb[24].mxu1 %v3725_v13  ;;  %v3809_v12 = vld [vmem:[%s3991_s9 + $0x3b4] ss:$36 sps:$4 sm:$0xff]   ;;  %v3811_v13 = vld [vmem:[%s3991_s9 + $0x17c] ss:$36 sps:$4 sm:$0xff]  }
  0x57   : > { %1745 = vmatprep.mubr.bf16.mxu0 %v3730_v14  ;;  %1874 = vmatprep.mubr.bf16.mxu1 %v3732_v17  ;;  %v3813_v14 = vld [vmem:[%s3991_s9 + $0x3b0] ss:$36 sps:$4 sm:$0xff]   ;;  %v3817_v17 = vld [vmem:[%s3991_s9 + $0x1c4] ss:$36 sps:$4 sm:$0xff]  }
  0x58   : > { %3442 = vmatpush3.bf16.msra.mxu1 %v3777_v28  ;;  %v3837_v28 = vld [vmem:[%s3991_s9 + $0x29c] ss:$36 sps:$4 sm:$0xff]  }
  0x59   : > { %3443 = vmatprep.subr.bf16.mxu1 %v3791_v33  ;;  %v3845_v33 = vld [vmem:[%s3991_s9 + $0xac] ss:$36 sps:$4 sm:$0xff]  }
  0x5c   : > { %3444 = vmatpush3.bf16.msra.mxu1 %v3792_v35  ;;  %v3848_v35 = vld [vmem:[%s3991_s9 + $0xa8] ss:$36 sps:$4 sm:$0xff]  }
  0x5d   : > { %3445 = vmatprep.subr.bf16.mxu1 %v3806_v41  ;;  %v3858_v41 = vld [vmem:[%s3991_s9 + $0x13c] ss:$36 sps:$4 sm:$0xff]  }
  0x5e   : > { %1746 = vmatmul.mubr.bf16.gmra.mrb[28].mxu0 %v3734_v20  ;;  %1875 = vmatmul.mubr.bf16.gmra.mrb[28].mxu1 %v3735_v21  ;;  %v3824_v20 = vld [vmem:[%s3991_s9 + $0x444] ss:$36 sps:$4 sm:$0xff]   ;;  %v3826_v21 = vld [vmem:[%s3991_s9 + $0x20c] ss:$36 sps:$4 sm:$0xff]  }
  0x5f   : > { %1753 = vmatprep.mubr.bf16.mxu0 %v3736_v22  ;;  %1882 = vmatprep.mubr.bf16.mxu1 %v3738_v23  ;;  %v3828_v22 = vld [vmem:[%s3991_s9 + $0x440] ss:$36 sps:$4 sm:$0xff]   ;;  %v3829_v23 = vld [vmem:[%s3991_s9 + $0x208] ss:$36 sps:$4 sm:$0xff]  }
  0x60   : > { %3446 = vmatpush3.bf16.msra.mxu1 %v3807_v42  ;;  %v3860_v42 = vld [vmem:[%s3991_s9 + $0x370] ss:$36 sps:$4 sm:$0xff]  }
  0x61   : > { %3447 = vmatprep.subr.bf16.mxu1 %v3821_v47  ;;  %v3868_v47 = vld [vmem:[%s3991_s9 + $0x180] ss:$36 sps:$4 sm:$0xff]  }
  0x64   : > { %3448 = vmatpush3.bf16.msra.mxu1 %v3822_v48  ;;  %v3869_v48 = vld [vmem:[%s3991_s9 + $0x404] ss:$36 sps:$4 sm:$0xff]  }
  0x66   : > { %1754 = vmatmul.mubr.bf16.gmra.mrb[32].mxu0 %v3740_v27  ;;  %1883 = vmatmul.mubr.bf16.gmra.mrb[32].mxu1 %v3741_v30  ;;  %v3835_v27 = vld [vmem:[%s3991_s9 + $0x250] ss:$36 sps:$4 sm:$0xff]   ;;  %v3841_v30 = vld [vmem:[%s3991_s9 + $0x298] ss:$36 sps:$4 sm:$0xff]  }
  0x67   : > { %1761 = vmatprep.mubr.bf16.mxu0 %v3746_v31  ;;  %1890 = vmatprep.mubr.bf16.mxu1 %v3748_v32  ;;  %v3842_v31 = vld [vmem:[%s3991_s9 + $0x60] ss:$36 sps:$4 sm:$0xff]  }
  0x68   : > { %v3843_v32 = vld [vmem:[%s3991_s9 + $0x2e4] ss:$36 sps:$4 sm:$0xff]  }
  0x6e   : > { %1762 = vmatmul.mubr.bf16.gmra.mrb[36].mxu0 %v3750_v34  ;;  %1891 = vmatmul.mubr.bf16.gmra.mrb[36].mxu1 %v3751_v36  ;;  %v3847_v34 = vld [vmem:[%s3991_s9 + $0x2e0] ss:$36 sps:$4 sm:$0xff]   ;;  %v3850_v36 = vld [vmem:[%s3991_s9 + $0x32c] ss:$36 sps:$4 sm:$0xff]  }
  0x6f   : > { %1769 = vmatprep.mubr.bf16.mxu0 %v3754_v37  ;;  %1898 = vmatprep.mubr.bf16.mxu1 %v3756_v38  ;;  %v3852_v37 = vld [vmem:[%s3991_s9 + $0xf4] ss:$36 sps:$4 sm:$0xff]   ;;  %v3854_v38 = vld [vmem:[%s3991_s9 + $0x328] ss:$36 sps:$4 sm:$0xff]  }
  0x76   : > { %1770 = vmatmul.mubr.bf16.gmra.mrb[40].mxu0 %v3758_v39  ;;  %1899 = vmatmul.mubr.bf16.gmra.mrb[40].mxu1 %v3759_v40  ;;  %v3855_v39 = vld [vmem:[%s3991_s9 + $0xf0] ss:$36 sps:$4 sm:$0xff]  }
  0x77   : > { %1777 = vmatprep.mubr.bf16.mxu0 %v3762_v43  ;;  %1906 = vmatprep.mubr.bf16.mxu1 %v3764_v44  ;;  %v3856_v40 = vld [vmem:[%s3991_s9 + $0x374] ss:$36 sps:$4 sm:$0xff]   ;;  %v3863_v44 = vld [vmem:[%s3991_s9 + $0x3bc] ss:$36 sps:$4 sm:$0xff]  }
  0x78   : > { %v3861_v43 = vld [vmem:[%s3991_s9 + $0x138] ss:$36 sps:$4 sm:$0xff]  }
  0x7e   : > { %1778 = vmatmul.mubr.bf16.gmra.mrb[44].mxu0 %v3766_v45  ;;  %1907 = vmatmul.mubr.bf16.gmra.mrb[44].mxu1 %v3767_v46  ;;  %v3865_v45 = vld [vmem:[%s3991_s9 + $0x184] ss:$36 sps:$4 sm:$0xff]   ;;  %v3867_v46 = vld [vmem:[%s3991_s9 + $0x3b8] ss:$36 sps:$4 sm:$0xff]  }
  0x7f   : > { %1914 = vmatprep.mubr.bf16.mxu1 %v3770_v49  ;;  %2011 = vmatprep.mubr.bf16.mxu0 %v3774_v50  ;;  %v3871_v49 = vld [vmem:[%s3991_s9 + $0x1cc] ss:$36 sps:$4 sm:$0xff]   ;;  %v3873_v50 = vld [vmem:[%s3991_s9 + $0x400] ss:$36 sps:$4 sm:$0xff]  }
  0x86   : > { %1915 = vmatmul.mubr.bf16.gmra.mrb[48].mxu1 %v3775_v52  ;;  %2012 = vmatmul.mubr.bf16.vlgmr.msra.gmra.mrb[48].mxu0 %v3772_v51  ;;  %v3874_v51 = vld [vmem:[%s3991_s9 + $0x1c8] ss:$36 sps:$4 sm:$0xff]  }
  0x87   : > { %3570 = vmatpush3.bf16.msra.mxu0 %v3778_v29  ;;  %1922 = vmatprep.mubr.bf16.mxu1 %v3779_v53  ;;  %v3839_v29 = vld [vmem:[%s3991_s9 + $0x64] ss:$36 sps:$4 sm:$0xff]   ;;  %v3876_v52 = vld [vmem:[%s3991_s9 + $0x44c] ss:$36 sps:$4 sm:$0xff]   ;;  %v3878_v53 = vld [vmem:[%s3991_s9 + $0x214] ss:$36 sps:$4 sm:$0xff]  }
  0x88   : > { %2019 = vmatprep.mubr.bf16.mxu0 %v3781_v54  ;;  %3571 = vmatprep.subr.bf16.mxu0 %v3793_v55 }
  0x8b   : > { %3572 = vmatpush3.bf16.msra.mxu0 %v3793_v55 }
  0x8c   : > { %3573 = vmatprep.subr.bf16.mxu0 %v3808_v56 }
  0x8e   : > { %1923 = vmatmul.mubr.bf16.gmra.mrb[52].mxu1 %v3783_v57  ;;  %2020 = vmatmul.mubr.bf16.gmra.mrb[52].mxu0 %v3784_v58  ;;  %v3880_v58 = vld [vmem:[%s3991_s9 + $0x448] ss:$36 sps:$4 sm:$0xff]  }
  0x8f   : > { %1930 = vmatprep.mubr.bf16.mxu1 %v3785_v59  ;;  %2027 = vmatprep.mubr.bf16.mxu0 %v3787_v60  ;;  %v3881_v59 = vld [vmem:[%s3991_s9 + $0x210] ss:$36 sps:$4 sm:$0xff]  }
  0x90   : > { %3574 = vmatpush3.bf16.msra.mxu0 %v3808_v56 }
  0x91   : > { %3575 = vmatprep.subr.bf16.mxu0 %v3823_v61 }
  0x94   : > { %3576 = vmatpush3.bf16.msra.mxu0 %v3823_v61 }
  0x95   : > { %3577 = vmatprep.subr.bf16.mxu0 %v3836_v62 }
  0x96   : > { %1931 = vmatmul.mubr.bf16.gmra.mrb[56].mxu1 %v3789_v63  ;;  %2028 = vmatmul.mubr.bf16.gmra.mrb[56].mxu0 %v3790_v0  ;;  %v3882_v0 = vld [vmem:[%s3991_s9 + $0x25c] ss:$36 sps:$4 sm:$0xff]  }
  0x97   : > { %1938 = vmatprep.mubr.bf16.mxu1 %v3794_v1  ;;  %2035 = vmatprep.mubr.bf16.mxu0 %v3796_v2  ;;  %v3884_v1 = vld [vmem:[%s3991_s9 + $0x20] ss:$36 sps:$4 sm:$0xff]  }
  0x98   : > { %3578 = vmatpush3.bf16.msra.mxu0 %v3836_v62 }
  0x99   : > { %3579 = vmatprep.subr.bf16.mxu0 %v3849_v3 }
  0x9c   : > { %3580 = vmatpush3.bf16.msra.mxu0 %v3849_v3 }
  0x9d   : > { %3581 = vmatprep.subr.bf16.mxu0 %v3862_v6 }
  0x9e   : > { %1939 = vmatmul.mubr.bf16.gmra.mrb[60].mxu1 %v3798_v4  ;;  %2036 = vmatmul.mubr.bf16.gmra.mrb[60].mxu0 %v3799_v5 }
  0x9f   : > { %1946 = vmatprep.mubr.bf16.mxu1 %v3800_v7  ;;  %2043 = vmatprep.mubr.bf16.mxu0 %v3802_v8 }
  0xa0   : > { %3582 = vmatpush3.bf16.msra.mxu0 %v3862_v6 }
  0xa1   : > { %3583 = vmatprep.subr.bf16.mxu0 %v3875_v9 }
  0xa4   : > { %3584 = vmatpush3.bf16.msra.mxu0 %v3875_v9 }
  0xa6   : > { %1947 = vmatmul.mubr.bf16.gmra.mrb[64].mxu1 %v3804_v10  ;;  %2044 = vmatmul.mubr.bf16.gmra.mrb[64].mxu0 %v3805_v11  ;;  %v3885_v10 = vld [vmem:[%s3991_s9 + $0x258] ss:$36 sps:$4 sm:$0xff]   ;;  %v3886_v11 = vld [vmem:[%s3991_s9 + $0x68] ss:$36 sps:$4 sm:$0xff]  }
  0xa7   : > { %1954 = vmatprep.mubr.bf16.mxu1 %v3809_v12  ;;  %2051 = vmatprep.mubr.bf16.mxu0 %v3811_v13 }
  0xae   : > { %1955 = vmatmul.mubr.bf16.gmra.mrb[68].mxu1 %v3813_v14  ;;  %2052 = vmatmul.mubr.bf16.gmra.mrb[68].mxu0 %v3814_v15 }
  0xaf   : > { %1962 = vmatprep.mubr.bf16.mxu1 %v3815_v16  ;;  %2059 = vmatprep.mubr.bf16.mxu0 %v3817_v17  ;;  %v3887_v16 = vld [vmem:[%s3991_s9 + $0x2a4] ss:$36 sps:$4 sm:$0xff]   ;;  %v3889_v17 = vld [vmem:[%s3991_s9 + $0xb0] ss:$36 sps:$4 sm:$0xff]  }
  0xb6   : > { %1963 = vmatmul.mubr.bf16.gmra.mrb[72].mxu1 %v3819_v18  ;;  %2060 = vmatmul.mubr.bf16.gmra.mrb[72].mxu0 %v3820_v19 }
  0xb7   : > { %1970 = vmatprep.mubr.bf16.mxu1 %v3824_v20  ;;  %2067 = vmatprep.mubr.bf16.mxu0 %v3826_v21 }
  0xbe   : > { %1971 = vmatmul.mubr.bf16.gmra.mrb[76].mxu1 %v3828_v22  ;;  %2068 = vmatmul.mubr.bf16.gmra.mrb[76].mxu0 %v3829_v23 }
  0xbf   : > { %2075 = vmatprep.mubr.bf16.mxu0 %v3830_v24  ;;  %2172 = vmatprep.mubr.bf16.mxu1 %v3834_v25 }
  0xc6   : > { %2076 = vmatmul.mubr.bf16.gmra.mrb[80].mxu0 %v3835_v27  ;;  %2173 = vmatmul.mubr.bf16.vlgmr.msra.gmra.mrb[80].mxu1 %v3832_v26  ;;  %v3890_v26 = vld [vmem:[%s3991_s9 + $0x2a0] ss:$36 sps:$4 sm:$0xff]   ;;  %v3891_v27 = vld [vmem:[%s3991_s9 + $0xf8] ss:$36 sps:$4 sm:$0xff]  }
  0xc7   : > { %2083 = vmatprep.mubr.bf16.mxu0 %v3837_v28  ;;  %2180 = vmatprep.mubr.bf16.mxu1 %v3839_v29 }
  0xce   : > { %2084 = vmatmul.mubr.bf16.gmra.mrb[84].mxu0 %v3841_v30  ;;  %2181 = vmatmul.mubr.bf16.gmra.mrb[84].mxu1 %v3842_v31 }
  0xcf   : > { %2091 = vmatprep.mubr.bf16.mxu0 %v3843_v32  ;;  %2188 = vmatprep.mubr.bf16.mxu1 %v3845_v33  ;;  %v3892_v32 = vld [vmem:[%s3991_s9 + $0x2ec] ss:$36 sps:$4 sm:$0xff]   ;;  %v3894_v33 = vld [vmem:[%s3991_s9 + $0x140] ss:$36 sps:$4 sm:$0xff]  }
  0xd6   : > { %2092 = vmatmul.mubr.bf16.gmra.mrb[88].mxu0 %v3847_v34  ;;  %2189 = vmatmul.mubr.bf16.gmra.mrb[88].mxu1 %v3848_v35 }
  0xd7   : > { %2099 = vmatprep.mubr.bf16.mxu0 %v3850_v36  ;;  %2196 = vmatprep.mubr.bf16.mxu1 %v3852_v37 }
  0xde   : > { %2100 = vmatmul.mubr.bf16.gmra.mrb[92].mxu0 %v3854_v38  ;;  %2197 = vmatmul.mubr.bf16.gmra.mrb[92].mxu1 %v3855_v39 }
  0xdf   : > { %2107 = vmatprep.mubr.bf16.mxu0 %v3856_v40  ;;  %2204 = vmatprep.mubr.bf16.mxu1 %v3858_v41 }
  0xe6   : > { %2108 = vmatmul.mubr.bf16.gmra.mrb[96].mxu0 %v3860_v42  ;;  %2205 = vmatmul.mubr.bf16.gmra.mrb[96].mxu1 %v3861_v43  ;;  %v3895_v42 = vld [vmem:[%s3991_s9 + $0x2e8] ss:$36 sps:$4 sm:$0xff]  }
  0xe7   : > { %2115 = vmatprep.mubr.bf16.mxu0 %v3863_v44  ;;  %2212 = vmatprep.mubr.bf16.mxu1 %v3865_v45  ;;  %v3896_v43 = vld [vmem:[%s3991_s9 + $0x188] ss:$36 sps:$4 sm:$0xff]  }
  0xee   : > { %2116 = vmatmul.mubr.bf16.gmra.mrb[100].mxu0 %v3867_v46  ;;  %2213 = vmatmul.mubr.bf16.gmra.mrb[100].mxu1 %v3868_v47 }
  0xef   : > { %2123 = vmatprep.mubr.bf16.mxu0 %v3869_v48  ;;  %2220 = vmatprep.mubr.bf16.mxu1 %v3871_v49  ;;  %v3897_v48 = vld [vmem:[%s3991_s9 + $0x334] ss:$36 sps:$4 sm:$0xff]  }
  0xf0   : > { %v3899_v49 = vld [vmem:[%s3991_s9 + $0x1d0] ss:$36 sps:$4 sm:$0xff]  }
  0xf6   : > { %2124 = vmatmul.mubr.bf16.gmra.mrb[104].mxu0 %v3873_v50  ;;  %2221 = vmatmul.mubr.bf16.gmra.mrb[104].mxu1 %v3874_v51 }
  0xf7   : > { %2131 = vmatprep.mubr.bf16.mxu0 %v3876_v52  ;;  %2228 = vmatprep.mubr.bf16.mxu1 %v3878_v53 }
  0xf9   : > { %v3185_v54 = vpop.f32.mrb[0].mxu1  ;;  %v3113_v55 = vpop.f32.mrb[0].mxu0 }
  0xfa   : > { %v3186_v56 = vpop.f32.mrb[1].mxu1  ;;  %v3114_v57 = vpop.f32.mrb[1].mxu0 }
  0xfb   : > { %v4294_v60 = vadd.f32 %v3186_v56, %v3185_v54  ;;  %v3188_v61 = vpop.f32.mrb[2].mxu1  ;;  %v4296_v62 = vadd.f32 %v3114_v57, %v3113_v55  ;;  %v3116_v63 = vpop.f32.mrb[2].mxu0  ;;  %v4343_v54 = vld [vmem:[%s4732_s2] ss:$0 sm:$0xff] }
  0xfc   : > { %v3189_v2 = vpop.f32.mrb[3].mxu1  ;;  %v3117_v3 = vpop.f32.mrb[3].mxu0 }
  0xfd   : > { %v4300_v4 = vadd.f32 %v3189_v2, %v3188_v61  ;;  %v4302_v5 = vadd.f32 %v3117_v3, %v3116_v63  ;;  %v3901_v61 = vld [vmem:[%s3991_s9 + $0x218] ss:$36 sps:$4 sm:$0xff]   ;;  %v1692_v63 = vadd.f32 %v4296_v62, %v4343_v54 }
  0xfe   : > { %2132 = vmatmul.mubr.bf16.gmra.mrb[108].mxu0 %v3880_v58  ;;  %2229 = vmatmul.mubr.bf16.gmra.mrb[108].mxu1 %v3881_v59  ;;  %v3900_v59 = vld [vmem:[%s3991_s9 + $0x330] ss:$36 sps:$4 sm:$0xff]  }
  0xff   : > { %2236 = vmatprep.mubr.bf16.mxu1 %v3882_v0  ;;  %3585 = vmatprep.mubr.bf16.mxu0 %v3884_v1 }
 0x101   : > { %v3191_v6 = vpop.f32.mrb[4].mxu1  ;;  %v3119_v7 = vpop.f32.mrb[4].mxu0 }
 0x102   : > { %v3192_v8 = vpop.f32.mrb[5].mxu1  ;;  %v3120_v9 = vpop.f32.mrb[5].mxu0 }
 0x103   : > { %v4306_v12 = vadd.f32 %v3192_v8, %v3191_v6  ;;  %v3194_v13 = vpop.f32.mrb[6].mxu1  ;;  %v4308_v14 = vadd.f32 %v3120_v9, %v3119_v7  ;;  %v3122_v15 = vpop.f32.mrb[6].mxu0  ;;  %v3902_v6 = vld [vmem:[%s3991_s9 + $0x37c] ss:$36 sps:$4 sm:$0xff]  }
 0x104   : > { %v3195_v18 = vpop.f32.mrb[7].mxu1  ;;  %v3123_v19 = vpop.f32.mrb[7].mxu0  ;;  %v3904_v7 = vld [vmem:[%s3991_s9 + $0x260] ss:$36 sps:$4 sm:$0xff]  }
 0x105   : > { %v4312_v20 = vadd.f32 %v3195_v18, %v3194_v13  ;;  %v4314_v21 = vadd.f32 %v3123_v19, %v3122_v15 }
 0x106   : > { %2237 = vmatmul.mubr.bf16.gmra.mrb[112].mxu1 %v3885_v10  ;;  %3586 = vmatmul.mubr.bf16.vlgmr.msra.gmra.mrb[112].mxu0 %v3886_v11  ;;  %v1695_v10 = vadd.f32 %v4302_v5, %v4343_v54  ;;  %v1700_v5 = vadd.f32 %v4308_v14, %v4343_v54 }
 0x107   : > { %2244 = vmatprep.mubr.bf16.mxu1 %v3887_v16  ;;  %3589 = vmatprep.mubr.bf16.mxu0 %v3889_v17 }
 0x109   : > { %v3197_v22 = vpop.f32.mrb[8].mxu1  ;;  %v3125_v23 = vpop.f32.mrb[8].mxu0 }
 0x10a   : > { %v3198_v24 = vpop.f32.mrb[9].mxu1  ;;  %v3126_v25 = vpop.f32.mrb[9].mxu0 }
 0x10b   : > { %v4318_v28 = vadd.f32 %v3198_v24, %v3197_v22  ;;  %v3200_v29 = vpop.f32.mrb[10].mxu1  ;;  %v4320_v30 = vadd.f32 %v3126_v25, %v3125_v23  ;;  %v3128_v31 = vpop.f32.mrb[10].mxu0  ;;  %v3905_v22 = vld [vmem:[%s3991_s9 + $0x378] ss:$36 sps:$4 sm:$0xff]   ;;  %v3906_v23 = vld [vmem:[%s3991_s9 + $0x2a8] ss:$36 sps:$4 sm:$0xff]  }
 0x10c   : > { %v3201_v34 = vpop.f32.mrb[11].mxu1  ;;  %v3129_v35 = vpop.f32.mrb[11].mxu0 }
 0x10d   : > { %v4324_v36 = vadd.f32 %v3201_v34, %v3200_v29  ;;  %v4326_v37 = vadd.f32 %v3129_v35, %v3128_v31  ;;  %v3907_v29 = vld [vmem:[%s3991_s9 + $0x3c4] ss:$36 sps:$4 sm:$0xff]   ;;  %v3909_v31 = vld [vmem:[%s3991_s9 + $0x2f0] ss:$36 sps:$4 sm:$0xff]   ;;  %v1703_v34 = vadd.f32 %v4314_v21, %v4343_v54  ;;  %v1708_v21 = vadd.f32 %v4320_v30, %v4343_v54 }
 0x10e   : > { %2245 = vmatmul.mubr.bf16.gmra.mrb[116].mxu1 %v3890_v26  ;;  %3590 = vmatmul.mubr.bf16.gmra.mrb[116].mxu0 %v3891_v27 }
 0x10f   : > { %2252 = vmatprep.mubr.bf16.mxu1 %v3892_v32  ;;  %3593 = vmatprep.mubr.bf16.mxu0 %v3894_v33 }
 0x111   : > { %v3203_v38 = vpop.f32.mrb[12].mxu1  ;;  %v3131_v39 = vpop.f32.mrb[12].mxu0 }
 0x112   : > { %v3204_v40 = vpop.f32.mrb[13].mxu1  ;;  %v3132_v41 = vpop.f32.mrb[13].mxu0 }
 0x113   : > { %v4330_v44 = vadd.f32 %v3204_v40, %v3203_v38  ;;  %v3206_v45 = vpop.f32.mrb[14].mxu1  ;;  %v4332_v46 = vadd.f32 %v3132_v41, %v3131_v39  ;;  %v3134_v47 = vpop.f32.mrb[14].mxu0 }
 0x114   : > { %v3207_v50 = vpop.f32.mrb[15].mxu1  ;;  %v3135_v51 = vpop.f32.mrb[15].mxu0 }
 0x115   : > { %v4336_v52 = vadd.f32 %v3207_v50, %v3206_v45  ;;  %v4338_v53 = vadd.f32 %v3135_v51, %v3134_v47  ;;  %v3910_v45 = vld [vmem:[%s3991_s9 + $0x3c0] ss:$36 sps:$4 sm:$0xff]   ;;  %v3911_v47 = vld [vmem:[%s3991_s9 + $0x338] ss:$36 sps:$4 sm:$0xff]  }
 0x116   : > { %2253 = vmatmul.mubr.bf16.gmra.mrb[120].mxu1 %v3895_v42  ;;  %3594 = vmatmul.mubr.bf16.gmra.mrb[120].mxu0 %v3896_v43 }
 0x117   : > { %2260 = vmatprep.mubr.bf16.mxu1 %v3897_v48  ;;  %3597 = vmatprep.mubr.bf16.mxu0 %v3899_v49 }
 0x119   : > { %v3225_v55 = vpop.f32.mrb[16].mxu1  ;;  %v3137_v56 = vpop.f32.mrb[16].mxu0 }
 0x11a   : > { %v3226_v57 = vpop.f32.mrb[17].mxu1  ;;  %v3138_v58 = vpop.f32.mrb[17].mxu0 }
 0x11b   : > { %v3227_v0 = vadd.f32 %v3226_v57, %v3225_v55  ;;  %v3228_v1 = vpop.f32.mrb[18].mxu1  ;;  %v4349_v2 = vadd.f32 %v3138_v58, %v3137_v56  ;;  %v3140_v3 = vpop.f32.mrb[18].mxu0  ;;  %v3912_v55 = vld [vmem:[%s3991_s9 + $0x40c] ss:$36 sps:$4 sm:$0xff]   ;;  %v3914_v56 = vld [vmem:[%s3991_s9 + $0x380] ss:$36 sps:$4 sm:$0xff]  }
 0x11c   : > { %v3229_v8 = vpop.f32.mrb[19].mxu1  ;;  %v3141_v9 = vpop.f32.mrb[19].mxu0 }
 0x11d   : > { %v4355_v11 = vadd.f32 %v3227_v0, %v1692_v63  ;;  %v3230_v13 = vadd.f32 %v3229_v8, %v3228_v1  ;;  %v4357_v15 = vadd.f32 %v3141_v9, %v3140_v3  ;;  %v3915_v8 = vld [vmem:[%s3991_s9 + $0x408] ss:$36 sps:$4 sm:$0xff]  }
 0x11e   : > { %2261 = vmatmul.mubr.bf16.gmra.mrb[124].mxu1 %v3900_v59  ;;  %3598 = vmatmul.mubr.bf16.gmra.mrb[124].mxu0 %v3901_v61  ;;  %v1711_v59 = vadd.f32 %v4326_v37, %v4343_v54  ;;  %v3916_v9 = vld [vmem:[%s3991_s9 + $0x3c8] ss:$36 sps:$4 sm:$0xff]   ;;  %v1716_v37 = vadd.f32 %v4332_v46, %v4343_v54 }
 0x11f   : > { %v4359_v62 = vadd.f32 %v3230_v13, %v1695_v10  ;;  %2268 = vmatprep.mubr.bf16.mxu1 %v3902_v6  ;;  %3601 = vmatprep.mubr.bf16.mxu0 %v3904_v7 }
 0x121   : > { %v3231_v16 = vpop.f32.mrb[20].mxu1  ;;  %v3143_v17 = vpop.f32.mrb[20].mxu0 }
 0x122   : > { %v3232_v18 = vpop.f32.mrb[21].mxu1  ;;  %v3144_v19 = vpop.f32.mrb[21].mxu0 }
 0x123   : > { %v3233_v24 = vadd.f32 %v3232_v18, %v3231_v16  ;;  %v3234_v25 = vpop.f32.mrb[22].mxu1  ;;  %v4365_v26 = vadd.f32 %v3144_v19, %v3143_v17  ;;  %v3146_v27 = vpop.f32.mrb[22].mxu0  ;;  %v3917_v18 = vld [vmem:[%s3991_s9 + $0x454] ss:$36 sps:$4 sm:$0xff]  }
 0x124   : > { %v3235_v32 = vpop.f32.mrb[23].mxu1  ;;  %v3147_v33 = vpop.f32.mrb[23].mxu0  ;;  %v3919_v19 = vld [vmem:[%s3991_s9 + $0x410] ss:$36 sps:$4 sm:$0xff]  }
 0x125   : > { %v4371_v35 = vadd.f32 %v3233_v24, %v1700_v5  ;;  %v3236_v38 = vadd.f32 %v3235_v32, %v3234_v25  ;;  %v4373_v39 = vadd.f32 %v3147_v33, %v3146_v27  ;;  %v1719_v5 = vadd.f32 %v4338_v53, %v4343_v54 }
 0x126   : > { %2269 = vmatmul.mubr.bf16.gmra.mrb[128].mxu1 %v3905_v22  ;;  %3602 = vmatmul.mubr.bf16.gmra.mrb[128].mxu0 %v3906_v23  ;;  %v1724_v53 = vadd.f32 %v4349_v2, %v4343_v54 }
 0x127   : > { %v4375_v14 = vadd.f32 %v3236_v38, %v1703_v34  ;;  %2276 = vmatprep.mubr.bf16.mxu1 %v3907_v29  ;;  %3605 = vmatprep.mubr.bf16.mxu0 %v3909_v31  ;;  %v3920_v34 = vld [vmem:[%s3991_s9 + $0x450] ss:$36 sps:$4 sm:$0xff]   ;;  %v3921_v38 = vld [vmem:[%s3991_s9 + $0x458] ss:$36 sps:$4 sm:$0xff]   ;;  %s2718_s9 = sshll.u32 %s4735_s16, 2 }
 0x128   : > { %s4672_s22 = scalar_lea.vmem %s4733_s3, %s2718_s9 }
 0x129   : > { %v3237_v40 = vpop.f32.mrb[24].mxu1  ;;  %v3149_v41 = vpop.f32.mrb[24].mxu0 }
 0x12a   : > { %v3238_v42 = vpop.f32.mrb[25].mxu1  ;;  %v3150_v43 = vpop.f32.mrb[25].mxu0 }
 0x12b   : > { %v3239_v48 = vadd.f32 %v3238_v42, %v3237_v40  ;;  %v3240_v49 = vpop.f32.mrb[26].mxu1  ;;  %v4381_v50 = vadd.f32 %v3150_v43, %v3149_v41  ;;  %v3152_v51 = vpop.f32.mrb[26].mxu0 }
 0x12c   : > { %v3241_v57 = vpop.f32.mrb[27].mxu1  ;;  %v3153_v58 = vpop.f32.mrb[27].mxu0 }
 0x12d   : > { %v4387_v61 = vadd.f32 %v3239_v48, %v1708_v21  ;;  %v3242_v63 = vadd.f32 %v3241_v57, %v3240_v49  ;;  %v4389_v0 = vadd.f32 %v3153_v58, %v3152_v51  ;;  %v1727_v21 = vadd.f32 %v4357_v15, %v4343_v54 }
 0x12e   : > { %2277 = vmatmul.mubr.bf16.gmra.mrb[132].mxu1 %v3910_v45  ;;  %3606 = vmatmul.mubr.bf16.gmra.mrb[132].mxu0 %v3911_v47 }
 0x12f   : > { %v4391_v30 = vadd.f32 %v3242_v63, %v1711_v59  ;;  %2284 = vmatprep.mubr.bf16.mxu1 %v3912_v55  ;;  %3609 = vmatprep.mubr.bf16.mxu0 %v3914_v56  ;;  %v1732_v59 = vadd.f32 %v4365_v26, %v4343_v54 }
 0x131   : > { %v3243_v1 = vpop.f32.mrb[28].mxu1  ;;  %v3155_v3 = vpop.f32.mrb[28].mxu0 }
 0x132   : > { %v3244_v6 = vpop.f32.mrb[29].mxu1  ;;  %v3156_v7 = vpop.f32.mrb[29].mxu0 }
 0x133   : > { %v3245_v10 = vadd.f32 %v3244_v6, %v3243_v1  ;;  %v3246_v13 = vpop.f32.mrb[30].mxu1  ;;  %v4397_v16 = vadd.f32 %v3156_v7, %v3155_v3  ;;  %v3158_v17 = vpop.f32.mrb[30].mxu0 }
 0x134   : > { %v3247_v22 = vpop.f32.mrb[31].mxu1  ;;  %v3159_v23 = vpop.f32.mrb[31].mxu0 }
 0x135   : > { %v4403_v24 = vadd.f32 %v3245_v10, %v1716_v37  ;;  %v3248_v25 = vadd.f32 %v3247_v22, %v3246_v13  ;;  %v4405_v27 = vadd.f32 %v3159_v23, %v3158_v17  ;;  %v1740_v22 = vadd.f32 %v4381_v50, %v4343_v54 }
 0x136   : > { %2285 = vmatmul.mubr.bf16.gmra.mrb[136].mxu1 %v3915_v8  ;;  %3610 = vmatmul.mubr.bf16.gmra.mrb[136].mxu0 %v3916_v9  ;;  %v1735_v8 = vadd.f32 %v4373_v39, %v4343_v54 }
 0x137   : > { %v4407_v46 = vadd.f32 %v3248_v25, %v1719_v5  ;;  %2292 = vmatprep.mubr.bf16.mxu1 %v3917_v18  ;;  %3613 = vmatprep.mubr.bf16.mxu0 %v3919_v19 }
 0x139   : > { %v3249_v29 = vpop.f32.mrb[32].mxu1  ;;  %v3161_v31 = vpop.f32.mrb[32].mxu0 }
 0x13a   : > { %v3250_v32 = vpop.f32.mrb[33].mxu1  ;;  %v3162_v33 = vpop.f32.mrb[33].mxu0 }
 0x13b   : > { %v3251_v40 = vadd.f32 %v3250_v32, %v3249_v29  ;;  %v3252_v41 = vpop.f32.mrb[34].mxu1  ;;  %v4413_v42 = vadd.f32 %v3162_v33, %v3161_v31  ;;  %v3164_v43 = vpop.f32.mrb[34].mxu0  ;;  %v1743_v32 = vadd.f32 %v4389_v0, %v4343_v54 }
 0x13c   : > { %v3253_v45 = vpop.f32.mrb[35].mxu1  ;;  %v3165_v47 = vpop.f32.mrb[35].mxu0 }
 0x13d   : > { %v4417_v48 = vadd.f32 %v3251_v40, %v1724_v53  ;;  %v3254_v49 = vadd.f32 %v3253_v45, %v3252_v41  ;;  %v3166_v51 = vadd.f32 %v3165_v47, %v3164_v43  ;;  %v1748_v45 = vadd.f32 %v4397_v16, %v4343_v54 }
 0x13e   : > { %2293 = vmatmul.mubr.bf16.gmra.mrb[140].mxu1 %v3920_v34  ;;  %3614 = vmatmul.mubr.bf16.gmra.mrb[140].mxu0 %v3921_v38 }
 0x13f   : > { %v4419_v55 = vadd.f32 %v3254_v49, %v1727_v21 }
 0x141   : > { %v3255_v56 = vpop.f32.mrb[36].mxu1  ;;  %v3167_v2 = vpop.f32.mrb[36].mxu0 }
 0x142   : > { %v3256_v57 = vpop.f32.mrb[37].mxu1  ;;  %v3168_v58 = vpop.f32.mrb[37].mxu0 }
 0x143   : > { %v3257_v63 = vadd.f32 %v3256_v57, %v3255_v56  ;;  %v3258_v1 = vpop.f32.mrb[38].mxu1  ;;  %v4423_v3 = vadd.f32 %v3168_v58, %v3167_v2  ;;  %v3170_v15 = vpop.f32.mrb[38].mxu0  ;;  %v1751_v57 = vadd.f32 %v4405_v27, %v4343_v54  ;;  %v1759_v27 = vadd.f32 %v3166_v51, %v4343_v54 }
 0x144   : > { %v3259_v6 = vpop.f32.mrb[39].mxu1  ;;  %v3171_v7 = vpop.f32.mrb[39].mxu0 }
 0x145   : > { %v4427_v9 = vadd.f32 %v3257_v63, %v1732_v59  ;;  %v3260_v37 = vadd.f32 %v3259_v6, %v3258_v1  ;;  %v3172_v10 = vadd.f32 %v3171_v7, %v3170_v15  ;;  %v1764_v51 = vadd.f32 %v4423_v3, %v4343_v54 }
 0x147   : > { %v4429_v13 = vadd.f32 %v3260_v37, %v1735_v8  ;;  %v1756_v8 = vadd.f32 %v4413_v42, %v4343_v54 }
 0x149   : > { %v3261_v17 = vpop.f32.mrb[40].mxu1  ;;  %v3173_v18 = vpop.f32.mrb[40].mxu0 }
 0x14a   : > { %v3262_v19 = vpop.f32.mrb[41].mxu1  ;;  %v3174_v26 = vpop.f32.mrb[41].mxu0 }
 0x14b   : > { %v3263_v23 = vadd.f32 %v3262_v19, %v3261_v17  ;;  %v3264_v5 = vpop.f32.mrb[42].mxu1  ;;  %v4433_v25 = vadd.f32 %v3174_v26, %v3173_v18  ;;  %v3176_v29 = vpop.f32.mrb[42].mxu0 }
 0x14c   : > { %v3265_v31 = vpop.f32.mrb[43].mxu1  ;;  %v3177_v39 = vpop.f32.mrb[43].mxu0 }
 0x14d   : > { %v4437_v33 = vadd.f32 %v3263_v23, %v1740_v22  ;;  %v3266_v34 = vadd.f32 %v3265_v31, %v3264_v5  ;;  %v4439_v38 = vadd.f32 %v3177_v39, %v3176_v29 }
 0x14f   : > { %v4441_v53 = vadd.f32 %v3266_v34, %v1743_v32 }
 0x151   : > { %v3267_v40 = vpop.f32.mrb[44].mxu1  ;;  %v3179_v41 = vpop.f32.mrb[44].mxu0 }
 0x152   : > { %v3268_v50 = vpop.f32.mrb[45].mxu1  ;;  %v3180_v43 = vpop.f32.mrb[45].mxu0 }
 0x153   : > { %v3269_v47 = vadd.f32 %v3268_v50, %v3267_v40  ;;  %v3270_v21 = vpop.f32.mrb[46].mxu1  ;;  %v4445_v49 = vadd.f32 %v3180_v43, %v3179_v41  ;;  %v3182_v56 = vpop.f32.mrb[46].mxu0 }
 0x154   : > { %v3271_v0 = vpop.f32.mrb[47].mxu1  ;;  %v3183_v2 = vpop.f32.mrb[47].mxu0 }
 0x155   : > { %v4449_v58 = vadd.f32 %v3269_v47, %v1748_v45  ;;  %v3272_v59 = vadd.f32 %v3271_v0, %v3270_v21  ;;  %v4451_v63 = vadd.f32 %v3183_v2, %v3182_v56 }
 0x157   : > { %v4453_v1 = vadd.f32 %v3272_v59, %v1751_v57 }
 0x159   : > { %v3273_v15 = vpop.f32.mrb[48].mxu1  ;;  %v3337_v6 = vpop.f32.mrb[48].mxu0 }
 0x15a   : > { %v3274_v16 = vpop.f32.mrb[49].mxu1  ;;  %v3338_v7 = vpop.f32.mrb[49].mxu0 }
 0x15b   : > { %v3275_v37 = vadd.f32 %v3274_v16, %v3273_v15  ;;  %v3339_v17 = vadd.f32 %v3338_v7, %v3337_v6  ;;  %v3276_v18 = vpop.f32.mrb[50].mxu1  ;;  %v3340_v19 = vpop.f32.mrb[50].mxu0 }
 0x15c   : > { %v3277_v26 = vpop.f32.mrb[51].mxu1  ;;  %v3341_v22 = vpop.f32.mrb[51].mxu0 }
 0x15d   : > { %v4458_v23 = vadd.f32 %v3275_v37, %v1756_v8  ;;  %v4461_v5 = vadd.f32 %v3339_v17, %v4355_v11  ;;  %v3278_v29 = vadd.f32 %v3277_v26, %v3276_v18  ;;  %v3342_v31 = vadd.f32 %v3341_v22, %v3340_v19 }
 0x15e   : > { %v1767_v11 = vadd.f32 %v3172_v10, %v4343_v54  ;;  %v1772_v10 = vadd.f32 %v4433_v25, %v4343_v54 }
 0x15f   : > { %v4463_v39 = vadd.f32 %v3278_v29, %v1759_v27  ;;  %v4466_v32 = vadd.f32 %v3342_v31, %v4359_v62 }
 0x161   : > { %v3279_v42 = vpop.f32.mrb[52].mxu1  ;;  %v3343_v34 = vpop.f32.mrb[52].mxu0 }
 0x162   : > { %v3280_v40 = vpop.f32.mrb[53].mxu1  ;;  %v3344_v41 = vpop.f32.mrb[53].mxu0 }
 0x163   : > { %v3281_v50 = vadd.f32 %v3280_v40, %v3279_v42  ;;  %v3345_v43 = vadd.f32 %v3344_v41, %v3343_v34  ;;  %v3282_v45 = vpop.f32.mrb[54].mxu1  ;;  %v3346_v47 = vpop.f32.mrb[54].mxu0 }
 0x164   : > { %v3283_v21 = vpop.f32.mrb[55].mxu1  ;;  %v3347_v56 = vpop.f32.mrb[55].mxu0 }
 0x165   : > { %v4471_v0 = vadd.f32 %v3281_v50, %v1764_v51  ;;  %v4474_v62 = vadd.f32 %v3345_v43, %v4371_v35  ;;  %v3284_v2 = vadd.f32 %v3283_v21, %v3282_v45  ;;  %v3348_v57 = vadd.f32 %v3347_v56, %v3346_v47 }
 0x166   : > { %v1775_v35 = vadd.f32 %v4439_v38, %v4343_v54  ;;  %v1780_v38 = vadd.f32 %v4445_v49, %v4343_v54 }
 0x167   : > { %v4476_v59 = vadd.f32 %v3284_v2, %v1767_v11  ;;  %v4479_v15 = vadd.f32 %v3348_v57, %v4375_v14 }
 0x169   : > { %v3285_v3 = vpop.f32.mrb[56].mxu1  ;;  %v3349_v6 = vpop.f32.mrb[56].mxu0 }
 0x16a   : > { %v3286_v16 = vpop.f32.mrb[57].mxu1  ;;  %v3350_v7 = vpop.f32.mrb[57].mxu0 }
 0x16b   : > { %v3287_v8 = vadd.f32 %v3286_v16, %v3285_v3  ;;  %v3351_v37 = vadd.f32 %v3350_v7, %v3349_v6  ;;  %v3288_v17 = vpop.f32.mrb[58].mxu1  ;;  %v3352_v18 = vpop.f32.mrb[58].mxu0 }
 0x16c   : > { %v3289_v19 = vpop.f32.mrb[59].mxu1  ;;  %v3353_v27 = vpop.f32.mrb[59].mxu0 }
 0x16d   : > { %v4485_v26 = vadd.f32 %v3287_v8, %v1772_v10  ;;  %v4488_v14 = vadd.f32 %v3351_v37, %v4387_v61  ;;  %v3290_v22 = vadd.f32 %v3289_v19, %v3288_v17  ;;  %v3354_v29 = vadd.f32 %v3353_v27, %v3352_v18 }
 0x16e   : > { %v1783_v61 = vadd.f32 %v4451_v63, %v4343_v54  ;;  %v1788_v63 = vadd.f32 %v4294_v60, %v4343_v54 }
 0x16f   : > { %v4490_v31 = vadd.f32 %v3290_v22, %v1775_v35  ;;  %v4493_v25 = vadd.f32 %v3354_v29, %v4391_v30 }
 0x171   : > { %v3291_v42 = vpop.f32.mrb[60].mxu1  ;;  %v3355_v34 = vpop.f32.mrb[60].mxu0 }
 0x172   : > { %v3292_v40 = vpop.f32.mrb[61].mxu1  ;;  %v3356_v41 = vpop.f32.mrb[61].mxu0 }
 0x173   : > { %v3293_v51 = vadd.f32 %v3292_v40, %v3291_v42  ;;  %v3357_v50 = vadd.f32 %v3356_v41, %v3355_v34  ;;  %v3294_v43 = vpop.f32.mrb[62].mxu1  ;;  %v3358_v45 = vpop.f32.mrb[62].mxu0 }
 0x174   : > { %v3295_v47 = vpop.f32.mrb[63].mxu1  ;;  %v3359_v11 = vpop.f32.mrb[63].mxu0 }
 0x175   : > { %v4499_v21 = vadd.f32 %v3293_v51, %v1780_v38  ;;  %v4502_v30 = vadd.f32 %v3357_v50, %v4403_v24  ;;  %v3296_v56 = vadd.f32 %v3295_v47, %v3294_v43  ;;  %v3360_v2 = vadd.f32 %v3359_v11, %v3358_v45 }
 0x176   : > { %v1791_v24 = vadd.f32 %v4300_v4, %v4343_v54  ;;  %v1796_v4 = vadd.f32 %v4306_v12, %v4343_v54 }
 0x177   : > { %v4504_v57 = vadd.f32 %v3296_v56, %v1783_v61  ;;  %v4507_v49 = vadd.f32 %v3360_v2, %v4407_v46 }
 0x179   : > { %v3297_v3 = vpop.f32.mrb[64].mxu1  ;;  %v3361_v6 = vpop.f32.mrb[64].mxu0 }
 0x17a   : > { %v3298_v16 = vpop.f32.mrb[65].mxu1  ;;  %v3362_v7 = vpop.f32.mrb[65].mxu0 }
 0x17b   : > { %v3299_v10 = vadd.f32 %v3298_v16, %v3297_v3  ;;  %v3363_v8 = vadd.f32 %v3362_v7, %v3361_v6  ;;  %v3300_v37 = vpop.f32.mrb[66].mxu1  ;;  %v3364_v17 = vpop.f32.mrb[66].mxu0 }
 0x17c   : > { %v3301_v18 = vpop.f32.mrb[67].mxu1  ;;  %v3365_v35 = vpop.f32.mrb[67].mxu0 }
 0x17d   : > { %v4513_v19 = vadd.f32 %v3299_v10, %v1788_v63  ;;  %v4516_v46 = vadd.f32 %v3363_v8, %v4417_v48  ;;  %v3302_v27 = vadd.f32 %v3301_v18, %v3300_v37  ;;  %v3366_v22 = vadd.f32 %v3365_v35, %v3364_v17 }
 0x17e   : > { %v1799_v48 = vadd.f32 %v4312_v20, %v4343_v54  ;;  %v1804_v20 = vadd.f32 %v4318_v28, %v4343_v54 }
 0x17f   : > { %v4518_v29 = vadd.f32 %v3302_v27, %v1791_v24  ;;  %v4521_v60 = vadd.f32 %v3366_v22, %v4419_v55 }
 0x181   : > { %v3303_v42 = vpop.f32.mrb[68].mxu1  ;;  %v3367_v34 = vpop.f32.mrb[68].mxu0 }
 0x182   : > { %v3304_v40 = vpop.f32.mrb[69].mxu1  ;;  %v3368_v41 = vpop.f32.mrb[69].mxu0 }
 0x183   : > { %v3305_v38 = vadd.f32 %v3304_v40, %v3303_v42  ;;  %v3369_v51 = vadd.f32 %v3368_v41, %v3367_v34  ;;  %v3306_v50 = vpop.f32.mrb[70].mxu1  ;;  %v3370_v43 = vpop.f32.mrb[70].mxu0 }
 0x184   : > { %v3307_v45 = vpop.f32.mrb[71].mxu1  ;;  %v3371_v61 = vpop.f32.mrb[71].mxu0 }
 0x185   : > { %v4527_v47 = vadd.f32 %v3305_v38, %v1796_v4  ;;  %v4530_v55 = vadd.f32 %v3369_v51, %v4427_v9  ;;  %v3308_v11 = vadd.f32 %v3307_v45, %v3306_v50  ;;  %v3372_v56 = vadd.f32 %v3371_v61, %v3370_v43 }
 0x186   : > { %v1807_v9 = vadd.f32 %v4324_v36, %v4343_v54  ;;  %v1812_v36 = vadd.f32 %v4330_v44, %v4343_v54 }
 0x187   : > { %v4532_v2 = vadd.f32 %v3308_v11, %v1799_v48  ;;  %v4535_v12 = vadd.f32 %v3372_v56, %v4429_v13 }
 0x189   : > { %v3309_v3 = vpop.f32.mrb[72].mxu1  ;;  %v3373_v6 = vpop.f32.mrb[72].mxu0 }
 0x18a   : > { %v3310_v16 = vpop.f32.mrb[73].mxu1  ;;  %v3374_v7 = vpop.f32.mrb[73].mxu0 }
 0x18b   : > { %v3311_v63 = vadd.f32 %v3310_v16, %v3309_v3  ;;  %v3375_v10 = vadd.f32 %v3374_v7, %v3373_v6  ;;  %v3312_v8 = vpop.f32.mrb[74].mxu1  ;;  %v3376_v37 = vpop.f32.mrb[74].mxu0 }
 0x18c   : > { %v3313_v17 = vpop.f32.mrb[75].mxu1  ;;  %v3377_v24 = vpop.f32.mrb[75].mxu0 }
 0x18d   : > { %v4541_v18 = vadd.f32 %v3311_v63, %v1804_v20  ;;  %v4544_v13 = vadd.f32 %v3375_v10, %v4437_v33  ;;  %v3314_v35 = vadd.f32 %v3313_v17, %v3312_v8  ;;  %v3378_v27 = vadd.f32 %v3377_v24, %v3376_v37 }
 0x18e   : > { %v1815_v33 = vadd.f32 %v4336_v52, %v4343_v54 }
 0x18f   : > { %v4546_v22 = vadd.f32 %v3314_v35, %v1807_v9  ;;  %v4549_v28 = vadd.f32 %v3378_v27, %v4441_v53 }
 0x191   : > { %v3315_v42 = vpop.f32.mrb[76].mxu1  ;;  %v3379_v34 = vpop.f32.mrb[76].mxu0 }
 0x192   : > { %v3316_v40 = vpop.f32.mrb[77].mxu1  ;;  %v3380_v41 = vpop.f32.mrb[77].mxu0 }
 0x193   : > { %v3317_v4 = vadd.f32 %v3316_v40, %v3315_v42  ;;  %v3381_v38 = vadd.f32 %v3380_v41, %v3379_v34  ;;  %v3318_v51 = vpop.f32.mrb[78].mxu1  ;;  %v3382_v50 = vpop.f32.mrb[78].mxu0 }
 0x194   : > { %v3319_v43 = vpop.f32.mrb[79].mxu1  ;;  %v3383_v48 = vpop.f32.mrb[79].mxu0 }
 0x195   : > { %v4555_v45 = vadd.f32 %v3317_v4, %v1812_v36  ;;  %v4558_v53 = vadd.f32 %v3381_v38, %v4449_v58  ;;  %v3320_v61 = vadd.f32 %v3319_v43, %v3318_v51  ;;  %v3384_v11 = vadd.f32 %v3383_v48, %v3382_v50 }
 0x197   : > { %v4560_v56 = vadd.f32 %v3320_v61, %v1815_v33  ;;  %v4563_v44 = vadd.f32 %v3384_v11, %v4453_v1 }
 0x199   : > { %v3385_v3 = vpop.f32.mrb[80].mxu0  ;;  %v3449_v6 = vpop.f32.mrb[80].mxu1 }
 0x19a   : > { %v3386_v16 = vpop.f32.mrb[81].mxu0  ;;  %v3450_v7 = vpop.f32.mrb[81].mxu1 }
 0x19b   : > { %v3387_v20 = vadd.f32 %v3386_v16, %v3385_v3  ;;  %v3451_v52 = vadd.f32 %v3450_v7, %v3449_v6  ;;  %v3388_v54 = vpop.f32.mrb[82].mxu0  ;;  %v3452_v63 = vpop.f32.mrb[82].mxu1 }
 0x19c   : > { %v3389_v10 = vpop.f32.mrb[83].mxu0  ;;  %v3453_v8 = vpop.f32.mrb[83].mxu1 }
 0x19d   : > { %v4566_v58 = vadd.f32 %v3387_v20, %v4458_v23  ;;  %v3390_v37 = vadd.f32 %v3389_v10, %v3388_v54  ;;  %v3454_v9 = vadd.f32 %v3453_v8, %v3452_v63  ;;  %v4569_v17 = vadd.f32 %v3451_v52, %v4461_v5 }
 0x19f   : > { %v4572_v1 = vadd.f32 %v3390_v37, %v4463_v39  ;;  %v4575_v24 = vadd.f32 %v3454_v9, %v4466_v32 }
 0x1a1   : > { %v3391_v35 = vpop.f32.mrb[84].mxu0  ;;  %v3455_v27 = vpop.f32.mrb[84].mxu1 }
 0x1a2   : > { %v3392_v42 = vpop.f32.mrb[85].mxu0  ;;  %v3456_v34 = vpop.f32.mrb[85].mxu1 }
 0x1a3   : > { %v3393_v40 = vadd.f32 %v3392_v42, %v3391_v35  ;;  %v3457_v41 = vadd.f32 %v3456_v34, %v3455_v27  ;;  %v3394_v36 = vpop.f32.mrb[86].mxu0  ;;  %v3458_v23 = vpop.f32.mrb[86].mxu1 }
 0x1a4   : > { %v3395_v4 = vpop.f32.mrb[87].mxu0  ;;  %v3459_v38 = vpop.f32.mrb[87].mxu1 }
 0x1a5   : > { %v4578_v51 = vadd.f32 %v3393_v40, %v4471_v0  ;;  %v3396_v5 = vadd.f32 %v3395_v4, %v3394_v36  ;;  %v3460_v50 = vadd.f32 %v3459_v38, %v3458_v23  ;;  %v4581_v39 = vadd.f32 %v3457_v41, %v4474_v62 }
 0x1a7   : > { %v4584_v32 = vadd.f32 %v3396_v5, %v4476_v59  ;;  %v4587_v33 = vadd.f32 %v3460_v50, %v4479_v15 }
 0x1a9   : > { %v3397_v43 = vpop.f32.mrb[88].mxu0  ;;  %v3461_v48 = vpop.f32.mrb[88].mxu1 }
 0x1aa   : > { %v3398_v61 = vpop.f32.mrb[89].mxu0  ;;  %v3462_v11 = vpop.f32.mrb[89].mxu1 }
 0x1ab   : > { %v3399_v3 = vadd.f32 %v3398_v61, %v3397_v43  ;;  %v3463_v6 = vadd.f32 %v3462_v11, %v3461_v48  ;;  %v3400_v16 = vpop.f32.mrb[90].mxu0  ;;  %v3464_v0 = vpop.f32.mrb[90].mxu1 }
 0x1ac   : > { %v3401_v7 = vpop.f32.mrb[91].mxu0  ;;  %v3465_v20 = vpop.f32.mrb[91].mxu1 }
 0x1ad   : > { %v4590_v52 = vadd.f32 %v3399_v3, %v4485_v26  ;;  %v3402_v62 = vadd.f32 %v3401_v7, %v3400_v16  ;;  %v3466_v54 = vadd.f32 %v3465_v20, %v3464_v0  ;;  %v4593_v59 = vadd.f32 %v3463_v6, %v4488_v14 }
 0x1af   : > { %v4596_v15 = vadd.f32 %v3402_v62, %v4490_v31  ;;  %v4599_v63 = vadd.f32 %v3466_v54, %v4493_v25 }
 0x1b1   : > { %v3403_v10 = vpop.f32.mrb[92].mxu0  ;;  %v3467_v8 = vpop.f32.mrb[92].mxu1 }
 0x1b2   : > { %v3404_v37 = vpop.f32.mrb[93].mxu0  ;;  %v3468_v9 = vpop.f32.mrb[93].mxu1 }
 0x1b3   : > { %v3405_v35 = vadd.f32 %v3404_v37, %v3403_v10  ;;  %v3469_v27 = vadd.f32 %v3468_v9, %v3467_v8  ;;  %v3406_v42 = vpop.f32.mrb[94].mxu0  ;;  %v3470_v26 = vpop.f32.mrb[94].mxu1 }
 0x1b4   : > { %v3407_v34 = vpop.f32.mrb[95].mxu0  ;;  %v3471_v40 = vpop.f32.mrb[95].mxu1 }
 0x1b5   : > { %v4602_v41 = vadd.f32 %v3405_v35, %v4499_v21  ;;  %v3408_v14 = vadd.f32 %v3407_v34, %v3406_v42  ;;  %v3472_v36 = vadd.f32 %v3471_v40, %v3470_v26  ;;  %v4605_v31 = vadd.f32 %v3469_v27, %v4502_v30 }
 0x1b7   : > { %v4608_v25 = vadd.f32 %v3408_v14, %v4504_v57  ;;  %v4611_v23 = vadd.f32 %v3472_v36, %v4507_v49 }
 0x1b9   : > { %v3409_v4 = vpop.f32.mrb[96].mxu0  ;;  %v3473_v38 = vpop.f32.mrb[96].mxu1 }
 0x1ba   : > { %v3410_v5 = vpop.f32.mrb[97].mxu0  ;;  %v3474_v50 = vpop.f32.mrb[97].mxu1 }
 0x1bb   : > { %v3411_v43 = vadd.f32 %v3410_v5, %v3409_v4  ;;  %v3475_v48 = vadd.f32 %v3474_v50, %v3473_v38  ;;  %v3412_v61 = vpop.f32.mrb[98].mxu0  ;;  %v3476_v21 = vpop.f32.mrb[98].mxu1 }
 0x1bc   : > { %v3413_v11 = vpop.f32.mrb[99].mxu0  ;;  %v3477_v3 = vpop.f32.mrb[99].mxu1 }
 0x1bd   : > { %v4614_v6 = vadd.f32 %v3411_v43, %v4513_v19  ;;  %v3414_v30 = vadd.f32 %v3413_v11, %v3412_v61  ;;  %v3478_v16 = vadd.f32 %v3477_v3, %v3476_v21  ;;  %v4617_v57 = vadd.f32 %v3475_v48, %v4516_v46 }
 0x1bf   : > { %v4620_v49 = vadd.f32 %v3414_v30, %v4518_v29  ;;  %v4623_v0 = vadd.f32 %v3478_v16, %v4521_v60 }
 0x1c1   : > { %v3415_v7 = vpop.f32.mrb[100].mxu0  ;;  %v3479_v20 = vpop.f32.mrb[100].mxu1 }
 0x1c2   : > { %v3416_v62 = vpop.f32.mrb[101].mxu0  ;;  %v3480_v54 = vpop.f32.mrb[101].mxu1 }
 0x1c3   : > { %v3417_v10 = vadd.f32 %v3416_v62, %v3415_v7  ;;  %v3481_v8 = vadd.f32 %v3480_v54, %v3479_v20  ;;  %v3418_v37 = vpop.f32.mrb[102].mxu0  ;;  %v3482_v19 = vpop.f32.mrb[102].mxu1 }
 0x1c4   : > { %v3419_v9 = vpop.f32.mrb[103].mxu0  ;;  %v3483_v35 = vpop.f32.mrb[103].mxu1 }
 0x1c5   : > { %v4626_v27 = vadd.f32 %v3417_v10, %v4527_v47  ;;  %v3420_v46 = vadd.f32 %v3419_v9, %v3418_v37  ;;  %v3484_v42 = vadd.f32 %v3483_v35, %v3482_v19  ;;  %v4629_v29 = vadd.f32 %v3481_v8, %v4530_v55 }
 0x1c7   : > { %v4632_v60 = vadd.f32 %v3420_v46, %v4532_v2  ;;  %v4635_v26 = vadd.f32 %v3484_v42, %v4535_v12 }
 0x1c9   : > { %v3421_v34 = vpop.f32.mrb[104].mxu0  ;;  %v3485_v40 = vpop.f32.mrb[104].mxu1 }
 0x1ca   : > { %v3422_v14 = vpop.f32.mrb[105].mxu0  ;;  %v3486_v36 = vpop.f32.mrb[105].mxu1 }
 0x1cb   : > { %v3423_v4 = vadd.f32 %v3422_v14, %v3421_v34  ;;  %v3487_v38 = vadd.f32 %v3486_v36, %v3485_v40  ;;  %v3424_v5 = vpop.f32.mrb[106].mxu0  ;;  %v3488_v47 = vpop.f32.mrb[106].mxu1 }
 0x1cc   : > { %v3425_v50 = vpop.f32.mrb[107].mxu0  ;;  %v3489_v43 = vpop.f32.mrb[107].mxu1 }
 0x1cd   : > { %v4638_v48 = vadd.f32 %v3423_v4, %v4541_v18  ;;  %v3426_v55 = vadd.f32 %v3425_v50, %v3424_v5  ;;  %v3490_v61 = vadd.f32 %v3489_v43, %v3488_v47  ;;  %v4641_v2 = vadd.f32 %v3487_v38, %v4544_v13 }
 0x1cf   : > { %v4644_v12 = vadd.f32 %v3426_v55, %v4546_v22  ;;  %v4647_v21 = vadd.f32 %v3490_v61, %v4549_v28 }
 0x1d1   : > { %v3427_v11 = vpop.f32.mrb[108].mxu0  ;;  %v3491_v3 = vpop.f32.mrb[108].mxu1 }
 0x1d2   : > { %v3428_v30 = vpop.f32.mrb[109].mxu0  ;;  %v3492_v16 = vpop.f32.mrb[109].mxu1 }
 0x1d3   : > { %v3429_v7 = vadd.f32 %v3428_v30, %v3427_v11  ;;  %v3493_v20 = vadd.f32 %v3492_v16, %v3491_v3  ;;  %v3430_v62 = vpop.f32.mrb[110].mxu0  ;;  %v3494_v18 = vpop.f32.mrb[110].mxu1 }
 0x1d4   : > { %v3431_v54 = vpop.f32.mrb[111].mxu0  ;;  %v3495_v10 = vpop.f32.mrb[111].mxu1 }
 0x1d5   : > { %v4650_v13 = vadd.f32 %v3429_v7, %v4555_v45  ;;  %v3432_v8 = vadd.f32 %v3431_v54, %v3430_v62  ;;  %v3496_v22 = vadd.f32 %v3495_v10, %v3494_v18  ;;  %v4653_v37 = vadd.f32 %v3493_v20, %v4558_v53 }
 0x1d7   : > { %v4656_v28 = vadd.f32 %v3432_v8, %v4560_v56  ;;  %v4659_v19 = vadd.f32 %v3496_v22, %v4563_v44 }
 0x1d9   : > { %v3497_v9 = vpop.f32.mrb[112].mxu1  ;;  %v3587_v35 = vpop.f32.mrb[112].mxu0 }
 0x1da   : > { %v2344_v46 = vadd.f32 %v3587_v35, %v4581_v39  ;;  %v3498_v42 = vpop.f32.mrb[113].mxu1  ;;  %v2335_v34 = vpop.f32.mrb[113].mxu0 }
 0x1db   : > { %v3499_v40 = vadd.f32 %v3498_v42, %v3497_v9  ;;  %v2336_v45 = vadd.f32 %v2335_v34, %v4569_v17  ;;  %v3500_v14 = vpop.f32.mrb[114].mxu1  ;;  %v3588_v36 = vpop.f32.mrb[114].mxu0 }
 0x1dc   : > { %v2347_v53 = vadd.f32 %v3588_v36, %v4587_v33  ;;  %v3501_v4 = vpop.f32.mrb[115].mxu1  ;;  %v2338_v56 = vpop.f32.mrb[115].mxu0  ;;  %v2464_v47 = vmax.f32 %v2344_v46, 0.0 }
 0x1dd   : > { %v3502_v38 = vadd.f32 %v3501_v4, %v3500_v14  ;;  %v2339_v44 = vadd.f32 %v2338_v56, %v4575_v24  ;;  %v4667_v5 = vadd.f32 %v3499_v40, %v4566_v58  ;;  %v2462_v50 = vmax.f32 %v2336_v45, 0.0 }
 0x1de   : > { %v2465_v39 = vmax.f32 %v2347_v53, 0.0 }
 0x1df   : > { %v2463_v17 = vmax.f32 %v2339_v44, 0.0  ;;  %v4675_v33 = vadd.f32 %v3502_v38, %v4572_v1 }
 0x1e0   : > { %v3010_v43 = vpack.c.bf16 %v2465_v39, %v2464_v47 }
 0x1e1   : > { %v3005_v55 = vpack.c.bf16 %v2463_v17, %v2462_v50  ;;  %v3503_v24 = vpop.f32.mrb[116].mxu1  ;;  %v3591_v61 = vpop.f32.mrb[116].mxu0 }
 0x1e2   : > { %3082 = vst [vmem:[%s4672_s22 + $0x8] sm:$0xff] %v3010_v43   ;;  %v2360_v58 = vadd.f32 %v3591_v61, %v4605_v31  ;;  %v3504_v11 = vpop.f32.mrb[117].mxu1  ;;  %v2351_v3 = vpop.f32.mrb[117].mxu0 }
 0x1e3   : > { %3006 = vst [vmem:[%s4672_s22] sm:$0xff] %v3005_v55   ;;  %v3505_v30 = vadd.f32 %v3504_v11, %v3503_v24  ;;  %v2352_v16 = vadd.f32 %v2351_v3, %v4593_v59  ;;  %v3506_v7 = vpop.f32.mrb[118].mxu1  ;;  %v3592_v20 = vpop.f32.mrb[118].mxu0 }
 0x1e4   : > { %v2363_v62 = vadd.f32 %v3592_v20, %v4611_v23  ;;  %v3507_v1 = vpop.f32.mrb[119].mxu1  ;;  %v2354_v18 = vpop.f32.mrb[119].mxu0  ;;  %v2468_v31 = vmax.f32 %v2360_v58, 0.0 }
 0x1e5   : > { %v3508_v54 = vadd.f32 %v3507_v1, %v3506_v7  ;;  %v2355_v10 = vadd.f32 %v2354_v18, %v4599_v63  ;;  %v2247_v8 = vadd.f32 %v3505_v30, %v4578_v51  ;;  %v2466_v9 = vmax.f32 %v2352_v16, 0.0 }
 0x1e6   : > { %v2469_v22 = vmax.f32 %v2363_v62, 0.0 }
 0x1e7   : > { %v2467_v35 = vmax.f32 %v2355_v10, 0.0  ;;  %v2250_v46 = vadd.f32 %v3508_v54, %v4584_v32 }
 0x1e8   : > { %v3020_v59 = vpack.c.bf16 %v2469_v22, %v2468_v31 }
 0x1e9   : > { %v3015_v42 = vpack.c.bf16 %v2467_v35, %v2466_v9  ;;  %v3509_v34 = vpop.f32.mrb[120].mxu1  ;;  %v3595_v40 = vpop.f32.mrb[120].mxu0 }
 0x1ea   : > { %3084 = vst [vmem:[%s4672_s22 + $0x18] sm:$0xff] %v3020_v59   ;;  %v2376_v23 = vadd.f32 %v3595_v40, %v4629_v29  ;;  %v3510_v45 = vpop.f32.mrb[121].mxu1  ;;  %v2367_v14 = vpop.f32.mrb[121].mxu0 }
 0x1eb   : > { %3083 = vst [vmem:[%s4672_s22 + $0x10] sm:$0xff] %v3015_v42   ;;  %v3511_v36 = vadd.f32 %v3510_v45, %v3509_v34  ;;  %v2368_v63 = vadd.f32 %v2367_v14, %v4617_v57  ;;  %v3512_v51 = vpop.f32.mrb[122].mxu1  ;;  %v3596_v53 = vpop.f32.mrb[122].mxu0 }
 0x1ec   : > { %v2379_v4 = vadd.f32 %v3596_v53, %v4635_v26  ;;  %v3513_v56 = vpop.f32.mrb[123].mxu1  ;;  %v2370_v32 = vpop.f32.mrb[123].mxu0  ;;  %v2472_v29 = vmax.f32 %v2376_v23, 0.0 }
 0x1ed   : > { %v3514_v38 = vadd.f32 %v3513_v56, %v3512_v51  ;;  %v2371_v44 = vadd.f32 %v2370_v32, %v4623_v0  ;;  %v4692_v47 = vadd.f32 %v3511_v36, %v4590_v52  ;;  %v2470_v50 = vmax.f32 %v2368_v63, 0.0 }
 0x1ee   : > { %v2473_v39 = vmax.f32 %v2379_v4, 0.0 }
 0x1ef   : > { %v2471_v17 = vmax.f32 %v2371_v44, 0.0  ;;  %v4695_v57 = vadd.f32 %v3514_v38, %v4596_v15 }
 0x1f0   : > { %v3030_v43 = vpack.c.bf16 %v2473_v39, %v2472_v29 }
 0x1f1   : > { %v3025_v55 = vpack.c.bf16 %v2471_v17, %v2470_v50  ;;  %v3515_v24 = vpop.f32.mrb[124].mxu1  ;;  %v3599_v26 = vpop.f32.mrb[124].mxu0 }
 0x1f2   : > { %3086 = vst [vmem:[%s4672_s22 + $0x28] sm:$0xff] %v3030_v43   ;;  %v2392_v61 = vadd.f32 %v3599_v26, %v4653_v37  ;;  %v3516_v58 = vpop.f32.mrb[125].mxu1  ;;  %v2383_v11 = vpop.f32.mrb[125].mxu0 }
 0x1f3   : > { %3085 = vst [vmem:[%s4672_s22 + $0x20] sm:$0xff] %v3025_v55   ;;  %v3517_v0 = vadd.f32 %v3516_v58, %v3515_v24  ;;  %v2384_v52 = vadd.f32 %v2383_v11, %v4641_v2  ;;  %v3518_v3 = vpop.f32.mrb[126].mxu1  ;;  %v3600_v30 = vpop.f32.mrb[126].mxu0 }
 0x1f4   : > { %v2395_v16 = vadd.f32 %v3600_v30, %v4659_v19  ;;  %v3519_v15 = vpop.f32.mrb[127].mxu1  ;;  %v2386_v7 = vpop.f32.mrb[127].mxu0  ;;  %v2476_v37 = vmax.f32 %v2392_v61, 0.0 }
 0x1f5   : > { %v3520_v20 = vadd.f32 %v3519_v15, %v3518_v3  ;;  %v2387_v62 = vadd.f32 %v2386_v7, %v4647_v21  ;;  %v2263_v1 = vadd.f32 %v3517_v0, %v4602_v41  ;;  %v2474_v54 = vmax.f32 %v2384_v52, 0.0 }
 0x1f6   : > { %v2477_v18 = vmax.f32 %v2395_v16, 0.0 }
 0x1f7   : > { %v2475_v10 = vmax.f32 %v2387_v62, 0.0  ;;  %v2266_v31 = vadd.f32 %v3520_v20, %v4608_v25 }
 0x1f8   : > { %v3040_v2 = vpack.c.bf16 %v2477_v18, %v2476_v37 }
 0x1f9   : > { %v3035_v22 = vpack.c.bf16 %v2475_v10, %v2474_v54  ;;  %v3521_v9 = vpop.f32.mrb[128].mxu1  ;;  %v3603_v35 = vpop.f32.mrb[128].mxu0 }
 0x1fa   : > { %3088 = vst [vmem:[%s4672_s22 + $0x38] sm:$0xff] %v3040_v2   ;;  %v2408_v19 = vadd.f32 %v3603_v35, %v2247_v8  ;;  %v3522_v59 = vpop.f32.mrb[129].mxu1  ;;  %v2399_v42 = vpop.f32.mrb[129].mxu0 }
 0x1fb   : > { %3087 = vst [vmem:[%s4672_s22 + $0x30] sm:$0xff] %v3035_v22   ;;  %v3523_v34 = vadd.f32 %v3522_v59, %v3521_v9  ;;  %v2400_v21 = vadd.f32 %v2399_v42, %v4667_v5  ;;  %v3524_v40 = vpop.f32.mrb[130].mxu1  ;;  %v3604_v41 = vpop.f32.mrb[130].mxu0 }
 0x1fc   : > { %v2411_v23 = vadd.f32 %v3604_v41, %v2250_v46  ;;  %v3525_v45 = vpop.f32.mrb[131].mxu1  ;;  %v2402_v14 = vpop.f32.mrb[131].mxu0  ;;  %v2480_v51 = vmax.f32 %v2408_v19, 0.0 }
 0x1fd   : > { %v3526_v36 = vadd.f32 %v3525_v45, %v3524_v40  ;;  %v2403_v25 = vadd.f32 %v2402_v14, %v4675_v33  ;;  %v2271_v63 = vadd.f32 %v3523_v34, %v4614_v6  ;;  %v2478_v53 = vmax.f32 %v2400_v21, 0.0 }
 0x1fe   : > { %v2481_v8 = vmax.f32 %v2411_v23, 0.0 }
 0x1ff   : > { %v2479_v4 = vmax.f32 %v2403_v25, 0.0  ;;  %v2274_v56 = vadd.f32 %v3526_v36, %v4620_v49 }
 0x200   : > { %v3050_v32 = vpack.c.bf16 %v2481_v8, %v2480_v51 }
 0x201   : > { %v3045_v5 = vpack.c.bf16 %v2479_v4, %v2478_v53  ;;  %v3527_v38 = vpop.f32.mrb[132].mxu1  ;;  %v3607_v44 = vpop.f32.mrb[132].mxu0 }
 0x202   : > { %3090 = vst [vmem:[%s4672_s22 + $0x48] sm:$0xff] %v3050_v32   ;;  %v2424_v46 = vadd.f32 %v3607_v44, %v2263_v1  ;;  %v3528_v29 = vpop.f32.mrb[133].mxu1  ;;  %v2415_v39 = vpop.f32.mrb[133].mxu0 }
 0x203   : > { %3089 = vst [vmem:[%s4672_s22 + $0x40] sm:$0xff] %v3045_v5   ;;  %v3529_v50 = vadd.f32 %v3528_v29, %v3527_v38  ;;  %v2416_v33 = vadd.f32 %v2415_v39, %v4692_v47  ;;  %v3530_v17 = vpop.f32.mrb[134].mxu1  ;;  %v3608_v6 = vpop.f32.mrb[134].mxu0 }
 0x204   : > { %v2427_v43 = vadd.f32 %v3608_v6, %v2266_v31  ;;  %v3531_v55 = vpop.f32.mrb[135].mxu1  ;;  %v2418_v24 = vpop.f32.mrb[135].mxu0  ;;  %v2484_v58 = vmax.f32 %v2424_v46, 0.0 }
 0x205   : > { %v3532_v26 = vadd.f32 %v3531_v55, %v3530_v17  ;;  %v2419_v49 = vadd.f32 %v2418_v24, %v4695_v57  ;;  %v2279_v61 = vadd.f32 %v3529_v50, %v4626_v27  ;;  %v2482_v0 = vmax.f32 %v2416_v33, 0.0 }
 0x206   : > { %v2485_v11 = vmax.f32 %v2427_v43, 0.0 }
 0x207   : > { %v2483_v52 = vmax.f32 %v2419_v49, 0.0  ;;  %v2282_v3 = vadd.f32 %v3532_v26, %v4632_v60 }
 0x208   : > { %v3060_v30 = vpack.c.bf16 %v2485_v11, %v2484_v58 }
 0x209   : > { %v3055_v47 = vpack.c.bf16 %v2483_v52, %v2482_v0  ;;  %v3533_v16 = vpop.f32.mrb[136].mxu1  ;;  %v3611_v15 = vpop.f32.mrb[136].mxu0 }
 0x20a   : > { %3092 = vst [vmem:[%s4672_s22 + $0x58] sm:$0xff] %v3060_v30   ;;  %v2440_v7 = vadd.f32 %v3611_v15, %v2279_v61  ;;  %v3534_v20 = vpop.f32.mrb[137].mxu1  ;;  %v2431_v62 = vpop.f32.mrb[137].mxu0 }
 0x20b   : > { %3091 = vst [vmem:[%s4672_s22 + $0x50] sm:$0xff] %v3055_v47   ;;  %v3535_v1 = vadd.f32 %v3534_v20, %v3533_v16  ;;  %v2432_v37 = vadd.f32 %v2431_v62, %v2271_v63  ;;  %v3536_v57 = vpop.f32.mrb[138].mxu1  ;;  %v3612_v18 = vpop.f32.mrb[138].mxu0 }
 0x20c   : > { %v2443_v27 = vadd.f32 %v3612_v18, %v2282_v3  ;;  %v3537_v54 = vpop.f32.mrb[139].mxu1  ;;  %v2434_v10 = vpop.f32.mrb[139].mxu0  ;;  %v2488_v22 = vmax.f32 %v2440_v7, 0.0 }
 0x20d   : > { %v3538_v31 = vadd.f32 %v3537_v54, %v3536_v57  ;;  %v2435_v60 = vadd.f32 %v2434_v10, %v2274_v56  ;;  %v2287_v2 = vadd.f32 %v3535_v1, %v4638_v48  ;;  %v2486_v35 = vmax.f32 %v2432_v37, 0.0 }
 0x20e   : > { %v2489_v9 = vmax.f32 %v2443_v27, 0.0 }
 0x20f   : > { %v2487_v19 = vmax.f32 %v2435_v60, 0.0  ;;  %v2290_v59 = vadd.f32 %v3538_v31, %v4644_v12 }
 0x210   : > { %v3070_v42 = vpack.c.bf16 %v2489_v9, %v2488_v22 }
 0x211   : > { %v3065_v34 = vpack.c.bf16 %v2487_v19, %v2486_v35  ;;  %v3539_v21 = vpop.f32.mrb[140].mxu1  ;;  %v3615_v40 = vpop.f32.mrb[140].mxu0 }
 0x212   : > { %3094 = vst [vmem:[%s4672_s22 + $0x68] sm:$0xff] %v3070_v42   ;;  %v3540_v41 = vpop.f32.mrb[141].mxu1  ;;  %v2447_v23 = vpop.f32.mrb[141].mxu0 }
 0x213   : > { %3093 = vst [vmem:[%s4672_s22 + $0x60] sm:$0xff] %v3065_v34   ;;  %v3541_v45 = vadd.f32 %v3540_v41, %v3539_v21  ;;  %v2448_v14 = vadd.f32 %v2447_v23, %v2287_v2  ;;  %v3542_v36 = vpop.f32.mrb[142].mxu1  ;;  %v3616_v25 = vpop.f32.mrb[142].mxu0 }
 0x214   : > { %v3543_v48 = vpop.f32.mrb[143].mxu1  ;;  %v2450_v63 = vpop.f32.mrb[143].mxu0 }
 0x215   : > { %v2295_v51 = vadd.f32 %v3541_v45, %v4650_v13  ;;  %v3544_v8 = vadd.f32 %v3543_v48, %v3542_v36  ;;  %v2451_v12 = vadd.f32 %v2450_v63, %v2290_v59  ;;  %v2490_v4 = vmax.f32 %v2448_v14, 0.0 }
 0x217   : > { %v2456_v53 = vadd.f32 %v3615_v40, %v2295_v51  ;;  %v2298_v56 = vadd.f32 %v3544_v8, %v4656_v28  ;;  %v2491_v32 = vmax.f32 %v2451_v12, 0.0 }
 0x219   : > { %v2459_v5 = vadd.f32 %v3616_v25, %v2298_v56  ;;  %v3075_v38 = vpack.c.bf16 %v2491_v32, %v2490_v4  ;;  %v2492_v44 = vmax.f32 %v2456_v53, 0.0 }
 0x21b   : > { %v2493_v46 = vmax.f32 %v2459_v5, 0.0  ;;  %3095 = vst [vmem:[%s4672_s22 + $0x70] sm:$0xff] %v3075_v38  }
 0x21d   : > { %v3080_v29 = vpack.c.bf16 %v2493_v46, %v2492_v44 }
 0x21f   : > { %3096 = vst [vmem:[%s4672_s22 + $0x78] sm:$0xff] %v3080_v29  }
 0x220 PF: > { %s13_s12 = sadd.s32 1, %s3928_s12  }
 0x221   : > { %p10_p4 = scmp.ge.s32.totalorder %s13_s12, 4  }
 0x223   :  { %12 = sbr.rel (!%p10_p4) target bundleno = 1 (0x1), region = 62 }

// kernel: forward.10
= control target key start
LH: loop header
LB: loop body
LE: loop exit
PB: predicated region body
PF: predicated region fallthrough
CT: control target
= control target key end

     0   :  { %s1632_s1 = inlined_call_operand.vmem [shape: bf16[1152,128], index: 1, kind: input, shape index: {}]   ;;  %s1633_s0 = inlined_call_operand.vmem [shape: bf16[32,1152], index: 0, kind: input, shape index: {}]   ;;  %s1634_s2 = inlined_call_operand.vmem [shape: f32[1,128], index: 2, kind: input, shape index: {}]   ;;  %s1635_s3 = inlined_call_operand.vmem [shape: bf16[32,128], index: 3, kind: output, shape index: {}]  }
   0x1   :  { %v1235_v0 = vld [vmem:[%s1632_s1 + $0x40] sm:$0xff]   ;;  %v1239_v4 = vld [vmem:[%s1632_s1 + $0x48] sm:$0xff]   ;;  %v1243_v8 = vld [vmem:[%s1632_s1 + $0x50] sm:$0xff]  }
   0x2   :  { %v1236_v1 = vld [vmem:[%s1632_s1] sm:$0xff]   ;;  %1093 = vmatprep.subr.bf16.mxu0 %v1235_v0  ;;  %v1240_v5 = vld [vmem:[%s1632_s1 + $0x8] sm:$0xff]   ;;  %v1244_v9 = vld [vmem:[%s1632_s1 + $0x10] sm:$0xff]  }
   0x3   :  { %v1237_v2 = vld [vmem:[%s1632_s1 + $0xc0] sm:$0xff]   ;;  %1094 = vmatpush3.bf16.msra.mxu0 %v1236_v1  ;;  %v1241_v6 = vld [vmem:[%s1632_s1 + $0xc8] sm:$0xff]   ;;  %v1245_v10 = vld [vmem:[%s1632_s1 + $0xd0] sm:$0xff]  }
   0x4   :  { %v1238_v3 = vld [vmem:[%s1632_s1 + $0x80] sm:$0xff]   ;;  %1121 = vmatprep.subr.bf16.mxu1 %v1237_v2  ;;  %1095 = vmatprep.subr.bf16.mxu0 %v1239_v4  ;;  %v1242_v7 = vld [vmem:[%s1632_s1 + $0x88] sm:$0xff]   ;;  %v1246_v11 = vld [vmem:[%s1632_s1 + $0x90] sm:$0xff]  }
   0x5   :  { %1122 = vmatpush3.bf16.msra.mxu1 %v1238_v3  ;;  %v1247_v12 = vld [vmem:[%s1632_s1 + $0x58] sm:$0xff]   ;;  %v1251_v16 = vld [vmem:[%s1632_s1 + $0x60] sm:$0xff]   ;;  %v1255_v20 = vld [vmem:[%s1632_s1 + $0x68] sm:$0xff]  }
   0x6   :  { %1123 = vmatprep.subr.bf16.mxu1 %v1241_v6  ;;  %v1248_v13 = vld [vmem:[%s1632_s1 + $0x18] sm:$0xff]   ;;  %v1252_v17 = vld [vmem:[%s1632_s1 + $0x20] sm:$0xff]   ;;  %v1256_v21 = vld [vmem:[%s1632_s1 + $0x28] sm:$0xff]  }
   0x7   :  { %1096 = vmatpush3.bf16.msra.mxu0 %v1240_v5  ;;  %v1249_v14 = vld [vmem:[%s1632_s1 + $0xd8] sm:$0xff]   ;;  %v1253_v18 = vld [vmem:[%s1632_s1 + $0xe0] sm:$0xff]   ;;  %v1257_v22 = vld [vmem:[%s1632_s1 + $0xe8] sm:$0xff]  }
   0x8   :  { %1097 = vmatprep.subr.bf16.mxu0 %v1243_v8  ;;  %v1250_v15 = vld [vmem:[%s1632_s1 + $0x98] sm:$0xff]   ;;  %v1254_v19 = vld [vmem:[%s1632_s1 + $0xa0] sm:$0xff]   ;;  %v1258_v23 = vld [vmem:[%s1632_s1 + $0xa8] sm:$0xff]  }
   0x9   :  { %1124 = vmatpush3.bf16.msra.mxu1 %v1242_v7  ;;  %v1259_v24 = vld [vmem:[%s1632_s1 + $0x70] sm:$0xff]   ;;  %v1263_v28 = vld [vmem:[%s1632_s1 + $0x78] sm:$0xff]   ;;  %v1266_v31 = vld [vmem:[%s1633_s0] ss:$36 sps:$4 sm:$0xff]  }
   0xa   :  { %1125 = vmatprep.subr.bf16.mxu1 %v1245_v10  ;;  %v1260_v25 = vld [vmem:[%s1632_s1 + $0x30] sm:$0xff]   ;;  %v1264_v29 = vld [vmem:[%s1632_s1 + $0x38] sm:$0xff]   ;;  %v1268_v32 = vld [vmem:[%s1633_s0 + $0x4] ss:$36 sps:$4 sm:$0xff]  }
   0xb   :  { %1098 = vmatpush3.bf16.msra.mxu0 %v1244_v9  ;;  %v1261_v26 = vld [vmem:[%s1632_s1 + $0xf0] sm:$0xff]   ;;  %v1265_v30 = vld [vmem:[%s1632_s1 + $0xf8] sm:$0xff]   ;;  %742 = vmatprep.mubr.bf16.mxu0 %v1268_v32  ;;  %v1270_v34 = vld [vmem:[%s1632_s1 + $0x140] sm:$0xff]  }
   0xc   :  { %1099 = vmatprep.subr.bf16.mxu0 %v1247_v12  ;;  %v1262_v27 = vld [vmem:[%s1632_s1 + $0xb0] sm:$0xff]   ;;  %v1269_v33 = vld [vmem:[%s1632_s1 + $0xb8] sm:$0xff]   ;;  %v1271_v35 = vld [vmem:[%s1633_s0 + $0x8] ss:$36 sps:$4 sm:$0xff]  }
   0xd   :  { %1126 = vmatpush3.bf16.msra.mxu1 %v1246_v11  ;;  %v1273_v36 = vld [vmem:[%s1633_s0 + $0xc] ss:$36 sps:$4 sm:$0xff]   ;;  %v1274_v37 = vld [vmem:[%s1632_s1 + $0x100] sm:$0xff]   ;;  %v1285_v48 = vld [vmem:[%s1632_s1 + $0x158] sm:$0xff]  }
   0xe   :  { %1127 = vmatprep.subr.bf16.mxu1 %v1249_v14  ;;  %791 = vmatprep.mubr.bf16.mxu1 %v1273_v36  ;;  %v1275_v38 = vld [vmem:[%s1632_s1 + $0x1c0] sm:$0xff]   ;;  %v1277_v40 = vld [vmem:[%s1632_s1 + $0x148] sm:$0xff]   ;;  %v1281_v44 = vld [vmem:[%s1632_s1 + $0x150] sm:$0xff]  }
   0xf   :  { %1100 = vmatpush3.bf16.msra.mxu0 %v1248_v13  ;;  %v1276_v39 = vld [vmem:[%s1632_s1 + $0x180] sm:$0xff]   ;;  %v1278_v41 = vld [vmem:[%s1632_s1 + $0x108] sm:$0xff]   ;;  %v1282_v45 = vld [vmem:[%s1632_s1 + $0x110] sm:$0xff]  }
  0x10   :  { %1101 = vmatprep.subr.bf16.mxu0 %v1251_v16  ;;  %v1279_v42 = vld [vmem:[%s1632_s1 + $0x1c8] sm:$0xff]   ;;  %v1283_v46 = vld [vmem:[%s1632_s1 + $0x1d0] sm:$0xff]   ;;  %v1286_v49 = vld [vmem:[%s1632_s1 + $0x118] sm:$0xff]  }
  0x11   :  { %1128 = vmatpush3.bf16.msra.mxu1 %v1250_v15  ;;  %v1280_v43 = vld [vmem:[%s1632_s1 + $0x188] sm:$0xff]   ;;  %v1284_v47 = vld [vmem:[%s1632_s1 + $0x190] sm:$0xff]   ;;  %v1287_v50 = vld [vmem:[%s1632_s1 + $0x1d8] sm:$0xff]  }
  0x12   :  { %1129 = vmatprep.subr.bf16.mxu1 %v1253_v18  ;;  %v1288_v51 = vld [vmem:[%s1632_s1 + $0x198] sm:$0xff]   ;;  %v1289_v52 = vld [vmem:[%s1632_s1 + $0x160] sm:$0xff]   ;;  %v1293_v56 = vld [vmem:[%s1632_s1 + $0x168] sm:$0xff]  }
  0x13   :  { %1102 = vmatpush3.bf16.msra.mxu0 %v1252_v17  ;;  %v1290_v53 = vld [vmem:[%s1632_s1 + $0x120] sm:$0xff]   ;;  %v1294_v57 = vld [vmem:[%s1633_s0 + $0x4c] ss:$36 sps:$4 sm:$0xff]   ;;  %v1299_v61 = vld [vmem:[%s1633_s0 + $0x54] ss:$36 sps:$4 sm:$0xff]  }
  0x14   :  { %1103 = vmatprep.subr.bf16.mxu0 %v1255_v20  ;;  %v1291_v54 = vld [vmem:[%s1632_s1 + $0x1e0] sm:$0xff]   ;;  %v1296_v58 = vld [vmem:[%s1632_s1 + $0x128] sm:$0xff]   ;;  %v1302_v63 = vld [vmem:[%s1633_s0 + $0x50] ss:$36 sps:$4 sm:$0xff]  }
  0x15   :  { %1130 = vmatpush3.bf16.msra.mxu1 %v1254_v19  ;;  %v1292_v55 = vld [vmem:[%s1632_s1 + $0x1a0] sm:$0xff]   ;;  %v1297_v59 = vld [vmem:[%s1633_s0 + $0x48] ss:$36 sps:$4 sm:$0xff]   ;;  %v1303_v0 = vld [vmem:[%s1632_s1 + $0x170] sm:$0xff]  }
  0x16   :  { %1131 = vmatprep.subr.bf16.mxu1 %v1257_v22  ;;  %v1298_v60 = vld [vmem:[%s1632_s1 + $0x1e8] sm:$0xff]   ;;  %v1304_v1 = vld [vmem:[%s1632_s1 + $0x130] sm:$0xff]   ;;  %v1307_v4 = vld [vmem:[%s1632_s1 + $0x178] sm:$0xff]  }
  0x17   :  { %1104 = vmatpush3.bf16.msra.mxu0 %v1256_v21  ;;  %v1301_v62 = vld [vmem:[%s1632_s1 + $0x1a8] sm:$0xff]   ;;  %v1305_v2 = vld [vmem:[%s1632_s1 + $0x1f0] sm:$0xff]   ;;  %v1308_v5 = vld [vmem:[%s1632_s1 + $0x138] sm:$0xff]  }
  0x18   :  { %1105 = vmatprep.subr.bf16.mxu0 %v1259_v24  ;;  %v1306_v3 = vld [vmem:[%s1632_s1 + $0x1b0] sm:$0xff]   ;;  %v1309_v6 = vld [vmem:[%s1632_s1 + $0x1f8] sm:$0xff]   ;;  %v1314_v10 = vld [vmem:[%s1632_s1 + $0x200] sm:$0xff]  }
  0x19   :  { %1132 = vmatpush3.bf16.msra.mxu1 %v1258_v23  ;;  %v1310_v7 = vld [vmem:[%s1633_s0 + $0x10] ss:$36 sps:$4 sm:$0xff]   ;;  %v1313_v9 = vld [vmem:[%s1632_s1 + $0x1b8] sm:$0xff]   ;;  %v1318_v13 = vld [vmem:[%s1632_s1 + $0x208] sm:$0xff]  }
  0x1a   :  { %1133 = vmatprep.subr.bf16.mxu1 %v1261_v26  ;;  %v1312_v8 = vld [vmem:[%s1633_s0 + $0x14] ss:$36 sps:$4 sm:$0xff]   ;;  %v1317_v12 = vld [vmem:[%s1633_s0 + $0x1c] ss:$36 sps:$4 sm:$0xff]   ;;  %v1323_v17 = vld [vmem:[%s1633_s0 + $0x64] ss:$36 sps:$4 sm:$0xff]  }
  0x1b   :  { %1106 = vmatpush3.bf16.msra.mxu0 %v1260_v25  ;;  %v1315_v11 = vld [vmem:[%s1633_s0 + $0x18] ss:$36 sps:$4 sm:$0xff]   ;;  %v1322_v16 = vld [vmem:[%s1632_s1 + $0x210] sm:$0xff]   ;;  %v1325_v18 = vld [vmem:[%s1633_s0 + $0x60] ss:$36 sps:$4 sm:$0xff]  }
  0x1c   :  { %1107 = vmatprep.subr.bf16.mxu0 %v1263_v28  ;;  %v1319_v14 = vld [vmem:[%s1633_s0 + $0x5c] ss:$36 sps:$4 sm:$0xff]   ;;  %v1328_v22 = vld [vmem:[%s1632_s1 + $0x228] sm:$0xff]   ;;  %v1329_v23 = vld [vmem:[%s1632_s1 + $0x230] sm:$0xff]  }
  0x1d   :  { %1134 = vmatpush3.bf16.msra.mxu1 %v1262_v27  ;;  %v1321_v15 = vld [vmem:[%s1633_s0 + $0x58] ss:$36 sps:$4 sm:$0xff]   ;;  %v1327_v20 = vld [vmem:[%s1632_s1 + $0x220] sm:$0xff]   ;;  %v1332_v25 = vld [vmem:[%s1633_s0 + $0x68] ss:$36 sps:$4 sm:$0xff]  }
  0x1e   :  { %1135 = vmatprep.subr.bf16.mxu1 %v1265_v30  ;;  %v1326_v19 = vld [vmem:[%s1632_s1 + $0x218] sm:$0xff]   ;;  %v1331_v21 = vld [vmem:[%s1633_s0 + $0x20] ss:$36 sps:$4 sm:$0xff]  }
  0x1f   :  { %1108 = vmatpush3.bf16.msra.mxu0 %v1264_v29  ;;  %v1330_v24 = vld [vmem:[%s1632_s1 + $0x238] sm:$0xff]   ;;  %v983_v27 = vld [vmem:[%s1634_s2] ss:$0 sm:$0xff] }
  0x20   :  { %1149 = vmatprep.subr.bf16.mxu0 %v1270_v34 }
  0x21   :  { %1136 = vmatpush3.bf16.msra.mxu1 %v1269_v33 }
  0x22   :  { %743 = vmatmul.mubr.bf16.vlgmr.msra.gmra.mrb[0].mxu0 %v1266_v31  ;;  %1177 = vmatprep.subr.bf16.mxu1 %v1275_v38 }
  0x23   :  { %1150 = vmatpush3.bf16.msra.mxu0 %v1274_v37  ;;  %750 = vmatprep.mubr.bf16.mxu0 %v1294_v57 }
  0x24   :  { %792 = vmatmul.mubr.bf16.vlgmr.msra.gmra.mrb[0].mxu1 %v1271_v35  ;;  %1151 = vmatprep.subr.bf16.mxu0 %v1277_v40 }
  0x25   :  { %1178 = vmatpush3.bf16.msra.mxu1 %v1276_v39  ;;  %799 = vmatprep.mubr.bf16.mxu1 %v1299_v61 }
  0x26   :  { %1179 = vmatprep.subr.bf16.mxu1 %v1279_v42 }
  0x27   :  { %1152 = vmatpush3.bf16.msra.mxu0 %v1278_v41 }
  0x28   :  { %1153 = vmatprep.subr.bf16.mxu0 %v1281_v44 }
  0x29   :  { %1180 = vmatpush3.bf16.msra.mxu1 %v1280_v43 }
  0x2a   :  { %1181 = vmatprep.subr.bf16.mxu1 %v1283_v46  ;;  %751 = vmatmul.mubr.bf16.gmra.mrb[4].mxu0 %v1297_v59 }
  0x2b   :  { %1154 = vmatpush3.bf16.msra.mxu0 %v1282_v45  ;;  %840 = vmatprep.mubr.bf16.mxu0 %v1312_v8 }
  0x2c   :  { %1155 = vmatprep.subr.bf16.mxu0 %v1285_v48  ;;  %800 = vmatmul.mubr.bf16.gmra.mrb[4].mxu1 %v1302_v63 }
  0x2d   :  { %1182 = vmatpush3.bf16.msra.mxu1 %v1284_v47  ;;  %889 = vmatprep.mubr.bf16.mxu1 %v1317_v12 }
  0x2e   :  { %1183 = vmatprep.subr.bf16.mxu1 %v1287_v50 }
  0x2f   :  { %1156 = vmatpush3.bf16.msra.mxu0 %v1286_v49 }
  0x30   :  { %1157 = vmatprep.subr.bf16.mxu0 %v1289_v52 }
  0x31   :  { %1184 = vmatpush3.bf16.msra.mxu1 %v1288_v51 }
  0x32   :  { %1185 = vmatprep.subr.bf16.mxu1 %v1291_v54 }
  0x33   :  { %1158 = vmatpush3.bf16.msra.mxu0 %v1290_v53 }
  0x34   :  { %1159 = vmatprep.subr.bf16.mxu0 %v1293_v56 }
  0x35   :  { %1186 = vmatpush3.bf16.msra.mxu1 %v1292_v55 }
  0x36   :  { %1187 = vmatprep.subr.bf16.mxu1 %v1298_v60 }
  0x37   :  { %1160 = vmatpush3.bf16.msra.mxu0 %v1296_v58 }
  0x38   :  { %1161 = vmatprep.subr.bf16.mxu0 %v1303_v0 }
  0x39   :  { %1188 = vmatpush3.bf16.msra.mxu1 %v1301_v62 }
  0x3a   :  { %1189 = vmatprep.subr.bf16.mxu1 %v1305_v2 }
  0x3b   :  { %1162 = vmatpush3.bf16.msra.mxu0 %v1304_v1 }
  0x3c   :  { %1163 = vmatprep.subr.bf16.mxu0 %v1307_v4 }
  0x3d   :  { %1190 = vmatpush3.bf16.msra.mxu1 %v1306_v3 }
  0x3e   :  { %1191 = vmatprep.subr.bf16.mxu1 %v1309_v6 }
  0x3f   :  { %1164 = vmatpush3.bf16.msra.mxu0 %v1308_v5 }
  0x40   :  { %1215 = vmatprep.subr.bf16.mxu0 %v1314_v10 }
  0x41   :  { %1192 = vmatpush3.bf16.msra.mxu1 %v1313_v9 }
  0x42   :  { %841 = vmatmul.mubr.bf16.vlgmr.msra.gmra.mrb[8].mxu0 %v1310_v7 }
  0x43   :  { %1216 = vmatpush3.bf16.msra.mxu0 %v1314_v10  ;;  %848 = vmatprep.mubr.bf16.mxu0 %v1319_v14 }
  0x44   :  { %890 = vmatmul.mubr.bf16.vlgmr.msra.gmra.mrb[8].mxu1 %v1315_v11  ;;  %1217 = vmatprep.subr.bf16.mxu0 %v1318_v13 }
  0x45   :  { %897 = vmatprep.mubr.bf16.mxu1 %v1323_v17 }
  0x47   :  { %1218 = vmatpush3.bf16.msra.mxu0 %v1318_v13 }
  0x48   :  { %1219 = vmatprep.subr.bf16.mxu0 %v1322_v16 }
  0x4a   :  { %849 = vmatmul.mubr.bf16.gmra.mrb[12].mxu0 %v1321_v15 }
  0x4b   :  { %1220 = vmatpush3.bf16.msra.mxu0 %v1322_v16  ;;  %1231 = vmatprep.mubr.bf16.mxu0 %v1331_v21 }
  0x4c   :  { %898 = vmatmul.mubr.bf16.gmra.mrb[12].mxu1 %v1325_v18  ;;  %1221 = vmatprep.subr.bf16.mxu0 %v1326_v19 }
  0x4f   :  { %1222 = vmatpush3.bf16.msra.mxu0 %v1326_v19 }
  0x50   :  { %1223 = vmatprep.subr.bf16.mxu0 %v1327_v20 }
  0x53   :  { %1224 = vmatpush3.bf16.msra.mxu0 %v1327_v20 }
  0x54   :  { %1225 = vmatprep.subr.bf16.mxu0 %v1328_v22 }
  0x57   :  { %1226 = vmatpush3.bf16.msra.mxu0 %v1328_v22 }
  0x58   :  { %1227 = vmatprep.subr.bf16.mxu0 %v1329_v23 }
  0x5b   :  { %1228 = vmatpush3.bf16.msra.mxu0 %v1329_v23 }
  0x5c   :  { %1229 = vmatprep.subr.bf16.mxu0 %v1330_v24 }
  0x5f   :  { %1230 = vmatpush3.bf16.msra.mxu0 %v1330_v24 }
  0x62   :  { %1232 = vmatmul.mubr.bf16.vlgmr.msra.gmra.mrb[16].mxu0 %v1332_v25 }
  0xf5   :  { %v1109_v26 = vpop.f32.mrb[0].mxu0 }
  0xf6   :  { %v1110_v28 = vpop.f32.mrb[1].mxu0 }
  0xf7   :  { %v1111_v29 = vadd.f32 %v1110_v28, %v1109_v26  ;;  %v1112_v30 = vpop.f32.mrb[2].mxu0  ;;  %v1137_v31 = vpop.f32.mrb[0].mxu1 }
  0xf8   :  { %v1113_v32 = vpop.f32.mrb[3].mxu0  ;;  %v1138_v35 = vpop.f32.mrb[1].mxu1 }
  0xf9   :  { %v745_v33 = vadd.f32 %v1111_v29, %v983_v27  ;;  %v1114_v34 = vadd.f32 %v1113_v32, %v1112_v30  ;;  %v1139_v36 = vadd.f32 %v1138_v35, %v1137_v31  ;;  %v1140_v37 = vpop.f32.mrb[2].mxu1 }
  0xfa   :  { %v1141_v39 = vpop.f32.mrb[3].mxu1 }
  0xfb   :  { %v748_v38 = vadd.f32 %v1114_v34, %v983_v27  ;;  %v794_v40 = vadd.f32 %v1139_v36, %v745_v33  ;;  %v1142_v41 = vadd.f32 %v1141_v39, %v1140_v37 }
  0xfd   :  { %v797_v42 = vadd.f32 %v1142_v41, %v748_v38  ;;  %v1115_v43 = vpop.f32.mrb[4].mxu0 }
  0xfe   :  { %v1116_v44 = vpop.f32.mrb[5].mxu0 }
  0xff   :  { %v1117_v45 = vadd.f32 %v1116_v44, %v1115_v43  ;;  %v1118_v46 = vpop.f32.mrb[6].mxu0  ;;  %v1143_v47 = vpop.f32.mrb[4].mxu1 }
 0x100   :  { %v1119_v48 = vpop.f32.mrb[7].mxu0  ;;  %v1144_v51 = vpop.f32.mrb[5].mxu1 }
 0x101   :  { %v753_v49 = vadd.f32 %v1117_v45, %v983_v27  ;;  %v1120_v50 = vadd.f32 %v1119_v48, %v1118_v46  ;;  %v1145_v52 = vadd.f32 %v1144_v51, %v1143_v47  ;;  %v1146_v53 = vpop.f32.mrb[6].mxu1 }
 0x102   :  { %v1147_v55 = vpop.f32.mrb[7].mxu1 }
 0x103   :  { %v756_v54 = vadd.f32 %v1120_v50, %v983_v27  ;;  %v802_v56 = vadd.f32 %v1145_v52, %v753_v49  ;;  %v1148_v57 = vadd.f32 %v1147_v55, %v1146_v53 }
 0x105   :  { %v805_v58 = vadd.f32 %v1148_v57, %v756_v54 }
 0x115   :  { %v1165_v59 = vpop.f32.mrb[8].mxu0 }
 0x116   :  { %v1166_v60 = vpop.f32.mrb[9].mxu0 }
 0x117   :  { %v1167_v61 = vadd.f32 %v1166_v60, %v1165_v59  ;;  %v1168_v62 = vpop.f32.mrb[10].mxu0  ;;  %v1193_v63 = vpop.f32.mrb[8].mxu1 }
 0x118   :  { %v1169_v0 = vpop.f32.mrb[11].mxu0  ;;  %v1194_v3 = vpop.f32.mrb[9].mxu1 }
 0x119   :  { %v843_v1 = vadd.f32 %v1167_v61, %v794_v40  ;;  %v1170_v2 = vadd.f32 %v1169_v0, %v1168_v62  ;;  %v1195_v4 = vadd.f32 %v1194_v3, %v1193_v63  ;;  %v1196_v5 = vpop.f32.mrb[10].mxu1 }
 0x11a   :  { %v1197_v7 = vpop.f32.mrb[11].mxu1 }
 0x11b   :  { %v846_v6 = vadd.f32 %v1170_v2, %v797_v42  ;;  %v1198_v8 = vadd.f32 %v1197_v7, %v1196_v5  ;;  %v892_v9 = vadd.f32 %v1195_v4, %v843_v1 }
 0x11d   :  { %v1171_v10 = vpop.f32.mrb[12].mxu0  ;;  %v895_v12 = vadd.f32 %v1198_v8, %v846_v6 }
 0x11e   :  { %v1172_v11 = vpop.f32.mrb[13].mxu0 }
 0x11f   :  { %v1173_v13 = vadd.f32 %v1172_v11, %v1171_v10  ;;  %v1174_v14 = vpop.f32.mrb[14].mxu0  ;;  %v1199_v15 = vpop.f32.mrb[12].mxu1 }
 0x120   :  { %v1175_v16 = vpop.f32.mrb[15].mxu0  ;;  %v1200_v19 = vpop.f32.mrb[13].mxu1 }
 0x121   :  { %v851_v17 = vadd.f32 %v1173_v13, %v802_v56  ;;  %v1176_v18 = vadd.f32 %v1175_v16, %v1174_v14  ;;  %v1201_v20 = vadd.f32 %v1200_v19, %v1199_v15  ;;  %v1202_v21 = vpop.f32.mrb[14].mxu1 }
 0x122   :  { %v1203_v23 = vpop.f32.mrb[15].mxu1 }
 0x123   :  { %v854_v22 = vadd.f32 %v1176_v18, %v805_v58  ;;  %v1204_v24 = vadd.f32 %v1203_v23, %v1202_v21  ;;  %v900_v25 = vadd.f32 %v1201_v20, %v851_v17 }
 0x125   :  { %v903_v26 = vadd.f32 %v1204_v24, %v854_v22 }
 0x135   :  { %v1233_v27 = vpop.f32.mrb[16].mxu0 }
 0x136   :  { %v949_v28 = vadd.f32 %v1233_v27, %v900_v25  ;;  %v940_v29 = vpop.f32.mrb[17].mxu0 }
 0x137   :  { %v941_v30 = vadd.f32 %v940_v29, %v892_v9  ;;  %v1234_v31 = vpop.f32.mrb[18].mxu0 }
 0x138   :  { %v952_v32 = vadd.f32 %v1234_v31, %v903_v26  ;;  %v943_v33 = vpop.f32.mrb[19].mxu0  ;;  %v957_v35 = vmax.f32 %v949_v28, 0.0 }
 0x139   :  { %v944_v34 = vadd.f32 %v943_v33, %v895_v12  ;;  %v955_v37 = vmax.f32 %v941_v30, 0.0 }
 0x13a   :  { %v958_v36 = vmax.f32 %v952_v32, 0.0 }
 0x13b   :  { %v956_v38 = vmax.f32 %v944_v34, 0.0 }
 0x13c   :  { %v1090_v39 = vpack.c.bf16 %v958_v36, %v957_v35 }
 0x13d   :  { %v1085_v40 = vpack.c.bf16 %v956_v38, %v955_v37 }
 0x13e   :  { %1092 = vst [vmem:[%s1635_s3 + $0x8] sm:$0xff] %v1090_v39  }
 0x13f   :  { %1086 = vst [vmem:[%s1635_s3] sm:$0xff] %v1085_v40  }

// kernel: forward.11
= control target key start
LH: loop header
LB: loop body
LE: loop exit
PB: predicated region body
PF: predicated region fallthrough
CT: control target
= control target key end

     0   :  { %s8126_s17 = smov 0   ;;  %s9969_s0 = inlined_call_operand.vmem [shape: bf16[2,4,4,128], index: 0, kind: input, shape index: {}]   ;;  %s9970_s1 = inlined_call_operand.vmem [shape: bf16[1152,128], index: 1, kind: input, shape index: {}]   ;;  %s9971_s2 = inlined_call_operand.vmem [shape: f32[1,128], index: 2, kind: input, shape index: {}]   ;;  %s9972_s3 = inlined_call_operand.vmem [shape: bf16[1152,128], index: 3, kind: input, shape index: {}]   ;;  %s9973_s4 = inlined_call_operand.vmem [shape: f32[1,128], index: 4, kind: input, shape index: {}]   ;;  %s9974_s5 = inlined_call_operand.vmem [shape: bf16[2048,256], index: 5, kind: input, shape index: {}]   ;;  %s9975_s6 = inlined_call_operand.vmem [shape: f32[1,256], index: 6, kind: input, shape index: {}]   ;;  %s9976_s7 = inlined_call_operand.vmem [shape: bf16[256,512], index: 7, kind: input, shape index: {}]   ;;  %s9977_s8 = inlined_call_operand.vmem [shape: f32[1,512], index: 8, kind: input, shape index: {}]   ;;  %s9978_s9 = inlined_call_operand.vmem [shape: bf16[512,128], index: 9, kind: input, shape index: {}]   ;;  %s9979_s10 = inlined_call_operand.vmem [shape: f32[1,128], index: 10, kind: input, shape index: {}]   ;;  %s9980_s11 = inlined_call_operand.vmem [shape: f32[128,128], index: 11, kind: output, shape index: {}]  }
   0x1 LB: > { %s8132_s18 = sadd.s32 4294967295, %s8061_s17   ;;  %p6137_p0 = scmp.ge.s32.totalorder %s8061_s17, 1  ;;  %s8061_s17 = sphi %s8126_s17, %s21_s17  }
   0x2   : > { %p337_p1 = scmp.lt.s32.totalorder %s8061_s17, 3 }
   0x4   : > { %p338_p2 = pnand %p6137_p0, %p337_p1 }
   0x5   : > { %v7313_v0 = vld [vmem:[%s9970_s1 + $0x40] sm:$0xff] (!%p338_p2)   ;;  %v8063_v1 = vmov (!%p338_p2), 0.0   ;;  %v7315_v3 = vld [vmem:[%s9970_s1 + $0x48] sm:$0xff] (!%p338_p2)   ;;  %vm8064_vm0 = vmmov (!%p338_p2), 0   ;;  %p377_p3 = scmp.lt.s32.totalorder (!%p338_p2), %s8132_s18, 1  ;;  %v7317_v5 = vld [vmem:[%s9970_s1 + $0x50] sm:$0xff] (!%p338_p2)  }
   0x6   : > { %341 = sbr.rel (%p338_p2) target bundleno = 1680 (0x690), region = 64  ;;  %6894 = vmatprep.subr.bf16.mxu0 (!%p338_p2), %v8063_v1  ;;  %389 = vst [vmem:[#allocation2] sm:$0x3f] (!%p338_p2), %v8063_v1  ;;  %390 = vst [vmem:[#allocation2 + $0x8] sm:$0x3f] (!%p338_p2), %v8063_v1  ;;  %6914 = vmatprep.subr.bf16.mxu1 (!%p338_p2), %v8063_v1  ;;  %v7314_v2 = vld [vmem:[%s9970_s1] sm:$0xff] (!%p338_p2)  }
   0x7   : > { %391 = vst [vmem:[#allocation2 + $0x10] sm:$0x3f] (!%p338_p2), %v8063_v1  ;;  %392 = vst [vmem:[#allocation2 + $0x18] sm:$0x3f] (!%p338_p2), %v8063_v1  ;;  %6895 = vmatpush3.bf16.msra.mxu0 (!%p338_p2), %v7313_v0  ;;  %6910 = vmatprep.mubr.msk.bf16.mxu0 (!%p338_p2), %vm8064_vm0, %v8063_v1  ;;  %v7316_v4 = vld [vmem:[%s9970_s1 + $0x8] sm:$0xff] (!%p338_p2)   ;;  %v7318_v6 = vld [vmem:[%s9970_s1 + $0x10] sm:$0xff] (!%p338_p2)  }
   0x8   : > { %393 = vst [vmem:[#allocation2 + $0x20] sm:$0x3f] (!%p338_p2), %v8063_v1  ;;  %394 = vst [vmem:[#allocation2 + $0x28] sm:$0x3f] (!%p338_p2), %v8063_v1  ;;  %6915 = vmatpush3.bf16.msra.mxu1 (!%p338_p2), %v7314_v2  ;;  %6896 = vmatprep.subr.bf16.mxu0 (!%p338_p2), %v8063_v1  ;;  %v7319_v7 = vld [vmem:[%s9970_s1 + $0x58] sm:$0xff] (!%p338_p2)   ;;  %v7321_v9 = vld [vmem:[%s9970_s1 + $0x60] sm:$0xff] (!%p338_p2)  }
   0x9   : > { %6916 = vmatprep.subr.bf16.mxu1 (!%p338_p2), %v8063_v1  ;;  %6930 = vmatprep.mubr.msk.bf16.mxu1 (!%p338_p2), %vm8064_vm0, %v8063_v1  ;;  %v7320_v8 = vld [vmem:[%s9970_s1 + $0x18] sm:$0xff] (!%p338_p2)   ;;  %v7322_v10 = vld [vmem:[%s9970_s1 + $0x20] sm:$0xff] (!%p338_p2)   ;;  %v7323_v14 = vld [vmem:[%s9970_s1 + $0x68] sm:$0xff] (!%p338_p2)   ;;  %s6140_s23 = sshll.u32 (!%p338_p2), %s8132_s18, 3 }
   0xa   : > { %v7324_v15 = vld [vmem:[%s9970_s1 + $0x28] sm:$0xff] (!%p338_p2)   ;;  %v7325_v16 = vld [vmem:[%s9970_s1 + $0x70] sm:$0xff] (!%p338_p2)   ;;  %v7327_v18 = vld [vmem:[%s9970_s1 + $0x78] sm:$0xff] (!%p338_p2)   ;;  %p383_p4 = scmp.lt.s32.totalorder (!%p338_p2), %s6140_s23, 15 }
   0xb   : > { %6897 = vmatpush3.bf16.msra.mxu0 (!%p338_p2), %v7315_v3  ;;  %v7326_v17 = vld [vmem:[%s9970_s1 + $0x30] sm:$0xff] (!%p338_p2)   ;;  %v7328_v19 = vld [vmem:[%s9970_s1 + $0x38] sm:$0xff] (!%p338_p2)   ;;  %v7333_v25 = vld [vmem:[%s9970_s1 + $0x80] sm:$0xff] (!%p338_p2)  }
   0xc   : > { %6917 = vmatpush3.bf16.msra.mxu1 (!%p338_p2), %v7316_v4  ;;  %6898 = vmatprep.subr.bf16.mxu0 (!%p338_p2), %v8063_v1  ;;  %v7334_v27 = vld [vmem:[%s9970_s1 + $0xc0] sm:$0xff] (!%p338_p2)   ;;  %v7335_v28 = vld [vmem:[%s9970_s1 + $0x88] sm:$0xff] (!%p338_p2)   ;;  %v7337_v30 = vld [vmem:[%s9970_s1 + $0x90] sm:$0xff] (!%p338_p2)  }
   0xd   : > { %s378_s29 = scalar_select %p377_p3, %s8132_s18, 1  ;;  %6918 = vmatprep.subr.bf16.mxu1 %v8063_v1  ;;  %v7336_v29 = vld [vmem:[%s9970_s1 + $0xc8] sm:$0xff]   ;;  %v7338_v31 = vld [vmem:[%s9970_s1 + $0xd0] sm:$0xff]   ;;  %v7339_v32 = vld [vmem:[%s9970_s1 + $0x98] sm:$0xff]  }
   0xe   : > { %v7340_v33 = vld [vmem:[%s9970_s1 + $0xd8] sm:$0xff]   ;;  %v7341_v34 = vld [vmem:[%s9970_s1 + $0xa0] sm:$0xff]   ;;  %v7343_v36 = vld [vmem:[%s9970_s1 + $0xa8] sm:$0xff]   ;;  %s9982_s23 = smov (!%p383_p4, %s6140_s23), 15 }
   0xf   : > { %6899 = vmatpush3.bf16.msra.mxu0 %v7317_v5  ;;  %s6651_s15 = sshll.u32 %s378_s29, 3  ;;  %v7342_v35 = vld [vmem:[%s9970_s1 + $0xe0] sm:$0xff]   ;;  %v7344_v37 = vld [vmem:[%s9970_s1 + $0xe8] sm:$0xff]   ;;  %v7345_v38 = vld [vmem:[%s9970_s1 + $0xb0] sm:$0xff]   ;;  %s6141_s24 = sshll.u32 %s9982_s23, 3 }
  0x10   : > { %6919 = vmatpush3.bf16.msra.mxu1 %v7318_v6  ;;  %6900 = vmatprep.subr.bf16.mxu0 %v8063_v1  ;;  %s381_s22 = scalar_lea.vmem %s9969_s0, %s6651_s15  ;;  %v7346_v39 = vld [vmem:[%s9970_s1 + $0xf0] sm:$0xff]   ;;  %v7347_v41 = vld [vmem:[%s9970_s1 + $0xb8] sm:$0xff]   ;;  %v7351_v47 = vld [vmem:[%s9970_s1 + $0x100] sm:$0xff]   ;;  %s9952_s27 = scalar_lea.vmem %s9980_s11, %s6141_s24 }
  0x11   : > { %6920 = vmatprep.subr.bf16.mxu1 %v8063_v1  ;;  %v395_v11 = vld [vmem:[%s381_s22] sm:$0xff]   ;;  %v7348_v45 = vld [vmem:[%s9970_s1 + $0xf8] sm:$0xff]   ;;  %v7355_v50 = vld [vmem:[%s9970_s1 + $0x108] sm:$0xff]  }
  0x12   : > { %v399_v12 = vunpack.c.l.bf16 %v395_v11  ;;  %v401_v13 = vunpack.c.h.bf16 %v395_v11  ;;  %v7354_v49 = vld [vmem:[%s9970_s1 + $0x140] sm:$0xff]   ;;  %v7356_v51 = vld [vmem:[%s9970_s1 + $0x148] sm:$0xff]   ;;  %v7357_v52 = vld [vmem:[%s9970_s1 + $0x110] sm:$0xff]  }
  0x13   : > { %6901 = vmatpush3.bf16.msra.mxu0 %v7319_v7  ;;  %v7358_v53 = vld [vmem:[%s9970_s1 + $0x150] sm:$0xff]   ;;  %v7359_v54 = vld [vmem:[%s9970_s1 + $0x118] sm:$0xff]   ;;  %v7361_v56 = vld [vmem:[%s9970_s1 + $0x120] sm:$0xff]  }
  0x14   : > { %6921 = vmatpush3.bf16.msra.mxu1 %v7320_v8  ;;  %6902 = vmatprep.subr.bf16.mxu0 %v8063_v1  ;;  %404 = vst [vmem:[#allocation2 + $0x9] ss:$8 sps:$4 sm:$0xff] %v399_v12   ;;  %406 = vst [vmem:[#allocation2 + $0x19] ss:$8 sps:$4 sm:$0xff] %v401_v13   ;;  %v7360_v55 = vld [vmem:[%s9970_s1 + $0x158] sm:$0xff]   ;;  %v7362_v57 = vld [vmem:[%s9970_s1 + $0x160] sm:$0xff]  }
  0x15   : > { %6922 = vmatprep.subr.bf16.mxu1 %v8063_v1  ;;  %v7363_v58 = vld [vmem:[%s9970_s1 + $0x128] sm:$0xff]   ;;  %v7365_v60 = vld [vmem:[%s9970_s1 + $0x130] sm:$0xff]   ;;  %v7367_v63 = vld [vmem:[%s9970_s1 + $0x138] sm:$0xff]  }
  0x16   : > { %v7364_v59 = vld [vmem:[%s9970_s1 + $0x168] sm:$0xff]   ;;  %v7366_v61 = vld [vmem:[%s9970_s1 + $0x170] sm:$0xff]   ;;  %v7368_v2 = vld [vmem:[%s9970_s1 + $0x178] sm:$0xff]  }
  0x17   : > { %6903 = vmatpush3.bf16.msra.mxu0 %v7321_v9  ;;  %v7371_v5 = vld [vmem:[%s9970_s1 + $0x180] sm:$0xff]   ;;  %v7375_v9 = vld [vmem:[%s9970_s1 + $0x188] sm:$0xff]   ;;  %v7377_v11 = vld [vmem:[%s9970_s1 + $0x190] sm:$0xff]  }
  0x18   : > { %6923 = vmatpush3.bf16.msra.mxu1 %v7322_v10  ;;  %6904 = vmatprep.subr.bf16.mxu0 %v8063_v1  ;;  %v7374_v7 = vld [vmem:[%s9970_s1 + $0x1c0] sm:$0xff]   ;;  %v7376_v10 = vld [vmem:[%s9970_s1 + $0x1c8] sm:$0xff]   ;;  %v7378_v12 = vld [vmem:[%s9970_s1 + $0x1d0] sm:$0xff]  }
  0x19   : > { %6924 = vmatprep.subr.bf16.mxu1 %v8063_v1  ;;  %v7379_v13 = vld [vmem:[%s9970_s1 + $0x198] sm:$0xff]  }
  0x1b   : > { %6905 = vmatpush3.bf16.msra.mxu0 %v7323_v14  ;;  %v7329_v20 = vld [vmem:[#allocation2 + $0x1] ss:$8 sps:$4 sm:$0xff]   ;;  %v7330_v21 = vld [vmem:[#allocation2 + $0x11] ss:$8 sps:$4 sm:$0xff]  }
  0x1c   : > { %6925 = vmatpush3.bf16.msra.mxu1 %v7324_v15  ;;  %6906 = vmatprep.subr.bf16.mxu0 %v8063_v1  ;;  %v7331_v22 = vld [vmem:[#allocation2] ss:$8 sps:$4 sm:$0xff]   ;;  %v449_v23 = vpack.c.bf16 %v7330_v21, %v7329_v20  ;;  %v7332_v24 = vld [vmem:[#allocation2 + $0x10] ss:$8 sps:$4 sm:$0xff]  }
  0x1d   : > { %6926 = vmatprep.subr.bf16.mxu1 %v8063_v1  ;;  %v420_v26 = vpack.c.bf16 %v7332_v24, %v7331_v22  ;;  %v7349_v40 = vld [vmem:[#allocation2 + $0x2] ss:$8 sps:$4 sm:$0xff]   ;;  %v7350_v42 = vld [vmem:[#allocation2 + $0x12] ss:$8 sps:$4 sm:$0xff]  }
  0x1e   : > { %v7352_v43 = vld [vmem:[#allocation2 + $0x8] ss:$8 sps:$4 sm:$0xff]   ;;  %v7353_v44 = vld [vmem:[#allocation2 + $0x18] ss:$8 sps:$4 sm:$0xff]   ;;  %v656_v46 = vpack.c.bf16 %v7350_v42, %v7349_v40 }
  0x1f   : > { %6907 = vmatpush3.bf16.msra.mxu0 %v7325_v16  ;;  %v776_v48 = vpack.c.bf16 %v7353_v44, %v7352_v43  ;;  %v7369_v62 = vld [vmem:[#allocation2 + $0x9] ss:$8 sps:$4 sm:$0xff]   ;;  %v7370_v0 = vld [vmem:[#allocation2 + $0x19] ss:$8 sps:$4 sm:$0xff]  }
  0x20   : > { %6927 = vmatpush3.bf16.msra.mxu1 %v7326_v17  ;;  %6908 = vmatprep.subr.bf16.mxu0 %v8063_v1  ;;  %v7372_v3 = vld [vmem:[#allocation2 + $0xa] ss:$8 sps:$4 sm:$0xff]   ;;  %v7373_v4 = vld [vmem:[#allocation2 + $0x1a] ss:$8 sps:$4 sm:$0xff]   ;;  %v896_v6 = vpack.c.bf16 %v7370_v0, %v7369_v62 }
  0x21   : > { %6928 = vmatprep.subr.bf16.mxu1 %v8063_v1  ;;  %v1016_v8 = vpack.c.bf16 %v7373_v4, %v7372_v3  ;;  %v7380_v14 = vld [vmem:[%s9970_s1 + $0x1d8] sm:$0xff]   ;;  %v7381_v15 = vld [vmem:[%s9970_s1 + $0x1a0] sm:$0xff]   ;;  %v7383_v17 = vld [vmem:[%s9970_s1 + $0x1a8] sm:$0xff]  }
  0x22   : > { %v7382_v16 = vld [vmem:[%s9970_s1 + $0x1e0] sm:$0xff]   ;;  %v7386_v20 = vld [vmem:[%s9970_s1 + $0x1f0] sm:$0xff]   ;;  %v7405_v42 = vld [vmem:[%s9972_s3 + $0x48] sm:$0xff]  }
  0x23   : > { %6909 = vmatpush3.bf16.msra.mxu0 %v7327_v18  ;;  %v7384_v18 = vld [vmem:[%s9970_s1 + $0x1e8] sm:$0xff]   ;;  %v7389_v21 = vld [vmem:[#allocation2 + $0x10] ss:$8 sps:$4 sm:$0xff]   ;;  %v7403_v40 = vld [vmem:[%s9972_s3 + $0x40] sm:$0xff]  }
  0x24   : > { %6929 = vmatpush3.bf16.msra.mxu1 %v7328_v19  ;;  %6934 = vmatprep.subr.bf16.mxu0 %v8063_v1  ;;  %v7385_v19 = vld [vmem:[%s9970_s1 + $0x1b0] sm:$0xff]   ;;  %v7390_v22 = vld [vmem:[#allocation2 + $0x20] ss:$8 sps:$4 sm:$0xff]   ;;  %v7417_v0 = vld [vmem:[%s9972_s3 + $0x78] sm:$0xff]  }
  0x25   : > { %6954 = vmatprep.subr.bf16.mxu1 %v8063_v1  ;;  %v7392_v24 = vld [vmem:[#allocation2 + $0x11] ss:$8 sps:$4 sm:$0xff]   ;;  %v7406_v43 = vld [vmem:[%s9972_s3 + $0x8] sm:$0xff]  }
  0x26   : > { %6911 = vmatmul.mubr.bf16.vlgmr.msra.gmra.mrb[0].mxu0 %v449_v23  ;;  %v7387_v23 = vld [vmem:[%s9970_s1 + $0x1b8] sm:$0xff]   ;;  %v7407_v44 = vld [vmem:[%s9972_s3 + $0x50] sm:$0xff]  }
  0x27   : > { %6931 = vmatmul.mubr.bf16.vlgmr.msra.gmra.mrb[0].mxu1 %v420_v26  ;;  %6935 = vmatpush3.bf16.msra.mxu0 %v7333_v25  ;;  %v7393_v25 = vld [vmem:[#allocation2 + $0x21] ss:$8 sps:$4 sm:$0xff]   ;;  %v7388_v26 = vld [vmem:[%s9970_s1 + $0x1f8] sm:$0xff]   ;;  %v7415_v62 = vld [vmem:[%s9972_s3 + $0x70] sm:$0xff]  }
  0x28   : > { %6955 = vmatpush3.bf16.msra.mxu1 %v7334_v27  ;;  %6936 = vmatprep.subr.bf16.mxu0 %v8063_v1  ;;  %v7391_v27 = vld [vmem:[%s9970_s1 + $0x200] sm:$0xff]  }
  0x29   : > { %6956 = vmatprep.subr.bf16.mxu1 %v8063_v1  ;;  %6950 = vmatprep.mubr.msk.bf16.mxu0 %vm8064_vm0, %v8063_v1 }
  0x2a   : > { %6970 = vmatprep.mubr.msk.bf16.mxu1 %vm8064_vm0, %v8063_v1 }
  0x2b   : > { %6937 = vmatpush3.bf16.msra.mxu0 %v7335_v28  ;;  %v1137_v28 = vpack.c.bf16 %v7390_v22, %v7389_v21 }
  0x2c   : > { %6957 = vmatpush3.bf16.msra.mxu1 %v7336_v29  ;;  %6938 = vmatprep.subr.bf16.mxu0 %v8063_v1  ;;  %v1257_v29 = vpack.c.bf16 %v7393_v25, %v7392_v24 }
  0x2d   : > { %6958 = vmatprep.subr.bf16.mxu1 %v8063_v1 }
  0x2f   : > { %6939 = vmatpush3.bf16.msra.mxu0 %v7337_v30  ;;  %v7394_v30 = vld [vmem:[%s9970_s1 + $0x208] sm:$0xff]  }
  0x30   : > { %6959 = vmatpush3.bf16.msra.mxu1 %v7338_v31  ;;  %6940 = vmatprep.subr.bf16.mxu0 %v8063_v1  ;;  %v7395_v31 = vld [vmem:[%s9970_s1 + $0x210] sm:$0xff]  }
  0x31   : > { %6960 = vmatprep.subr.bf16.mxu1 %v8063_v1 }
  0x33   : > { %6941 = vmatpush3.bf16.msra.mxu0 %v7339_v32  ;;  %v7396_v32 = vld [vmem:[%s9970_s1 + $0x218] sm:$0xff]  }
  0x34   : > { %6961 = vmatpush3.bf16.msra.mxu1 %v7340_v33  ;;  %6942 = vmatprep.subr.bf16.mxu0 %v8063_v1  ;;  %v7397_v33 = vld [vmem:[%s9970_s1 + $0x220] sm:$0xff]  }
  0x35   : > { %6962 = vmatprep.subr.bf16.mxu1 %v8063_v1 }
  0x37   : > { %6943 = vmatpush3.bf16.msra.mxu0 %v7341_v34  ;;  %v7398_v34 = vld [vmem:[%s9970_s1 + $0x228] sm:$0xff]  }
  0x38   : > { %6963 = vmatpush3.bf16.msra.mxu1 %v7342_v35  ;;  %6944 = vmatprep.subr.bf16.mxu0 %v8063_v1  ;;  %v7399_v35 = vld [vmem:[%s9970_s1 + $0x230] sm:$0xff]  }
  0x39   : > { %6964 = vmatprep.subr.bf16.mxu1 %v8063_v1 }
  0x3b   : > { %6945 = vmatpush3.bf16.msra.mxu0 %v7343_v36  ;;  %v7401_v36 = vld [vmem:[#allocation2 + $0x12] ss:$8 sps:$4 sm:$0xff]  }
  0x3c   : > { %6965 = vmatpush3.bf16.msra.mxu1 %v7344_v37  ;;  %6946 = vmatprep.subr.bf16.mxu0 %v8063_v1  ;;  %v7402_v37 = vld [vmem:[#allocation2 + $0x22] ss:$8 sps:$4 sm:$0xff]  }
  0x3d   : > { %6966 = vmatprep.subr.bf16.mxu1 %v8063_v1 }
  0x3f   : > { %6947 = vmatpush3.bf16.msra.mxu0 %v7345_v38  ;;  %v7400_v38 = vld [vmem:[%s9970_s1 + $0x238] sm:$0xff]  }
  0x40   : > { %6967 = vmatpush3.bf16.msra.mxu1 %v7346_v39  ;;  %6948 = vmatprep.subr.bf16.mxu0 %v8063_v1  ;;  %v1377_v39 = vpack.c.bf16 %v7402_v37, %v7401_v36 }
  0x41   : > { %6968 = vmatprep.subr.bf16.mxu1 %v8063_v1 }
  0x43   : > { %6949 = vmatpush3.bf16.msra.mxu0 %v7347_v41  ;;  %v7404_v41 = vld [vmem:[%s9972_s3] sm:$0xff]  }
  0x44   : > { %6969 = vmatpush3.bf16.msra.mxu1 %v7348_v45  ;;  %6974 = vmatprep.subr.bf16.mxu0 %v8063_v1  ;;  %v7408_v45 = vld [vmem:[%s9972_s3 + $0x10] sm:$0xff]  }
  0x45   : > { %6994 = vmatprep.subr.bf16.mxu1 %v8063_v1 }
  0x46   : > { %6951 = vmatmul.mubr.bf16.vlgmr.msra.gmra.mrb[4].mxu0 %v656_v46  ;;  %v7409_v46 = vld [vmem:[%s9972_s3 + $0x58] sm:$0xff]  }
  0x47   : > { %6975 = vmatpush3.bf16.msra.mxu0 %v7351_v47  ;;  %6971 = vmatmul.mubr.bf16.vlgmr.msra.gmra.mrb[4].mxu1 %v776_v48  ;;  %v7410_v47 = vld [vmem:[%s9972_s3 + $0x18] sm:$0xff]  }
  0x48   : > { %6995 = vmatpush3.bf16.msra.mxu1 %v7354_v49  ;;  %6976 = vmatprep.subr.bf16.mxu0 %v8063_v1 }
  0x49   : > { %6996 = vmatprep.subr.bf16.mxu1 %v8063_v1  ;;  %6990 = vmatprep.mubr.msk.bf16.mxu0 %vm8064_vm0, %v8063_v1 }
  0x4a   : > { %7010 = vmatprep.mubr.msk.bf16.mxu1 %vm8064_vm0, %v8063_v1 }
  0x4b   : > { %6977 = vmatpush3.bf16.msra.mxu0 %v7355_v50 }
  0x4c   : > { %6997 = vmatpush3.bf16.msra.mxu1 %v7356_v51  ;;  %6978 = vmatprep.subr.bf16.mxu0 %v8063_v1 }
  0x4d   : > { %6998 = vmatprep.subr.bf16.mxu1 %v8063_v1 }
  0x4f   : > { %6979 = vmatpush3.bf16.msra.mxu0 %v7357_v52 }
  0x50   : > { %6999 = vmatpush3.bf16.msra.mxu1 %v7358_v53  ;;  %6980 = vmatprep.subr.bf16.mxu0 %v8063_v1 }
  0x51   : > { %7000 = vmatprep.subr.bf16.mxu1 %v8063_v1 }
  0x53   : > { %6981 = vmatpush3.bf16.msra.mxu0 %v7359_v54 }
  0x54   : > { %7001 = vmatpush3.bf16.msra.mxu1 %v7360_v55  ;;  %6982 = vmatprep.subr.bf16.mxu0 %v8063_v1 }
  0x55   : > { %7002 = vmatprep.subr.bf16.mxu1 %v8063_v1 }
  0x57   : > { %6983 = vmatpush3.bf16.msra.mxu0 %v7361_v56  ;;  %v7411_v56 = vld [vmem:[%s9972_s3 + $0x60] sm:$0xff]  }
  0x58   : > { %7003 = vmatpush3.bf16.msra.mxu1 %v7362_v57  ;;  %6984 = vmatprep.subr.bf16.mxu0 %v8063_v1  ;;  %v7412_v57 = vld [vmem:[%s9972_s3 + $0x20] sm:$0xff]  }
  0x59   : > { %7004 = vmatprep.subr.bf16.mxu1 %v8063_v1 }
  0x5b   : > { %6985 = vmatpush3.bf16.msra.mxu0 %v7363_v58 }
  0x5c   : > { %7005 = vmatpush3.bf16.msra.mxu1 %v7364_v59  ;;  %6986 = vmatprep.subr.bf16.mxu0 %v8063_v1 }
  0x5d   : > { %7006 = vmatprep.subr.bf16.mxu1 %v8063_v1 }
  0x5f   : > { %6987 = vmatpush3.bf16.msra.mxu0 %v7365_v60  ;;  %v7413_v60 = vld [vmem:[%s9972_s3 + $0x68] sm:$0xff]  }
  0x60   : > { %7007 = vmatpush3.bf16.msra.mxu1 %v7366_v61  ;;  %6988 = vmatprep.subr.bf16.mxu0 %v8063_v1  ;;  %v7414_v61 = vld [vmem:[%s9972_s3 + $0x28] sm:$0xff]  }
  0x61   : > { %7008 = vmatprep.subr.bf16.mxu1 %v8063_v1 }
  0x63   : > { %6989 = vmatpush3.bf16.msra.mxu0 %v7367_v63  ;;  %v7416_v63 = vld [vmem:[%s9972_s3 + $0x30] sm:$0xff]  }
  0x64   : > { %7009 = vmatpush3.bf16.msra.mxu1 %v7368_v2  ;;  %7014 = vmatprep.subr.bf16.mxu0 %v8063_v1  ;;  %v7418_v2 = vld [vmem:[%s9972_s3 + $0x38] sm:$0xff]  }
  0x65   : > { %7034 = vmatprep.subr.bf16.mxu1 %v8063_v1 }
  0x66   : > { %6991 = vmatmul.mubr.bf16.vlgmr.msra.gmra.mrb[8].mxu0 %v896_v6 }
  0x67   : > { %7015 = vmatpush3.bf16.msra.mxu0 %v7371_v5  ;;  %7011 = vmatmul.mubr.bf16.vlgmr.msra.gmra.mrb[8].mxu1 %v1016_v8 }
  0x68   : > { %7035 = vmatpush3.bf16.msra.mxu1 %v7374_v7  ;;  %7016 = vmatprep.subr.bf16.mxu0 %v8063_v1 }
  0x69   : > { %7036 = vmatprep.subr.bf16.mxu1 %v8063_v1  ;;  %7030 = vmatprep.mubr.msk.bf16.mxu0 %vm8064_vm0, %v8063_v1 }
  0x6a   : > { %7050 = vmatprep.mubr.msk.bf16.mxu1 %vm8064_vm0, %v8063_v1 }
  0x6b   : > { %7017 = vmatpush3.bf16.msra.mxu0 %v7375_v9 }
  0x6c   : > { %7037 = vmatpush3.bf16.msra.mxu1 %v7376_v10  ;;  %7018 = vmatprep.subr.bf16.mxu0 %v8063_v1 }
  0x6d   : > { %7038 = vmatprep.subr.bf16.mxu1 %v8063_v1 }
  0x6f   : > { %7019 = vmatpush3.bf16.msra.mxu0 %v7377_v11 }
  0x70   : > { %7039 = vmatpush3.bf16.msra.mxu1 %v7378_v12  ;;  %7020 = vmatprep.subr.bf16.mxu0 %v8063_v1 }
  0x71   : > { %7040 = vmatprep.subr.bf16.mxu1 %v8063_v1 }
  0x73   : > { %7021 = vmatpush3.bf16.msra.mxu0 %v7379_v13 }
  0x74   : > { %7041 = vmatpush3.bf16.msra.mxu1 %v7380_v14  ;;  %7022 = vmatprep.subr.bf16.mxu0 %v8063_v1 }
  0x75   : > { %7042 = vmatprep.subr.bf16.mxu1 %v8063_v1 }
  0x77   : > { %7023 = vmatpush3.bf16.msra.mxu0 %v7381_v15 }
  0x78   : > { %7043 = vmatpush3.bf16.msra.mxu1 %v7382_v16  ;;  %7024 = vmatprep.subr.bf16.mxu0 %v8063_v1 }
  0x79   : > { %7044 = vmatprep.subr.bf16.mxu1 %v8063_v1 }
  0x7b   : > { %7025 = vmatpush3.bf16.msra.mxu0 %v7383_v17 }
  0x7c   : > { %7045 = vmatpush3.bf16.msra.mxu1 %v7384_v18  ;;  %7026 = vmatprep.subr.bf16.mxu0 %v8063_v1 }
  0x7d   : > { %7046 = vmatprep.subr.bf16.mxu1 %v8063_v1 }
  0x7f   : > { %7027 = vmatpush3.bf16.msra.mxu0 %v7385_v19 }
  0x80   : > { %7047 = vmatpush3.bf16.msra.mxu1 %v7386_v20  ;;  %7028 = vmatprep.subr.bf16.mxu0 %v8063_v1 }
  0x81   : > { %7048 = vmatprep.subr.bf16.mxu1 %v8063_v1 }
  0x83   : > { %7029 = vmatpush3.bf16.msra.mxu0 %v7387_v23 }
  0x84   : > { %7049 = vmatpush3.bf16.msra.mxu1 %v7388_v26  ;;  %7054 = vmatprep.subr.bf16.mxu0 %v8063_v1 }
  0x85   : > { %7074 = vmatprep.subr.bf16.mxu1 %v8063_v1 }
  0x86   : > { %7031 = vmatmul.mubr.bf16.vlgmr.msra.gmra.mrb[12].mxu0 %v1137_v28 }
  0x87   : > { %7055 = vmatpush3.bf16.msra.mxu0 %v7391_v27  ;;  %7051 = vmatmul.mubr.bf16.vlgmr.msra.gmra.mrb[12].mxu1 %v1257_v29 }
  0x88   : > { %7056 = vmatprep.subr.bf16.mxu0 %v8063_v1  ;;  %7070 = vmatprep.mubr.msk.bf16.mxu0 %vm8064_vm0, %v8063_v1 }
  0x89   : > { %7090 = vmatprep.mubr.msk.bf16.mxu1 %vm8064_vm0, %v8063_v1  ;;  %7075 = vmatpush3.bf16.msra.mxu1 %v7403_v40  ;;  %v6214_v40 = vld [vmem:[%s9971_s2] ss:$0 sm:$0xff] }
  0x8a   : > { %7076 = vmatprep.subr.bf16.mxu1 %v8063_v1 }
  0x8b   : > { %7057 = vmatpush3.bf16.msra.mxu0 %v7394_v30 }
  0x8c   : > { %7058 = vmatprep.subr.bf16.mxu0 %v8063_v1 }
  0x8d   : > { %7077 = vmatpush3.bf16.msra.mxu1 %v7405_v42 }
  0x8e   : > { %7078 = vmatprep.subr.bf16.mxu1 %v8063_v1 }
  0x8f   : > { %7059 = vmatpush3.bf16.msra.mxu0 %v7395_v31 }
  0x90   : > { %7060 = vmatprep.subr.bf16.mxu0 %v8063_v1 }
  0x91   : > { %7079 = vmatpush3.bf16.msra.mxu1 %v7407_v44 }
  0x92   : > { %7080 = vmatprep.subr.bf16.mxu1 %v8063_v1 }
  0x93   : > { %7061 = vmatpush3.bf16.msra.mxu0 %v7396_v32 }
  0x94   : > { %7062 = vmatprep.subr.bf16.mxu0 %v8063_v1 }
  0x95   : > { %7081 = vmatpush3.bf16.msra.mxu1 %v7409_v46 }
  0x96   : > { %7082 = vmatprep.subr.bf16.mxu1 %v8063_v1 }
  0x97   : > { %7063 = vmatpush3.bf16.msra.mxu0 %v7397_v33 }
  0x98   : > { %7064 = vmatprep.subr.bf16.mxu0 %v8063_v1 }
  0x99   : > { %7083 = vmatpush3.bf16.msra.mxu1 %v7411_v56 }
  0x9a   : > { %7084 = vmatprep.subr.bf16.mxu1 %v8063_v1 }
  0x9b   : > { %7065 = vmatpush3.bf16.msra.mxu0 %v7398_v34 }
  0x9c   : > { %7066 = vmatprep.subr.bf16.mxu0 %v8063_v1 }
  0x9d   : > { %7085 = vmatpush3.bf16.msra.mxu1 %v7413_v60  ;;  %v7425_v60 = vld [vmem:[%s9972_s3 + $0x88] sm:$0xff]  }
  0x9e   : > { %7086 = vmatprep.subr.bf16.mxu1 %v8063_v1 }
  0x9f   : > { %7067 = vmatpush3.bf16.msra.mxu0 %v7399_v35 }
  0xa0   : > { %7068 = vmatprep.subr.bf16.mxu0 %v8063_v1 }
  0xa1   : > { %7087 = vmatpush3.bf16.msra.mxu1 %v7415_v62  ;;  %v7427_v62 = vld [vmem:[%s9972_s3 + $0x90] sm:$0xff]  }
  0xa2   : > { %7088 = vmatprep.subr.bf16.mxu1 %v8063_v1 }
  0xa3   : > { %7069 = vmatpush3.bf16.msra.mxu0 %v7400_v38 }
  0xa4   : > { %7094 = vmatprep.subr.bf16.mxu0 %v8063_v1 }
  0xa5   : > { %7089 = vmatpush3.bf16.msra.mxu1 %v7417_v0  ;;  %v7429_v0 = vld [vmem:[%s9972_s3 + $0x98] sm:$0xff]  }
  0xa6   : > { %7071 = vmatmul.mubr.bf16.vlgmr.msra.gmra.mrb[16].mxu0 %v1377_v39  ;;  %7114 = vmatprep.subr.bf16.mxu1 %v8063_v1 }
  0xa7   : > { %7110 = vmatprep.mubr.msk.bf16.mxu0 %vm8064_vm0, %v8063_v1  ;;  %7095 = vmatpush3.bf16.msra.mxu0 %v7404_v41 }
  0xa8   : > { %7096 = vmatprep.subr.bf16.mxu0 %v8063_v1 }
  0xab   : > { %7097 = vmatpush3.bf16.msra.mxu0 %v7406_v43 }
  0xac   : > { %7098 = vmatprep.subr.bf16.mxu0 %v8063_v1 }
  0xaf   : > { %7099 = vmatpush3.bf16.msra.mxu0 %v7408_v45 }
  0xb0   : > { %7100 = vmatprep.subr.bf16.mxu0 %v8063_v1 }
  0xb3   : > { %7101 = vmatpush3.bf16.msra.mxu0 %v7410_v47 }
  0xb4   : > { %7102 = vmatprep.subr.bf16.mxu0 %v8063_v1 }
  0xb7   : > { %7103 = vmatpush3.bf16.msra.mxu0 %v7412_v57 }
  0xb8   : > { %7104 = vmatprep.subr.bf16.mxu0 %v8063_v1 }
  0xbb   : > { %7105 = vmatpush3.bf16.msra.mxu0 %v7414_v61  ;;  %v7426_v61 = vld [vmem:[%s9972_s3 + $0xc8] sm:$0xff]  }
  0xbc   : > { %7106 = vmatprep.subr.bf16.mxu0 %v8063_v1 }
  0xbf   : > { %7107 = vmatpush3.bf16.msra.mxu0 %v7416_v63  ;;  %v7428_v63 = vld [vmem:[%s9972_s3 + $0xd0] sm:$0xff]  }
  0xc0   : > { %7108 = vmatprep.subr.bf16.mxu0 %v8063_v1 }
  0xc3   : > { %7109 = vmatpush3.bf16.msra.mxu0 %v7418_v2  ;;  %v7430_v2 = vld [vmem:[%s9972_s3 + $0xd8] sm:$0xff]  }
  0xc4   : > { %7134 = vmatprep.subr.bf16.mxu0 %v8063_v1 }
  0xf9   : > { %v548_v48 = vpop.f32.mrb[0].mxu0 }
  0xfa   : > { %v637_v49 = vpop.f32.mrb[0].mxu1  ;;  %v6912_v50 = vpop.f32.mrb[1].mxu0 }
  0xfb   : > { %v638_v51 = vadd.f32 %v637_v49, %v548_v48  ;;  %v6932_v52 = vpop.f32.mrb[1].mxu1  ;;  %v551_v53 = vpop.f32.mrb[2].mxu0 }
  0xfc   : > { %v640_v54 = vpop.f32.mrb[2].mxu1  ;;  %v6913_v55 = vpop.f32.mrb[3].mxu0 }
  0xfd   : > { %v641_v58 = vadd.f32 %v640_v54, %v551_v53  ;;  %v6933_v59 = vpop.f32.mrb[3].mxu1  ;;  %v7423_v54 = vld [vmem:[%s9972_s3 + $0x80] sm:$0xff]  }
 0x119   : > { %v755_v3 = vpop.f32.mrb[4].mxu0 }
 0x11a   : > { %v762_v4 = vadd.f32 %v755_v3, %v638_v51  ;;  %v6952_v5 = vpop.f32.mrb[5].mxu0  ;;  %v875_v6 = vpop.f32.mrb[4].mxu1  ;;  %v7431_v3 = vld [vmem:[%s9972_s3 + $0xa0] sm:$0xff]  }
 0x11b   : > { %v758_v7 = vpop.f32.mrb[6].mxu0  ;;  %v6972_v8 = vpop.f32.mrb[5].mxu1  ;;  %v7433_v5 = vld [vmem:[%s9972_s3 + $0xa8] sm:$0xff]  }
 0x11c   : > { %v763_v9 = vadd.f32 %v758_v7, %v641_v58  ;;  %v882_v10 = vadd.f32 %v875_v6, %v762_v4  ;;  %v6953_v11 = vpop.f32.mrb[7].mxu0  ;;  %v878_v12 = vpop.f32.mrb[6].mxu1  ;;  %v7424_v58 = vld [vmem:[%s9972_s3 + $0xc0] sm:$0xff]   ;;  %v7434_v6 = vld [vmem:[%s9972_s3 + $0xe8] sm:$0xff]   ;;  %v7435_v7 = vld [vmem:[%s9972_s3 + $0xb0] sm:$0xff]  }
 0x11d   : > { %v6973_v13 = vpop.f32.mrb[7].mxu1  ;;  %v7432_v4 = vld [vmem:[%s9972_s3 + $0xe0] sm:$0xff]   ;;  %v7436_v8 = vld [vmem:[%s9972_s3 + $0xf0] sm:$0xff]  }
 0x11e   : > { %v883_v14 = vadd.f32 %v878_v12, %v763_v9  ;;  %v7437_v9 = vld [vmem:[%s9972_s3 + $0xb8] sm:$0xff]  }
 0x139   : > { %v995_v15 = vpop.f32.mrb[8].mxu0 }
 0x13a   : > { %v1002_v16 = vadd.f32 %v995_v15, %v882_v10  ;;  %v6992_v17 = vpop.f32.mrb[9].mxu0  ;;  %v1115_v18 = vpop.f32.mrb[8].mxu1  ;;  %v7438_v10 = vld [vmem:[%s9972_s3 + $0xf8] sm:$0xff]   ;;  %v7443_v15 = vld [vmem:[%s9972_s3 + $0x100] sm:$0xff]  }
 0x13b   : > { %v998_v19 = vpop.f32.mrb[10].mxu0  ;;  %v7012_v20 = vpop.f32.mrb[9].mxu1  ;;  %v7444_v17 = vld [vmem:[%s9972_s3 + $0x140] sm:$0xff]  }
 0x13c   : > { %v1003_v21 = vadd.f32 %v998_v19, %v883_v14  ;;  %v1122_v22 = vadd.f32 %v1115_v18, %v1002_v16  ;;  %v6993_v23 = vpop.f32.mrb[11].mxu0  ;;  %v1118_v24 = vpop.f32.mrb[10].mxu1  ;;  %v7445_v19 = vld [vmem:[%s9972_s3 + $0x108] sm:$0xff]  }
 0x13d   : > { %v7013_v25 = vpop.f32.mrb[11].mxu1  ;;  %v7446_v20 = vld [vmem:[%s9972_s3 + $0x148] sm:$0xff]   ;;  %v7449_v23 = vld [vmem:[%s9972_s3 + $0x118] sm:$0xff]  }
 0x13e   : > { %v1123_v26 = vadd.f32 %v1118_v24, %v1003_v21  ;;  %v7447_v21 = vld [vmem:[%s9972_s3 + $0x110] sm:$0xff]   ;;  %v7450_v24 = vld [vmem:[%s9972_s3 + $0x158] sm:$0xff]   ;;  %v7451_v25 = vld [vmem:[%s9972_s3 + $0x120] sm:$0xff]  }
 0x159   : > { %v1236_v27 = vpop.f32.mrb[12].mxu0 }
 0x15a   : > { %v1243_v28 = vadd.f32 %v1236_v27, %v1122_v22  ;;  %v7032_v29 = vpop.f32.mrb[13].mxu0  ;;  %v1356_v30 = vpop.f32.mrb[12].mxu1  ;;  %v7448_v22 = vld [vmem:[%s9972_s3 + $0x150] sm:$0xff]   ;;  %v7453_v27 = vld [vmem:[%s9972_s3 + $0x128] sm:$0xff]  }
 0x15b   : > { %v1239_v31 = vpop.f32.mrb[14].mxu0  ;;  %v7052_v32 = vpop.f32.mrb[13].mxu1  ;;  %v7455_v29 = vld [vmem:[%s9972_s3 + $0x130] sm:$0xff]  }
 0x15c   : > { %v1244_v33 = vadd.f32 %v1239_v31, %v1123_v26  ;;  %v1363_v34 = vadd.f32 %v1356_v30, %v1243_v28  ;;  %v7033_v35 = vpop.f32.mrb[15].mxu0  ;;  %v1359_v36 = vpop.f32.mrb[14].mxu1  ;;  %v7452_v26 = vld [vmem:[%s9972_s3 + $0x160] sm:$0xff]   ;;  %v7454_v28 = vld [vmem:[%s9972_s3 + $0x168] sm:$0xff]   ;;  %v7456_v30 = vld [vmem:[%s9972_s3 + $0x170] sm:$0xff]  }
 0x15d   : > { %v7053_v37 = vpop.f32.mrb[15].mxu1  ;;  %v7457_v31 = vld [vmem:[%s9972_s3 + $0x138] sm:$0xff]  }
 0x15e   : > { %v1364_v38 = vadd.f32 %v1359_v36, %v1244_v33  ;;  %v7458_v32 = vld [vmem:[%s9972_s3 + $0x178] sm:$0xff]   ;;  %v7463_v37 = vld [vmem:[%s9972_s3 + $0x180] sm:$0xff]  }
 0x179   : > { %v1476_v39 = vpop.f32.mrb[16].mxu0 }
 0x17a   : > { %v1483_v41 = vadd.f32 %v1476_v39, %v1363_v34  ;;  %v7072_v42 = vpop.f32.mrb[17].mxu0  ;;  %v7464_v39 = vld [vmem:[%s9972_s3 + $0x1c0] sm:$0xff]  }
 0x17b   : > { %v1479_v43 = vpop.f32.mrb[18].mxu0  ;;  %v7466_v42 = vld [vmem:[%s9972_s3 + $0x1c8] sm:$0xff]  }
 0x17c   : > { %v1492_v44 = vadd.f32 %v6214_v40, %v1483_v41  ;;  %v1484_v45 = vadd.f32 %v1479_v43, %v1364_v38  ;;  %v7073_v46 = vpop.f32.mrb[19].mxu0  ;;  %v7465_v41 = vld [vmem:[%s9972_s3 + $0x188] sm:$0xff]   ;;  %v7467_v43 = vld [vmem:[%s9972_s3 + $0x190] sm:$0xff]  }
 0x17d   : > { %v7470_v46 = vld [vmem:[%s9972_s3 + $0x1d8] sm:$0xff]  }
 0x17e   : > { %v1494_v47 = vmax.f32 %v1492_v44, 0.0  ;;  %v1493_v48 = vadd.f32 %v6214_v40, %v1484_v45  ;;  %v7468_v44 = vld [vmem:[%s9972_s3 + $0x1d0] sm:$0xff]   ;;  %v7469_v45 = vld [vmem:[%s9972_s3 + $0x198] sm:$0xff]  }
 0x180   : > { %v1498_v49 = vcombine.high %v1494_v47, %v1494_v47  ;;  %1502 = vst [vmem:[#allocation2 + $0x9] sm:$0xf] %v1494_v47  ;;  %v1495_v50 = vmax.f32 %v1493_v48, 0.0  ;;  %v7471_v47 = vld [vmem:[%s9972_s3 + $0x1a0] sm:$0xff]  }
 0x181   : > { %v7472_v48 = vld [vmem:[%s9972_s3 + $0x1e0] sm:$0xff]  }
 0x182   : > { %1503 = vst [vmem:[#allocation2 + $0x11] sm:$0xf] %v1498_v49  ;;  %v1499_v51 = vcombine.high %v1495_v50, %v1495_v50  ;;  %1504 = vst [vmem:[#allocation2 + $0x19] sm:$0xf] %v1495_v50  ;;  %v7473_v49 = vld [vmem:[%s9972_s3 + $0x1a8] sm:$0xff]  }
 0x183   : > { %v7474_v50 = vld [vmem:[%s9972_s3 + $0x1e8] sm:$0xff]  }
 0x184   : > { %1505 = vst [vmem:[#allocation2 + $0x21] sm:$0xf] %v1499_v51  ;;  %v7475_v51 = vld [vmem:[%s9972_s3 + $0x1b0] sm:$0xff]  }
 0x187   : > { %v7419_v52 = vld [vmem:[#allocation2 + $0x1] ss:$8 sps:$4 sm:$0xff]  }
 0x188   : > { %v7421_v53 = vld [vmem:[#allocation2] ss:$8 sps:$4 sm:$0xff]  }
 0x189   : > { %v7420_v55 = vld [vmem:[#allocation2 + $0x11] ss:$8 sps:$4 sm:$0xff]   ;;  %v7439_v13 = vld [vmem:[#allocation2 + $0x2] ss:$8 sps:$4 sm:$0xff]  }
 0x18a   : > { %v7422_v56 = vld [vmem:[#allocation2 + $0x10] ss:$8 sps:$4 sm:$0xff]   ;;  %v1547_v57 = vpack.c.bf16 %v7420_v55, %v7419_v52 }
 0x18b   : > { %v1518_v59 = vpack.c.bf16 %v7422_v56, %v7421_v53  ;;  %v7440_v11 = vld [vmem:[#allocation2 + $0x12] ss:$8 sps:$4 sm:$0xff]   ;;  %v7480_v55 = vld [vmem:[#allocation2 + $0x20] ss:$8 sps:$4 sm:$0xff]  }
 0x18c   : > { %7091 = vmatmul.mubr.bf16.vlgmr.msra.gmra.mrb[16].mxu1 %v1547_v57  ;;  %v7442_v12 = vld [vmem:[#allocation2 + $0x18] ss:$8 sps:$4 sm:$0xff]   ;;  %v7441_v14 = vld [vmem:[#allocation2 + $0x8] ss:$8 sps:$4 sm:$0xff]   ;;  %v1754_v16 = vpack.c.bf16 %v7440_v11, %v7439_v13  ;;  %v7504_v13 = vld [vmem:[%s9974_s5 + $0x314] ss:$8 sps:$4 sm:$0xff]  }
 0x18d   : > { %7111 = vmatmul.mubr.bf16.vlgmr.msra.gmra.mrb[20].mxu0 %v1518_v59  ;;  %7115 = vmatpush3.bf16.msra.mxu1 %v7423_v54  ;;  %v1874_v18 = vpack.c.bf16 %v7442_v12, %v7441_v14  ;;  %v7460_v33 = vld [vmem:[#allocation2 + $0x19] ss:$8 sps:$4 sm:$0xff]   ;;  %v7459_v35 = vld [vmem:[#allocation2 + $0x9] ss:$8 sps:$4 sm:$0xff]  }
 0x18e   : > { %7135 = vmatpush3.bf16.msra.mxu0 %v7424_v58  ;;  %7116 = vmatprep.subr.bf16.mxu1 %v8063_v1  ;;  %v7462_v34 = vld [vmem:[#allocation2 + $0x1a] ss:$8 sps:$4 sm:$0xff]   ;;  %v7461_v36 = vld [vmem:[#allocation2 + $0xa] ss:$8 sps:$4 sm:$0xff]   ;;  %v1994_v38 = vpack.c.bf16 %v7460_v33, %v7459_v35 }
 0x18f   : > { %7136 = vmatprep.subr.bf16.mxu0 %v8063_v1  ;;  %7130 = vmatprep.mubr.msk.bf16.mxu1 %vm8064_vm0, %v8063_v1  ;;  %v2114_v40 = vpack.c.bf16 %v7462_v34, %v7461_v36  ;;  %v7476_v52 = vld [vmem:[%s9972_s3 + $0x1f0] sm:$0xff]   ;;  %v7477_v53 = vld [vmem:[%s9972_s3 + $0x1b8] sm:$0xff]   ;;  %v7482_v56 = vld [vmem:[#allocation2 + $0x21] ss:$8 sps:$4 sm:$0xff]  }
 0x190   : > { %7150 = vmatprep.mubr.msk.bf16.mxu0 %vm8064_vm0, %v8063_v1  ;;  %v7478_v54 = vld [vmem:[%s9972_s3 + $0x1f8] sm:$0xff]   ;;  %v7483_v59 = vld [vmem:[%s9972_s3 + $0x200] sm:$0xff]  }
 0x191   : > { %7117 = vmatpush3.bf16.msra.mxu1 %v7425_v60  ;;  %v7479_v57 = vld [vmem:[#allocation2 + $0x10] ss:$8 sps:$4 sm:$0xff]   ;;  %v7496_v11 = vld [vmem:[%s9974_s5 + $0x300] ss:$8 sps:$4 sm:$0xff]   ;;  %v7501_v12 = vld [vmem:[%s9974_s5 + $0x394] ss:$8 sps:$4 sm:$0xff]  }
 0x192   : > { %7137 = vmatpush3.bf16.msra.mxu0 %v7426_v61  ;;  %7118 = vmatprep.subr.bf16.mxu1 %v8063_v1  ;;  %v7481_v58 = vld [vmem:[#allocation2 + $0x11] ss:$8 sps:$4 sm:$0xff]   ;;  %v2234_v60 = vpack.c.bf16 %v7480_v55, %v7479_v57  ;;  %v7519_v34 = vld [vmem:[%s9974_s5 + $0x3c4] ss:$8 sps:$4 sm:$0xff]   ;;  %v7517_v36 = vld [vmem:[%s9974_s5 + $0x3c0] ss:$8 sps:$4 sm:$0xff]  }
 0x193   : > { %7138 = vmatprep.subr.bf16.mxu0 %v8063_v1  ;;  %v2354_v61 = vpack.c.bf16 %v7482_v56, %v7481_v58  ;;  %v7499_v14 = vld [vmem:[%s9974_s5 + $0x390] ss:$8 sps:$4 sm:$0xff]   ;;  %v7516_v33 = vld [vmem:[%s9974_s5 + $0x334] ss:$8 sps:$4 sm:$0xff]   ;;  %v7522_v35 = vld [vmem:[%s9974_s5 + $0x344] ss:$8 sps:$4 sm:$0xff]  }
 0x195   : > { %7119 = vmatpush3.bf16.msra.mxu1 %v7427_v62  ;;  %v7484_v62 = vld [vmem:[%s9972_s3 + $0x208] sm:$0xff]  }
 0x196   : > { %7139 = vmatpush3.bf16.msra.mxu0 %v7428_v63  ;;  %7120 = vmatprep.subr.bf16.mxu1 %v8063_v1  ;;  %v7485_v63 = vld [vmem:[%s9972_s3 + $0x210] sm:$0xff]  }
 0x197   : > { %7140 = vmatprep.subr.bf16.mxu0 %v8063_v1 }
 0x199   : > { %7121 = vmatpush3.bf16.msra.mxu1 %v7429_v0  ;;  %v7486_v0 = vld [vmem:[%s9972_s3 + $0x218] sm:$0xff]  }
 0x19a   : > { %7141 = vmatpush3.bf16.msra.mxu0 %v7430_v2  ;;  %7122 = vmatprep.subr.bf16.mxu1 %v8063_v1  ;;  %v7487_v2 = vld [vmem:[%s9972_s3 + $0x220] sm:$0xff]  }
 0x19b   : > { %7142 = vmatprep.subr.bf16.mxu0 %v8063_v1 }
 0x19d   : > { %7123 = vmatpush3.bf16.msra.mxu1 %v7431_v3  ;;  %v7488_v3 = vld [vmem:[%s9972_s3 + $0x228] sm:$0xff]  }
 0x19e   : > { %7143 = vmatpush3.bf16.msra.mxu0 %v7432_v4  ;;  %7124 = vmatprep.subr.bf16.mxu1 %v8063_v1  ;;  %v7489_v4 = vld [vmem:[%s9972_s3 + $0x230] sm:$0xff]  }
 0x19f   : > { %7144 = vmatprep.subr.bf16.mxu0 %v8063_v1 }
 0x1a1   : > { %7125 = vmatpush3.bf16.msra.mxu1 %v7433_v5  ;;  %v7490_v5 = vld [vmem:[%s9972_s3 + $0x238] sm:$0xff]  }
 0x1a2   : > { %7145 = vmatpush3.bf16.msra.mxu0 %v7434_v6  ;;  %7126 = vmatprep.subr.bf16.mxu1 %v8063_v1  ;;  %v7492_v6 = vld [vmem:[#allocation2 + $0x22] ss:$8 sps:$4 sm:$0xff]  }
 0x1a3   : > { %7146 = vmatprep.subr.bf16.mxu0 %v8063_v1 }
 0x1a5   : > { %7127 = vmatpush3.bf16.msra.mxu1 %v7435_v7  ;;  %v7491_v7 = vld [vmem:[#allocation2 + $0x12] ss:$8 sps:$4 sm:$0xff]  }
 0x1a6   : > { %7147 = vmatpush3.bf16.msra.mxu0 %v7436_v8  ;;  %7128 = vmatprep.subr.bf16.mxu1 %v8063_v1  ;;  %v2474_v8 = vpack.c.bf16 %v7492_v6, %v7491_v7 }
 0x1a7   : > { %7148 = vmatprep.subr.bf16.mxu0 %v8063_v1 }
 0x1a9   : > { %7129 = vmatpush3.bf16.msra.mxu1 %v7437_v9  ;;  %v7493_v9 = vld [vmem:[%s9974_s5 + $0x380] ss:$8 sps:$4 sm:$0xff]  }
 0x1aa   : > { %7149 = vmatpush3.bf16.msra.mxu0 %v7438_v10  ;;  %7154 = vmatprep.subr.bf16.mxu1 %v8063_v1  ;;  %v7495_v10 = vld [vmem:[%s9974_s5 + $0x384] ss:$8 sps:$4 sm:$0xff]  }
 0x1ab   : > { %7174 = vmatprep.subr.bf16.mxu0 %v8063_v1 }
 0x1ac   : > { %7131 = vmatmul.mubr.bf16.vlgmr.msra.gmra.mrb[20].mxu1 %v1754_v16  ;;  %v7507_v16 = vld [vmem:[%s9974_s5 + $0x3a4] ss:$8 sps:$4 sm:$0xff]  }
 0x1ad   : > { %7151 = vmatmul.mubr.bf16.vlgmr.msra.gmra.mrb[24].mxu0 %v1874_v18  ;;  %7155 = vmatpush3.bf16.msra.mxu1 %v7443_v15  ;;  %v7502_v15 = vld [vmem:[%s9974_s5 + $0x310] ss:$8 sps:$4 sm:$0xff]   ;;  %v7505_v18 = vld [vmem:[%s9974_s5 + $0x3a0] ss:$8 sps:$4 sm:$0xff]  }
 0x1ae   : > { %7175 = vmatpush3.bf16.msra.mxu0 %v7444_v17  ;;  %7156 = vmatprep.subr.bf16.mxu1 %v8063_v1  ;;  %v7510_v17 = vld [vmem:[%s9974_s5 + $0x324] ss:$8 sps:$4 sm:$0xff]  }
 0x1af   : > { %7176 = vmatprep.subr.bf16.mxu0 %v8063_v1  ;;  %7170 = vmatprep.mubr.msk.bf16.mxu1 %vm8064_vm0, %v8063_v1 }
 0x1b0   : > { %7190 = vmatprep.mubr.msk.bf16.mxu0 %vm8064_vm0, %v8063_v1 }
 0x1b1   : > { %7157 = vmatpush3.bf16.msra.mxu1 %v7445_v19  ;;  %v7508_v19 = vld [vmem:[%s9974_s5 + $0x320] ss:$8 sps:$4 sm:$0xff]  }
 0x1b2   : > { %7177 = vmatpush3.bf16.msra.mxu0 %v7446_v20  ;;  %7158 = vmatprep.subr.bf16.mxu1 %v8063_v1 }
 0x1b3   : > { %7178 = vmatprep.subr.bf16.mxu0 %v8063_v1 }
 0x1b5   : > { %7159 = vmatpush3.bf16.msra.mxu1 %v7447_v21 }
 0x1b6   : > { %7179 = vmatpush3.bf16.msra.mxu0 %v7448_v22  ;;  %7160 = vmatprep.subr.bf16.mxu1 %v8063_v1 }
 0x1b7   : > { %7180 = vmatprep.subr.bf16.mxu0 %v8063_v1 }
 0x1b9   : > { %7161 = vmatpush3.bf16.msra.mxu1 %v7449_v23 }
 0x1ba   : > { %7181 = vmatpush3.bf16.msra.mxu0 %v7450_v24  ;;  %7162 = vmatprep.subr.bf16.mxu1 %v8063_v1 }
 0x1bb   : > { %7182 = vmatprep.subr.bf16.mxu0 %v8063_v1 }
 0x1bd   : > { %7163 = vmatpush3.bf16.msra.mxu1 %v7451_v25 }
 0x1be   : > { %7183 = vmatpush3.bf16.msra.mxu0 %v7452_v26  ;;  %7164 = vmatprep.subr.bf16.mxu1 %v8063_v1 }
 0x1bf   : > { %7184 = vmatprep.subr.bf16.mxu0 %v8063_v1 }
 0x1c1   : > { %7165 = vmatpush3.bf16.msra.mxu1 %v7453_v27 }
 0x1c2   : > { %7185 = vmatpush3.bf16.msra.mxu0 %v7454_v28  ;;  %7166 = vmatprep.subr.bf16.mxu1 %v8063_v1 }
 0x1c3   : > { %7186 = vmatprep.subr.bf16.mxu0 %v8063_v1 }
 0x1c5   : > { %7167 = vmatpush3.bf16.msra.mxu1 %v7455_v29 }
 0x1c6   : > { %7187 = vmatpush3.bf16.msra.mxu0 %v7456_v30  ;;  %7168 = vmatprep.subr.bf16.mxu1 %v8063_v1  ;;  %v7511_v30 = vld [vmem:[%s9974_s5 + $0x3b0] ss:$8 sps:$4 sm:$0xff]  }
 0x1c7   : > { %7188 = vmatprep.subr.bf16.mxu0 %v8063_v1 }
 0x1c9   : > { %7169 = vmatpush3.bf16.msra.mxu1 %v7457_v31  ;;  %v7513_v31 = vld [vmem:[%s9974_s5 + $0x3b4] ss:$8 sps:$4 sm:$0xff]  }
 0x1ca   : > { %7189 = vmatpush3.bf16.msra.mxu0 %v7458_v32  ;;  %7194 = vmatprep.subr.bf16.mxu1 %v8063_v1  ;;  %v7514_v32 = vld [vmem:[%s9974_s5 + $0x330] ss:$8 sps:$4 sm:$0xff]  }
 0x1cb   : > { %7214 = vmatprep.subr.bf16.mxu0 %v8063_v1 }
 0x1cc   : > { %7171 = vmatmul.mubr.bf16.vlgmr.msra.gmra.mrb[24].mxu1 %v1994_v38  ;;  %v7525_v38 = vld [vmem:[%s9974_s5 + $0x3d4] ss:$8 sps:$4 sm:$0xff]  }
 0x1cd   : > { %7191 = vmatmul.mubr.bf16.vlgmr.msra.gmra.mrb[28].mxu0 %v2114_v40  ;;  %7195 = vmatpush3.bf16.msra.mxu1 %v7463_v37  ;;  %v7520_v37 = vld [vmem:[%s9974_s5 + $0x340] ss:$8 sps:$4 sm:$0xff]   ;;  %v7523_v40 = vld [vmem:[%s9974_s5 + $0x3d0] ss:$8 sps:$4 sm:$0xff]  }
 0x1ce   : > { %7215 = vmatpush3.bf16.msra.mxu0 %v7464_v39  ;;  %7196 = vmatprep.subr.bf16.mxu1 %v8063_v1  ;;  %v7528_v39 = vld [vmem:[%s9974_s5 + $0x354] ss:$8 sps:$4 sm:$0xff]  }
 0x1cf   : > { %7216 = vmatprep.subr.bf16.mxu0 %v8063_v1  ;;  %7210 = vmatprep.mubr.msk.bf16.mxu1 %vm8064_vm0, %v8063_v1 }
 0x1d0   : > { %7230 = vmatprep.mubr.msk.bf16.mxu0 %vm8064_vm0, %v8063_v1 }
 0x1d1   : > { %7197 = vmatpush3.bf16.msra.mxu1 %v7465_v41  ;;  %v8065_v41 = vmov 0  }
 0x1d2   : > { %7217 = vmatpush3.bf16.msra.mxu0 %v7466_v42  ;;  %7198 = vmatprep.subr.bf16.mxu1 %v8063_v1  ;;  %v7526_v42 = vld [vmem:[%s9974_s5 + $0x350] ss:$8 sps:$4 sm:$0xff]  }
 0x1d3   : > { %7218 = vmatprep.subr.bf16.mxu0 %v8063_v1 }
 0x1d5   : > { %7199 = vmatpush3.bf16.msra.mxu1 %v7467_v43  ;;  %v7531_v43 = vld [vmem:[%s9974_s5 + $0x3e4] ss:$8 sps:$4 sm:$0xff]  }
 0x1d6   : > { %7219 = vmatpush3.bf16.msra.mxu0 %v7468_v44  ;;  %7200 = vmatprep.subr.bf16.mxu1 %v8063_v1  ;;  %v7534_v44 = vld [vmem:[%s9974_s5 + $0x364] ss:$8 sps:$4 sm:$0xff]  }
 0x1d7   : > { %7220 = vmatprep.subr.bf16.mxu0 %v8063_v1 }
 0x1d9   : > { %7201 = vmatpush3.bf16.msra.mxu1 %v7469_v45  ;;  %v7529_v45 = vld [vmem:[%s9974_s5 + $0x3e0] ss:$8 sps:$4 sm:$0xff]  }
 0x1da   : > { %7221 = vmatpush3.bf16.msra.mxu0 %v7470_v46  ;;  %7202 = vmatprep.subr.bf16.mxu1 %v8063_v1  ;;  %v7532_v46 = vld [vmem:[%s9974_s5 + $0x360] ss:$8 sps:$4 sm:$0xff]  }
 0x1db   : > { %7222 = vmatprep.subr.bf16.mxu0 %v8063_v1 }
 0x1dd   : > { %7203 = vmatpush3.bf16.msra.mxu1 %v7471_v47  ;;  %v7537_v47 = vld [vmem:[%s9974_s5 + $0x3f4] ss:$8 sps:$4 sm:$0xff]  }
 0x1de   : > { %7223 = vmatpush3.bf16.msra.mxu0 %v7472_v48  ;;  %7204 = vmatprep.subr.bf16.mxu1 %v8063_v1  ;;  %v7540_v48 = vld [vmem:[%s9974_s5 + $0x374] ss:$8 sps:$4 sm:$0xff]  }
 0x1df   : > { %7224 = vmatprep.subr.bf16.mxu0 %v8063_v1 }
 0x1e1   : > { %7205 = vmatpush3.bf16.msra.mxu1 %v7473_v49  ;;  %v7535_v49 = vld [vmem:[%s9974_s5 + $0x3f0] ss:$8 sps:$4 sm:$0xff]  }
 0x1e2   : > { %7225 = vmatpush3.bf16.msra.mxu0 %v7474_v50  ;;  %7206 = vmatprep.subr.bf16.mxu1 %v8063_v1  ;;  %v7538_v50 = vld [vmem:[%s9974_s5 + $0x370] ss:$8 sps:$4 sm:$0xff]  }
 0x1e3   : > { %7226 = vmatprep.subr.bf16.mxu0 %v8063_v1 }
 0x1e5   : > { %7207 = vmatpush3.bf16.msra.mxu1 %v7475_v51  ;;  %v7543_v51 = vld [vmem:[%s9974_s5 + $0x284] ss:$8 sps:$4 sm:$0xff]  }
 0x1e6   : > { %7227 = vmatpush3.bf16.msra.mxu0 %v7476_v52  ;;  %7208 = vmatprep.subr.bf16.mxu1 %v8063_v1  ;;  %v7546_v52 = vld [vmem:[%s9974_s5 + $0x204] ss:$8 sps:$4 sm:$0xff]  }
 0x1e7   : > { %7228 = vmatprep.subr.bf16.mxu0 %v8063_v1 }
 0x1e9   : > { %7209 = vmatpush3.bf16.msra.mxu1 %v7477_v53 }
 0x1ea   : > { %7229 = vmatpush3.bf16.msra.mxu0 %v7478_v54  ;;  %7234 = vmatprep.subr.bf16.mxu1 %v8063_v1 }
 0x1eb   : > { %2741 = vmatprep.subr.bf16.mxu0 %v7495_v10 }
 0x1ec   : > { %7211 = vmatmul.mubr.bf16.vlgmr.msra.gmra.mrb[28].mxu1 %v2234_v60 }
 0x1ed   : > { %7231 = vmatmul.mubr.bf16.vlgmr.msra.gmra.mrb[32].mxu0 %v2354_v61  ;;  %7235 = vmatpush3.bf16.msra.mxu1 %v7483_v59 }
 0x1ee   : > { %7236 = vmatprep.subr.bf16.mxu1 %v8063_v1  ;;  %7250 = vmatprep.mubr.msk.bf16.mxu1 %vm8064_vm0, %v8063_v1 }
 0x1ef   : > { %2742 = vmatpush1.bf16.msra.mxu0 %v7493_v9  ;;  %2773 = vmatprep.mubr.bf16.mxu0 %v8065_v41 }
 0x1f0   : > { %2743 = vmatprep.subr.bf16.mxu0 %v7501_v12 }
 0x1f1   : > { %7237 = vmatpush3.bf16.msra.mxu1 %v7484_v62 }
 0x1f2   : > { %7238 = vmatprep.subr.bf16.mxu1 %v8063_v1 }
 0x1f3   : > { %2744 = vmatpush1.bf16.msra.mxu0 %v7499_v14 }
 0x1f4   : > { %2745 = vmatprep.subr.bf16.mxu0 %v7507_v16 }
 0x1f5   : > { %7239 = vmatpush3.bf16.msra.mxu1 %v7485_v63 }
 0x1f6   : > { %7240 = vmatprep.subr.bf16.mxu1 %v8063_v1 }
 0x1f7   : > { %2746 = vmatpush1.bf16.msra.mxu0 %v7505_v18 }
 0x1f8   : > { %2747 = vmatprep.subr.bf16.mxu0 %v7513_v31 }
 0x1f9   : > { %7241 = vmatpush3.bf16.msra.mxu1 %v7486_v0 }
 0x1fa   : > { %7242 = vmatprep.subr.bf16.mxu1 %v8063_v1 }
 0x1fb   : > { %2748 = vmatpush1.bf16.msra.mxu0 %v7511_v30 }
 0x1fc   : > { %2749 = vmatprep.subr.bf16.mxu0 %v7519_v34 }
 0x1fd   : > { %7243 = vmatpush3.bf16.msra.mxu1 %v7487_v2 }
 0x1fe   : > { %7244 = vmatprep.subr.bf16.mxu1 %v8063_v1 }
 0x1ff   : > { %2750 = vmatpush1.bf16.msra.mxu0 %v7517_v36 }
 0x200   : > { %2751 = vmatprep.subr.bf16.mxu0 %v7525_v38 }
 0x201   : > { %7245 = vmatpush3.bf16.msra.mxu1 %v7488_v3 }
 0x202   : > { %7246 = vmatprep.subr.bf16.mxu1 %v8063_v1 }
 0x203   : > { %2752 = vmatpush1.bf16.msra.mxu0 %v7523_v40 }
 0x204   : > { %2753 = vmatprep.subr.bf16.mxu0 %v7531_v43 }
 0x205   : > { %7247 = vmatpush3.bf16.msra.mxu1 %v7489_v4 }
 0x206   : > { %7248 = vmatprep.subr.bf16.mxu1 %v8063_v1  ;;  %v7498_v1 = vld [vmem:[%s9974_s5 + $0x304] ss:$8 sps:$4 sm:$0xff]  }
 0x207   : > { %2754 = vmatpush1.bf16.msra.mxu0 %v7529_v45 }
 0x208   : > { %2755 = vmatprep.subr.bf16.mxu0 %v7537_v47 }
 0x209   : > { %7249 = vmatpush3.bf16.msra.mxu1 %v7490_v5 }
 0x20a   : > { %3364 = vmatprep.subr.bf16.mxu1 %v7498_v1 }
 0x20b   : > { %2756 = vmatpush1.bf16.msra.mxu0 %v7535_v49  ;;  %v7551_v49 = vld [vmem:[%s9974_s5 + $0x290] ss:$8 sps:$4 sm:$0xff]  }
 0x20c   : > { %7251 = vmatmul.mubr.bf16.vlgmr.msra.gmra.mrb[32].mxu1 %v2474_v8  ;;  %2864 = vmatprep.subr.bf16.mxu0 %v7543_v51  ;;  %v7559_v51 = vld [vmem:[%s9974_s5 + $0x2a4] ss:$8 sps:$4 sm:$0xff]  }
 0x20d   : > { %3365 = vmatpush1.bf16.msra.mxu1 %v7496_v11  ;;  %3396 = vmatprep.mubr.bf16.mxu1 %v8065_v41 }
 0x20e   : > { %3366 = vmatprep.subr.bf16.mxu1 %v7504_v13 }
 0x211   : > { %3367 = vmatpush1.bf16.msra.mxu1 %v7502_v15 }
 0x212   : > { %3368 = vmatprep.subr.bf16.mxu1 %v7510_v17 }
 0x215   : > { %3369 = vmatpush1.bf16.msra.mxu1 %v7508_v19 }
 0x216   : > { %3370 = vmatprep.subr.bf16.mxu1 %v7516_v33 }
 0x219   : > { %3371 = vmatpush1.bf16.msra.mxu1 %v7514_v32 }
 0x21a   : > { %3372 = vmatprep.subr.bf16.mxu1 %v7522_v35 }
 0x21d   : > { %3373 = vmatpush1.bf16.msra.mxu1 %v7520_v37 }
 0x21e   : > { %3374 = vmatprep.subr.bf16.mxu1 %v7528_v39  ;;  %v7541_v39 = vld [vmem:[%s9974_s5 + $0x280] ss:$8 sps:$4 sm:$0xff]  }
 0x221   : > { %3375 = vmatpush1.bf16.msra.mxu1 %v7526_v42 }
 0x222   : > { %3376 = vmatprep.subr.bf16.mxu1 %v7534_v44  ;;  %v7544_v44 = vld [vmem:[%s9974_s5 + $0x200] ss:$8 sps:$4 sm:$0xff]  }
 0x225   : > { %3377 = vmatpush1.bf16.msra.mxu1 %v7532_v46  ;;  %v7553_v46 = vld [vmem:[%s9974_s5 + $0x294] ss:$8 sps:$4 sm:$0xff]  }
 0x226   : > { %3378 = vmatprep.subr.bf16.mxu1 %v7540_v48  ;;  %v7556_v48 = vld [vmem:[%s9974_s5 + $0x214] ss:$8 sps:$4 sm:$0xff]  }
 0x229   : > { %3379 = vmatpush1.bf16.msra.mxu1 %v7538_v50  ;;  %v7554_v50 = vld [vmem:[%s9974_s5 + $0x210] ss:$8 sps:$4 sm:$0xff]  }
 0x22a   : > { %3487 = vmatprep.subr.bf16.mxu1 %v7546_v52  ;;  %v7562_v52 = vld [vmem:[%s9974_s5 + $0x224] ss:$8 sps:$4 sm:$0xff]  }
 0x25f   : > { %v1646_v20 = vpop.f32.mrb[16].mxu1 }
 0x260   : > { %v1735_v21 = vpop.f32.mrb[20].mxu0  ;;  %v7092_v22 = vpop.f32.mrb[17].mxu1 }
 0x261   : > { %v1736_v23 = vadd.f32 %v1735_v21, %v1646_v20  ;;  %v7112_v24 = vpop.f32.mrb[21].mxu0  ;;  %v1649_v25 = vpop.f32.mrb[18].mxu1 }
 0x262   : > { %v1738_v26 = vpop.f32.mrb[22].mxu0  ;;  %v7093_v27 = vpop.f32.mrb[19].mxu1 }
 0x263   : > { %v1739_v28 = vadd.f32 %v1738_v26, %v1649_v25  ;;  %v7113_v29 = vpop.f32.mrb[23].mxu0  ;;  %v6287_v26 = vld [vmem:[%s9973_s4] ss:$0 sm:$0xff] }
 0x27f   : > { %v1853_v53 = vpop.f32.mrb[20].mxu1 }
 0x280   : > { %v1860_v54 = vadd.f32 %v1853_v53, %v1736_v23  ;;  %v1973_v55 = vpop.f32.mrb[24].mxu0  ;;  %v7132_v56 = vpop.f32.mrb[21].mxu1  ;;  %v7557_v53 = vld [vmem:[%s9974_s5 + $0x2a0] ss:$8 sps:$4 sm:$0xff]  }
 0x281   : > { %v7152_v57 = vpop.f32.mrb[25].mxu0  ;;  %v1856_v58 = vpop.f32.mrb[22].mxu1  ;;  %v7568_v56 = vld [vmem:[%s9974_s5 + $0x234] ss:$8 sps:$4 sm:$0xff]  }
 0x282   : > { %v1980_v59 = vadd.f32 %v1973_v55, %v1860_v54  ;;  %v1861_v60 = vadd.f32 %v1856_v58, %v1739_v28  ;;  %v1976_v61 = vpop.f32.mrb[26].mxu0  ;;  %v7133_v62 = vpop.f32.mrb[23].mxu1  ;;  %v7560_v54 = vld [vmem:[%s9974_s5 + $0x220] ss:$8 sps:$4 sm:$0xff]   ;;  %v7565_v55 = vld [vmem:[%s9974_s5 + $0x2b4] ss:$8 sps:$4 sm:$0xff]  }
 0x283   : > { %v7153_v63 = vpop.f32.mrb[27].mxu0  ;;  %v7563_v57 = vld [vmem:[%s9974_s5 + $0x2b0] ss:$8 sps:$4 sm:$0xff]   ;;  %v7572_v62 = vld [vmem:[%s9974_s5 + $0x240] ss:$8 sps:$4 sm:$0xff]  }
 0x284   : > { %v1981_v0 = vadd.f32 %v1976_v61, %v1861_v60  ;;  %v7566_v58 = vld [vmem:[%s9974_s5 + $0x230] ss:$8 sps:$4 sm:$0xff]   ;;  %v7574_v60 = vld [vmem:[%s9974_s5 + $0x244] ss:$8 sps:$4 sm:$0xff]   ;;  %v7569_v61 = vld [vmem:[%s9974_s5 + $0x2c0] ss:$8 sps:$4 sm:$0xff]  }
 0x285   : > { %v7577_v63 = vld [vmem:[%s9974_s5 + $0x2d4] ss:$8 sps:$4 sm:$0xff]  }
 0x29f   : > { %v2093_v2 = vpop.f32.mrb[24].mxu1 }
 0x2a0   : > { %v2100_v3 = vadd.f32 %v2093_v2, %v1980_v59  ;;  %v2213_v4 = vpop.f32.mrb[28].mxu0  ;;  %v7172_v5 = vpop.f32.mrb[25].mxu1  ;;  %v7571_v59 = vld [vmem:[%s9974_s5 + $0x2c4] ss:$8 sps:$4 sm:$0xff]   ;;  %v7575_v2 = vld [vmem:[%s9974_s5 + $0x2d0] ss:$8 sps:$4 sm:$0xff]  }
 0x2a1   : > { %v7192_v6 = vpop.f32.mrb[29].mxu0  ;;  %v2096_v7 = vpop.f32.mrb[26].mxu1  ;;  %v7586_v5 = vld [vmem:[%s9974_s5 + $0x264] ss:$8 sps:$4 sm:$0xff]  }
 0x2a2   : > { %v2220_v8 = vadd.f32 %v2213_v4, %v2100_v3  ;;  %v2101_v9 = vadd.f32 %v2096_v7, %v1981_v0  ;;  %v2216_v10 = vpop.f32.mrb[30].mxu0  ;;  %v7173_v11 = vpop.f32.mrb[27].mxu1  ;;  %v7580_v0 = vld [vmem:[%s9974_s5 + $0x254] ss:$8 sps:$4 sm:$0xff]   ;;  %v7578_v3 = vld [vmem:[%s9974_s5 + $0x250] ss:$8 sps:$4 sm:$0xff]  }
 0x2a3   : > { %v7193_v1 = vpop.f32.mrb[31].mxu0  ;;  %v7583_v4 = vld [vmem:[%s9974_s5 + $0x2e4] ss:$8 sps:$4 sm:$0xff]   ;;  %v7581_v6 = vld [vmem:[%s9974_s5 + $0x2e0] ss:$8 sps:$4 sm:$0xff]  }
 0x2a4   : > { %v2221_v12 = vadd.f32 %v2216_v10, %v2101_v9  ;;  %v7584_v7 = vld [vmem:[%s9974_s5 + $0x260] ss:$8 sps:$4 sm:$0xff]   ;;  %v7592_v9 = vld [vmem:[%s9974_s5 + $0x274] ss:$8 sps:$4 sm:$0xff]   ;;  %v7587_v10 = vld [vmem:[%s9974_s5 + $0x2f0] ss:$8 sps:$4 sm:$0xff]  }
 0x2a5   : > { %v7590_v11 = vld [vmem:[%s9974_s5 + $0x270] ss:$8 sps:$4 sm:$0xff]   ;;  %v7595_v1 = vld [vmem:[%s9974_s5 + $0x684] ss:$8 sps:$4 sm:$0xff]  }
 0x2bf   : > { %v2333_v13 = vpop.f32.mrb[28].mxu1 }
 0x2c0   : > { %v2340_v14 = vadd.f32 %v2333_v13, %v2220_v8  ;;  %v2453_v15 = vpop.f32.mrb[32].mxu0  ;;  %v7212_v16 = vpop.f32.mrb[29].mxu1  ;;  %v7589_v8 = vld [vmem:[%s9974_s5 + $0x2f4] ss:$8 sps:$4 sm:$0xff]   ;;  %v7600_v13 = vld [vmem:[%s9974_s5 + $0x604] ss:$8 sps:$4 sm:$0xff]  }
 0x2c1   : > { %v7232_v17 = vpop.f32.mrb[33].mxu0  ;;  %v2336_v18 = vpop.f32.mrb[30].mxu1  ;;  %v7598_v16 = vld [vmem:[%s9974_s5 + $0x600] ss:$8 sps:$4 sm:$0xff]  }
 0x2c2   : > { %v2460_v19 = vadd.f32 %v2453_v15, %v2340_v14  ;;  %v2341_v20 = vadd.f32 %v2336_v18, %v2221_v12  ;;  %v2456_v21 = vpop.f32.mrb[34].mxu0  ;;  %v7213_v22 = vpop.f32.mrb[31].mxu1  ;;  %v7593_v14 = vld [vmem:[%s9974_s5 + $0x680] ss:$8 sps:$4 sm:$0xff]   ;;  %v7603_v17 = vld [vmem:[%s9974_s5 + $0x694] ss:$8 sps:$4 sm:$0xff]  }
 0x2c3   : > { %v7233_v23 = vpop.f32.mrb[35].mxu0  ;;  %v7609_v22 = vld [vmem:[%s9974_s5 + $0x6a4] ss:$8 sps:$4 sm:$0xff]  }
 0x2c4   : > { %v2461_v24 = vadd.f32 %v2456_v21, %v2341_v20  ;;  %v7601_v20 = vld [vmem:[%s9974_s5 + $0x690] ss:$8 sps:$4 sm:$0xff]   ;;  %v7612_v23 = vld [vmem:[%s9974_s5 + $0x624] ss:$8 sps:$4 sm:$0xff]  }
 0x2c5   : > { %v7604_v21 = vld [vmem:[%s9974_s5 + $0x610] ss:$8 sps:$4 sm:$0xff]  }
 0x2df   : > { %v2573_v25 = vpop.f32.mrb[32].mxu1 }
 0x2e0   : > { %v2580_v27 = vadd.f32 %v2573_v25, %v2460_v19  ;;  %v7252_v28 = vpop.f32.mrb[33].mxu1  ;;  %v7606_v19 = vld [vmem:[%s9974_s5 + $0x614] ss:$8 sps:$4 sm:$0xff]   ;;  %v7610_v25 = vld [vmem:[%s9974_s5 + $0x620] ss:$8 sps:$4 sm:$0xff]  }
 0x2e1   : > { %v2576_v29 = vpop.f32.mrb[34].mxu1  ;;  %v7613_v28 = vld [vmem:[%s9974_s5 + $0x6b0] ss:$8 sps:$4 sm:$0xff]  }
 0x2e2   : > { %v2589_v30 = vadd.f32 %v6287_v26, %v2580_v27  ;;  %v2581_v31 = vadd.f32 %v2576_v29, %v2461_v24  ;;  %v7253_v32 = vpop.f32.mrb[35].mxu1  ;;  %v7607_v24 = vld [vmem:[%s9974_s5 + $0x6a0] ss:$8 sps:$4 sm:$0xff]   ;;  %v7618_v27 = vld [vmem:[%s9974_s5 + $0x634] ss:$8 sps:$4 sm:$0xff]  }
 0x2e3   : > { %v7616_v29 = vld [vmem:[%s9974_s5 + $0x630] ss:$8 sps:$4 sm:$0xff]   ;;  %v7619_v32 = vld [vmem:[%s9974_s5 + $0x6c0] ss:$8 sps:$4 sm:$0xff]  }
 0x2e4   : > { %v2591_v33 = vmax.f32 %v2589_v30, 0.0  ;;  %v2590_v34 = vadd.f32 %v6287_v26, %v2581_v31  ;;  %v7615_v26 = vld [vmem:[%s9974_s5 + $0x6b4] ss:$8 sps:$4 sm:$0xff]   ;;  %v7621_v30 = vld [vmem:[%s9974_s5 + $0x6c4] ss:$8 sps:$4 sm:$0xff]  }
 0x2e5   : > { %v7624_v31 = vld [vmem:[%s9974_s5 + $0x644] ss:$8 sps:$4 sm:$0xff]  }
 0x2e6   : > { %v2595_v35 = vcombine.high %v2591_v33, %v2591_v33  ;;  %2599 = vst [vmem:[#allocation2 + $0x9] sm:$0xf] %v2591_v33  ;;  %v2592_v36 = vmax.f32 %v2590_v34, 0.0  ;;  %v7622_v33 = vld [vmem:[%s9974_s5 + $0x640] ss:$8 sps:$4 sm:$0xff]  }
 0x2e7   : > { %v7627_v34 = vld [vmem:[%s9974_s5 + $0x6d4] ss:$8 sps:$4 sm:$0xff]  }
 0x2e8   : > { %2600 = vst [vmem:[#allocation2 + $0x11] sm:$0xf] %v2595_v35  ;;  %v2596_v37 = vcombine.high %v2592_v36, %v2592_v36  ;;  %2601 = vst [vmem:[#allocation2 + $0x19] sm:$0xf] %v2592_v36  ;;  %v7630_v35 = vld [vmem:[%s9974_s5 + $0x654] ss:$8 sps:$4 sm:$0xff]  }
 0x2e9   : > { %v7625_v36 = vld [vmem:[%s9974_s5 + $0x6d0] ss:$8 sps:$4 sm:$0xff]  }
 0x2ea   : > { %2602 = vst [vmem:[#allocation2 + $0x21] sm:$0xf] %v2596_v37  ;;  %v7628_v37 = vld [vmem:[%s9974_s5 + $0x650] ss:$8 sps:$4 sm:$0xff]  }
 0x2ef   : > { %v7547_v38 = vld [vmem:[#allocation2 + $0x8] ss:$8 sps:$4 sm:$0xff]  }
 0x2f0   : > { %v7549_v40 = vld [vmem:[#allocation2 + $0x9] ss:$8 sps:$4 sm:$0xff]  }
 0x2f1   : > { %v7548_v42 = vld [vmem:[#allocation2 + $0x18] ss:$8 sps:$4 sm:$0xff]   ;;  %v7596_v15 = vld [vmem:[#allocation2 + $0xa] ss:$8 sps:$4 sm:$0xff]  }
 0x2f2   : > { %v7550_v43 = vld [vmem:[#allocation2 + $0x19] ss:$8 sps:$4 sm:$0xff]   ;;  %v8875_v45 = vpack.c.bf16 %v7548_v42, %v7547_v38 }
 0x2f3   : > { %v8880_v47 = vpack.c.bf16 %v7550_v43, %v7549_v40  ;;  %v7597_v12 = vld [vmem:[#allocation2 + $0x1a] ss:$8 sps:$4 sm:$0xff]  }
 0x2f4   : > { %2774 = vmatmul.mubr.bf16.vlgmr.msra.gmra.mrb[36].mxu0 %v8875_v45  ;;  %v8982_v18 = vpack.c.bf16 %v7597_v12, %v7596_v15  ;;  %v7633_v38 = vld [vmem:[%s9974_s5 + $0x6e4] ss:$8 sps:$4 sm:$0xff]   ;;  %v7631_v40 = vld [vmem:[%s9974_s5 + $0x6e0] ss:$8 sps:$4 sm:$0xff]   ;;  %v7639_v43 = vld [vmem:[%s9974_s5 + $0x6f4] ss:$8 sps:$4 sm:$0xff]  }
 0x2f5   : > { %2865 = vmatpush1.bf16.msra.mxu0 %v7541_v39  ;;  %3397 = vmatmul.mubr.bf16.vlgmr.msra.gmra.mrb[36].mxu1 %v8880_v47  ;;  %v7636_v39 = vld [vmem:[%s9974_s5 + $0x664] ss:$8 sps:$4 sm:$0xff]   ;;  %v7634_v42 = vld [vmem:[%s9974_s5 + $0x660] ss:$8 sps:$4 sm:$0xff]   ;;  %v7682_v12 = vld [vmem:[%s9974_s5 + $0x754] ss:$8 sps:$4 sm:$0xff]  }
 0x2f6   : > { %3488 = vmatpush1.bf16.msra.mxu1 %v7544_v44  ;;  %2866 = vmatprep.subr.bf16.mxu0 %v7553_v46  ;;  %v7642_v44 = vld [vmem:[%s9974_s5 + $0x674] ss:$8 sps:$4 sm:$0xff]   ;;  %v7637_v46 = vld [vmem:[%s9974_s5 + $0x6f0] ss:$8 sps:$4 sm:$0xff]   ;;  %v7685_v15 = vld [vmem:[%s9974_s5 + $0x7e4] ss:$8 sps:$4 sm:$0xff]  }
 0x2f7   : > { %3489 = vmatprep.subr.bf16.mxu1 %v7556_v48  ;;  %2896 = vmatprep.mubr.bf16.mxu0 %v8065_v41  ;;  %v7640_v48 = vld [vmem:[%s9974_s5 + $0x670] ss:$8 sps:$4 sm:$0xff]  }
 0x2f8   : > { %3519 = vmatprep.mubr.bf16.mxu1 %v8065_v41 }
 0x2f9   : > { %2867 = vmatpush1.bf16.msra.mxu0 %v7551_v49  ;;  %v7644_v49 = vld [vmem:[#allocation2 + $0x11] ss:$8 sps:$4 sm:$0xff]  }
 0x2fa   : > { %3490 = vmatpush1.bf16.msra.mxu1 %v7554_v50  ;;  %2868 = vmatprep.subr.bf16.mxu0 %v7559_v51  ;;  %v7647_v50 = vld [vmem:[%s9974_s5 + $0x784] ss:$8 sps:$4 sm:$0xff]   ;;  %v7649_v51 = vld [vmem:[#allocation2 + $0x12] ss:$8 sps:$4 sm:$0xff]  }
 0x2fb   : > { %3491 = vmatprep.subr.bf16.mxu1 %v7562_v52  ;;  %v7652_v52 = vld [vmem:[%s9974_s5 + $0x704] ss:$8 sps:$4 sm:$0xff]  }
 0x2fd   : > { %2869 = vmatpush1.bf16.msra.mxu0 %v7557_v53  ;;  %v7643_v53 = vld [vmem:[#allocation2 + $0x1] ss:$8 sps:$4 sm:$0xff]  }
 0x2fe   : > { %3492 = vmatpush1.bf16.msra.mxu1 %v7560_v54  ;;  %2870 = vmatprep.subr.bf16.mxu0 %v7565_v55  ;;  %v7645_v54 = vld [vmem:[%s9974_s5 + $0x780] ss:$8 sps:$4 sm:$0xff]  }
 0x2ff   : > { %3493 = vmatprep.subr.bf16.mxu1 %v7568_v56  ;;  %v7648_v55 = vld [vmem:[#allocation2 + $0x2] ss:$8 sps:$4 sm:$0xff]   ;;  %v9078_v56 = vpack.c.bf16 %v7644_v49, %v7643_v53  ;;  %v7730_v53 = vld [vmem:[%s9974_s5 + $0x150] ss:$8 sps:$4 sm:$0xff]  }
 0x300   : > { %v7724_v49 = vld [vmem:[%s9974_s5 + $0x140] ss:$8 sps:$4 sm:$0xff]  }
 0x301   : > { %2871 = vmatpush1.bf16.msra.mxu0 %v7563_v57  ;;  %v7650_v57 = vld [vmem:[%s9974_s5 + $0x700] ss:$8 sps:$4 sm:$0xff]  }
 0x302   : > { %3494 = vmatpush1.bf16.msra.mxu1 %v7566_v58  ;;  %2872 = vmatprep.subr.bf16.mxu0 %v7571_v59  ;;  %v7655_v58 = vld [vmem:[%s9974_s5 + $0x794] ss:$8 sps:$4 sm:$0xff]   ;;  %v3542_v59 = vpack.c.bf16 %v7649_v51, %v7648_v55  ;;  %v7738_v55 = vld [vmem:[%s9974_s5 + $0x164] ss:$8 sps:$4 sm:$0xff]  }
 0x303   : > { %3495 = vmatprep.subr.bf16.mxu1 %v7574_v60  ;;  %v7658_v60 = vld [vmem:[%s9974_s5 + $0x714] ss:$8 sps:$4 sm:$0xff]  }
 0x304   : > { %v7732_v51 = vld [vmem:[%s9974_s5 + $0x154] ss:$8 sps:$4 sm:$0xff]  }
 0x305   : > { %2873 = vmatpush1.bf16.msra.mxu0 %v7569_v61  ;;  %v7653_v61 = vld [vmem:[%s9974_s5 + $0x790] ss:$8 sps:$4 sm:$0xff]  }
 0x306   : > { %3496 = vmatpush1.bf16.msra.mxu1 %v7572_v62  ;;  %2874 = vmatprep.subr.bf16.mxu0 %v7577_v63  ;;  %v7656_v62 = vld [vmem:[%s9974_s5 + $0x710] ss:$8 sps:$4 sm:$0xff]   ;;  %v7661_v63 = vld [vmem:[%s9974_s5 + $0x7a4] ss:$8 sps:$4 sm:$0xff]  }
 0x307   : > { %3497 = vmatprep.subr.bf16.mxu1 %v7580_v0  ;;  %v7664_v0 = vld [vmem:[%s9974_s5 + $0x724] ss:$8 sps:$4 sm:$0xff]  }
 0x309   : > { %2875 = vmatpush1.bf16.msra.mxu0 %v7575_v2  ;;  %v7659_v2 = vld [vmem:[%s9974_s5 + $0x7a0] ss:$8 sps:$4 sm:$0xff]  }
 0x30a   : > { %3498 = vmatpush1.bf16.msra.mxu1 %v7578_v3  ;;  %2876 = vmatprep.subr.bf16.mxu0 %v7583_v4  ;;  %v7662_v3 = vld [vmem:[%s9974_s5 + $0x720] ss:$8 sps:$4 sm:$0xff]   ;;  %v7667_v4 = vld [vmem:[%s9974_s5 + $0x7b4] ss:$8 sps:$4 sm:$0xff]  }
 0x30b   : > { %3499 = vmatprep.subr.bf16.mxu1 %v7586_v5  ;;  %v7670_v5 = vld [vmem:[%s9974_s5 + $0x734] ss:$8 sps:$4 sm:$0xff]  }
 0x30d   : > { %2877 = vmatpush1.bf16.msra.mxu0 %v7581_v6  ;;  %v7665_v6 = vld [vmem:[%s9974_s5 + $0x7b0] ss:$8 sps:$4 sm:$0xff]  }
 0x30e   : > { %3500 = vmatpush1.bf16.msra.mxu1 %v7584_v7  ;;  %2878 = vmatprep.subr.bf16.mxu0 %v7589_v8  ;;  %v7668_v7 = vld [vmem:[%s9974_s5 + $0x730] ss:$8 sps:$4 sm:$0xff]   ;;  %v7673_v8 = vld [vmem:[%s9974_s5 + $0x7c4] ss:$8 sps:$4 sm:$0xff]  }
 0x30f   : > { %3501 = vmatprep.subr.bf16.mxu1 %v7592_v9  ;;  %v7676_v9 = vld [vmem:[%s9974_s5 + $0x744] ss:$8 sps:$4 sm:$0xff]  }
 0x311   : > { %2879 = vmatpush1.bf16.msra.mxu0 %v7587_v10  ;;  %v7671_v10 = vld [vmem:[%s9974_s5 + $0x7c0] ss:$8 sps:$4 sm:$0xff]  }
 0x312   : > { %3502 = vmatpush1.bf16.msra.mxu1 %v7590_v11  ;;  %3016 = vmatprep.subr.bf16.mxu0 %v7595_v1  ;;  %v7674_v11 = vld [vmem:[%s9974_s5 + $0x740] ss:$8 sps:$4 sm:$0xff]   ;;  %v7679_v1 = vld [vmem:[%s9974_s5 + $0x7d4] ss:$8 sps:$4 sm:$0xff]  }
 0x313   : > { %3639 = vmatprep.subr.bf16.mxu1 %v7600_v13  ;;  %v7677_v13 = vld [vmem:[%s9974_s5 + $0x7d0] ss:$8 sps:$4 sm:$0xff]  }
 0x314   : > { %2897 = vmatmul.mubr.bf16.vlgmr.msra.gmra.mrb[36].mxu0 %v8880_v47 }
 0x315   : > { %3520 = vmatmul.mubr.bf16.vlgmr.msra.gmra.mrb[36].mxu1 %v8982_v18  ;;  %3017 = vmatpush1.bf16.msra.mxu0 %v7593_v14  ;;  %v7680_v14 = vld [vmem:[%s9974_s5 + $0x750] ss:$8 sps:$4 sm:$0xff]  }
 0x316   : > { %3640 = vmatpush1.bf16.msra.mxu1 %v7598_v16  ;;  %3018 = vmatprep.subr.bf16.mxu0 %v7603_v17  ;;  %v7688_v16 = vld [vmem:[%s9974_s5 + $0x764] ss:$8 sps:$4 sm:$0xff]   ;;  %v7683_v17 = vld [vmem:[%s9974_s5 + $0x7e0] ss:$8 sps:$4 sm:$0xff]  }
 0x317   : > { %3641 = vmatprep.subr.bf16.mxu1 %v7606_v19  ;;  %3048 = vmatprep.mubr.bf16.mxu0 %v8065_v41  ;;  %v7686_v19 = vld [vmem:[%s9974_s5 + $0x760] ss:$8 sps:$4 sm:$0xff]  }
 0x318   : > { %3671 = vmatprep.mubr.bf16.mxu1 %v8065_v41 }
 0x319   : > { %3019 = vmatpush1.bf16.msra.mxu0 %v7601_v20  ;;  %v7691_v20 = vld [vmem:[%s9974_s5 + $0x7f4] ss:$8 sps:$4 sm:$0xff]  }
 0x31a   : > { %3642 = vmatpush1.bf16.msra.mxu1 %v7604_v21  ;;  %3020 = vmatprep.subr.bf16.mxu0 %v7609_v22  ;;  %v7694_v21 = vld [vmem:[%s9974_s5 + $0x774] ss:$8 sps:$4 sm:$0xff]   ;;  %v7689_v22 = vld [vmem:[%s9974_s5 + $0x7f0] ss:$8 sps:$4 sm:$0xff]  }
 0x31b   : > { %3643 = vmatprep.subr.bf16.mxu1 %v7612_v23  ;;  %v7692_v23 = vld [vmem:[%s9974_s5 + $0x770] ss:$8 sps:$4 sm:$0xff]  }
 0x31d   : > { %3021 = vmatpush1.bf16.msra.mxu0 %v7607_v24  ;;  %v7696_v24 = vld [vmem:[#allocation2 + $0x10] ss:$8 sps:$4 sm:$0xff]  }
 0x31e   : > { %3644 = vmatpush1.bf16.msra.mxu1 %v7610_v25  ;;  %3022 = vmatprep.subr.bf16.mxu0 %v7615_v26  ;;  %v7699_v25 = vld [vmem:[%s9974_s5 + $0x184] ss:$8 sps:$4 sm:$0xff]  }
 0x31f   : > { %3645 = vmatprep.subr.bf16.mxu1 %v7618_v27  ;;  %v7702_v26 = vld [vmem:[%s9974_s5 + $0x104] ss:$8 sps:$4 sm:$0xff]   ;;  %v7695_v27 = vld [vmem:[#allocation2] ss:$8 sps:$4 sm:$0xff]  }
 0x321   : > { %3023 = vmatpush1.bf16.msra.mxu0 %v7613_v28  ;;  %v7697_v28 = vld [vmem:[%s9974_s5 + $0x180] ss:$8 sps:$4 sm:$0xff]  }
 0x322   : > { %3646 = vmatpush1.bf16.msra.mxu1 %v7616_v29  ;;  %3024 = vmatprep.subr.bf16.mxu0 %v7621_v30  ;;  %v3075_v29 = vpack.c.bf16 %v7696_v24, %v7695_v27  ;;  %v7700_v30 = vld [vmem:[%s9974_s5 + $0x100] ss:$8 sps:$4 sm:$0xff]   ;;  %v7779_v27 = vld [vmem:[%s9974_s5 + $0xd0] ss:$8 sps:$4 sm:$0xff]  }
 0x323   : > { %3647 = vmatprep.subr.bf16.mxu1 %v7624_v31  ;;  %v7705_v31 = vld [vmem:[%s9974_s5 + $0x194] ss:$8 sps:$4 sm:$0xff]   ;;  %v7776_v24 = vld [vmem:[%s9974_s5 + $0x40] ss:$8 sps:$4 sm:$0xff]  }
 0x325   : > { %3025 = vmatpush1.bf16.msra.mxu0 %v7619_v32  ;;  %v7708_v32 = vld [vmem:[%s9974_s5 + $0x114] ss:$8 sps:$4 sm:$0xff]  }
 0x326   : > { %3648 = vmatpush1.bf16.msra.mxu1 %v7622_v33  ;;  %3026 = vmatprep.subr.bf16.mxu0 %v7627_v34  ;;  %v7703_v33 = vld [vmem:[%s9974_s5 + $0x190] ss:$8 sps:$4 sm:$0xff]  }
 0x327   : > { %3649 = vmatprep.subr.bf16.mxu1 %v7630_v35  ;;  %v7706_v34 = vld [vmem:[%s9974_s5 + $0x110] ss:$8 sps:$4 sm:$0xff]   ;;  %v7711_v35 = vld [vmem:[%s9974_s5 + $0x1a4] ss:$8 sps:$4 sm:$0xff]  }
 0x329   : > { %3027 = vmatpush1.bf16.msra.mxu0 %v7625_v36  ;;  %v7714_v36 = vld [vmem:[%s9974_s5 + $0x124] ss:$8 sps:$4 sm:$0xff]  }
 0x32a   : > { %3650 = vmatpush1.bf16.msra.mxu1 %v7628_v37  ;;  %3028 = vmatprep.subr.bf16.mxu0 %v7633_v38  ;;  %v7709_v37 = vld [vmem:[%s9974_s5 + $0x1a0] ss:$8 sps:$4 sm:$0xff]  }
 0x32b   : > { %3651 = vmatprep.subr.bf16.mxu1 %v7636_v39  ;;  %v7712_v38 = vld [vmem:[%s9974_s5 + $0x120] ss:$8 sps:$4 sm:$0xff]   ;;  %v7717_v39 = vld [vmem:[%s9974_s5 + $0x1b4] ss:$8 sps:$4 sm:$0xff]  }
 0x32d   : > { %3029 = vmatpush1.bf16.msra.mxu0 %v7631_v40  ;;  %v7720_v40 = vld [vmem:[%s9974_s5 + $0x134] ss:$8 sps:$4 sm:$0xff]  }
 0x32e   : > { %3652 = vmatpush1.bf16.msra.mxu1 %v7634_v42  ;;  %3030 = vmatprep.subr.bf16.mxu0 %v7639_v43  ;;  %v7715_v42 = vld [vmem:[%s9974_s5 + $0x1b0] ss:$8 sps:$4 sm:$0xff]  }
 0x32f   : > { %3653 = vmatprep.subr.bf16.mxu1 %v7642_v44  ;;  %v7718_v43 = vld [vmem:[%s9974_s5 + $0x130] ss:$8 sps:$4 sm:$0xff]   ;;  %v7723_v44 = vld [vmem:[%s9974_s5 + $0x1c4] ss:$8 sps:$4 sm:$0xff]  }
 0x331   : > { %3031 = vmatpush1.bf16.msra.mxu0 %v7637_v46  ;;  %v7726_v46 = vld [vmem:[%s9974_s5 + $0x144] ss:$8 sps:$4 sm:$0xff]  }
 0x332   : > { %3654 = vmatpush1.bf16.msra.mxu1 %v7640_v48  ;;  %3172 = vmatprep.subr.bf16.mxu0 %v7647_v50  ;;  %v7721_v48 = vld [vmem:[%s9974_s5 + $0x1c0] ss:$8 sps:$4 sm:$0xff]   ;;  %v7729_v50 = vld [vmem:[%s9974_s5 + $0x1d4] ss:$8 sps:$4 sm:$0xff]  }
 0x333   : > { %3782 = vmatprep.subr.bf16.mxu1 %v7652_v52  ;;  %v7727_v52 = vld [vmem:[%s9974_s5 + $0x1d0] ss:$8 sps:$4 sm:$0xff]  }
 0x334   : > { %3049 = vmatmul.mubr.bf16.vlgmr.msra.gmra.mrb[36].mxu0 %v9078_v56 }
 0x335   : > { %3672 = vmatmul.mubr.bf16.vlgmr.msra.gmra.mrb[36].mxu1 %v3542_v59  ;;  %3173 = vmatpush1.bf16.msra.mxu0 %v7645_v54  ;;  %v7735_v54 = vld [vmem:[%s9974_s5 + $0x1e4] ss:$8 sps:$4 sm:$0xff]   ;;  %v7744_v59 = vld [vmem:[%s9974_s5 + $0x174] ss:$8 sps:$4 sm:$0xff]  }
 0x336   : > { %3783 = vmatpush1.bf16.msra.mxu1 %v7650_v57  ;;  %3174 = vmatprep.subr.bf16.mxu0 %v7655_v58  ;;  %v7736_v57 = vld [vmem:[%s9974_s5 + $0x160] ss:$8 sps:$4 sm:$0xff]   ;;  %v7741_v58 = vld [vmem:[%s9974_s5 + $0x1f4] ss:$8 sps:$4 sm:$0xff]  }
 0x337   : > { %3784 = vmatprep.subr.bf16.mxu1 %v7658_v60  ;;  %3204 = vmatprep.mubr.bf16.mxu0 %v8065_v41  ;;  %v7739_v60 = vld [vmem:[%s9974_s5 + $0x1f0] ss:$8 sps:$4 sm:$0xff]  }
 0x338   : > { %3814 = vmatprep.mubr.bf16.mxu1 %v8065_v41 }
 0x339   : > { %3175 = vmatpush1.bf16.msra.mxu0 %v7653_v61  ;;  %v7742_v61 = vld [vmem:[%s9974_s5 + $0x170] ss:$8 sps:$4 sm:$0xff]  }
 0x33a   : > { %3785 = vmatpush1.bf16.msra.mxu1 %v7656_v62  ;;  %3176 = vmatprep.subr.bf16.mxu0 %v7661_v63  ;;  %v7746_v62 = vld [vmem:[#allocation2 + $0x20] ss:$8 sps:$4 sm:$0xff]   ;;  %v7749_v63 = vld [vmem:[%s9974_s5 + $0x84] ss:$8 sps:$4 sm:$0xff]  }
 0x33b   : > { %3786 = vmatprep.subr.bf16.mxu1 %v7664_v0  ;;  %v7751_v0 = vld [vmem:[#allocation2 + $0x21] ss:$8 sps:$4 sm:$0xff]  }
 0x33d   : > { %3177 = vmatpush1.bf16.msra.mxu0 %v7659_v2  ;;  %v7754_v2 = vld [vmem:[%s9974_s5 + $0x4] ss:$8 sps:$4 sm:$0xff]  }
 0x33e   : > { %3787 = vmatpush1.bf16.msra.mxu1 %v7662_v3  ;;  %3178 = vmatprep.subr.bf16.mxu0 %v7667_v4  ;;  %v7745_v3 = vld [vmem:[#allocation2 + $0x10] ss:$8 sps:$4 sm:$0xff]   ;;  %v7747_v4 = vld [vmem:[%s9974_s5 + $0x80] ss:$8 sps:$4 sm:$0xff]  }
 0x33f   : > { %3788 = vmatprep.subr.bf16.mxu1 %v7670_v5  ;;  %v7750_v5 = vld [vmem:[#allocation2 + $0x11] ss:$8 sps:$4 sm:$0xff]  }
 0x341   : > { %3179 = vmatpush1.bf16.msra.mxu0 %v7665_v6  ;;  %v3878_v6 = vpack.c.bf16 %v7746_v62, %v7745_v3  ;;  %v7826_v62 = vld [vmem:[%s9974_s5 + $0x440] ss:$8 sps:$4 sm:$0xff]   ;;  %v7832_v3 = vld [vmem:[%s9974_s5 + $0x450] ss:$8 sps:$4 sm:$0xff]  }
 0x342   : > { %3789 = vmatpush1.bf16.msra.mxu1 %v7668_v7  ;;  %3180 = vmatprep.subr.bf16.mxu0 %v7673_v8  ;;  %v7752_v7 = vld [vmem:[%s9974_s5] ss:$8 sps:$4 sm:$0xff]   ;;  %v7757_v8 = vld [vmem:[%s9974_s5 + $0x94] ss:$8 sps:$4 sm:$0xff]  }
 0x343   : > { %3790 = vmatprep.subr.bf16.mxu1 %v7676_v9  ;;  %v9284_v9 = vpack.c.bf16 %v7751_v0, %v7750_v5  ;;  %v7834_v0 = vld [vmem:[%s9974_s5 + $0x454] ss:$8 sps:$4 sm:$0xff]   ;;  %v7840_v5 = vld [vmem:[%s9974_s5 + $0x464] ss:$8 sps:$4 sm:$0xff]  }
 0x345   : > { %3181 = vmatpush1.bf16.msra.mxu0 %v7671_v10  ;;  %v7760_v10 = vld [vmem:[%s9974_s5 + $0x14] ss:$8 sps:$4 sm:$0xff]  }
 0x346   : > { %3791 = vmatpush1.bf16.msra.mxu1 %v7674_v11  ;;  %3182 = vmatprep.subr.bf16.mxu0 %v7679_v1  ;;  %v7755_v11 = vld [vmem:[%s9974_s5 + $0x90] ss:$8 sps:$4 sm:$0xff]  }
 0x347   : > { %3792 = vmatprep.subr.bf16.mxu1 %v7682_v12  ;;  %v7758_v1 = vld [vmem:[%s9974_s5 + $0x10] ss:$8 sps:$4 sm:$0xff]   ;;  %v7763_v12 = vld [vmem:[%s9974_s5 + $0xa4] ss:$8 sps:$4 sm:$0xff]  }
 0x349   : > { %3183 = vmatpush1.bf16.msra.mxu0 %v7677_v13  ;;  %v7766_v13 = vld [vmem:[%s9974_s5 + $0x24] ss:$8 sps:$4 sm:$0xff]  }
 0x34a   : > { %3793 = vmatpush1.bf16.msra.mxu1 %v7680_v14  ;;  %3184 = vmatprep.subr.bf16.mxu0 %v7685_v15  ;;  %v7761_v14 = vld [vmem:[%s9974_s5 + $0xa0] ss:$8 sps:$4 sm:$0xff]  }
 0x34b   : > { %3794 = vmatprep.subr.bf16.mxu1 %v7688_v16  ;;  %v7764_v15 = vld [vmem:[%s9974_s5 + $0x20] ss:$8 sps:$4 sm:$0xff]   ;;  %v7769_v16 = vld [vmem:[%s9974_s5 + $0xb4] ss:$8 sps:$4 sm:$0xff]  }
 0x34d   : > { %3185 = vmatpush1.bf16.msra.mxu0 %v7683_v17  ;;  %v7772_v17 = vld [vmem:[%s9974_s5 + $0x34] ss:$8 sps:$4 sm:$0xff]  }
 0x34e   : > { %3795 = vmatpush1.bf16.msra.mxu1 %v7686_v19  ;;  %3186 = vmatprep.subr.bf16.mxu0 %v7691_v20  ;;  %v7767_v19 = vld [vmem:[%s9974_s5 + $0xb0] ss:$8 sps:$4 sm:$0xff]  }
 0x34f   : > { %3796 = vmatprep.subr.bf16.mxu1 %v7694_v21  ;;  %v7770_v20 = vld [vmem:[%s9974_s5 + $0x30] ss:$8 sps:$4 sm:$0xff]   ;;  %v7775_v21 = vld [vmem:[%s9974_s5 + $0xc4] ss:$8 sps:$4 sm:$0xff]  }
 0x351   : > { %3187 = vmatpush1.bf16.msra.mxu0 %v7689_v22  ;;  %v7778_v22 = vld [vmem:[%s9974_s5 + $0x44] ss:$8 sps:$4 sm:$0xff]  }
 0x352   : > { %3797 = vmatpush1.bf16.msra.mxu1 %v7692_v23  ;;  %3975 = vmatprep.subr.bf16.mxu0 %v7699_v25  ;;  %v7773_v23 = vld [vmem:[%s9974_s5 + $0xc0] ss:$8 sps:$4 sm:$0xff]   ;;  %v7781_v25 = vld [vmem:[%s9974_s5 + $0xd4] ss:$8 sps:$4 sm:$0xff]  }
 0x353   : > { %4560 = vmatprep.subr.bf16.mxu1 %v7702_v26  ;;  %v7784_v26 = vld [vmem:[%s9974_s5 + $0x54] ss:$8 sps:$4 sm:$0xff]  }
 0x354   : > { %3205 = vmatmul.mubr.bf16.vlgmr.msra.gmra.mrb[36].mxu0 %v3075_v29  ;;  %v7787_v29 = vld [vmem:[%s9974_s5 + $0xe4] ss:$8 sps:$4 sm:$0xff]  }
 0x355   : > { %3815 = vmatmul.mubr.bf16.vlgmr.msra.gmra.mrb[36].mxu1 %v9078_v56  ;;  %3976 = vmatpush1.bf16.msra.mxu0 %v7697_v28  ;;  %v7733_v56 = vld [vmem:[%s9974_s5 + $0x1e0] ss:$8 sps:$4 sm:$0xff]   ;;  %v7782_v28 = vld [vmem:[%s9974_s5 + $0x50] ss:$8 sps:$4 sm:$0xff]  }
 0x356   : > { %4561 = vmatpush1.bf16.msra.mxu1 %v7700_v30  ;;  %3977 = vmatprep.subr.bf16.mxu0 %v7705_v31  ;;  %v7790_v30 = vld [vmem:[%s9974_s5 + $0x64] ss:$8 sps:$4 sm:$0xff]   ;;  %v7785_v31 = vld [vmem:[%s9974_s5 + $0xe0] ss:$8 sps:$4 sm:$0xff]  }
 0x357   : > { %4562 = vmatprep.subr.bf16.mxu1 %v7708_v32  ;;  %4007 = vmatprep.mubr.bf16.mxu0 %v8065_v41  ;;  %v7788_v32 = vld [vmem:[%s9974_s5 + $0x60] ss:$8 sps:$4 sm:$0xff]  }
 0x358   : > { %4592 = vmatprep.mubr.bf16.mxu1 %v8065_v41 }
 0x359   : > { %3978 = vmatpush1.bf16.msra.mxu0 %v7703_v33  ;;  %v7793_v33 = vld [vmem:[%s9974_s5 + $0xf4] ss:$8 sps:$4 sm:$0xff]  }
 0x35a   : > { %4563 = vmatpush1.bf16.msra.mxu1 %v7706_v34  ;;  %3979 = vmatprep.subr.bf16.mxu0 %v7711_v35  ;;  %v7796_v34 = vld [vmem:[%s9974_s5 + $0x74] ss:$8 sps:$4 sm:$0xff]   ;;  %v7791_v35 = vld [vmem:[%s9974_s5 + $0xf0] ss:$8 sps:$4 sm:$0xff]  }
 0x35b   : > { %4564 = vmatprep.subr.bf16.mxu1 %v7714_v36  ;;  %v7794_v36 = vld [vmem:[%s9974_s5 + $0x70] ss:$8 sps:$4 sm:$0xff]  }
 0x35d   : > { %3980 = vmatpush1.bf16.msra.mxu0 %v7709_v37  ;;  %v7799_v37 = vld [vmem:[%s9974_s5 + $0x484] ss:$8 sps:$4 sm:$0xff]  }
 0x35e   : > { %4565 = vmatpush1.bf16.msra.mxu1 %v7712_v38  ;;  %3981 = vmatprep.subr.bf16.mxu0 %v7717_v39  ;;  %v7801_v38 = vld [vmem:[#allocation2 + $0x22] ss:$8 sps:$4 sm:$0xff]  }
 0x35f   : > { %4566 = vmatprep.subr.bf16.mxu1 %v7720_v40  ;;  %v7804_v39 = vld [vmem:[%s9974_s5 + $0x404] ss:$8 sps:$4 sm:$0xff]   ;;  %v7797_v40 = vld [vmem:[%s9974_s5 + $0x480] ss:$8 sps:$4 sm:$0xff]  }
 0x361   : > { %3982 = vmatpush1.bf16.msra.mxu0 %v7715_v42  ;;  %v7800_v42 = vld [vmem:[#allocation2 + $0x12] ss:$8 sps:$4 sm:$0xff]  }
 0x362   : > { %4567 = vmatpush1.bf16.msra.mxu1 %v7718_v43  ;;  %3983 = vmatprep.subr.bf16.mxu0 %v7723_v44  ;;  %v7802_v43 = vld [vmem:[%s9974_s5 + $0x400] ss:$8 sps:$4 sm:$0xff]   ;;  %v7807_v44 = vld [vmem:[%s9974_s5 + $0x494] ss:$8 sps:$4 sm:$0xff]  }
 0x363   : > { %4568 = vmatprep.subr.bf16.mxu1 %v7726_v46  ;;  %v4447_v46 = vpack.c.bf16 %v7801_v38, %v7800_v42  ;;  %v7891_v38 = vld [vmem:[%s9974_s5 + $0x5f4] ss:$8 sps:$4 sm:$0xff]   ;;  %v7892_v42 = vld [vmem:[%s9974_s5 + $0x570] ss:$8 sps:$4 sm:$0xff]  }
 0x365   : > { %3984 = vmatpush1.bf16.msra.mxu0 %v7721_v48  ;;  %v7810_v48 = vld [vmem:[%s9974_s5 + $0x414] ss:$8 sps:$4 sm:$0xff]  }
 0x366   : > { %4569 = vmatpush1.bf16.msra.mxu1 %v7724_v49  ;;  %3985 = vmatprep.subr.bf16.mxu0 %v7729_v50  ;;  %v7805_v49 = vld [vmem:[%s9974_s5 + $0x490] ss:$8 sps:$4 sm:$0xff]  }
 0x367   : > { %4570 = vmatprep.subr.bf16.mxu1 %v7732_v51  ;;  %v7808_v50 = vld [vmem:[%s9974_s5 + $0x410] ss:$8 sps:$4 sm:$0xff]   ;;  %v7813_v51 = vld [vmem:[%s9974_s5 + $0x4a4] ss:$8 sps:$4 sm:$0xff]  }
 0x369   : > { %3986 = vmatpush1.bf16.msra.mxu0 %v7727_v52  ;;  %v7816_v52 = vld [vmem:[%s9974_s5 + $0x424] ss:$8 sps:$4 sm:$0xff]  }
 0x36a   : > { %4571 = vmatpush1.bf16.msra.mxu1 %v7730_v53  ;;  %3987 = vmatprep.subr.bf16.mxu0 %v7735_v54  ;;  %v7811_v53 = vld [vmem:[%s9974_s5 + $0x4a0] ss:$8 sps:$4 sm:$0xff]  }
 0x36b   : > { %4572 = vmatprep.subr.bf16.mxu1 %v7738_v55  ;;  %v7814_v54 = vld [vmem:[%s9974_s5 + $0x420] ss:$8 sps:$4 sm:$0xff]   ;;  %v7819_v55 = vld [vmem:[%s9974_s5 + $0x4b4] ss:$8 sps:$4 sm:$0xff]  }
 0x36d   : > { %3988 = vmatpush1.bf16.msra.mxu0 %v7733_v56  ;;  %v7822_v56 = vld [vmem:[%s9974_s5 + $0x434] ss:$8 sps:$4 sm:$0xff]  }
 0x36e   : > { %4573 = vmatpush1.bf16.msra.mxu1 %v7736_v57  ;;  %3989 = vmatprep.subr.bf16.mxu0 %v7741_v58  ;;  %v7817_v57 = vld [vmem:[%s9974_s5 + $0x4b0] ss:$8 sps:$4 sm:$0xff]  }
 0x36f   : > { %4574 = vmatprep.subr.bf16.mxu1 %v7744_v59  ;;  %v7820_v58 = vld [vmem:[%s9974_s5 + $0x430] ss:$8 sps:$4 sm:$0xff]   ;;  %v7825_v59 = vld [vmem:[%s9974_s5 + $0x4c4] ss:$8 sps:$4 sm:$0xff]  }
 0x371   : > { %3990 = vmatpush1.bf16.msra.mxu0 %v7739_v60  ;;  %v7828_v60 = vld [vmem:[%s9974_s5 + $0x444] ss:$8 sps:$4 sm:$0xff]  }
 0x372   : > { %4575 = vmatpush1.bf16.msra.mxu1 %v7742_v61  ;;  %4098 = vmatprep.subr.bf16.mxu0 %v7749_v63  ;;  %v7823_v61 = vld [vmem:[%s9974_s5 + $0x4c0] ss:$8 sps:$4 sm:$0xff]   ;;  %v7831_v63 = vld [vmem:[%s9974_s5 + $0x4d4] ss:$8 sps:$4 sm:$0xff]  }
 0x373   : > { %4683 = vmatprep.subr.bf16.mxu1 %v7754_v2  ;;  %v7829_v2 = vld [vmem:[%s9974_s5 + $0x4d0] ss:$8 sps:$4 sm:$0xff]  }
 0x374   : > { %4008 = vmatmul.mubr.bf16.vlgmr.msra.gmra.mrb[40].mxu0 %v3878_v6  ;;  %v7835_v6 = vld [vmem:[%s9974_s5 + $0x4e0] ss:$8 sps:$4 sm:$0xff]  }
 0x375   : > { %4593 = vmatmul.mubr.bf16.vlgmr.msra.gmra.mrb[40].mxu1 %v9284_v9  ;;  %4099 = vmatpush1.bf16.msra.mxu0 %v7747_v4  ;;  %v7837_v4 = vld [vmem:[%s9974_s5 + $0x4e4] ss:$8 sps:$4 sm:$0xff]  }
 0x376   : > { %4684 = vmatpush1.bf16.msra.mxu1 %v7752_v7  ;;  %4100 = vmatprep.subr.bf16.mxu0 %v7757_v8  ;;  %v7838_v7 = vld [vmem:[%s9974_s5 + $0x460] ss:$8 sps:$4 sm:$0xff]   ;;  %v7843_v8 = vld [vmem:[%s9974_s5 + $0x4f4] ss:$8 sps:$4 sm:$0xff]  }
 0x377   : > { %4685 = vmatprep.subr.bf16.mxu1 %v7760_v10  ;;  %4130 = vmatprep.mubr.bf16.mxu0 %v8065_v41  ;;  %v7841_v10 = vld [vmem:[%s9974_s5 + $0x4f0] ss:$8 sps:$4 sm:$0xff]  }
 0x378   : > { %4715 = vmatprep.mubr.bf16.mxu1 %v8065_v41 }
 0x379   : > { %4101 = vmatpush1.bf16.msra.mxu0 %v7755_v11  ;;  %v7844_v11 = vld [vmem:[%s9974_s5 + $0x470] ss:$8 sps:$4 sm:$0xff]  }
 0x37a   : > { %4686 = vmatpush1.bf16.msra.mxu1 %v7758_v1  ;;  %4102 = vmatprep.subr.bf16.mxu0 %v7763_v12  ;;  %v7849_v1 = vld [vmem:[%s9974_s5 + $0x584] ss:$8 sps:$4 sm:$0xff]  }
 0x37b   : > { %4687 = vmatprep.subr.bf16.mxu1 %v7766_v13  ;;  %v7852_v12 = vld [vmem:[%s9974_s5 + $0x504] ss:$8 sps:$4 sm:$0xff]   ;;  %v7847_v13 = vld [vmem:[%s9974_s5 + $0x580] ss:$8 sps:$4 sm:$0xff]  }
 0x37d   : > { %4103 = vmatpush1.bf16.msra.mxu0 %v7761_v14  ;;  %v7850_v14 = vld [vmem:[%s9974_s5 + $0x500] ss:$8 sps:$4 sm:$0xff]  }
 0x37e   : > { %4688 = vmatpush1.bf16.msra.mxu1 %v7764_v15  ;;  %4104 = vmatprep.subr.bf16.mxu0 %v7769_v16  ;;  %v7855_v15 = vld [vmem:[%s9974_s5 + $0x594] ss:$8 sps:$4 sm:$0xff]  }
 0x37f   : > { %4689 = vmatprep.subr.bf16.mxu1 %v7772_v17  ;;  %v7858_v16 = vld [vmem:[%s9974_s5 + $0x514] ss:$8 sps:$4 sm:$0xff]   ;;  %v7853_v17 = vld [vmem:[%s9974_s5 + $0x590] ss:$8 sps:$4 sm:$0xff]  }
 0x381   : > { %4105 = vmatpush1.bf16.msra.mxu0 %v7767_v19  ;;  %v7856_v19 = vld [vmem:[%s9974_s5 + $0x510] ss:$8 sps:$4 sm:$0xff]  }
 0x382   : > { %4690 = vmatpush1.bf16.msra.mxu1 %v7770_v20  ;;  %4106 = vmatprep.subr.bf16.mxu0 %v7775_v21  ;;  %v7861_v20 = vld [vmem:[%s9974_s5 + $0x5a4] ss:$8 sps:$4 sm:$0xff]   ;;  %v7859_v21 = vld [vmem:[%s9974_s5 + $0x5a0] ss:$8 sps:$4 sm:$0xff]  }
 0x383   : > { %4691 = vmatprep.subr.bf16.mxu1 %v7778_v22  ;;  %v7862_v22 = vld [vmem:[%s9974_s5 + $0x520] ss:$8 sps:$4 sm:$0xff]  }
 0x385   : > { %4107 = vmatpush1.bf16.msra.mxu0 %v7773_v23  ;;  %v7867_v23 = vld [vmem:[%s9974_s5 + $0x5b4] ss:$8 sps:$4 sm:$0xff]  }
 0x386   : > { %4692 = vmatpush1.bf16.msra.mxu1 %v7776_v24  ;;  %4108 = vmatprep.subr.bf16.mxu0 %v7781_v25  ;;  %v7865_v24 = vld [vmem:[%s9974_s5 + $0x5b0] ss:$8 sps:$4 sm:$0xff]  }
 0x387   : > { %4693 = vmatprep.subr.bf16.mxu1 %v7784_v26  ;;  %v7868_v25 = vld [vmem:[%s9974_s5 + $0x530] ss:$8 sps:$4 sm:$0xff]   ;;  %v7873_v26 = vld [vmem:[%s9974_s5 + $0x5c4] ss:$8 sps:$4 sm:$0xff]  }
 0x389   : > { %4109 = vmatpush1.bf16.msra.mxu0 %v7779_v27  ;;  %v7876_v27 = vld [vmem:[%s9974_s5 + $0x544] ss:$8 sps:$4 sm:$0xff]  }
 0x38a   : > { %4694 = vmatpush1.bf16.msra.mxu1 %v7782_v28  ;;  %4110 = vmatprep.subr.bf16.mxu0 %v7787_v29  ;;  %v7871_v28 = vld [vmem:[%s9974_s5 + $0x5c0] ss:$8 sps:$4 sm:$0xff]  }
 0x38b   : > { %4695 = vmatprep.subr.bf16.mxu1 %v7790_v30  ;;  %v7874_v29 = vld [vmem:[%s9974_s5 + $0x540] ss:$8 sps:$4 sm:$0xff]   ;;  %v7879_v30 = vld [vmem:[%s9974_s5 + $0x5d4] ss:$8 sps:$4 sm:$0xff]  }
 0x38d   : > { %4111 = vmatpush1.bf16.msra.mxu0 %v7785_v31  ;;  %v7882_v31 = vld [vmem:[%s9974_s5 + $0x554] ss:$8 sps:$4 sm:$0xff]  }
 0x38e   : > { %4696 = vmatpush1.bf16.msra.mxu1 %v7788_v32  ;;  %4112 = vmatprep.subr.bf16.mxu0 %v7793_v33  ;;  %v7877_v32 = vld [vmem:[%s9974_s5 + $0x5d0] ss:$8 sps:$4 sm:$0xff]  }
 0x38f   : > { %4697 = vmatprep.subr.bf16.mxu1 %v7796_v34  ;;  %v7880_v33 = vld [vmem:[%s9974_s5 + $0x550] ss:$8 sps:$4 sm:$0xff]   ;;  %v7885_v34 = vld [vmem:[%s9974_s5 + $0x5e4] ss:$8 sps:$4 sm:$0xff]  }
 0x391   : > { %4113 = vmatpush1.bf16.msra.mxu0 %v7791_v35  ;;  %v7888_v35 = vld [vmem:[%s9974_s5 + $0x564] ss:$8 sps:$4 sm:$0xff]  }
 0x392   : > { %4698 = vmatpush1.bf16.msra.mxu1 %v7794_v36  ;;  %4237 = vmatprep.subr.bf16.mxu0 %v7799_v37  ;;  %v7883_v36 = vld [vmem:[%s9974_s5 + $0x5e0] ss:$8 sps:$4 sm:$0xff]  }
 0x393   : > { %4822 = vmatprep.subr.bf16.mxu1 %v7804_v39  ;;  %v7886_v37 = vld [vmem:[%s9974_s5 + $0x560] ss:$8 sps:$4 sm:$0xff]   ;;  %v7894_v39 = vld [vmem:[%s9974_s5 + $0x574] ss:$8 sps:$4 sm:$0xff]  }
 0x394   : > { %4131 = vmatmul.mubr.bf16.vlgmr.msra.gmra.mrb[40].mxu0 %v9284_v9  ;;  %v7846_v9 = vld [vmem:[%s9974_s5 + $0x474] ss:$8 sps:$4 sm:$0xff]  }
 0x395   : > { %4716 = vmatmul.mubr.bf16.vlgmr.msra.gmra.mrb[40].mxu1 %v4447_v46  ;;  %4238 = vmatpush1.bf16.msra.mxu0 %v7797_v40  ;;  %v7889_v40 = vld [vmem:[%s9974_s5 + $0x5f0] ss:$8 sps:$4 sm:$0xff]  }
 0x396   : > { %4823 = vmatpush1.bf16.msra.mxu1 %v7802_v43  ;;  %4239 = vmatprep.subr.bf16.mxu0 %v7807_v44  ;;  %v7897_v43 = vld [vmem:[%s9976_s7 + $0x4] ss:$16 sps:$4 sm:$0xff]   ;;  %v7900_v44 = vld [vmem:[%s9976_s7 + $0xc] ss:$16 sps:$4 sm:$0xff]   ;;  %v7895_v46 = vld [vmem:[%s9976_s7] ss:$16 sps:$4 sm:$0xff]  }
 0x397   : > { %4824 = vmatprep.subr.bf16.mxu1 %v7810_v48  ;;  %4269 = vmatprep.mubr.bf16.mxu0 %v8065_v41  ;;  %v7898_v48 = vld [vmem:[%s9976_s7 + $0x8] ss:$16 sps:$4 sm:$0xff]  }
 0x398   : > { %4854 = vmatprep.mubr.bf16.mxu1 %v8065_v41 }
 0x399   : > { %4240 = vmatpush1.bf16.msra.mxu0 %v7805_v49  ;;  %v7903_v49 = vld [vmem:[%s9976_s7 + $0x24] ss:$16 sps:$4 sm:$0xff]  }
 0x39a   : > { %4825 = vmatpush1.bf16.msra.mxu1 %v7808_v50  ;;  %4241 = vmatprep.subr.bf16.mxu0 %v7813_v51  ;;  %v7906_v50 = vld [vmem:[%s9976_s7 + $0x2c] ss:$16 sps:$4 sm:$0xff]   ;;  %v7901_v51 = vld [vmem:[%s9976_s7 + $0x20] ss:$16 sps:$4 sm:$0xff]  }
 0x39b   : > { %4826 = vmatprep.subr.bf16.mxu1 %v7816_v52  ;;  %v7904_v52 = vld [vmem:[%s9976_s7 + $0x28] ss:$16 sps:$4 sm:$0xff]  }
 0x39d   : > { %4242 = vmatpush1.bf16.msra.mxu0 %v7811_v53  ;;  %v7909_v53 = vld [vmem:[%s9976_s7 + $0x44] ss:$16 sps:$4 sm:$0xff]  }
 0x39e   : > { %4827 = vmatpush1.bf16.msra.mxu1 %v7814_v54  ;;  %4243 = vmatprep.subr.bf16.mxu0 %v7819_v55  ;;  %v7910_v54 = vld [vmem:[%s9976_s7 + $0x48] ss:$16 sps:$4 sm:$0xff]   ;;  %v7915_v55 = vld [vmem:[%s9976_s7 + $0x64] ss:$16 sps:$4 sm:$0xff]  }
 0x39f   : > { %4828 = vmatprep.subr.bf16.mxu1 %v7822_v56  ;;  %v7918_v56 = vld [vmem:[%s9976_s7 + $0x6c] ss:$16 sps:$4 sm:$0xff]  }
 0x3a1   : > { %4244 = vmatpush1.bf16.msra.mxu0 %v7817_v57  ;;  %v7913_v57 = vld [vmem:[%s9976_s7 + $0x60] ss:$16 sps:$4 sm:$0xff]  }
 0x3a2   : > { %4829 = vmatpush1.bf16.msra.mxu1 %v7820_v58  ;;  %4245 = vmatprep.subr.bf16.mxu0 %v7825_v59  ;;  %v7916_v58 = vld [vmem:[%s9976_s7 + $0x68] ss:$16 sps:$4 sm:$0xff]   ;;  %v7921_v59 = vld [vmem:[%s9976_s7 + $0x84] ss:$16 sps:$4 sm:$0xff]  }
 0x3a3   : > { %4830 = vmatprep.subr.bf16.mxu1 %v7828_v60  ;;  %v7924_v60 = vld [vmem:[%s9976_s7 + $0x8c] ss:$16 sps:$4 sm:$0xff]  }
 0x3a5   : > { %4246 = vmatpush1.bf16.msra.mxu0 %v7823_v61  ;;  %v7919_v61 = vld [vmem:[%s9976_s7 + $0x80] ss:$16 sps:$4 sm:$0xff]  }
 0x3a6   : > { %4831 = vmatpush1.bf16.msra.mxu1 %v7826_v62  ;;  %4247 = vmatprep.subr.bf16.mxu0 %v7831_v63  ;;  %v7922_v62 = vld [vmem:[%s9976_s7 + $0x88] ss:$16 sps:$4 sm:$0xff]   ;;  %v7927_v63 = vld [vmem:[%s9976_s7 + $0xa4] ss:$16 sps:$4 sm:$0xff]  }
 0x3a7   : > { %4832 = vmatprep.subr.bf16.mxu1 %v7834_v0  ;;  %v7930_v0 = vld [vmem:[%s9976_s7 + $0xac] ss:$16 sps:$4 sm:$0xff]  }
 0x3a9   : > { %4248 = vmatpush1.bf16.msra.mxu0 %v7829_v2  ;;  %v7925_v2 = vld [vmem:[%s9976_s7 + $0xa0] ss:$16 sps:$4 sm:$0xff]  }
 0x3aa   : > { %4833 = vmatpush1.bf16.msra.mxu1 %v7832_v3  ;;  %4249 = vmatprep.subr.bf16.mxu0 %v7837_v4  ;;  %v7928_v3 = vld [vmem:[%s9976_s7 + $0xa8] ss:$16 sps:$4 sm:$0xff]   ;;  %v7933_v4 = vld [vmem:[%s9976_s7 + $0xc4] ss:$16 sps:$4 sm:$0xff]  }
 0x3ab   : > { %4834 = vmatprep.subr.bf16.mxu1 %v7840_v5  ;;  %v7936_v5 = vld [vmem:[%s9976_s7 + $0xcc] ss:$16 sps:$4 sm:$0xff]  }
 0x3ad   : > { %4250 = vmatpush1.bf16.msra.mxu0 %v7835_v6  ;;  %v7931_v6 = vld [vmem:[%s9976_s7 + $0xc0] ss:$16 sps:$4 sm:$0xff]  }
 0x3ae   : > { %4835 = vmatpush1.bf16.msra.mxu1 %v7838_v7  ;;  %4251 = vmatprep.subr.bf16.mxu0 %v7843_v8  ;;  %v7934_v7 = vld [vmem:[%s9976_s7 + $0xc8] ss:$16 sps:$4 sm:$0xff]   ;;  %v7939_v8 = vld [vmem:[%s9976_s7 + $0xe4] ss:$16 sps:$4 sm:$0xff]  }
 0x3af   : > { %4836 = vmatprep.subr.bf16.mxu1 %v7846_v9  ;;  %v7942_v9 = vld [vmem:[%s9976_s7 + $0xec] ss:$16 sps:$4 sm:$0xff]  }
 0x3b1   : > { %4252 = vmatpush1.bf16.msra.mxu0 %v7841_v10  ;;  %v7937_v10 = vld [vmem:[%s9976_s7 + $0xe0] ss:$16 sps:$4 sm:$0xff]  }
 0x3b2   : > { %4837 = vmatpush1.bf16.msra.mxu1 %v7844_v11  ;;  %4380 = vmatprep.subr.bf16.mxu0 %v7849_v1  ;;  %v7940_v11 = vld [vmem:[%s9976_s7 + $0xe8] ss:$16 sps:$4 sm:$0xff]   ;;  %v7945_v1 = vld [vmem:[%s9976_s7 + $0x104] ss:$16 sps:$4 sm:$0xff]  }
 0x3b3   : > { %4965 = vmatprep.subr.bf16.mxu1 %v7852_v12  ;;  %v7948_v12 = vld [vmem:[%s9976_s7 + $0x10c] ss:$16 sps:$4 sm:$0xff]  }
 0x3b4   : > { %4270 = vmatmul.mubr.bf16.vlgmr.msra.gmra.mrb[40].mxu0 %v8880_v47 }
 0x3b5   : > { %4855 = vmatmul.mubr.bf16.vlgmr.msra.gmra.mrb[40].mxu1 %v8982_v18  ;;  %4381 = vmatpush1.bf16.msra.mxu0 %v7847_v13  ;;  %v7864_v18 = vld [vmem:[%s9974_s5 + $0x524] ss:$8 sps:$4 sm:$0xff]   ;;  %v7943_v13 = vld [vmem:[%s9976_s7 + $0x100] ss:$16 sps:$4 sm:$0xff]  }
 0x3b6   : > { %4966 = vmatpush1.bf16.msra.mxu1 %v7850_v14  ;;  %4382 = vmatprep.subr.bf16.mxu0 %v7855_v15  ;;  %v7946_v14 = vld [vmem:[%s9976_s7 + $0x108] ss:$16 sps:$4 sm:$0xff]   ;;  %v7951_v15 = vld [vmem:[%s9976_s7 + $0x124] ss:$16 sps:$4 sm:$0xff]  }
 0x3b7   : > { %4967 = vmatprep.subr.bf16.mxu1 %v7858_v16  ;;  %4412 = vmatprep.mubr.bf16.mxu0 %v8065_v41  ;;  %v7954_v16 = vld [vmem:[%s9976_s7 + $0x12c] ss:$16 sps:$4 sm:$0xff]  }
 0x3b8   : > { %4997 = vmatprep.mubr.bf16.mxu1 %v8065_v41  ;;  %v7870_v41 = vld [vmem:[%s9974_s5 + $0x534] ss:$8 sps:$4 sm:$0xff]  }
 0x3b9   : > { %4383 = vmatpush1.bf16.msra.mxu0 %v7853_v17  ;;  %v7949_v17 = vld [vmem:[%s9976_s7 + $0x120] ss:$16 sps:$4 sm:$0xff]  }
 0x3ba   : > { %4968 = vmatpush1.bf16.msra.mxu1 %v7856_v19  ;;  %4384 = vmatprep.subr.bf16.mxu0 %v7861_v20  ;;  %v7952_v19 = vld [vmem:[%s9976_s7 + $0x128] ss:$16 sps:$4 sm:$0xff]   ;;  %v7957_v20 = vld [vmem:[%s9976_s7 + $0x144] ss:$16 sps:$4 sm:$0xff]  }
 0x3bb   : > { %4969 = vmatprep.subr.bf16.mxu1 %v7864_v18  ;;  %v7960_v18 = vld [vmem:[%s9976_s7 + $0x14c] ss:$16 sps:$4 sm:$0xff]  }
 0x3bd   : > { %4385 = vmatpush1.bf16.msra.mxu0 %v7859_v21  ;;  %v7955_v21 = vld [vmem:[%s9976_s7 + $0x140] ss:$16 sps:$4 sm:$0xff]  }
 0x3be   : > { %4970 = vmatpush1.bf16.msra.mxu1 %v7862_v22  ;;  %4386 = vmatprep.subr.bf16.mxu0 %v7867_v23  ;;  %v7958_v22 = vld [vmem:[%s9976_s7 + $0x148] ss:$16 sps:$4 sm:$0xff]   ;;  %v7963_v23 = vld [vmem:[%s9976_s7 + $0x164] ss:$16 sps:$4 sm:$0xff]  }
 0x3bf   : > { %4971 = vmatprep.subr.bf16.mxu1 %v7870_v41  ;;  %v7966_v41 = vld [vmem:[%s9976_s7 + $0x16c] ss:$16 sps:$4 sm:$0xff]  }
 0x3c1   : > { %4387 = vmatpush1.bf16.msra.mxu0 %v7865_v24  ;;  %v7961_v24 = vld [vmem:[%s9976_s7 + $0x160] ss:$16 sps:$4 sm:$0xff]  }
 0x3c2   : > { %4972 = vmatpush1.bf16.msra.mxu1 %v7868_v25  ;;  %4388 = vmatprep.subr.bf16.mxu0 %v7873_v26  ;;  %v7964_v25 = vld [vmem:[%s9976_s7 + $0x168] ss:$16 sps:$4 sm:$0xff]   ;;  %v7969_v26 = vld [vmem:[%s9976_s7 + $0x184] ss:$16 sps:$4 sm:$0xff]  }
 0x3c3   : > { %4973 = vmatprep.subr.bf16.mxu1 %v7876_v27  ;;  %v7972_v27 = vld [vmem:[%s9976_s7 + $0x18c] ss:$16 sps:$4 sm:$0xff]  }
 0x3c5   : > { %4389 = vmatpush1.bf16.msra.mxu0 %v7871_v28  ;;  %v7967_v28 = vld [vmem:[%s9976_s7 + $0x180] ss:$16 sps:$4 sm:$0xff]  }
 0x3c6   : > { %4974 = vmatpush1.bf16.msra.mxu1 %v7874_v29  ;;  %4390 = vmatprep.subr.bf16.mxu0 %v7879_v30  ;;  %v7970_v29 = vld [vmem:[%s9976_s7 + $0x188] ss:$16 sps:$4 sm:$0xff]   ;;  %v7975_v30 = vld [vmem:[%s9976_s7 + $0x1a4] ss:$16 sps:$4 sm:$0xff]  }
 0x3c7   : > { %4975 = vmatprep.subr.bf16.mxu1 %v7882_v31  ;;  %v7978_v31 = vld [vmem:[%s9976_s7 + $0x1ac] ss:$16 sps:$4 sm:$0xff]  }
 0x3c9   : > { %4391 = vmatpush1.bf16.msra.mxu0 %v7877_v32  ;;  %v7973_v32 = vld [vmem:[%s9976_s7 + $0x1a0] ss:$16 sps:$4 sm:$0xff]  }
 0x3ca   : > { %4976 = vmatpush1.bf16.msra.mxu1 %v7880_v33  ;;  %4392 = vmatprep.subr.bf16.mxu0 %v7885_v34  ;;  %v7976_v33 = vld [vmem:[%s9976_s7 + $0x1a8] ss:$16 sps:$4 sm:$0xff]   ;;  %v7981_v34 = vld [vmem:[%s9976_s7 + $0x1c4] ss:$16 sps:$4 sm:$0xff]  }
 0x3cb   : > { %4977 = vmatprep.subr.bf16.mxu1 %v7888_v35  ;;  %v7984_v35 = vld [vmem:[%s9976_s7 + $0x1cc] ss:$16 sps:$4 sm:$0xff]  }
 0x3cd   : > { %4393 = vmatpush1.bf16.msra.mxu0 %v7883_v36  ;;  %v7979_v36 = vld [vmem:[%s9976_s7 + $0x1c0] ss:$16 sps:$4 sm:$0xff]  }
 0x3ce   : > { %4978 = vmatpush1.bf16.msra.mxu1 %v7886_v37  ;;  %4394 = vmatprep.subr.bf16.mxu0 %v7891_v38  ;;  %v7982_v37 = vld [vmem:[%s9976_s7 + $0x1c8] ss:$16 sps:$4 sm:$0xff]   ;;  %v7987_v38 = vld [vmem:[%s9976_s7 + $0x1e4] ss:$16 sps:$4 sm:$0xff]  }
 0x3cf   : > { %4979 = vmatprep.subr.bf16.mxu1 %v7894_v39  ;;  %v7990_v39 = vld [vmem:[%s9976_s7 + $0x1ec] ss:$16 sps:$4 sm:$0xff]  }
 0x3d1   : > { %4395 = vmatpush1.bf16.msra.mxu0 %v7889_v40  ;;  %v7985_v40 = vld [vmem:[%s9976_s7 + $0x1e0] ss:$16 sps:$4 sm:$0xff]  }
 0x3d2   : > { %4980 = vmatpush1.bf16.msra.mxu1 %v7892_v42  ;;  %5434 = vmatprep.subr.bf16.mxu0 %v7897_v43  ;;  %v7988_v42 = vld [vmem:[%s9976_s7 + $0x1e8] ss:$16 sps:$4 sm:$0xff]   ;;  %v3221_v43 = vlaneseq }
 0x3d3   : > { %5507 = vmatprep.subr.bf16.mxu1 %v7900_v44 }
 0x3d4   : > { %4413 = vmatmul.mubr.bf16.vlgmr.msra.gmra.mrb[40].mxu0 %v8875_v45  ;;  %v7912_v45 = vld [vmem:[%s9976_s7 + $0x4c] ss:$16 sps:$4 sm:$0xff]   ;;  %v9763_v44 = vshrl.u32 %v3221_v43, 7 }
 0x3d5   : > { %4998 = vmatmul.mubr.bf16.vlgmr.msra.gmra.mrb[40].mxu1 %v8880_v47  ;;  %5435 = vmatpush1.bf16.msra.mxu0 %v7895_v46  ;;  %v7907_v47 = vld [vmem:[%s9976_s7 + $0x40] ss:$16 sps:$4 sm:$0xff]   ;;  %v8020_v43 = vld [vmem:[%s9978_s9 + $0xf8] sm:$0xff]  }
 0x3d6   : > { %5508 = vmatpush1.bf16.msra.mxu1 %v7898_v48  ;;  %5436 = vmatprep.subr.bf16.mxu0 %v7903_v49  ;;  %v3223_v46 = vsub.s32 0, %v9763_v44  ;;  %v3219_v48 = vld [vmem:[%s9975_s6] sm:$0x3]  ;;  %v3227_v49 = vsub.s32 1, %v9763_v44 }
 0x3d7   : > { %5509 = vmatprep.subr.bf16.mxu1 %v7906_v50 }
 0x3d8   : > { %v9772_v50 = vrot.slane %v3219_v48, %v3223_v46 }
 0x3d9   : > { %5437 = vmatpush1.bf16.msra.mxu0 %v7901_v51  ;;  %v9776_v51 = vrot.slane %v3219_v48, %v3227_v49  ;;  %v8021_v48 = vld [vmem:[%s9978_s9 + $0x38] sm:$0xff]  }
 0x3da   : > { %5510 = vmatpush1.bf16.msra.mxu1 %v7904_v52  ;;  %5438 = vmatprep.subr.bf16.mxu0 %v7909_v53 }
 0x3db   : > { %5511 = vmatprep.subr.bf16.mxu1 %v7912_v45 }
 0x3dd   : > { %5439 = vmatpush1.bf16.msra.mxu0 %v7907_v47 }
 0x3de   : > { %5512 = vmatpush1.bf16.msra.mxu1 %v7910_v54  ;;  %5440 = vmatprep.subr.bf16.mxu0 %v7915_v55 }
 0x3df   : > { %5513 = vmatprep.subr.bf16.mxu1 %v7918_v56 }
 0x3e1   : > { %5441 = vmatpush1.bf16.msra.mxu0 %v7913_v57 }
 0x3e2   : > { %5514 = vmatpush1.bf16.msra.mxu1 %v7916_v58  ;;  %5442 = vmatprep.subr.bf16.mxu0 %v7921_v59 }
 0x3e3   : > { %5515 = vmatprep.subr.bf16.mxu1 %v7924_v60 }
 0x3e5   : > { %5443 = vmatpush1.bf16.msra.mxu0 %v7919_v61 }
 0x3e6   : > { %5516 = vmatpush1.bf16.msra.mxu1 %v7922_v62  ;;  %5444 = vmatprep.subr.bf16.mxu0 %v7927_v63 }
 0x3e7   : > { %5517 = vmatprep.subr.bf16.mxu1 %v7930_v0 }
 0x3e9   : > { %5445 = vmatpush1.bf16.msra.mxu0 %v7925_v2 }
 0x3ea   : > { %5518 = vmatpush1.bf16.msra.mxu1 %v7928_v3  ;;  %5446 = vmatprep.subr.bf16.mxu0 %v7933_v4 }
 0x3eb   : > { %5519 = vmatprep.subr.bf16.mxu1 %v7936_v5 }
 0x3ed   : > { %5447 = vmatpush1.bf16.msra.mxu0 %v7931_v6 }
 0x3ee   : > { %5520 = vmatpush1.bf16.msra.mxu1 %v7934_v7  ;;  %5448 = vmatprep.subr.bf16.mxu0 %v7939_v8 }
 0x3ef   : > { %5521 = vmatprep.subr.bf16.mxu1 %v7942_v9 }
 0x3f1   : > { %5449 = vmatpush1.bf16.msra.mxu0 %v7937_v10 }
 0x3f2   : > { %5522 = vmatpush1.bf16.msra.mxu1 %v7940_v11  ;;  %5450 = vmatprep.subr.bf16.mxu0 %v7945_v1 }
 0x3f3   : > { %5523 = vmatprep.subr.bf16.mxu1 %v7948_v12 }
 0x3f5   : > { %5451 = vmatpush1.bf16.msra.mxu0 %v7943_v13 }
 0x3f6   : > { %5524 = vmatpush1.bf16.msra.mxu1 %v7946_v14  ;;  %5452 = vmatprep.subr.bf16.mxu0 %v7951_v15  ;;  %v7991_v14 = vld [vmem:[%s9978_s9 + $0x40] sm:$0xff]  }
 0x3f7   : > { %5525 = vmatprep.subr.bf16.mxu1 %v7954_v16  ;;  %v7992_v15 = vld [vmem:[%s9978_s9 + $0xc0] sm:$0xff]  }
 0x3f8   : > { %v7993_v16 = vld [vmem:[%s9978_s9] sm:$0xff]  }
 0x3f9   : > { %5453 = vmatpush1.bf16.msra.mxu0 %v7949_v17  ;;  %v7994_v17 = vld [vmem:[%s9978_s9 + $0x80] sm:$0xff]  }
 0x3fa   : > { %5526 = vmatpush1.bf16.msra.mxu1 %v7952_v19  ;;  %5454 = vmatprep.subr.bf16.mxu0 %v7957_v20  ;;  %v7995_v19 = vld [vmem:[%s9978_s9 + $0x48] sm:$0xff]  }
 0x3fb   : > { %5527 = vmatprep.subr.bf16.mxu1 %v7960_v18  ;;  %v7996_v20 = vld [vmem:[%s9978_s9 + $0xc8] sm:$0xff]  }
 0x3fc   : > { %v7997_v18 = vld [vmem:[%s9978_s9 + $0x8] sm:$0xff]  }
 0x3fd   : > { %5455 = vmatpush1.bf16.msra.mxu0 %v7955_v21  ;;  %v7998_v21 = vld [vmem:[%s9978_s9 + $0x88] sm:$0xff]  }
 0x3fe   : > { %5528 = vmatpush1.bf16.msra.mxu1 %v7958_v22  ;;  %5456 = vmatprep.subr.bf16.mxu0 %v7963_v23  ;;  %v7999_v22 = vld [vmem:[%s9978_s9 + $0x50] sm:$0xff]  }
 0x3ff   : > { %5529 = vmatprep.subr.bf16.mxu1 %v7966_v41  ;;  %v8000_v23 = vld [vmem:[%s9978_s9 + $0xd0] sm:$0xff]  }
 0x400   : > { %v8001_v41 = vld [vmem:[%s9978_s9 + $0x10] sm:$0xff]  }
 0x401   : > { %5457 = vmatpush1.bf16.msra.mxu0 %v7961_v24  ;;  %v8002_v24 = vld [vmem:[%s9978_s9 + $0x90] sm:$0xff]  }
 0x402   : > { %5530 = vmatpush1.bf16.msra.mxu1 %v7964_v25  ;;  %5458 = vmatprep.subr.bf16.mxu0 %v7969_v26  ;;  %v8003_v25 = vld [vmem:[%s9978_s9 + $0x58] sm:$0xff]  }
 0x403   : > { %5531 = vmatprep.subr.bf16.mxu1 %v7972_v27  ;;  %v8004_v26 = vld [vmem:[%s9978_s9 + $0xd8] sm:$0xff]  }
 0x404   : > { %v8005_v27 = vld [vmem:[%s9978_s9 + $0x18] sm:$0xff]  }
 0x405   : > { %5459 = vmatpush1.bf16.msra.mxu0 %v7967_v28  ;;  %v8006_v28 = vld [vmem:[%s9978_s9 + $0x98] sm:$0xff]  }
 0x406   : > { %5532 = vmatpush1.bf16.msra.mxu1 %v7970_v29  ;;  %5460 = vmatprep.subr.bf16.mxu0 %v7975_v30  ;;  %v8007_v29 = vld [vmem:[%s9978_s9 + $0x60] sm:$0xff]  }
 0x407   : > { %5533 = vmatprep.subr.bf16.mxu1 %v7978_v31  ;;  %v8008_v30 = vld [vmem:[%s9978_s9 + $0xe0] sm:$0xff]  }
 0x408   : > { %v8009_v31 = vld [vmem:[%s9978_s9 + $0x20] sm:$0xff]  }
 0x409   : > { %5461 = vmatpush1.bf16.msra.mxu0 %v7973_v32  ;;  %v8010_v32 = vld [vmem:[%s9978_s9 + $0xa0] sm:$0xff]  }
 0x40a   : > { %5534 = vmatpush1.bf16.msra.mxu1 %v7976_v33  ;;  %5462 = vmatprep.subr.bf16.mxu0 %v7981_v34  ;;  %v8011_v33 = vld [vmem:[%s9978_s9 + $0x68] sm:$0xff]  }
 0x40b   : > { %5535 = vmatprep.subr.bf16.mxu1 %v7984_v35  ;;  %v8012_v34 = vld [vmem:[%s9978_s9 + $0xe8] sm:$0xff]  }
 0x40c   : > { %v8013_v35 = vld [vmem:[%s9978_s9 + $0x28] sm:$0xff]  }
 0x40d   : > { %5463 = vmatpush1.bf16.msra.mxu0 %v7979_v36  ;;  %v8014_v36 = vld [vmem:[%s9978_s9 + $0xa8] sm:$0xff]  }
 0x40e   : > { %5536 = vmatpush1.bf16.msra.mxu1 %v7982_v37  ;;  %5464 = vmatprep.subr.bf16.mxu0 %v7987_v38  ;;  %v8015_v37 = vld [vmem:[%s9978_s9 + $0x70] sm:$0xff]  }
 0x40f   : > { %5537 = vmatprep.subr.bf16.mxu1 %v7990_v39  ;;  %v8016_v38 = vld [vmem:[%s9978_s9 + $0xf0] sm:$0xff]  }
 0x410   : > { %v8017_v39 = vld [vmem:[%s9978_s9 + $0x30] sm:$0xff]  }
 0x411   : > { %5465 = vmatpush1.bf16.msra.mxu0 %v7985_v40  ;;  %v8018_v40 = vld [vmem:[%s9978_s9 + $0xb0] sm:$0xff]  }
 0x412   : > { %5538 = vmatpush1.bf16.msra.mxu1 %v7988_v42  ;;  %6814 = vmatprep.subr.bf16.mxu0 %v7991_v14  ;;  %v8019_v42 = vld [vmem:[%s9978_s9 + $0x78] sm:$0xff]  }
 0x413   : > { %6854 = vmatprep.subr.bf16.mxu1 %v7992_v15  ;;  %v5108_v15 = vsub.s32 3, %v9763_v44 }
 0x427   : > { %v3206_v52 = vpop.f32.mrb[36].mxu0 }
 0x428   : > { %v3231_v53 = vadd.f32 %v9772_v50, %v3206_v52  ;;  %v3816_v45 = vpop.f32.mrb[36].mxu1  ;;  %v3208_v47 = vpop.f32.mrb[37].mxu0  ;;  %v8022_v52 = vld [vmem:[%s9978_s9 + $0xb8] sm:$0xff]  }
 0x429   : > { %v3829_v54 = vadd.f32 %v3816_v45, %v9772_v50  ;;  %v3232_v55 = vadd.f32 %v9776_v51, %v3208_v47  ;;  %v3818_v56 = vpop.f32.mrb[37].mxu1  ;;  %v3210_v57 = vpop.f32.mrb[38].mxu0 }
 0x42a   : > { %v3830_v58 = vadd.f32 %v3818_v56, %v9776_v51  ;;  %v3233_v59 = vadd.f32 %v9772_v50, %v3210_v57  ;;  %v3820_v60 = vpop.f32.mrb[38].mxu1  ;;  %v3212_v61 = vpop.f32.mrb[39].mxu0  ;;  %v3235_v2 = vmax.f32 %v3231_v53, 0.0 }
 0x42b   : > { %v3831_v62 = vadd.f32 %v3820_v60, %v9772_v50  ;;  %v3234_v63 = vadd.f32 %v9776_v51, %v3212_v61  ;;  %v3822_v0 = vpop.f32.mrb[39].mxu1  ;;  %v3833_v5 = vmax.f32 %v3829_v54, 0.0  ;;  %v3236_v6 = vmax.f32 %v3232_v55, 0.0 }
 0x42c   : > { %v3237_v3 = vmax.f32 %v3233_v59, 0.0  ;;  %v3832_v4 = vadd.f32 %v3822_v0, %v9776_v51  ;;  %v3834_v9 = vmax.f32 %v3830_v58, 0.0 }
 0x42d   : > { %v3835_v7 = vmax.f32 %v3831_v62, 0.0  ;;  %v3238_v8 = vmax.f32 %v3234_v63, 0.0 }
 0x42e   : > { %v5020_v10 = vpack.c.bf16 %v3237_v3, %v3235_v2  ;;  %v3836_v11 = vmax.f32 %v3832_v4, 0.0 }
 0x42f   : > { %v5022_v1 = vpack.c.bf16 %v3835_v7, %v3833_v5  ;;  %v5021_v12 = vpack.c.bf16 %v3238_v8, %v3236_v6 }
 0x430   : > { %v5023_v13 = vpack.c.bf16 %v3836_v11, %v3834_v9 }
 0x431   : > { %5466 = vmatprep.mubr.bf16.mxu0 %v5021_v12  ;;  %5539 = vmatprep.mubr.bf16.mxu1 %v5021_v12 }
 0x432   : > { %5467 = vmatmul.mubr.bf16.vlgmr.msra.gmra.mrb[44].mxu0 %v5020_v10  ;;  %5540 = vmatmul.mubr.bf16.vlgmr.msra.gmra.mrb[44].mxu1 %v5020_v10 }
 0x433   : > { %5476 = vmatprep.mubr.bf16.mxu0 %v5023_v13  ;;  %5549 = vmatprep.mubr.bf16.mxu1 %v5023_v13 }
 0x434   : > { %6815 = vmatpush3.bf16.msra.mxu0 %v7993_v16  ;;  %6855 = vmatpush3.bf16.msra.mxu1 %v7994_v17 }
 0x435   : > { %6816 = vmatprep.subr.bf16.mxu0 %v7995_v19  ;;  %6856 = vmatprep.subr.bf16.mxu1 %v7996_v20 }
 0x438   : > { %6817 = vmatpush3.bf16.msra.mxu0 %v7997_v18  ;;  %6857 = vmatpush3.bf16.msra.mxu1 %v7998_v21 }
 0x439   : > { %6818 = vmatprep.subr.bf16.mxu0 %v7999_v22  ;;  %6858 = vmatprep.subr.bf16.mxu1 %v8000_v23 }
 0x43a   : > { %5477 = vmatmul.mubr.bf16.gmra.mrb[48].mxu0 %v5022_v1  ;;  %5550 = vmatmul.mubr.bf16.gmra.mrb[48].mxu1 %v5022_v1 }
 0x43c   : > { %6819 = vmatpush3.bf16.msra.mxu0 %v8001_v41  ;;  %6859 = vmatpush3.bf16.msra.mxu1 %v8002_v24 }
 0x43d   : > { %6820 = vmatprep.subr.bf16.mxu0 %v8003_v25  ;;  %6860 = vmatprep.subr.bf16.mxu1 %v8004_v26 }
 0x440   : > { %6821 = vmatpush3.bf16.msra.mxu0 %v8005_v27  ;;  %6861 = vmatpush3.bf16.msra.mxu1 %v8006_v28 }
 0x441   : > { %6822 = vmatprep.subr.bf16.mxu0 %v8007_v29  ;;  %6862 = vmatprep.subr.bf16.mxu1 %v8008_v30 }
 0x444   : > { %6823 = vmatpush3.bf16.msra.mxu0 %v8009_v31  ;;  %6863 = vmatpush3.bf16.msra.mxu1 %v8010_v32 }
 0x445   : > { %6824 = vmatprep.subr.bf16.mxu0 %v8011_v33  ;;  %6864 = vmatprep.subr.bf16.mxu1 %v8012_v34 }
 0x448   : > { %6825 = vmatpush3.bf16.msra.mxu0 %v8013_v35  ;;  %6865 = vmatpush3.bf16.msra.mxu1 %v8014_v36 }
 0x449   : > { %6826 = vmatprep.subr.bf16.mxu0 %v8015_v37  ;;  %6866 = vmatprep.subr.bf16.mxu1 %v8016_v38 }
 0x44c   : > { %6827 = vmatpush3.bf16.msra.mxu0 %v8017_v39  ;;  %6867 = vmatpush3.bf16.msra.mxu1 %v8018_v40 }
 0x44d   : > { %6828 = vmatprep.subr.bf16.mxu0 %v8019_v42  ;;  %6868 = vmatprep.subr.bf16.mxu1 %v8020_v43 }
 0x450   : > { %6829 = vmatpush3.bf16.msra.mxu0 %v8021_v48  ;;  %6869 = vmatpush3.bf16.msra.mxu1 %v8022_v52 }
 0x4a7   : > { %v4414_v53 = vpop.f32.mrb[40].mxu0 }
 0x4a8   : > { %v4427_v45 = vadd.f32 %v4414_v53, %v9772_v50  ;;  %v4999_v47 = vpop.f32.mrb[40].mxu1  ;;  %v4416_v54 = vpop.f32.mrb[41].mxu0 }
 0x4a9   : > { %v5012_v55 = vadd.f32 %v4999_v47, %v9772_v50  ;;  %v4428_v56 = vadd.f32 %v4416_v54, %v9776_v51  ;;  %v5001_v57 = vpop.f32.mrb[41].mxu1  ;;  %v4418_v58 = vpop.f32.mrb[42].mxu0 }
 0x4aa   : > { %v5013_v59 = vadd.f32 %v5001_v57, %v9776_v51  ;;  %v4429_v60 = vadd.f32 %v4418_v58, %v9772_v50  ;;  %v5003_v61 = vpop.f32.mrb[42].mxu1  ;;  %v4420_v62 = vpop.f32.mrb[43].mxu0  ;;  %v4431_v3 = vmax.f32 %v4427_v45, 0.0 }
 0x4ab   : > { %v5014_v63 = vadd.f32 %v5003_v61, %v9772_v50  ;;  %v4430_v0 = vadd.f32 %v4420_v62, %v9776_v51  ;;  %v5005_v2 = vpop.f32.mrb[43].mxu1  ;;  %v5016_v6 = vmax.f32 %v5012_v55, 0.0  ;;  %v4432_v7 = vmax.f32 %v4428_v56, 0.0 }
 0x4ac   : > { %v4433_v4 = vmax.f32 %v4429_v60, 0.0  ;;  %v5015_v5 = vadd.f32 %v5005_v2, %v9776_v51  ;;  %v5017_v10 = vmax.f32 %v5013_v59, 0.0  ;;  %v5104_v50 = vsub.s32 2, %v9763_v44  ;;  %v5092_v51 = vld [vmem:[%s9977_s8] sm:$0xf] }
 0x4ad   : > { %v5018_v8 = vmax.f32 %v5014_v63, 0.0  ;;  %v4434_v9 = vmax.f32 %v4430_v0, 0.0  ;;  %v9897_v16 = vrot.slane %v5092_v51, %v3223_v46  ;;  %v9903_v19 = vrot.slane %v5092_v51, %v3227_v49 }
 0x4ae   : > { %v5024_v11 = vpack.c.bf16 %v4433_v4, %v4431_v3  ;;  %v5019_v1 = vmax.f32 %v5015_v5, 0.0  ;;  %v9899_v17 = vrot.slane %v5092_v51, %v5104_v50  ;;  %v9905_v20 = vrot.slane %v5092_v51, %v5108_v15 }
 0x4af   : > { %v5026_v12 = vpack.c.bf16 %v5018_v8, %v5016_v6  ;;  %v5025_v13 = vpack.c.bf16 %v4434_v9, %v4432_v7 }
 0x4b0   : > { %v5027_v14 = vpack.c.bf16 %v5019_v1, %v5017_v10 }
 0x4b1   : > { %5486 = vmatprep.mubr.bf16.mxu0 %v5025_v13  ;;  %5559 = vmatprep.mubr.bf16.mxu1 %v5025_v13 }
 0x4b2   : > { %5487 = vmatmul.mubr.bf16.gmra.mrb[52].mxu0 %v5024_v11  ;;  %5560 = vmatmul.mubr.bf16.gmra.mrb[52].mxu1 %v5024_v11 }
 0x4b3   : > { %5496 = vmatprep.mubr.bf16.mxu0 %v5027_v14  ;;  %5569 = vmatprep.mubr.bf16.mxu1 %v5027_v14 }
 0x4ba   : > { %5497 = vmatmul.mubr.bf16.gmra.mrb[56].mxu0 %v5026_v12  ;;  %5570 = vmatmul.mubr.bf16.gmra.mrb[56].mxu1 %v5026_v12 }
 0x505   : > { %v5468_v18 = vpop.f32.mrb[44].mxu0  ;;  %v5541_v21 = vpop.f32.mrb[44].mxu1 }
 0x506   : > { %v5469_v22 = vadd.f32 %v5468_v18, %v9897_v16  ;;  %v5542_v23 = vadd.f32 %v5541_v21, %v9899_v17  ;;  %v5470_v41 = vpop.f32.mrb[45].mxu0  ;;  %v5543_v24 = vpop.f32.mrb[45].mxu1 }
 0x507   : > { %v5471_v25 = vadd.f32 %v5470_v41, %v9903_v19  ;;  %v5544_v46 = vadd.f32 %v5543_v24, %v9905_v20  ;;  %v5472_v26 = vpop.f32.mrb[46].mxu0  ;;  %v5545_v27 = vpop.f32.mrb[46].mxu1 }
 0x508   : > { %v5473_v44 = vadd.f32 %v5472_v26, %v9897_v16  ;;  %v5546_v49 = vadd.f32 %v5545_v27, %v9899_v17  ;;  %v5474_v28 = vpop.f32.mrb[47].mxu0  ;;  %v5547_v29 = vpop.f32.mrb[47].mxu1  ;;  %v5580_v32 = vmax.f32 %v5469_v22, 0.0  ;;  %v5582_v33 = vmax.f32 %v5542_v23, 0.0 }
 0x509   : > { %v5475_v30 = vadd.f32 %v5474_v28, %v9903_v19  ;;  %v5548_v31 = vadd.f32 %v5547_v29, %v9905_v20  ;;  %v5581_v36 = vmax.f32 %v5471_v25, 0.0  ;;  %v5583_v37 = vmax.f32 %v5544_v46, 0.0 }
 0x50a   : > { %v5584_v34 = vmax.f32 %v5473_v44, 0.0  ;;  %v5586_v35 = vmax.f32 %v5546_v49, 0.0 }
 0x50b   : > { %v5585_v38 = vmax.f32 %v5475_v30, 0.0  ;;  %v5587_v39 = vmax.f32 %v5548_v31, 0.0 }
 0x50c   : > { %v5612_v40 = vpack.c.bf16 %v5584_v34, %v5580_v32  ;;  %v5614_v42 = vpack.c.bf16 %v5586_v35, %v5582_v33 }
 0x50d   : > { %v5613_v43 = vpack.c.bf16 %v5585_v38, %v5581_v36  ;;  %v5615_v48 = vpack.c.bf16 %v5587_v39, %v5583_v37  ;;  %v5478_v52 = vpop.f32.mrb[48].mxu0  ;;  %v5551_v53 = vpop.f32.mrb[48].mxu1 }
 0x50e   : > { %v5479_v45 = vadd.f32 %v5478_v52, %v9897_v16  ;;  %v5552_v47 = vadd.f32 %v5551_v53, %v9899_v17  ;;  %v5480_v54 = vpop.f32.mrb[49].mxu0  ;;  %v5553_v55 = vpop.f32.mrb[49].mxu1 }
 0x50f   : > { %v5481_v56 = vadd.f32 %v5480_v54, %v9903_v19  ;;  %v5554_v57 = vadd.f32 %v5553_v55, %v9905_v20  ;;  %v5482_v58 = vpop.f32.mrb[50].mxu0  ;;  %v5555_v59 = vpop.f32.mrb[50].mxu1  ;;  %5923 = vmatprep.mubr.bf16.mxu0 %v5613_v43  ;;  %5988 = vmatprep.mubr.bf16.mxu1 %v5615_v48 }
 0x510   : > { %v5483_v60 = vadd.f32 %v5482_v58, %v9897_v16  ;;  %v5556_v61 = vadd.f32 %v5555_v59, %v9899_v17  ;;  %v5484_v62 = vpop.f32.mrb[51].mxu0  ;;  %v5557_v63 = vpop.f32.mrb[51].mxu1  ;;  %5924 = vmatmul.mubr.bf16.vlgmr.msra.gmra.mrb[60].mxu0 %v5612_v40  ;;  %5989 = vmatmul.mubr.bf16.vlgmr.msra.gmra.mrb[60].mxu1 %v5614_v42  ;;  %v5588_v3 = vmax.f32 %v5479_v45, 0.0  ;;  %v5590_v4 = vmax.f32 %v5552_v47, 0.0 }
 0x511   : > { %v5485_v0 = vadd.f32 %v5484_v62, %v9903_v19  ;;  %v5558_v2 = vadd.f32 %v5557_v63, %v9905_v20  ;;  %v5589_v7 = vmax.f32 %v5481_v56, 0.0  ;;  %v5591_v8 = vmax.f32 %v5554_v57, 0.0 }
 0x512   : > { %v5592_v5 = vmax.f32 %v5483_v60, 0.0  ;;  %v5594_v6 = vmax.f32 %v5556_v61, 0.0 }
 0x513   : > { %v5593_v9 = vmax.f32 %v5485_v0, 0.0  ;;  %v5595_v10 = vmax.f32 %v5558_v2, 0.0 }
 0x514   : > { %v5616_v11 = vpack.c.bf16 %v5592_v5, %v5588_v3  ;;  %v5618_v1 = vpack.c.bf16 %v5594_v6, %v5590_v4 }
 0x515   : > { %v5617_v12 = vpack.c.bf16 %v5593_v9, %v5589_v7  ;;  %v5619_v13 = vpack.c.bf16 %v5595_v10, %v5591_v8 }
 0x517   : > { %5931 = vmatprep.mubr.bf16.mxu0 %v5617_v12  ;;  %5996 = vmatprep.mubr.bf16.mxu1 %v5619_v13 }
 0x518   : > { %5932 = vmatmul.mubr.bf16.gmra.mrb[64].mxu0 %v5616_v11  ;;  %5997 = vmatmul.mubr.bf16.gmra.mrb[64].mxu1 %v5618_v1 }
 0x585   : > { %v5488_v14 = vpop.f32.mrb[52].mxu0  ;;  %v5561_v50 = vpop.f32.mrb[52].mxu1 }
 0x586   : > { %v5489_v51 = vadd.f32 %v5488_v14, %v9897_v16  ;;  %v5562_v15 = vadd.f32 %v5561_v50, %v9899_v17  ;;  %v5490_v18 = vpop.f32.mrb[53].mxu0  ;;  %v5563_v21 = vpop.f32.mrb[53].mxu1 }
 0x587   : > { %v5491_v22 = vadd.f32 %v5490_v18, %v9903_v19  ;;  %v5564_v23 = vadd.f32 %v5563_v21, %v9905_v20  ;;  %v5492_v41 = vpop.f32.mrb[54].mxu0  ;;  %v5565_v24 = vpop.f32.mrb[54].mxu1 }
 0x588   : > { %v5493_v25 = vadd.f32 %v5492_v41, %v9897_v16  ;;  %v5566_v46 = vadd.f32 %v5565_v24, %v9899_v17  ;;  %v5494_v26 = vpop.f32.mrb[55].mxu0  ;;  %v5567_v27 = vpop.f32.mrb[55].mxu1  ;;  %v5596_v28 = vmax.f32 %v5489_v51, 0.0  ;;  %v5598_v29 = vmax.f32 %v5562_v15, 0.0 }
 0x589   : > { %v5495_v44 = vadd.f32 %v5494_v26, %v9903_v19  ;;  %v5568_v49 = vadd.f32 %v5567_v27, %v9905_v20  ;;  %v5597_v32 = vmax.f32 %v5491_v22, 0.0  ;;  %v5599_v33 = vmax.f32 %v5564_v23, 0.0 }
 0x58a   : > { %v5600_v30 = vmax.f32 %v5493_v25, 0.0  ;;  %v5602_v31 = vmax.f32 %v5566_v46, 0.0 }
 0x58b   : > { %v5601_v34 = vmax.f32 %v5495_v44, 0.0  ;;  %v5603_v35 = vmax.f32 %v5568_v49, 0.0 }
 0x58c   : > { %v5620_v36 = vpack.c.bf16 %v5600_v30, %v5596_v28  ;;  %v5622_v37 = vpack.c.bf16 %v5602_v31, %v5598_v29 }
 0x58d   : > { %v5621_v38 = vpack.c.bf16 %v5601_v34, %v5597_v32  ;;  %v5623_v39 = vpack.c.bf16 %v5603_v35, %v5599_v33  ;;  %v5498_v40 = vpop.f32.mrb[56].mxu0  ;;  %v5571_v42 = vpop.f32.mrb[56].mxu1 }
 0x58e   : > { %v5499_v43 = vadd.f32 %v5498_v40, %v9897_v16  ;;  %v5572_v48 = vadd.f32 %v5571_v42, %v9899_v17  ;;  %v5500_v52 = vpop.f32.mrb[57].mxu0  ;;  %v5573_v53 = vpop.f32.mrb[57].mxu1 }
 0x58f   : > { %v5501_v45 = vadd.f32 %v5500_v52, %v9903_v19  ;;  %v5574_v47 = vadd.f32 %v5573_v53, %v9905_v20  ;;  %v5502_v54 = vpop.f32.mrb[58].mxu0  ;;  %v5575_v55 = vpop.f32.mrb[58].mxu1  ;;  %5939 = vmatprep.mubr.bf16.mxu0 %v5621_v38  ;;  %6004 = vmatprep.mubr.bf16.mxu1 %v5623_v39 }
 0x590   : > { %v5503_v56 = vadd.f32 %v5502_v54, %v9897_v16  ;;  %v5576_v57 = vadd.f32 %v5575_v55, %v9899_v17  ;;  %v5504_v58 = vpop.f32.mrb[59].mxu0  ;;  %v5577_v59 = vpop.f32.mrb[59].mxu1  ;;  %5940 = vmatmul.mubr.bf16.gmra.mrb[68].mxu0 %v5620_v36  ;;  %6005 = vmatmul.mubr.bf16.gmra.mrb[68].mxu1 %v5622_v37  ;;  %v5604_v62 = vmax.f32 %v5499_v43, 0.0  ;;  %v5606_v63 = vmax.f32 %v5572_v48, 0.0 }
 0x591   : > { %v5505_v60 = vadd.f32 %v5504_v58, %v9903_v19  ;;  %v5578_v61 = vadd.f32 %v5577_v59, %v9905_v20  ;;  %v5605_v3 = vmax.f32 %v5501_v45, 0.0  ;;  %v5607_v4 = vmax.f32 %v5574_v47, 0.0  ;;  %v9942_v20 = vld [vmem:[%s9979_s10] ss:$0 sm:$0xff] }
 0x592   : > { %v5608_v0 = vmax.f32 %v5503_v56, 0.0  ;;  %v5610_v2 = vmax.f32 %v5576_v57, 0.0 }
 0x593   : > { %v5609_v5 = vmax.f32 %v5505_v60, 0.0  ;;  %v5611_v6 = vmax.f32 %v5578_v61, 0.0 }
 0x594   : > { %v5624_v7 = vpack.c.bf16 %v5608_v0, %v5604_v62  ;;  %v5626_v16 = vpack.c.bf16 %v5610_v2, %v5606_v63 }
 0x595   : > { %v5625_v8 = vpack.c.bf16 %v5609_v5, %v5605_v3  ;;  %v5627_v17 = vpack.c.bf16 %v5611_v6, %v5607_v4 }
 0x597   : > { %5947 = vmatprep.mubr.bf16.mxu0 %v5625_v8  ;;  %6012 = vmatprep.mubr.bf16.mxu1 %v5627_v17 }
 0x598   : > { %5948 = vmatmul.mubr.bf16.gmra.mrb[72].mxu0 %v5624_v7  ;;  %6013 = vmatmul.mubr.bf16.gmra.mrb[72].mxu1 %v5626_v16 }
 0x5e3   : > { %v6830_v9 = vpop.f32.mrb[60].mxu0  ;;  %v6870_v19 = vpop.f32.mrb[60].mxu1 }
 0x5e4   : > { %v6831_v10 = vpop.f32.mrb[61].mxu0  ;;  %v6871_v11 = vpop.f32.mrb[61].mxu1 }
 0x5e5   : > { %v6832_v1 = vadd.f32 %v6831_v10, %v6830_v9  ;;  %v6872_v12 = vadd.f32 %v6871_v11, %v6870_v19  ;;  %v6833_v13 = vpop.f32.mrb[62].mxu0  ;;  %v6873_v14 = vpop.f32.mrb[62].mxu1 }
 0x5e6   : > { %v6834_v50 = vpop.f32.mrb[63].mxu0  ;;  %v6874_v51 = vpop.f32.mrb[63].mxu1 }
 0x5e7   : > { %v5926_v15 = vadd.f32 %v6832_v1, %v9942_v20  ;;  %v6835_v18 = vadd.f32 %v6834_v50, %v6833_v13  ;;  %v6875_v21 = vadd.f32 %v6874_v51, %v6873_v14 }
 0x5e9   : > { %v5991_v22 = vadd.f32 %v6872_v12, %v5926_v15  ;;  %v5929_v23 = vadd.f32 %v6835_v18, %v9942_v20 }
 0x5eb   : > { %v6641_v41 = vmul.f32 -1.442695, %v5991_v22  ;;  %v5994_v24 = vadd.f32 %v6875_v21, %v5929_v23  ;;  %v6836_v25 = vpop.f32.mrb[64].mxu0  ;;  %v6876_v46 = vpop.f32.mrb[64].mxu1 }
 0x5ec   : > { %v6837_v26 = vpop.f32.mrb[65].mxu0  ;;  %v6877_v27 = vpop.f32.mrb[65].mxu1 }
 0x5ed   : > { %8023 = vpow2.f32 %v6641_v41  ;;  %v6642_v44 = vmul.f32 -1.442695, %v5994_v24  ;;  %v6838_v49 = vadd.f32 %v6837_v26, %v6836_v25  ;;  %v6878_v28 = vadd.f32 %v6877_v27, %v6876_v46  ;;  %v6839_v29 = vpop.f32.mrb[66].mxu0  ;;  %v6879_v30 = vpop.f32.mrb[66].mxu1 }
 0x5ee   : > { %v6840_v31 = vpop.f32.mrb[67].mxu0  ;;  %v6880_v32 = vpop.f32.mrb[67].mxu1 }
 0x5ef   : > { %8025 = vpow2.f32 %v6642_v44  ;;  %v5934_v33 = vadd.f32 %v6838_v49, %v9942_v20  ;;  %v6841_v34 = vadd.f32 %v6840_v31, %v6839_v29  ;;  %v6881_v35 = vadd.f32 %v6880_v32, %v6879_v30 }
 0x5f1   : > { %v5999_v36 = vadd.f32 %v6878_v28, %v5934_v33  ;;  %v5937_v37 = vadd.f32 %v6841_v34, %v9942_v20 }
 0x5f3   : > { %v6643_v38 = vmul.f32 -1.442695, %v5999_v36  ;;  %v6002_v39 = vadd.f32 %v6881_v35, %v5937_v37 }
 0x5f5   : > { %8027 = vpow2.f32 %v6643_v38  ;;  %v6644_v40 = vmul.f32 -1.442695, %v6002_v39 }
 0x5f7   : > { %v8024_v42 = vpop.eup %8023  ;;  %8029 = vpow2.f32 %v6644_v40 }
 0x5f8   : > { %v6045_v43 = vadd.f32 1.0, %v8024_v42 }
 0x5f9   : > { %v8026_v48 = vpop.eup %8025 }
 0x5fa   : > { %8031 = vrcp.f32 %v6045_v43  ;;  %v6046_v52 = vadd.f32 1.0, %v8026_v48 }
 0x5fc   : > { %8033 = vrcp.f32 %v6046_v52 }
 0x5ff   : > { %v8028_v53 = vpop.eup %8027 }
 0x600   : > { %v6047_v45 = vadd.f32 1.0, %v8028_v53 }
 0x601   : > { %v8030_v47 = vpop.eup %8029 }
 0x602   : > { %8035 = vrcp.f32 %v6047_v45  ;;  %v6048_v54 = vadd.f32 1.0, %v8030_v47 }
 0x604   : > { %v8032_v55 = vpop.eup %8031  ;;  %8037 = vrcp.f32 %v6048_v54 }
 0x605   : > { %6069 = vst [vmem:[%s9952_s27] sm:$0xff] %v8032_v55 }
 0x606   : > { %v8034_v56 = vpop.eup %8033 }
 0x607   : > { %6070 = vst [vmem:[%s9952_s27 + $0x8] sm:$0xff] %v8034_v56 }
 0x60c   : > { %v8036_v57 = vpop.eup %8035 }
 0x60d   : > { %6071 = vst [vmem:[%s9952_s27 + $0x10] sm:$0xff] %v8036_v57 }
 0x60e   : > { %v8038_v58 = vpop.eup %8037 }
 0x60f   : > { %6072 = vst [vmem:[%s9952_s27 + $0x18] sm:$0xff] %v8038_v58 }
 0x663   : > { %v6842_v59 = vpop.f32.mrb[68].mxu0  ;;  %v6882_v60 = vpop.f32.mrb[68].mxu1 }
 0x664   : > { %v6843_v61 = vpop.f32.mrb[69].mxu0  ;;  %v6883_v62 = vpop.f32.mrb[69].mxu1 }
 0x665   : > { %v6844_v63 = vadd.f32 %v6843_v61, %v6842_v59  ;;  %v6884_v0 = vadd.f32 %v6883_v62, %v6882_v60  ;;  %v6845_v2 = vpop.f32.mrb[70].mxu0  ;;  %v6885_v3 = vpop.f32.mrb[70].mxu1 }
 0x666   : > { %v6846_v4 = vpop.f32.mrb[71].mxu0  ;;  %v6886_v5 = vpop.f32.mrb[71].mxu1 }
 0x667   : > { %v5942_v6 = vadd.f32 %v6844_v63, %v9942_v20  ;;  %v6847_v7 = vadd.f32 %v6846_v4, %v6845_v2  ;;  %v6887_v16 = vadd.f32 %v6886_v5, %v6885_v3 }
 0x669   : > { %v6007_v8 = vadd.f32 %v6884_v0, %v5942_v6  ;;  %v5945_v17 = vadd.f32 %v6847_v7, %v9942_v20 }
 0x66b   : > { %v6645_v9 = vmul.f32 -1.442695, %v6007_v8  ;;  %v6010_v19 = vadd.f32 %v6887_v16, %v5945_v17  ;;  %v6848_v10 = vpop.f32.mrb[72].mxu0  ;;  %v6888_v11 = vpop.f32.mrb[72].mxu1 }
 0x66c   : > { %v6849_v1 = vpop.f32.mrb[73].mxu0  ;;  %v6889_v12 = vpop.f32.mrb[73].mxu1 }
 0x66d   : > { %8039 = vpow2.f32 %v6645_v9  ;;  %v6646_v13 = vmul.f32 -1.442695, %v6010_v19  ;;  %v6850_v14 = vadd.f32 %v6849_v1, %v6848_v10  ;;  %v6890_v50 = vadd.f32 %v6889_v12, %v6888_v11  ;;  %v6851_v51 = vpop.f32.mrb[74].mxu0  ;;  %v6891_v15 = vpop.f32.mrb[74].mxu1 }
 0x66e   : > { %v6852_v18 = vpop.f32.mrb[75].mxu0  ;;  %v6892_v21 = vpop.f32.mrb[75].mxu1 }
 0x66f   : > { %8041 = vpow2.f32 %v6646_v13  ;;  %v5950_v22 = vadd.f32 %v6850_v14, %v9942_v20  ;;  %v6853_v23 = vadd.f32 %v6852_v18, %v6851_v51  ;;  %v6893_v41 = vadd.f32 %v6892_v21, %v6891_v15 }
 0x671   : > { %v6015_v24 = vadd.f32 %v6890_v50, %v5950_v22  ;;  %v5953_v25 = vadd.f32 %v6853_v23, %v9942_v20 }
 0x673   : > { %v6647_v46 = vmul.f32 -1.442695, %v6015_v24  ;;  %v6018_v26 = vadd.f32 %v6893_v41, %v5953_v25 }
 0x675   : > { %8043 = vpow2.f32 %v6647_v46  ;;  %v6648_v27 = vmul.f32 -1.442695, %v6018_v26 }
 0x677   : > { %v8040_v44 = vpop.eup %8039  ;;  %8045 = vpow2.f32 %v6648_v27 }
 0x678   : > { %v6049_v49 = vadd.f32 1.0, %v8040_v44 }
 0x679   : > { %v8042_v28 = vpop.eup %8041 }
 0x67a   : > { %8047 = vrcp.f32 %v6049_v49  ;;  %v6050_v29 = vadd.f32 1.0, %v8042_v28 }
 0x67c   : > { %8049 = vrcp.f32 %v6050_v29 }
 0x67f   : > { %v8044_v30 = vpop.eup %8043 }
 0x680   : > { %v6051_v31 = vadd.f32 1.0, %v8044_v30 }
 0x681   : > { %v8046_v32 = vpop.eup %8045 }
 0x682   : > { %8051 = vrcp.f32 %v6051_v31  ;;  %v6052_v20 = vadd.f32 1.0, %v8046_v32 }
 0x684   : > { %v8048_v33 = vpop.eup %8047  ;;  %8053 = vrcp.f32 %v6052_v20 }
 0x685   : > { %6073 = vst [vmem:[%s9952_s27 + $0x20] sm:$0xff] %v8048_v33 }
 0x686   : > { %v8050_v34 = vpop.eup %8049 }
 0x687   : > { %6074 = vst [vmem:[%s9952_s27 + $0x28] sm:$0xff] %v8050_v34 }
 0x68c   : > { %v8052_v35 = vpop.eup %8051 }
 0x68d   : > { %6075 = vst [vmem:[%s9952_s27 + $0x30] sm:$0xff] %v8052_v35 }
 0x68e   : > { %v8054_v36 = vpop.eup %8053 }
 0x68f   : > { %6076 = vst [vmem:[%s9952_s27 + $0x38] sm:$0xff] %v8054_v36 }
 0x690 PF: > { %s21_s17 = sadd.s32 1, %s8061_s17  }
 0x691   : > { %p18_p5 = scmp.ge.s32.totalorder %s21_s17, 4  }
 0x693   :  { %20 = sbr.rel (!%p18_p5) target bundleno = 1 (0x1), region = 96 }

</bundles_post_ra>
